<compile_context>
chip_gen: v7x
topology: tpu7x:2x2x1
jax: 0.10.0
libtpu: 0.0.40
codegen_flags: <defaults>
</compile_context>

<pallas_src>
import jax
import jax.numpy as jnp
from jax.experimental import pallas as pl
from jax.experimental.pallas import tpu as pltpu


# ---------------------------------------------------------------------------
# Pallas kernels
# ---------------------------------------------------------------------------
def _conv_relu_pool_kernel(p_ref, w_ref, b_ref, o_ref):
    """Fused 3x3 'same' conv (im2col matmul) + bias + ReLU + 2x2 max-pool.

    p_ref: (4, tm, K) bf16 patches; leading axis = position in the 2x2 window.
    w_ref: (K, Cout)  bf16 (VMEM-resident across the whole grid).
    b_ref: (1, Cout)  f32.
    o_ref: (tm, Cout) bf16 pooled output rows, ordered (b, i_out, j_out).
    """
    four, tm, K = p_ref.shape
    cout = w_ref.shape[1]

    # One long MXU matmul instead of 4 short ones: (4, tm, K) -> (4*tm, K) is a
    # pure leading-dim collapse (tm is a multiple of 16), layout-free.
    p = p_ref[...].reshape(four * tm, K)
    y = jnp.dot(p, w_ref[...], preferred_element_type=jnp.float32)
    y = y.reshape(four, tm, cout)

    # 2x2 max-pool across the window positions, then bias + ReLU once.
    m = jnp.maximum(jnp.maximum(y[0], y[1]), jnp.maximum(y[2], y[3]))
    o_ref[...] = jnp.maximum(m + b_ref[...], 0.0).astype(o_ref.dtype)


def _fc_fused_kernel(x_ref, w1_ref, b1_ref, w2_ref, b2_ref, o_ref):
    """logits = relu(x @ w1 + b1) @ w2 + b2 -- single invocation, all in VMEM."""
    h = jnp.dot(x_ref[...], w1_ref[...], preferred_element_type=jnp.float32)
    h = jnp.maximum(h + b1_ref[...], 0.0)
    # TODO(synk): Dropout(0.5) treated as identity (inference / eval semantics).
    logits = jnp.dot(h.astype(w2_ref.dtype), w2_ref[...],
                     preferred_element_type=jnp.float32)
    o_ref[...] = logits + b2_ref[...]


# ---------------------------------------------------------------------------
# Wrappers
# ---------------------------------------------------------------------------
def _im2col_pooled(x):
    """x: (B, H, W, C) -> (4, B*(H//2)*(W//2), 9*C) 'same'-padding 3x3 patches.

    Leading axis indexes the position inside each 2x2 pool window; rows are
    ordered (b, i_out, j_out); K is ordered (kh, kw, ci)."""
    B, H, W, C = x.shape
    xp = jnp.pad(x, ((0, 0), (1, 1), (1, 1), (0, 0)))
    cols = jnp.concatenate(
        [xp[:, kh:kh + H, kw:kw + W, :] for kh in range(3) for kw in range(3)],
        axis=-1)                                          # (B, H, W, 9C)
    cols = cols.reshape(B, H // 2, 2, W // 2, 2, 9 * C)
    cols = jnp.transpose(cols, (2, 4, 0, 1, 3, 5))        # (2, 2, B, H/2, W/2, 9C)
    return cols.reshape(4, B * (H // 2) * (W // 2), 9 * C)


def _pick_row_tile(m):
    """Two row blocks when cleanly possible (keeps both v7x TensorCores busy,
    costs only one extra ~0.35us step on single-TC chips), else one block."""
    half = m // 2
    if half >= 16 and half % 16 == 0 and m % half == 0:
        return half
    return m


def conv3x3_relu_pool(x, w, b):
    """x: (B, H, W, Cin) bf16; w: (9*Cin, Cout) bf16; b: (Cout,) f32.
    Returns maxpool2x2(relu(conv3x3(x) + b)) as (B, H//2, W//2, Cout) bf16."""
    B, H, W, Cin = x.shape
    K, Cout = w.shape
    assert K == 9 * Cin and H % 2 == 0 and W % 2 == 0
    Hout, Wout = H // 2, W // 2
    M = B * Hout * Wout

    patches = _im2col_pooled(x)                           # (4, M, K) bf16
    bias = b.reshape(1, Cout).astype(jnp.float32)

    tm = _pick_row_tile(M)
    grid = (M // tm,)

    out = pl.pallas_call(
        _conv_relu_pool_kernel,
        out_shape=jax.ShapeDtypeStruct((M, Cout), jnp.bfloat16),
        grid=grid,
        in_specs=[
            pl.BlockSpec((4, tm, K), lambda i: (0, i, 0)),
            pl.BlockSpec((K, Cout), lambda i: (0, 0)),    # weight stays resident
            pl.BlockSpec((1, Cout), lambda i: (0, 0)),
        ],
        out_specs=pl.BlockSpec((tm, Cout), lambda i: (i, 0)),
        compiler_params=pltpu.CompilerParams(
            dimension_semantics=("parallel",)),
    )(patches, w, bias)
    return out.reshape(B, Hout, Wout, Cout)


def fc_head(flat, w1, b1, w2, b2):
    """logits = relu(flat @ w1 + b1) @ w2 + b2 in a single Pallas call.

    flat: (M, 4096) bf16, w1: (4096, 512) bf16, w2: (512, 3) bf16."""
    M, K = flat.shape
    N1 = w1.shape[1]
    N2 = w2.shape[1]
    b1r = b1.reshape(1, N1).astype(jnp.float32)
    b2r = b2.reshape(1, N2).astype(jnp.float32)

    return pl.pallas_call(
        _fc_fused_kernel,
        out_shape=jax.ShapeDtypeStruct((M, N2), jnp.float32),
        grid=(1,),
        in_specs=[
            pl.BlockSpec((M, K), lambda i: (0, 0)),
            pl.BlockSpec((K, N1), lambda i: (0, 0)),      # 4 MiB bf16, resident
            pl.BlockSpec((1, N1), lambda i: (0, 0)),
            pl.BlockSpec((N1, N2), lambda i: (0, 0)),     # fc2 weight resident
            pl.BlockSpec((1, N2), lambda i: (0, 0)),
        ],
        out_specs=pl.BlockSpec((M, N2), lambda i: (0, 0)),
        compiler_params=pltpu.CompilerParams(
            dimension_semantics=("arbitrary",)),
    )(flat, w1, b1r, w2, b2r)


# ---------------------------------------------------------------------------
# Model: parameters + forward
# ---------------------------------------------------------------------------
def init_params(key):
    """Deterministic synthetic parameters matching the PyTorch module shapes,
    stored pre-transposed / pre-permuted for the kernel formulations (bf16)."""
    ks = jax.random.split(key, 10)

    def conv_w(k, cout, cin):
        # PyTorch layout (Cout, Cin, 3, 3) -> im2col layout (9*Cin, Cout);
        # row index = (kh*3 + kw)*Cin + ci, matching _im2col_pooled's K order.
        w = jax.random.normal(k, (cout, cin, 3, 3), jnp.float32) * 0.05
        w = jnp.transpose(w, (2, 3, 1, 0)).reshape(9 * cin, cout)
        return w.astype(jnp.bfloat16)

    # fc1: PyTorch weight is (512, 4096) with input features in NCHW order
    # (c*64 + h*8 + w).  Permute the rows once so that the NHWC conv3 output
    # can be flattened with a plain reshape (no runtime transpose).
    w1_pt = jax.random.normal(ks[6], (512, 64 * 8 * 8), jnp.float32) * 0.02
    w1 = jnp.transpose(
        w1_pt.reshape(512, 64, 8, 8),        # (out, c, h, w)
        (2, 3, 1, 0),                        # (h, w, c, out)  == NHWC flatten
    ).reshape(64 * 8 * 8, 512).astype(jnp.bfloat16)

    # fc2: PyTorch (3, 512) -> stored pre-transposed (512, 3).
    w2_pt = jax.random.normal(ks[8], (3, 512), jnp.float32) * 0.02
    w2 = jnp.transpose(w2_pt).astype(jnp.bfloat16)

    return {
        "conv1_w": conv_w(ks[0], 16, 3),
        "conv1_b": jax.random.normal(ks[1], (16,), jnp.float32) * 0.01,
        "conv2_w": conv_w(ks[2], 32, 16),
        "conv2_b": jax.random.normal(ks[3], (32,), jnp.float32) * 0.01,
        "conv3_w": conv_w(ks[4], 64, 32),
        "conv3_b": jax.random.normal(ks[5], (64,), jnp.float32) * 0.01,
        "fc1_w": w1,
        "fc1_b": jax.random.normal(ks[7], (512,), jnp.float32) * 0.01,
        "fc2_w": w2,
        "fc2_b": jax.random.normal(ks[9], (3,), jnp.float32) * 0.01,
    }


def iris_forward(params, x_nchw):
    # NCHW -> NHWC once; bf16 MXU operands (f32 accumulation inside kernels).
    x = jnp.transpose(x_nchw, (0, 2, 3, 1)).astype(jnp.bfloat16)   # (B, 64, 64, 3)

    for i in (1, 2, 3):
        # Fused conv3x3 + bias + ReLU + 2x2 maxpool, one Pallas kernel per layer.
        x = conv3x3_relu_pool(x, params[f"conv{i}_w"], params[f"conv{i}_b"])

    # (B, 8, 8, 64) NHWC -> (B, 4096): plain reshape.  fc1_w rows were permuted
    # at init to the NHWC flatten order, so no transpose is needed here.
    B = x.shape[0]
    flat = x.reshape(B, 8 * 8 * 64)

    # Fused fc1 + ReLU (+ dropout as identity) + fc2 in one Pallas call.
    return fc_head(flat, params["fc1_w"], params["fc1_b"],
                   params["fc2_w"], params["fc2_b"])               # (B, 3) f32


if __name__ == "__main__":
    key = jax.random.PRNGKey(0)
    k_params, k_x = jax.random.split(key)
    params = init_params(k_params)
    # Spatial size must be 64x64: three 2x2 pools -> 8x8, matching 64*8*8 flatten.
    x = jax.random.normal(k_x, (2, 3, 64, 64), jnp.float32)

    out = jax.jit(iris_forward)(params, x)
    out = jax.block_until_ready(out)
    assert out.shape == (2, 3) and out.dtype == jnp.float32
    print("KERNEL_OK")
</pallas_src>

<mosaic_0001>
module attributes {stable_mosaic.version = 11 : i64} {
  func.func @_conv_relu_pool_kernel(%arg0: i32, %arg1: memref<4x1024x27xbf16, #tpu.memory_space<vmem>>, %arg2: memref<27x16xbf16, #tpu.memory_space<vmem>>, %arg3: memref<1x16xf32, #tpu.memory_space<vmem>>, %arg4: memref<1024x16xbf16, #tpu.memory_space<vmem>>) attributes {dimension_semantics = [#tpu.dimension_semantics<parallel>], iteration_bounds = array<i64: 2>, scalar_prefetch = 0 : i64, scratch_operands = 0 : i64, tpu.core_type = #tpu.core_type<tc>, window_params = [{transform_indices = @transform_0, window_bounds = array<i64: 4, 1024, 27>}, {pipeline_mode = #tpu.pipeline_mode<synchronous>, transform_indices = @transform_1, window_bounds = array<i64: 27, 16>}, {pipeline_mode = #tpu.pipeline_mode<synchronous>, transform_indices = @transform_2, window_bounds = array<i64: 1, 16>}, {transform_indices = @transform_3, window_bounds = array<i64: 1024, 16>}]} {
    %c0 = arith.constant 0 : index
    %c0_0 = arith.constant 0 : index
    %c0_1 = arith.constant 0 : index
    %0 = vector.load %arg1[%c0, %c0_0, %c0_1] : memref<4x1024x27xbf16, #tpu.memory_space<vmem>>, vector<4x1024x27xbf16>
    %1 = vector.shape_cast %0 : vector<4x1024x27xbf16> to vector<4096x27xbf16>
    %c0_2 = arith.constant 0 : index
    %c0_3 = arith.constant 0 : index
    %2 = vector.load %arg2[%c0_2, %c0_3] : memref<27x16xbf16, #tpu.memory_space<vmem>>, vector<27x16xbf16>
    %cst = arith.constant dense<0.000000e+00> : vector<4096x16xf32>
    %3 = tpu.matmul %1, %2, %cst {dimension_numbers = #tpu.dot_dimension_numbers<[1], [0], [0], [1], [0, 0, 1, 1], [], []>} : vector<4096x27xbf16>, vector<27x16xbf16>, vector<4096x16xf32> -> vector<4096x16xf32>
    %4 = vector.shape_cast %3 : vector<4096x16xf32> to vector<4x1024x16xf32>
    %5 = vector.extract_strided_slice %4 {offsets = [0, 0, 0], sizes = [1, 1024, 16], strides = [1, 1, 1]} : vector<4x1024x16xf32> to vector<1x1024x16xf32>
    %6 = vector.shape_cast %5 : vector<1x1024x16xf32> to vector<1024x16xf32>
    %7 = vector.extract_strided_slice %4 {offsets = [1, 0, 0], sizes = [1, 1024, 16], strides = [1, 1, 1]} : vector<4x1024x16xf32> to vector<1x1024x16xf32>
    %8 = vector.shape_cast %7 : vector<1x1024x16xf32> to vector<1024x16xf32>
    %9 = arith.maximumf %6, %8 : vector<1024x16xf32>
    %10 = vector.extract_strided_slice %4 {offsets = [2, 0, 0], sizes = [1, 1024, 16], strides = [1, 1, 1]} : vector<4x1024x16xf32> to vector<1x1024x16xf32>
    %11 = vector.shape_cast %10 : vector<1x1024x16xf32> to vector<1024x16xf32>
    %12 = vector.extract_strided_slice %4 {offsets = [3, 0, 0], sizes = [1, 1024, 16], strides = [1, 1, 1]} : vector<4x1024x16xf32> to vector<1x1024x16xf32>
    %13 = vector.shape_cast %12 : vector<1x1024x16xf32> to vector<1024x16xf32>
    %14 = arith.maximumf %11, %13 : vector<1024x16xf32>
    %15 = arith.maximumf %9, %14 : vector<1024x16xf32>
    %c0_4 = arith.constant 0 : index
    %c0_5 = arith.constant 0 : index
    %16 = vector.load %arg3[%c0_4, %c0_5] : memref<1x16xf32, #tpu.memory_space<vmem>>, vector<1x16xf32>
    %17 = vector.broadcast %16 : vector<1x16xf32> to vector<1024x16xf32>
    %18 = arith.addf %15, %17 : vector<1024x16xf32>
    %cst_6 = arith.constant 0.000000e+00 : f32
    %19 = vector.broadcast %cst_6 : f32 to vector<1024x16xf32>
    %20 = arith.maximumf %18, %19 : vector<1024x16xf32>
    %21 = arith.truncf %20 : vector<1024x16xf32> to vector<1024x16xbf16>
    %c0_7 = arith.constant 0 : index
    %c0_8 = arith.constant 0 : index
    %22 = vector.load %arg4[%c0_7, %c0_8] : memref<1024x16xbf16, #tpu.memory_space<vmem>>, vector<1024x16xbf16>
    tpu.vector_store %arg4[%c0_7, %c0_8], %21 {strides = array<i32>} : memref<1024x16xbf16, #tpu.memory_space<vmem>>, vector<1024x16xbf16>,
    return
  }
  func.func @transform_0(%arg0: i32) -> (i32, i32, i32) {
    %c0_i32 = arith.constant 0 : i32
    %c0_i32_0 = arith.constant 0 : i32
    %c0_i32_1 = arith.constant 0 : i32
    return %c0_i32, %arg0, %c0_i32_0 : i32, i32, i32
  }
  func.func @transform_1(%arg0: i32) -> (i32, i32) {
    %c0_i32 = arith.constant 0 : i32
    %c0_i32_0 = arith.constant 0 : i32
    %c0_i32_1 = arith.constant 0 : i32
    return %c0_i32, %c0_i32_0 : i32, i32
  }
  func.func @transform_2(%arg0: i32) -> (i32, i32) {
    %c0_i32 = arith.constant 0 : i32
    %c0_i32_0 = arith.constant 0 : i32
    %c0_i32_1 = arith.constant 0 : i32
    return %c0_i32, %c0_i32_0 : i32, i32
  }
  func.func @transform_3(%arg0: i32) -> (i32, i32) {
    %c0_i32 = arith.constant 0 : i32
    %c0_i32_0 = arith.constant 0 : i32
    return %arg0, %c0_i32 : i32, i32
  }
}

module attributes {stable_mosaic.version = 11 : i64} {
  func.func @_conv_relu_pool_kernel(%arg0: i32, %arg1: memref<4x256x144xbf16, #tpu.memory_space<vmem>>, %arg2: memref<144x32xbf16, #tpu.memory_space<vmem>>, %arg3: memref<1x32xf32, #tpu.memory_space<vmem>>, %arg4: memref<256x32xbf16, #tpu.memory_space<vmem>>) attributes {dimension_semantics = [#tpu.dimension_semantics<parallel>], iteration_bounds = array<i64: 2>, scalar_prefetch = 0 : i64, scratch_operands = 0 : i64, tpu.core_type = #tpu.core_type<tc>, window_params = [{transform_indices = @transform_0, window_bounds = array<i64: 4, 256, 144>}, {pipeline_mode = #tpu.pipeline_mode<synchronous>, transform_indices = @transform_1, window_bounds = array<i64: 144, 32>}, {pipeline_mode = #tpu.pipeline_mode<synchronous>, transform_indices = @transform_2, window_bounds = array<i64: 1, 32>}, {transform_indices = @transform_3, window_bounds = array<i64: 256, 32>}]} {
    %c0 = arith.constant 0 : index
    %c0_0 = arith.constant 0 : index
    %c0_1 = arith.constant 0 : index
    %0 = vector.load %arg1[%c0, %c0_0, %c0_1] : memref<4x256x144xbf16, #tpu.memory_space<vmem>>, vector<4x256x144xbf16>
    %1 = vector.shape_cast %0 : vector<4x256x144xbf16> to vector<1024x144xbf16>
    %c0_2 = arith.constant 0 : index
    %c0_3 = arith.constant 0 : index
    %2 = vector.load %arg2[%c0_2, %c0_3] : memref<144x32xbf16, #tpu.memory_space<vmem>>, vector<144x32xbf16>
    %cst = arith.constant dense<0.000000e+00> : vector<1024x32xf32>
    %3 = tpu.matmul %1, %2, %cst {dimension_numbers = #tpu.dot_dimension_numbers<[1], [0], [0], [1], [0, 0, 1, 1], [], []>} : vector<1024x144xbf16>, vector<144x32xbf16>, vector<1024x32xf32> -> vector<1024x32xf32>
    %4 = vector.shape_cast %3 : vector<1024x32xf32> to vector<4x256x32xf32>
    %5 = vector.extract_strided_slice %4 {offsets = [0, 0, 0], sizes = [1, 256, 32], strides = [1, 1, 1]} : vector<4x256x32xf32> to vector<1x256x32xf32>
    %6 = vector.shape_cast %5 : vector<1x256x32xf32> to vector<256x32xf32>
    %7 = vector.extract_strided_slice %4 {offsets = [1, 0, 0], sizes = [1, 256, 32], strides = [1, 1, 1]} : vector<4x256x32xf32> to vector<1x256x32xf32>
    %8 = vector.shape_cast %7 : vector<1x256x32xf32> to vector<256x32xf32>
    %9 = arith.maximumf %6, %8 : vector<256x32xf32>
    %10 = vector.extract_strided_slice %4 {offsets = [2, 0, 0], sizes = [1, 256, 32], strides = [1, 1, 1]} : vector<4x256x32xf32> to vector<1x256x32xf32>
    %11 = vector.shape_cast %10 : vector<1x256x32xf32> to vector<256x32xf32>
    %12 = vector.extract_strided_slice %4 {offsets = [3, 0, 0], sizes = [1, 256, 32], strides = [1, 1, 1]} : vector<4x256x32xf32> to vector<1x256x32xf32>
    %13 = vector.shape_cast %12 : vector<1x256x32xf32> to vector<256x32xf32>
    %14 = arith.maximumf %11, %13 : vector<256x32xf32>
    %15 = arith.maximumf %9, %14 : vector<256x32xf32>
    %c0_4 = arith.constant 0 : index
    %c0_5 = arith.constant 0 : index
    %16 = vector.load %arg3[%c0_4, %c0_5] : memref<1x32xf32, #tpu.memory_space<vmem>>, vector<1x32xf32>
    %17 = vector.broadcast %16 : vector<1x32xf32> to vector<256x32xf32>
    %18 = arith.addf %15, %17 : vector<256x32xf32>
    %cst_6 = arith.constant 0.000000e+00 : f32
    %19 = vector.broadcast %cst_6 : f32 to vector<256x32xf32>
    %20 = arith.maximumf %18, %19 : vector<256x32xf32>
    %21 = arith.truncf %20 : vector<256x32xf32> to vector<256x32xbf16>
    %c0_7 = arith.constant 0 : index
    %c0_8 = arith.constant 0 : index
    %22 = vector.load %arg4[%c0_7, %c0_8] : memref<256x32xbf16, #tpu.memory_space<vmem>>, vector<256x32xbf16>
    tpu.vector_store %arg4[%c0_7, %c0_8], %21 {strides = array<i32>} : memref<256x32xbf16, #tpu.memory_space<vmem>>, vector<256x32xbf16>,
    return
  }
  func.func @transform_0(%arg0: i32) -> (i32, i32, i32) {
    %c0_i32 = arith.constant 0 : i32
    %c0_i32_0 = arith.constant 0 : i32
    %c0_i32_1 = arith.constant 0 : i32
    return %c0_i32, %arg0, %c0_i32_0 : i32, i32, i32
  }
  func.func @transform_1(%arg0: i32) -> (i32, i32) {
    %c0_i32 = arith.constant 0 : i32
    %c0_i32_0 = arith.constant 0 : i32
    %c0_i32_1 = arith.constant 0 : i32
    return %c0_i32, %c0_i32_0 : i32, i32
  }
  func.func @transform_2(%arg0: i32) -> (i32, i32) {
    %c0_i32 = arith.constant 0 : i32
    %c0_i32_0 = arith.constant 0 : i32
    %c0_i32_1 = arith.constant 0 : i32
    return %c0_i32, %c0_i32_0 : i32, i32
  }
  func.func @transform_3(%arg0: i32) -> (i32, i32) {
    %c0_i32 = arith.constant 0 : i32
    %c0_i32_0 = arith.constant 0 : i32
    return %arg0, %c0_i32 : i32, i32
  }
}

module attributes {stable_mosaic.version = 11 : i64} {
  func.func @_conv_relu_pool_kernel(%arg0: i32, %arg1: memref<4x64x288xbf16, #tpu.memory_space<vmem>>, %arg2: memref<288x64xbf16, #tpu.memory_space<vmem>>, %arg3: memref<1x64xf32, #tpu.memory_space<vmem>>, %arg4: memref<64x64xbf16, #tpu.memory_space<vmem>>) attributes {dimension_semantics = [#tpu.dimension_semantics<parallel>], iteration_bounds = array<i64: 2>, scalar_prefetch = 0 : i64, scratch_operands = 0 : i64, tpu.core_type = #tpu.core_type<tc>, window_params = [{transform_indices = @transform_0, window_bounds = array<i64: 4, 64, 288>}, {pipeline_mode = #tpu.pipeline_mode<synchronous>, transform_indices = @transform_1, window_bounds = array<i64: 288, 64>}, {pipeline_mode = #tpu.pipeline_mode<synchronous>, transform_indices = @transform_2, window_bounds = array<i64: 1, 64>}, {transform_indices = @transform_3, window_bounds = array<i64: 64, 64>}]} {
    %c0 = arith.constant 0 : index
    %c0_0 = arith.constant 0 : index
    %c0_1 = arith.constant 0 : index
    %0 = vector.load %arg1[%c0, %c0_0, %c0_1] : memref<4x64x288xbf16, #tpu.memory_space<vmem>>, vector<4x64x288xbf16>
    %1 = vector.shape_cast %0 : vector<4x64x288xbf16> to vector<256x288xbf16>
    %c0_2 = arith.constant 0 : index
    %c0_3 = arith.constant 0 : index
    %2 = vector.load %arg2[%c0_2, %c0_3] : memref<288x64xbf16, #tpu.memory_space<vmem>>, vector<288x64xbf16>
    %cst = arith.constant dense<0.000000e+00> : vector<256x64xf32>
    %3 = tpu.matmul %1, %2, %cst {dimension_numbers = #tpu.dot_dimension_numbers<[1], [0], [0], [1], [0, 0, 1, 1], [], []>} : vector<256x288xbf16>, vector<288x64xbf16>, vector<256x64xf32> -> vector<256x64xf32>
    %4 = vector.shape_cast %3 : vector<256x64xf32> to vector<4x64x64xf32>
    %5 = vector.extract_strided_slice %4 {offsets = [0, 0, 0], sizes = [1, 64, 64], strides = [1, 1, 1]} : vector<4x64x64xf32> to vector<1x64x64xf32>
    %6 = vector.shape_cast %5 : vector<1x64x64xf32> to vector<64x64xf32>
    %7 = vector.extract_strided_slice %4 {offsets = [1, 0, 0], sizes = [1, 64, 64], strides = [1, 1, 1]} : vector<4x64x64xf32> to vector<1x64x64xf32>
    %8 = vector.shape_cast %7 : vector<1x64x64xf32> to vector<64x64xf32>
    %9 = arith.maximumf %6, %8 : vector<64x64xf32>
    %10 = vector.extract_strided_slice %4 {offsets = [2, 0, 0], sizes = [1, 64, 64], strides = [1, 1, 1]} : vector<4x64x64xf32> to vector<1x64x64xf32>
    %11 = vector.shape_cast %10 : vector<1x64x64xf32> to vector<64x64xf32>
    %12 = vector.extract_strided_slice %4 {offsets = [3, 0, 0], sizes = [1, 64, 64], strides = [1, 1, 1]} : vector<4x64x64xf32> to vector<1x64x64xf32>
    %13 = vector.shape_cast %12 : vector<1x64x64xf32> to vector<64x64xf32>
    %14 = arith.maximumf %11, %13 : vector<64x64xf32>
    %15 = arith.maximumf %9, %14 : vector<64x64xf32>
    %c0_4 = arith.constant 0 : index
    %c0_5 = arith.constant 0 : index
    %16 = vector.load %arg3[%c0_4, %c0_5] : memref<1x64xf32, #tpu.memory_space<vmem>>, vector<1x64xf32>
    %17 = vector.broadcast %16 : vector<1x64xf32> to vector<64x64xf32>
    %18 = arith.addf %15, %17 : vector<64x64xf32>
    %cst_6 = arith.constant 0.000000e+00 : f32
    %19 = vector.broadcast %cst_6 : f32 to vector<64x64xf32>
    %20 = arith.maximumf %18, %19 : vector<64x64xf32>
    %21 = arith.truncf %20 : vector<64x64xf32> to vector<64x64xbf16>
    %c0_7 = arith.constant 0 : index
    %c0_8 = arith.constant 0 : index
    %22 = vector.load %arg4[%c0_7, %c0_8] : memref<64x64xbf16, #tpu.memory_space<vmem>>, vector<64x64xbf16>
    tpu.vector_store %arg4[%c0_7, %c0_8], %21 {strides = array<i32>} : memref<64x64xbf16, #tpu.memory_space<vmem>>, vector<64x64xbf16>,
    return
  }
  func.func @transform_0(%arg0: i32) -> (i32, i32, i32) {
    %c0_i32 = arith.constant 0 : i32
    %c0_i32_0 = arith.constant 0 : i32
    %c0_i32_1 = arith.constant 0 : i32
    return %c0_i32, %arg0, %c0_i32_0 : i32, i32, i32
  }
  func.func @transform_1(%arg0: i32) -> (i32, i32) {
    %c0_i32 = arith.constant 0 : i32
    %c0_i32_0 = arith.constant 0 : i32
    %c0_i32_1 = arith.constant 0 : i32
    return %c0_i32, %c0_i32_0 : i32, i32
  }
  func.func @transform_2(%arg0: i32) -> (i32, i32) {
    %c0_i32 = arith.constant 0 : i32
    %c0_i32_0 = arith.constant 0 : i32
    %c0_i32_1 = arith.constant 0 : i32
    return %c0_i32, %c0_i32_0 : i32, i32
  }
  func.func @transform_3(%arg0: i32) -> (i32, i32) {
    %c0_i32 = arith.constant 0 : i32
    %c0_i32_0 = arith.constant 0 : i32
    return %arg0, %c0_i32 : i32, i32
  }
}

module attributes {stable_mosaic.version = 11 : i64} {
  func.func @_fc_fused_kernel(%arg0: i32, %arg1: memref<2x4096xbf16, #tpu.memory_space<vmem>>, %arg2: memref<4096x512xbf16, #tpu.memory_space<vmem>>, %arg3: memref<1x512xf32, #tpu.memory_space<vmem>>, %arg4: memref<512x3xbf16, #tpu.memory_space<vmem>>, %arg5: memref<1x3xf32, #tpu.memory_space<vmem>>, %arg6: memref<2x3xf32, #tpu.memory_space<vmem>>) attributes {dimension_semantics = [#tpu.dimension_semantics<arbitrary>], iteration_bounds = array<i64: 1>, scalar_prefetch = 0 : i64, scratch_operands = 0 : i64, tpu.core_type = #tpu.core_type<tc>, window_params = [{pipeline_mode = #tpu.pipeline_mode<synchronous>, transform_indices = @transform_0, window_bounds = array<i64: 2, 4096>}, {pipeline_mode = #tpu.pipeline_mode<synchronous>, transform_indices = @transform_1, window_bounds = array<i64: 4096, 512>}, {pipeline_mode = #tpu.pipeline_mode<synchronous>, transform_indices = @transform_2, window_bounds = array<i64: 1, 512>}, {pipeline_mode = #tpu.pipeline_mode<synchronous>, transform_indices = @transform_3, window_bounds = array<i64: 512, 3>}, {pipeline_mode = #tpu.pipeline_mode<synchronous>, transform_indices = @transform_4, window_bounds = array<i64: 1, 3>}, {pipeline_mode = #tpu.pipeline_mode<synchronous>, transform_indices = @transform_5, window_bounds = array<i64: 2, 3>}]} {
    %c0 = arith.constant 0 : index
    %c0_0 = arith.constant 0 : index
    %0 = vector.load %arg1[%c0, %c0_0] : memref<2x4096xbf16, #tpu.memory_space<vmem>>, vector<2x4096xbf16>
    %c0_1 = arith.constant 0 : index
    %c0_2 = arith.constant 0 : index
    %1 = vector.load %arg2[%c0_1, %c0_2] : memref<4096x512xbf16, #tpu.memory_space<vmem>>, vector<4096x512xbf16>
    %cst = arith.constant dense<0.000000e+00> : vector<2x512xf32>
    %2 = tpu.matmul %0, %1, %cst {dimension_numbers = #tpu.dot_dimension_numbers<[1], [0], [0], [1], [0, 0, 1, 1], [], []>} : vector<2x4096xbf16>, vector<4096x512xbf16>, vector<2x512xf32> -> vector<2x512xf32>
    %c0_3 = arith.constant 0 : index
    %c0_4 = arith.constant 0 : index
    %3 = vector.load %arg3[%c0_3, %c0_4] : memref<1x512xf32, #tpu.memory_space<vmem>>, vector<1x512xf32>
    %4 = vector.broadcast %3 : vector<1x512xf32> to vector<2x512xf32>
    %5 = arith.addf %2, %4 : vector<2x512xf32>
    %cst_5 = arith.constant 0.000000e+00 : f32
    %6 = vector.broadcast %cst_5 : f32 to vector<2x512xf32>
    %7 = arith.maximumf %5, %6 : vector<2x512xf32>
    %8 = arith.truncf %7 : vector<2x512xf32> to vector<2x512xbf16>
    %c0_6 = arith.constant 0 : index
    %c0_7 = arith.constant 0 : index
    %9 = vector.load %arg4[%c0_6, %c0_7] : memref<512x3xbf16, #tpu.memory_space<vmem>>, vector<512x3xbf16>
    %cst_8 = arith.constant dense<0.000000e+00> : vector<2x3xf32>
    %10 = tpu.matmul %8, %9, %cst_8 {dimension_numbers = #tpu.dot_dimension_numbers<[1], [0], [0], [1], [0, 0, 1, 1], [], []>} : vector<2x512xbf16>, vector<512x3xbf16>, vector<2x3xf32> -> vector<2x3xf32>
    %c0_9 = arith.constant 0 : index
    %c0_10 = arith.constant 0 : index
    %11 = vector.load %arg5[%c0_9, %c0_10] : memref<1x3xf32, #tpu.memory_space<vmem>>, vector<1x3xf32>
    %12 = vector.broadcast %11 : vector<1x3xf32> to vector<2x3xf32>
    %13 = arith.addf %10, %12 : vector<2x3xf32>
    %c0_11 = arith.constant 0 : index
    %c0_12 = arith.constant 0 : index
    %14 = vector.load %arg6[%c0_11, %c0_12] : memref<2x3xf32, #tpu.memory_space<vmem>>, vector<2x3xf32>
    tpu.vector_store %arg6[%c0_11, %c0_12], %13 {strides = array<i32>} : memref<2x3xf32, #tpu.memory_space<vmem>>, vector<2x3xf32>,
    return
  }
  func.func @transform_0(%arg0: i32) -> (i32, i32) {
    %c0_i32 = arith.constant 0 : i32
    %c0_i32_0 = arith.constant 0 : i32
    %c0_i32_1 = arith.constant 0 : i32
    return %c0_i32, %c0_i32_0 : i32, i32
  }
  func.func @transform_1(%arg0: i32) -> (i32, i32) {
    %c0_i32 = arith.constant 0 : i32
    %c0_i32_0 = arith.constant 0 : i32
    %c0_i32_1 = arith.constant 0 : i32
    return %c0_i32, %c0_i32_0 : i32, i32
  }
  func.func @transform_2(%arg0: i32) -> (i32, i32) {
    %c0_i32 = arith.constant 0 : i32
    %c0_i32_0 = arith.constant 0 : i32
    %c0_i32_1 = arith.constant 0 : i32
    return %c0_i32, %c0_i32_0 : i32, i32
  }
  func.func @transform_3(%arg0: i32) -> (i32, i32) {
    %c0_i32 = arith.constant 0 : i32
    %c0_i32_0 = arith.constant 0 : i32
    %c0_i32_1 = arith.constant 0 : i32
    return %c0_i32, %c0_i32_0 : i32, i32
  }
  func.func @transform_4(%arg0: i32) -> (i32, i32) {
    %c0_i32 = arith.constant 0 : i32
    %c0_i32_0 = arith.constant 0 : i32
    %c0_i32_1 = arith.constant 0 : i32
    return %c0_i32, %c0_i32_0 : i32, i32
  }
  func.func @transform_5(%arg0: i32) -> (i32, i32) {
    %c0_i32 = arith.constant 0 : i32
    %c0_i32_0 = arith.constant 0 : i32
    %c0_i32_1 = arith.constant 0 : i32
    return %c0_i32, %c0_i32_0 : i32, i32
  }
}

</mosaic_0001>

<bundles_post_ra>
// kernel: iris_forward.4
= control target key start
LH: loop header
LB: loop body
LE: loop exit
PB: predicated region body
PF: predicated region fallthrough
CT: control target
= control target key end

     0   :  { %s12253_s12 = smov 0   ;;  %s12255_s13 = smov 0   ;;  %s14513_s0 = inlined_call_operand.vmem [shape: bf16[4,2048,27], index: 0, kind: input, shape index: {}]   ;;  %s14514_s1 = inlined_call_operand.vmem [shape: bf16[27,16], index: 1, kind: input, shape index: {}]   ;;  %s14515_s2 = inlined_call_operand.vmem [shape: f32[1,16], index: 2, kind: input, shape index: {}]   ;;  %s14516_s3 = inlined_call_operand.vmem [shape: bf16[2048,16], index: 3, kind: output, shape index: {}]  }
   0x1   :  { %s12257_s14 = smov 0  }
   0x2 LB: > { %s10360_s15 = sadd.s32 4294967295, %s12230_s14   ;;  %s12270_s16 = sadd.s32 1, %s12230_s14   ;;  %s12230_s14 = sphi %s12257_s14, %s14941_s14   ;;  %s12226_s13 = sphi %s12255_s13, %s14940_s13   ;;  %s12222_s12 = sphi %s12253_s12, %s14939_s12  }
   0x3   : > { %s17_s17 = ssub.s32 %s12230_s14, %s12270_s16  ;;  %s20_s18 = sadd.s32 1, %s12226_s13 }
   0x4   : > { %p18_p0 = scmp.eq.s32.totalorder %s17_s17, 0  ;;  %p27_p1 = scmp.ne.s32.totalorder %s12226_s13, %s12222_s12 }
   0x5   : > { %p28_p2 = scmp.eq.s32.totalorder %s12230_s14, 0  ;;  %p10363_p4 = scmp.ge.s32.totalorder %s12230_s14, 2 }
   0x6   : > { %s12279_s19 = scalar_select %p18_p0, %s12226_s13, %s20_s18  }
   0x7   : > { %p29_p3 = por %p28_p2, %p27_p1  ;;  %127 = sbr.rel (%p10363_p4) target bundleno = 146 (0x92), region = 24 }
   0xe   : > { %130 = sbr.rel (!%p29_p3) target bundleno = 146 (0x92), region = 28  ;;  %s132_s20 = sand.u32 (%p29_p3), 1, %s12226_s13  }
   0xf   : > { %s11016_s21 = sshll.u32 (%p29_p3), %s12230_s14, 9  ;;  %s10364_s22 = sshll.u32 (%p29_p3), %s132_s20, 11 }
  0x10   : > { %s12287_s25 = scalar_lea.vmem (%p29_p3), %s14513_s0, %s11016_s21  ;;  %s12292_s26 = scalar_lea.vmem (%p29_p3), [#allocation2], %s10364_s22 }
  0x11   : > { %v153_v0 = vld [vmem:[%s12287_s25] sm:$0xff] (%p29_p3)   ;;  %v157_v1 = vld [vmem:[%s12287_s25 + $0x8] sm:$0xff] (%p29_p3)   ;;  %v161_v2 = vld [vmem:[%s12287_s25 + $0x10] sm:$0xff] (%p29_p3)  }
  0x12   : > { %154 = vst [vmem:[%s12292_s26] sm:$0xff] (%p29_p3), %v153_v0   ;;  %158 = vst [vmem:[%s12292_s26 + $0x8] sm:$0xff] (%p29_p3), %v157_v1   ;;  %v165_v3 = vld [vmem:[%s12287_s25 + $0x18] sm:$0xff] (%p29_p3)   ;;  %v169_v4 = vld [vmem:[%s12287_s25 + $0x20] sm:$0xff] (%p29_p3)  }
  0x13   : > { %162 = vst [vmem:[%s12292_s26 + $0x10] sm:$0xff] (%p29_p3), %v161_v2   ;;  %v173_v5 = vld [vmem:[%s12287_s25 + $0x28] sm:$0xff] (%p29_p3)   ;;  %166 = vst [vmem:[%s12292_s26 + $0x18] sm:$0xff] (%p29_p3), %v165_v3   ;;  %v177_v6 = vld [vmem:[%s12287_s25 + $0x30] sm:$0xff] (%p29_p3)  }
  0x14   : > { %170 = vst [vmem:[%s12292_s26 + $0x20] sm:$0xff] (%p29_p3), %v169_v4   ;;  %174 = vst [vmem:[%s12292_s26 + $0x28] sm:$0xff] (%p29_p3), %v173_v5   ;;  %v181_v7 = vld [vmem:[%s12287_s25 + $0x38] sm:$0xff] (%p29_p3)   ;;  %v185_v8 = vld [vmem:[%s12287_s25 + $0x40] sm:$0xff] (%p29_p3)  }
  0x15   : > { %178 = vst [vmem:[%s12292_s26 + $0x30] sm:$0xff] %v177_v6   ;;  %182 = vst [vmem:[%s12292_s26 + $0x38] sm:$0xff] %v181_v7   ;;  %v189_v9 = vld [vmem:[%s12287_s25 + $0x48] sm:$0xff]   ;;  %v193_v10 = vld [vmem:[%s12287_s25 + $0x50] sm:$0xff]  }
  0x16   : > { %186 = vst [vmem:[%s12292_s26 + $0x40] sm:$0xff] %v185_v8   ;;  %v197_v11 = vld [vmem:[%s12287_s25 + $0x58] sm:$0xff]   ;;  %190 = vst [vmem:[%s12292_s26 + $0x48] sm:$0xff] %v189_v9   ;;  %v201_v12 = vld [vmem:[%s12287_s25 + $0x60] sm:$0xff]  }
  0x17   : > { %194 = vst [vmem:[%s12292_s26 + $0x50] sm:$0xff] %v193_v10   ;;  %198 = vst [vmem:[%s12292_s26 + $0x58] sm:$0xff] %v197_v11   ;;  %v205_v13 = vld [vmem:[%s12287_s25 + $0x68] sm:$0xff]   ;;  %v209_v14 = vld [vmem:[%s12287_s25 + $0x70] sm:$0xff]  }
  0x18   : > { %202 = vst [vmem:[%s12292_s26 + $0x60] sm:$0xff] %v201_v12   ;;  %206 = vst [vmem:[%s12292_s26 + $0x68] sm:$0xff] %v205_v13   ;;  %v213_v15 = vld [vmem:[%s12287_s25 + $0x78] sm:$0xff]   ;;  %v217_v16 = vld [vmem:[%s12287_s25 + $0x80] sm:$0xff]  }
  0x19   : > { %210 = vst [vmem:[%s12292_s26 + $0x70] sm:$0xff] %v209_v14   ;;  %v221_v17 = vld [vmem:[%s12287_s25 + $0x88] sm:$0xff]   ;;  %214 = vst [vmem:[%s12292_s26 + $0x78] sm:$0xff] %v213_v15   ;;  %v225_v18 = vld [vmem:[%s12287_s25 + $0x90] sm:$0xff]  }
  0x1a   : > { %218 = vst [vmem:[%s12292_s26 + $0x80] sm:$0xff] %v217_v16   ;;  %222 = vst [vmem:[%s12292_s26 + $0x88] sm:$0xff] %v221_v17   ;;  %v229_v19 = vld [vmem:[%s12287_s25 + $0x98] sm:$0xff]   ;;  %v233_v20 = vld [vmem:[%s12287_s25 + $0xa0] sm:$0xff]  }
  0x1b   : > { %226 = vst [vmem:[%s12292_s26 + $0x90] sm:$0xff] %v225_v18   ;;  %230 = vst [vmem:[%s12292_s26 + $0x98] sm:$0xff] %v229_v19   ;;  %v237_v21 = vld [vmem:[%s12287_s25 + $0xa8] sm:$0xff]   ;;  %v241_v22 = vld [vmem:[%s12287_s25 + $0xb0] sm:$0xff]  }
  0x1c   : > { %234 = vst [vmem:[%s12292_s26 + $0xa0] sm:$0xff] %v233_v20   ;;  %v245_v23 = vld [vmem:[%s12287_s25 + $0xb8] sm:$0xff]   ;;  %238 = vst [vmem:[%s12292_s26 + $0xa8] sm:$0xff] %v237_v21   ;;  %v249_v24 = vld [vmem:[%s12287_s25 + $0xc0] sm:$0xff]  }
  0x1d   : > { %242 = vst [vmem:[%s12292_s26 + $0xb0] sm:$0xff] %v241_v22   ;;  %246 = vst [vmem:[%s12292_s26 + $0xb8] sm:$0xff] %v245_v23   ;;  %v253_v25 = vld [vmem:[%s12287_s25 + $0xc8] sm:$0xff]   ;;  %v257_v26 = vld [vmem:[%s12287_s25 + $0xd0] sm:$0xff]  }
  0x1e   : > { %250 = vst [vmem:[%s12292_s26 + $0xc0] sm:$0xff] %v249_v24   ;;  %254 = vst [vmem:[%s12292_s26 + $0xc8] sm:$0xff] %v253_v25   ;;  %v261_v27 = vld [vmem:[%s12287_s25 + $0xd8] sm:$0xff]   ;;  %v265_v28 = vld [vmem:[%s12287_s25 + $0xe0] sm:$0xff]  }
  0x1f   : > { %258 = vst [vmem:[%s12292_s26 + $0xd0] sm:$0xff] %v257_v26   ;;  %v269_v29 = vld [vmem:[%s12287_s25 + $0xe8] sm:$0xff]   ;;  %262 = vst [vmem:[%s12292_s26 + $0xd8] sm:$0xff] %v261_v27   ;;  %v273_v30 = vld [vmem:[%s12287_s25 + $0xf0] sm:$0xff]  }
  0x20   : > { %266 = vst [vmem:[%s12292_s26 + $0xe0] sm:$0xff] %v265_v28   ;;  %270 = vst [vmem:[%s12292_s26 + $0xe8] sm:$0xff] %v269_v29   ;;  %v277_v31 = vld [vmem:[%s12287_s25 + $0xf8] sm:$0xff]   ;;  %v281_v32 = vld [vmem:[%s12287_s25 + $0x100] sm:$0xff]  }
  0x21   : > { %274 = vst [vmem:[%s12292_s26 + $0xf0] sm:$0xff] %v273_v30   ;;  %278 = vst [vmem:[%s12292_s26 + $0xf8] sm:$0xff] %v277_v31   ;;  %v285_v33 = vld [vmem:[%s12287_s25 + $0x108] sm:$0xff]   ;;  %v289_v34 = vld [vmem:[%s12287_s25 + $0x110] sm:$0xff]  }
  0x22   : > { %282 = vst [vmem:[%s12292_s26 + $0x100] sm:$0xff] %v281_v32   ;;  %v293_v35 = vld [vmem:[%s12287_s25 + $0x118] sm:$0xff]   ;;  %286 = vst [vmem:[%s12292_s26 + $0x108] sm:$0xff] %v285_v33   ;;  %v297_v36 = vld [vmem:[%s12287_s25 + $0x120] sm:$0xff]  }
  0x23   : > { %290 = vst [vmem:[%s12292_s26 + $0x110] sm:$0xff] %v289_v34   ;;  %294 = vst [vmem:[%s12292_s26 + $0x118] sm:$0xff] %v293_v35   ;;  %v301_v37 = vld [vmem:[%s12287_s25 + $0x128] sm:$0xff]   ;;  %v305_v38 = vld [vmem:[%s12287_s25 + $0x130] sm:$0xff]  }
  0x24   : > { %298 = vst [vmem:[%s12292_s26 + $0x120] sm:$0xff] %v297_v36   ;;  %302 = vst [vmem:[%s12292_s26 + $0x128] sm:$0xff] %v301_v37   ;;  %v309_v39 = vld [vmem:[%s12287_s25 + $0x138] sm:$0xff]   ;;  %v313_v40 = vld [vmem:[%s12287_s25 + $0x140] sm:$0xff]  }
  0x25   : > { %306 = vst [vmem:[%s12292_s26 + $0x130] sm:$0xff] %v305_v38   ;;  %v317_v41 = vld [vmem:[%s12287_s25 + $0x148] sm:$0xff]   ;;  %310 = vst [vmem:[%s12292_s26 + $0x138] sm:$0xff] %v309_v39   ;;  %v321_v42 = vld [vmem:[%s12287_s25 + $0x150] sm:$0xff]  }
  0x26   : > { %314 = vst [vmem:[%s12292_s26 + $0x140] sm:$0xff] %v313_v40   ;;  %318 = vst [vmem:[%s12292_s26 + $0x148] sm:$0xff] %v317_v41   ;;  %v325_v43 = vld [vmem:[%s12287_s25 + $0x158] sm:$0xff]   ;;  %v329_v44 = vld [vmem:[%s12287_s25 + $0x160] sm:$0xff]  }
  0x27   : > { %322 = vst [vmem:[%s12292_s26 + $0x150] sm:$0xff] %v321_v42   ;;  %326 = vst [vmem:[%s12292_s26 + $0x158] sm:$0xff] %v325_v43   ;;  %v333_v45 = vld [vmem:[%s12287_s25 + $0x168] sm:$0xff]   ;;  %v337_v46 = vld [vmem:[%s12287_s25 + $0x170] sm:$0xff]  }
  0x28   : > { %330 = vst [vmem:[%s12292_s26 + $0x160] sm:$0xff] %v329_v44   ;;  %v341_v47 = vld [vmem:[%s12287_s25 + $0x178] sm:$0xff]   ;;  %334 = vst [vmem:[%s12292_s26 + $0x168] sm:$0xff] %v333_v45   ;;  %v345_v48 = vld [vmem:[%s12287_s25 + $0x180] sm:$0xff]  }
  0x29   : > { %338 = vst [vmem:[%s12292_s26 + $0x170] sm:$0xff] %v337_v46   ;;  %342 = vst [vmem:[%s12292_s26 + $0x178] sm:$0xff] %v341_v47   ;;  %v349_v49 = vld [vmem:[%s12287_s25 + $0x188] sm:$0xff]   ;;  %v353_v50 = vld [vmem:[%s12287_s25 + $0x190] sm:$0xff]  }
  0x2a   : > { %346 = vst [vmem:[%s12292_s26 + $0x180] sm:$0xff] %v345_v48   ;;  %350 = vst [vmem:[%s12292_s26 + $0x188] sm:$0xff] %v349_v49   ;;  %v357_v51 = vld [vmem:[%s12287_s25 + $0x198] sm:$0xff]   ;;  %v361_v52 = vld [vmem:[%s12287_s25 + $0x1a0] sm:$0xff]  }
  0x2b   : > { %354 = vst [vmem:[%s12292_s26 + $0x190] sm:$0xff] %v353_v50   ;;  %v365_v53 = vld [vmem:[%s12287_s25 + $0x1a8] sm:$0xff]   ;;  %358 = vst [vmem:[%s12292_s26 + $0x198] sm:$0xff] %v357_v51   ;;  %v369_v54 = vld [vmem:[%s12287_s25 + $0x1b0] sm:$0xff]  }
  0x2c   : > { %362 = vst [vmem:[%s12292_s26 + $0x1a0] sm:$0xff] %v361_v52   ;;  %366 = vst [vmem:[%s12292_s26 + $0x1a8] sm:$0xff] %v365_v53   ;;  %v373_v55 = vld [vmem:[%s12287_s25 + $0x1b8] sm:$0xff]   ;;  %v377_v56 = vld [vmem:[%s12287_s25 + $0x1c0] sm:$0xff]  }
  0x2d   : > { %370 = vst [vmem:[%s12292_s26 + $0x1b0] sm:$0xff] %v369_v54   ;;  %374 = vst [vmem:[%s12292_s26 + $0x1b8] sm:$0xff] %v373_v55   ;;  %v381_v57 = vld [vmem:[%s12287_s25 + $0x1c8] sm:$0xff]   ;;  %v385_v58 = vld [vmem:[%s12287_s25 + $0x1d0] sm:$0xff]  }
  0x2e   : > { %378 = vst [vmem:[%s12292_s26 + $0x1c0] sm:$0xff] %v377_v56   ;;  %v389_v59 = vld [vmem:[%s12287_s25 + $0x1d8] sm:$0xff]   ;;  %382 = vst [vmem:[%s12292_s26 + $0x1c8] sm:$0xff] %v381_v57   ;;  %v393_v60 = vld [vmem:[%s12287_s25 + $0x1e0] sm:$0xff]  }
  0x2f   : > { %386 = vst [vmem:[%s12292_s26 + $0x1d0] sm:$0xff] %v385_v58   ;;  %390 = vst [vmem:[%s12292_s26 + $0x1d8] sm:$0xff] %v389_v59   ;;  %v397_v61 = vld [vmem:[%s12287_s25 + $0x1e8] sm:$0xff]   ;;  %v401_v62 = vld [vmem:[%s12287_s25 + $0x1f0] sm:$0xff]  }
  0x30   : > { %394 = vst [vmem:[%s12292_s26 + $0x1e0] sm:$0xff] %v393_v60   ;;  %398 = vst [vmem:[%s12292_s26 + $0x1e8] sm:$0xff] %v397_v61   ;;  %v405_v63 = vld [vmem:[%s12287_s25 + $0x1f8] sm:$0xff]   ;;  %v409_v0 = vld [vmem:[%s12287_s25 + $0x400] sm:$0xff]  }
  0x31   : > { %402 = vst [vmem:[%s12292_s26 + $0x1f0] sm:$0xff] %v401_v62   ;;  %v413_v1 = vld [vmem:[%s12287_s25 + $0x408] sm:$0xff]   ;;  %406 = vst [vmem:[%s12292_s26 + $0x1f8] sm:$0xff] %v405_v63   ;;  %v417_v2 = vld [vmem:[%s12287_s25 + $0x410] sm:$0xff]  }
  0x32   : > { %410 = vst [vmem:[%s12292_s26 + $0x200] sm:$0xff] %v409_v0   ;;  %414 = vst [vmem:[%s12292_s26 + $0x208] sm:$0xff] %v413_v1   ;;  %v421_v3 = vld [vmem:[%s12287_s25 + $0x418] sm:$0xff]   ;;  %v425_v4 = vld [vmem:[%s12287_s25 + $0x420] sm:$0xff]  }
  0x33   : > { %418 = vst [vmem:[%s12292_s26 + $0x210] sm:$0xff] %v417_v2   ;;  %422 = vst [vmem:[%s12292_s26 + $0x218] sm:$0xff] %v421_v3   ;;  %v429_v5 = vld [vmem:[%s12287_s25 + $0x428] sm:$0xff]   ;;  %v433_v6 = vld [vmem:[%s12287_s25 + $0x430] sm:$0xff]  }
  0x34   : > { %426 = vst [vmem:[%s12292_s26 + $0x220] sm:$0xff] %v425_v4   ;;  %v437_v7 = vld [vmem:[%s12287_s25 + $0x438] sm:$0xff]   ;;  %430 = vst [vmem:[%s12292_s26 + $0x228] sm:$0xff] %v429_v5   ;;  %v441_v8 = vld [vmem:[%s12287_s25 + $0x440] sm:$0xff]  }
  0x35   : > { %434 = vst [vmem:[%s12292_s26 + $0x230] sm:$0xff] %v433_v6   ;;  %438 = vst [vmem:[%s12292_s26 + $0x238] sm:$0xff] %v437_v7   ;;  %v445_v9 = vld [vmem:[%s12287_s25 + $0x448] sm:$0xff]   ;;  %v449_v10 = vld [vmem:[%s12287_s25 + $0x450] sm:$0xff]  }
  0x36   : > { %442 = vst [vmem:[%s12292_s26 + $0x240] sm:$0xff] %v441_v8   ;;  %446 = vst [vmem:[%s12292_s26 + $0x248] sm:$0xff] %v445_v9   ;;  %v453_v11 = vld [vmem:[%s12287_s25 + $0x458] sm:$0xff]   ;;  %v457_v12 = vld [vmem:[%s12287_s25 + $0x460] sm:$0xff]  }
  0x37   : > { %450 = vst [vmem:[%s12292_s26 + $0x250] sm:$0xff] %v449_v10   ;;  %v461_v13 = vld [vmem:[%s12287_s25 + $0x468] sm:$0xff]   ;;  %454 = vst [vmem:[%s12292_s26 + $0x258] sm:$0xff] %v453_v11   ;;  %v465_v14 = vld [vmem:[%s12287_s25 + $0x470] sm:$0xff]  }
  0x38   : > { %458 = vst [vmem:[%s12292_s26 + $0x260] sm:$0xff] %v457_v12   ;;  %462 = vst [vmem:[%s12292_s26 + $0x268] sm:$0xff] %v461_v13   ;;  %v469_v15 = vld [vmem:[%s12287_s25 + $0x478] sm:$0xff]   ;;  %v473_v16 = vld [vmem:[%s12287_s25 + $0x480] sm:$0xff]  }
  0x39   : > { %466 = vst [vmem:[%s12292_s26 + $0x270] sm:$0xff] %v465_v14   ;;  %470 = vst [vmem:[%s12292_s26 + $0x278] sm:$0xff] %v469_v15   ;;  %v477_v17 = vld [vmem:[%s12287_s25 + $0x488] sm:$0xff]   ;;  %v481_v18 = vld [vmem:[%s12287_s25 + $0x490] sm:$0xff]  }
  0x3a   : > { %474 = vst [vmem:[%s12292_s26 + $0x280] sm:$0xff] %v473_v16   ;;  %v485_v19 = vld [vmem:[%s12287_s25 + $0x498] sm:$0xff]   ;;  %478 = vst [vmem:[%s12292_s26 + $0x288] sm:$0xff] %v477_v17   ;;  %v489_v20 = vld [vmem:[%s12287_s25 + $0x4a0] sm:$0xff]  }
  0x3b   : > { %482 = vst [vmem:[%s12292_s26 + $0x290] sm:$0xff] %v481_v18   ;;  %486 = vst [vmem:[%s12292_s26 + $0x298] sm:$0xff] %v485_v19   ;;  %v493_v21 = vld [vmem:[%s12287_s25 + $0x4a8] sm:$0xff]   ;;  %v497_v22 = vld [vmem:[%s12287_s25 + $0x4b0] sm:$0xff]  }
  0x3c   : > { %490 = vst [vmem:[%s12292_s26 + $0x2a0] sm:$0xff] %v489_v20   ;;  %494 = vst [vmem:[%s12292_s26 + $0x2a8] sm:$0xff] %v493_v21   ;;  %v501_v23 = vld [vmem:[%s12287_s25 + $0x4b8] sm:$0xff]   ;;  %v505_v24 = vld [vmem:[%s12287_s25 + $0x4c0] sm:$0xff]  }
  0x3d   : > { %498 = vst [vmem:[%s12292_s26 + $0x2b0] sm:$0xff] %v497_v22   ;;  %v509_v25 = vld [vmem:[%s12287_s25 + $0x4c8] sm:$0xff]   ;;  %502 = vst [vmem:[%s12292_s26 + $0x2b8] sm:$0xff] %v501_v23   ;;  %v513_v26 = vld [vmem:[%s12287_s25 + $0x4d0] sm:$0xff]  }
  0x3e   : > { %506 = vst [vmem:[%s12292_s26 + $0x2c0] sm:$0xff] %v505_v24   ;;  %510 = vst [vmem:[%s12292_s26 + $0x2c8] sm:$0xff] %v509_v25   ;;  %v517_v27 = vld [vmem:[%s12287_s25 + $0x4d8] sm:$0xff]   ;;  %v521_v28 = vld [vmem:[%s12287_s25 + $0x4e0] sm:$0xff]  }
  0x3f   : > { %514 = vst [vmem:[%s12292_s26 + $0x2d0] sm:$0xff] %v513_v26   ;;  %518 = vst [vmem:[%s12292_s26 + $0x2d8] sm:$0xff] %v517_v27   ;;  %v525_v29 = vld [vmem:[%s12287_s25 + $0x4e8] sm:$0xff]   ;;  %v529_v30 = vld [vmem:[%s12287_s25 + $0x4f0] sm:$0xff]  }
  0x40   : > { %522 = vst [vmem:[%s12292_s26 + $0x2e0] sm:$0xff] %v521_v28   ;;  %v533_v31 = vld [vmem:[%s12287_s25 + $0x4f8] sm:$0xff]   ;;  %526 = vst [vmem:[%s12292_s26 + $0x2e8] sm:$0xff] %v525_v29   ;;  %v537_v32 = vld [vmem:[%s12287_s25 + $0x500] sm:$0xff]  }
  0x41   : > { %530 = vst [vmem:[%s12292_s26 + $0x2f0] sm:$0xff] %v529_v30   ;;  %534 = vst [vmem:[%s12292_s26 + $0x2f8] sm:$0xff] %v533_v31   ;;  %v541_v33 = vld [vmem:[%s12287_s25 + $0x508] sm:$0xff]   ;;  %v545_v34 = vld [vmem:[%s12287_s25 + $0x510] sm:$0xff]  }
  0x42   : > { %538 = vst [vmem:[%s12292_s26 + $0x300] sm:$0xff] %v537_v32   ;;  %542 = vst [vmem:[%s12292_s26 + $0x308] sm:$0xff] %v541_v33   ;;  %v549_v35 = vld [vmem:[%s12287_s25 + $0x518] sm:$0xff]   ;;  %v553_v36 = vld [vmem:[%s12287_s25 + $0x520] sm:$0xff]  }
  0x43   : > { %546 = vst [vmem:[%s12292_s26 + $0x310] sm:$0xff] %v545_v34   ;;  %v557_v37 = vld [vmem:[%s12287_s25 + $0x528] sm:$0xff]   ;;  %550 = vst [vmem:[%s12292_s26 + $0x318] sm:$0xff] %v549_v35   ;;  %v561_v38 = vld [vmem:[%s12287_s25 + $0x530] sm:$0xff]  }
  0x44   : > { %554 = vst [vmem:[%s12292_s26 + $0x320] sm:$0xff] %v553_v36   ;;  %558 = vst [vmem:[%s12292_s26 + $0x328] sm:$0xff] %v557_v37   ;;  %v565_v39 = vld [vmem:[%s12287_s25 + $0x538] sm:$0xff]   ;;  %v569_v40 = vld [vmem:[%s12287_s25 + $0x540] sm:$0xff]  }
  0x45   : > { %562 = vst [vmem:[%s12292_s26 + $0x330] sm:$0xff] %v561_v38   ;;  %566 = vst [vmem:[%s12292_s26 + $0x338] sm:$0xff] %v565_v39   ;;  %v573_v41 = vld [vmem:[%s12287_s25 + $0x548] sm:$0xff]   ;;  %v577_v42 = vld [vmem:[%s12287_s25 + $0x550] sm:$0xff]  }
  0x46   : > { %570 = vst [vmem:[%s12292_s26 + $0x340] sm:$0xff] %v569_v40   ;;  %v581_v43 = vld [vmem:[%s12287_s25 + $0x558] sm:$0xff]   ;;  %574 = vst [vmem:[%s12292_s26 + $0x348] sm:$0xff] %v573_v41   ;;  %v585_v44 = vld [vmem:[%s12287_s25 + $0x560] sm:$0xff]  }
  0x47   : > { %578 = vst [vmem:[%s12292_s26 + $0x350] sm:$0xff] %v577_v42   ;;  %582 = vst [vmem:[%s12292_s26 + $0x358] sm:$0xff] %v581_v43   ;;  %v589_v45 = vld [vmem:[%s12287_s25 + $0x568] sm:$0xff]   ;;  %v593_v46 = vld [vmem:[%s12287_s25 + $0x570] sm:$0xff]  }
  0x48   : > { %586 = vst [vmem:[%s12292_s26 + $0x360] sm:$0xff] %v585_v44   ;;  %590 = vst [vmem:[%s12292_s26 + $0x368] sm:$0xff] %v589_v45   ;;  %v597_v47 = vld [vmem:[%s12287_s25 + $0x578] sm:$0xff]   ;;  %v601_v48 = vld [vmem:[%s12287_s25 + $0x580] sm:$0xff]  }
  0x49   : > { %594 = vst [vmem:[%s12292_s26 + $0x370] sm:$0xff] %v593_v46   ;;  %v605_v49 = vld [vmem:[%s12287_s25 + $0x588] sm:$0xff]   ;;  %598 = vst [vmem:[%s12292_s26 + $0x378] sm:$0xff] %v597_v47   ;;  %v609_v50 = vld [vmem:[%s12287_s25 + $0x590] sm:$0xff]  }
  0x4a   : > { %602 = vst [vmem:[%s12292_s26 + $0x380] sm:$0xff] %v601_v48   ;;  %606 = vst [vmem:[%s12292_s26 + $0x388] sm:$0xff] %v605_v49   ;;  %v613_v51 = vld [vmem:[%s12287_s25 + $0x598] sm:$0xff]   ;;  %v617_v52 = vld [vmem:[%s12287_s25 + $0x5a0] sm:$0xff]  }
  0x4b   : > { %610 = vst [vmem:[%s12292_s26 + $0x390] sm:$0xff] %v609_v50   ;;  %614 = vst [vmem:[%s12292_s26 + $0x398] sm:$0xff] %v613_v51   ;;  %v621_v53 = vld [vmem:[%s12287_s25 + $0x5a8] sm:$0xff]   ;;  %v625_v54 = vld [vmem:[%s12287_s25 + $0x5b0] sm:$0xff]  }
  0x4c   : > { %618 = vst [vmem:[%s12292_s26 + $0x3a0] sm:$0xff] %v617_v52   ;;  %v629_v55 = vld [vmem:[%s12287_s25 + $0x5b8] sm:$0xff]   ;;  %622 = vst [vmem:[%s12292_s26 + $0x3a8] sm:$0xff] %v621_v53   ;;  %v633_v56 = vld [vmem:[%s12287_s25 + $0x5c0] sm:$0xff]  }
  0x4d   : > { %626 = vst [vmem:[%s12292_s26 + $0x3b0] sm:$0xff] %v625_v54   ;;  %630 = vst [vmem:[%s12292_s26 + $0x3b8] sm:$0xff] %v629_v55   ;;  %v637_v57 = vld [vmem:[%s12287_s25 + $0x5c8] sm:$0xff]   ;;  %v641_v58 = vld [vmem:[%s12287_s25 + $0x5d0] sm:$0xff]  }
  0x4e   : > { %634 = vst [vmem:[%s12292_s26 + $0x3c0] sm:$0xff] %v633_v56   ;;  %638 = vst [vmem:[%s12292_s26 + $0x3c8] sm:$0xff] %v637_v57   ;;  %v645_v59 = vld [vmem:[%s12287_s25 + $0x5d8] sm:$0xff]   ;;  %v649_v60 = vld [vmem:[%s12287_s25 + $0x5e0] sm:$0xff]  }
  0x4f   : > { %642 = vst [vmem:[%s12292_s26 + $0x3d0] sm:$0xff] %v641_v58   ;;  %v653_v61 = vld [vmem:[%s12287_s25 + $0x5e8] sm:$0xff]   ;;  %646 = vst [vmem:[%s12292_s26 + $0x3d8] sm:$0xff] %v645_v59   ;;  %v657_v62 = vld [vmem:[%s12287_s25 + $0x5f0] sm:$0xff]  }
  0x50   : > { %650 = vst [vmem:[%s12292_s26 + $0x3e0] sm:$0xff] %v649_v60   ;;  %654 = vst [vmem:[%s12292_s26 + $0x3e8] sm:$0xff] %v653_v61   ;;  %v661_v63 = vld [vmem:[%s12287_s25 + $0x5f8] sm:$0xff]   ;;  %v665_v0 = vld [vmem:[%s12287_s25 + $0x800] sm:$0xff]  }
  0x51   : > { %658 = vst [vmem:[%s12292_s26 + $0x3f0] sm:$0xff] %v657_v62   ;;  %662 = vst [vmem:[%s12292_s26 + $0x3f8] sm:$0xff] %v661_v63   ;;  %v669_v1 = vld [vmem:[%s12287_s25 + $0x808] sm:$0xff]   ;;  %v673_v2 = vld [vmem:[%s12287_s25 + $0x810] sm:$0xff]  }
  0x52   : > { %666 = vst [vmem:[%s12292_s26 + $0x400] sm:$0xff] %v665_v0   ;;  %v677_v3 = vld [vmem:[%s12287_s25 + $0x818] sm:$0xff]   ;;  %670 = vst [vmem:[%s12292_s26 + $0x408] sm:$0xff] %v669_v1   ;;  %v681_v4 = vld [vmem:[%s12287_s25 + $0x820] sm:$0xff]  }
  0x53   : > { %674 = vst [vmem:[%s12292_s26 + $0x410] sm:$0xff] %v673_v2   ;;  %678 = vst [vmem:[%s12292_s26 + $0x418] sm:$0xff] %v677_v3   ;;  %v685_v5 = vld [vmem:[%s12287_s25 + $0x828] sm:$0xff]   ;;  %v689_v6 = vld [vmem:[%s12287_s25 + $0x830] sm:$0xff]  }
  0x54   : > { %682 = vst [vmem:[%s12292_s26 + $0x420] sm:$0xff] %v681_v4   ;;  %686 = vst [vmem:[%s12292_s26 + $0x428] sm:$0xff] %v685_v5   ;;  %v693_v7 = vld [vmem:[%s12287_s25 + $0x838] sm:$0xff]   ;;  %v697_v8 = vld [vmem:[%s12287_s25 + $0x840] sm:$0xff]  }
  0x55   : > { %690 = vst [vmem:[%s12292_s26 + $0x430] sm:$0xff] %v689_v6   ;;  %v701_v9 = vld [vmem:[%s12287_s25 + $0x848] sm:$0xff]   ;;  %694 = vst [vmem:[%s12292_s26 + $0x438] sm:$0xff] %v693_v7   ;;  %v705_v10 = vld [vmem:[%s12287_s25 + $0x850] sm:$0xff]  }
  0x56   : > { %698 = vst [vmem:[%s12292_s26 + $0x440] sm:$0xff] %v697_v8   ;;  %702 = vst [vmem:[%s12292_s26 + $0x448] sm:$0xff] %v701_v9   ;;  %v709_v11 = vld [vmem:[%s12287_s25 + $0x858] sm:$0xff]   ;;  %v713_v12 = vld [vmem:[%s12287_s25 + $0x860] sm:$0xff]  }
  0x57   : > { %706 = vst [vmem:[%s12292_s26 + $0x450] sm:$0xff] %v705_v10   ;;  %710 = vst [vmem:[%s12292_s26 + $0x458] sm:$0xff] %v709_v11   ;;  %v717_v13 = vld [vmem:[%s12287_s25 + $0x868] sm:$0xff]   ;;  %v721_v14 = vld [vmem:[%s12287_s25 + $0x870] sm:$0xff]  }
  0x58   : > { %714 = vst [vmem:[%s12292_s26 + $0x460] sm:$0xff] %v713_v12   ;;  %v725_v15 = vld [vmem:[%s12287_s25 + $0x878] sm:$0xff]   ;;  %718 = vst [vmem:[%s12292_s26 + $0x468] sm:$0xff] %v717_v13   ;;  %v729_v16 = vld [vmem:[%s12287_s25 + $0x880] sm:$0xff]  }
  0x59   : > { %722 = vst [vmem:[%s12292_s26 + $0x470] sm:$0xff] %v721_v14   ;;  %726 = vst [vmem:[%s12292_s26 + $0x478] sm:$0xff] %v725_v15   ;;  %v733_v17 = vld [vmem:[%s12287_s25 + $0x888] sm:$0xff]   ;;  %v737_v18 = vld [vmem:[%s12287_s25 + $0x890] sm:$0xff]  }
  0x5a   : > { %730 = vst [vmem:[%s12292_s26 + $0x480] sm:$0xff] %v729_v16   ;;  %734 = vst [vmem:[%s12292_s26 + $0x488] sm:$0xff] %v733_v17   ;;  %v741_v19 = vld [vmem:[%s12287_s25 + $0x898] sm:$0xff]   ;;  %v745_v20 = vld [vmem:[%s12287_s25 + $0x8a0] sm:$0xff]  }
  0x5b   : > { %738 = vst [vmem:[%s12292_s26 + $0x490] sm:$0xff] %v737_v18   ;;  %v749_v21 = vld [vmem:[%s12287_s25 + $0x8a8] sm:$0xff]   ;;  %742 = vst [vmem:[%s12292_s26 + $0x498] sm:$0xff] %v741_v19   ;;  %v753_v22 = vld [vmem:[%s12287_s25 + $0x8b0] sm:$0xff]  }
  0x5c   : > { %746 = vst [vmem:[%s12292_s26 + $0x4a0] sm:$0xff] %v745_v20   ;;  %750 = vst [vmem:[%s12292_s26 + $0x4a8] sm:$0xff] %v749_v21   ;;  %v757_v23 = vld [vmem:[%s12287_s25 + $0x8b8] sm:$0xff]   ;;  %v761_v24 = vld [vmem:[%s12287_s25 + $0x8c0] sm:$0xff]  }
  0x5d   : > { %754 = vst [vmem:[%s12292_s26 + $0x4b0] sm:$0xff] %v753_v22   ;;  %758 = vst [vmem:[%s12292_s26 + $0x4b8] sm:$0xff] %v757_v23   ;;  %v765_v25 = vld [vmem:[%s12287_s25 + $0x8c8] sm:$0xff]   ;;  %v769_v26 = vld [vmem:[%s12287_s25 + $0x8d0] sm:$0xff]  }
  0x5e   : > { %762 = vst [vmem:[%s12292_s26 + $0x4c0] sm:$0xff] %v761_v24   ;;  %v773_v27 = vld [vmem:[%s12287_s25 + $0x8d8] sm:$0xff]   ;;  %766 = vst [vmem:[%s12292_s26 + $0x4c8] sm:$0xff] %v765_v25   ;;  %v777_v28 = vld [vmem:[%s12287_s25 + $0x8e0] sm:$0xff]  }
  0x5f   : > { %770 = vst [vmem:[%s12292_s26 + $0x4d0] sm:$0xff] %v769_v26   ;;  %774 = vst [vmem:[%s12292_s26 + $0x4d8] sm:$0xff] %v773_v27   ;;  %v781_v29 = vld [vmem:[%s12287_s25 + $0x8e8] sm:$0xff]   ;;  %v785_v30 = vld [vmem:[%s12287_s25 + $0x8f0] sm:$0xff]  }
  0x60   : > { %778 = vst [vmem:[%s12292_s26 + $0x4e0] sm:$0xff] %v777_v28   ;;  %782 = vst [vmem:[%s12292_s26 + $0x4e8] sm:$0xff] %v781_v29   ;;  %v789_v31 = vld [vmem:[%s12287_s25 + $0x8f8] sm:$0xff]   ;;  %v793_v32 = vld [vmem:[%s12287_s25 + $0x900] sm:$0xff]  }
  0x61   : > { %786 = vst [vmem:[%s12292_s26 + $0x4f0] sm:$0xff] %v785_v30   ;;  %v797_v33 = vld [vmem:[%s12287_s25 + $0x908] sm:$0xff]   ;;  %790 = vst [vmem:[%s12292_s26 + $0x4f8] sm:$0xff] %v789_v31   ;;  %v801_v34 = vld [vmem:[%s12287_s25 + $0x910] sm:$0xff]  }
  0x62   : > { %794 = vst [vmem:[%s12292_s26 + $0x500] sm:$0xff] %v793_v32   ;;  %798 = vst [vmem:[%s12292_s26 + $0x508] sm:$0xff] %v797_v33   ;;  %v805_v35 = vld [vmem:[%s12287_s25 + $0x918] sm:$0xff]   ;;  %v809_v36 = vld [vmem:[%s12287_s25 + $0x920] sm:$0xff]  }
  0x63   : > { %802 = vst [vmem:[%s12292_s26 + $0x510] sm:$0xff] %v801_v34   ;;  %806 = vst [vmem:[%s12292_s26 + $0x518] sm:$0xff] %v805_v35   ;;  %v813_v37 = vld [vmem:[%s12287_s25 + $0x928] sm:$0xff]   ;;  %v817_v38 = vld [vmem:[%s12287_s25 + $0x930] sm:$0xff]  }
  0x64   : > { %810 = vst [vmem:[%s12292_s26 + $0x520] sm:$0xff] %v809_v36   ;;  %v821_v39 = vld [vmem:[%s12287_s25 + $0x938] sm:$0xff]   ;;  %814 = vst [vmem:[%s12292_s26 + $0x528] sm:$0xff] %v813_v37   ;;  %v825_v40 = vld [vmem:[%s12287_s25 + $0x940] sm:$0xff]  }
  0x65   : > { %818 = vst [vmem:[%s12292_s26 + $0x530] sm:$0xff] %v817_v38   ;;  %822 = vst [vmem:[%s12292_s26 + $0x538] sm:$0xff] %v821_v39   ;;  %v829_v41 = vld [vmem:[%s12287_s25 + $0x948] sm:$0xff]   ;;  %v833_v42 = vld [vmem:[%s12287_s25 + $0x950] sm:$0xff]  }
  0x66   : > { %826 = vst [vmem:[%s12292_s26 + $0x540] sm:$0xff] %v825_v40   ;;  %830 = vst [vmem:[%s12292_s26 + $0x548] sm:$0xff] %v829_v41   ;;  %v837_v43 = vld [vmem:[%s12287_s25 + $0x958] sm:$0xff]   ;;  %v841_v44 = vld [vmem:[%s12287_s25 + $0x960] sm:$0xff]  }
  0x67   : > { %834 = vst [vmem:[%s12292_s26 + $0x550] sm:$0xff] %v833_v42   ;;  %v845_v45 = vld [vmem:[%s12287_s25 + $0x968] sm:$0xff]   ;;  %838 = vst [vmem:[%s12292_s26 + $0x558] sm:$0xff] %v837_v43   ;;  %v849_v46 = vld [vmem:[%s12287_s25 + $0x970] sm:$0xff]  }
  0x68   : > { %842 = vst [vmem:[%s12292_s26 + $0x560] sm:$0xff] %v841_v44   ;;  %846 = vst [vmem:[%s12292_s26 + $0x568] sm:$0xff] %v845_v45   ;;  %v853_v47 = vld [vmem:[%s12287_s25 + $0x978] sm:$0xff]   ;;  %v857_v48 = vld [vmem:[%s12287_s25 + $0x980] sm:$0xff]  }
  0x69   : > { %850 = vst [vmem:[%s12292_s26 + $0x570] sm:$0xff] %v849_v46   ;;  %854 = vst [vmem:[%s12292_s26 + $0x578] sm:$0xff] %v853_v47   ;;  %v861_v49 = vld [vmem:[%s12287_s25 + $0x988] sm:$0xff]   ;;  %v865_v50 = vld [vmem:[%s12287_s25 + $0x990] sm:$0xff]  }
  0x6a   : > { %858 = vst [vmem:[%s12292_s26 + $0x580] sm:$0xff] %v857_v48   ;;  %v869_v51 = vld [vmem:[%s12287_s25 + $0x998] sm:$0xff]   ;;  %862 = vst [vmem:[%s12292_s26 + $0x588] sm:$0xff] %v861_v49   ;;  %v873_v52 = vld [vmem:[%s12287_s25 + $0x9a0] sm:$0xff]  }
  0x6b   : > { %866 = vst [vmem:[%s12292_s26 + $0x590] sm:$0xff] %v865_v50   ;;  %870 = vst [vmem:[%s12292_s26 + $0x598] sm:$0xff] %v869_v51   ;;  %v877_v53 = vld [vmem:[%s12287_s25 + $0x9a8] sm:$0xff]   ;;  %v881_v54 = vld [vmem:[%s12287_s25 + $0x9b0] sm:$0xff]  }
  0x6c   : > { %874 = vst [vmem:[%s12292_s26 + $0x5a0] sm:$0xff] %v873_v52   ;;  %878 = vst [vmem:[%s12292_s26 + $0x5a8] sm:$0xff] %v877_v53   ;;  %v885_v55 = vld [vmem:[%s12287_s25 + $0x9b8] sm:$0xff]   ;;  %v889_v56 = vld [vmem:[%s12287_s25 + $0x9c0] sm:$0xff]  }
  0x6d   : > { %882 = vst [vmem:[%s12292_s26 + $0x5b0] sm:$0xff] %v881_v54   ;;  %v893_v57 = vld [vmem:[%s12287_s25 + $0x9c8] sm:$0xff]   ;;  %886 = vst [vmem:[%s12292_s26 + $0x5b8] sm:$0xff] %v885_v55   ;;  %v897_v58 = vld [vmem:[%s12287_s25 + $0x9d0] sm:$0xff]  }
  0x6e   : > { %890 = vst [vmem:[%s12292_s26 + $0x5c0] sm:$0xff] %v889_v56   ;;  %894 = vst [vmem:[%s12292_s26 + $0x5c8] sm:$0xff] %v893_v57   ;;  %v901_v59 = vld [vmem:[%s12287_s25 + $0x9d8] sm:$0xff]   ;;  %v905_v60 = vld [vmem:[%s12287_s25 + $0x9e0] sm:$0xff]  }
  0x6f   : > { %898 = vst [vmem:[%s12292_s26 + $0x5d0] sm:$0xff] %v897_v58   ;;  %902 = vst [vmem:[%s12292_s26 + $0x5d8] sm:$0xff] %v901_v59   ;;  %v909_v61 = vld [vmem:[%s12287_s25 + $0x9e8] sm:$0xff]   ;;  %v913_v62 = vld [vmem:[%s12287_s25 + $0x9f0] sm:$0xff]  }
  0x70   : > { %906 = vst [vmem:[%s12292_s26 + $0x5e0] sm:$0xff] %v905_v60   ;;  %v917_v63 = vld [vmem:[%s12287_s25 + $0x9f8] sm:$0xff]   ;;  %910 = vst [vmem:[%s12292_s26 + $0x5e8] sm:$0xff] %v909_v61   ;;  %v921_v0 = vld [vmem:[%s12287_s25 + $0xc00] sm:$0xff]  }
  0x71   : > { %914 = vst [vmem:[%s12292_s26 + $0x5f0] sm:$0xff] %v913_v62   ;;  %918 = vst [vmem:[%s12292_s26 + $0x5f8] sm:$0xff] %v917_v63   ;;  %v925_v1 = vld [vmem:[%s12287_s25 + $0xc08] sm:$0xff]   ;;  %v929_v2 = vld [vmem:[%s12287_s25 + $0xc10] sm:$0xff]  }
  0x72   : > { %922 = vst [vmem:[%s12292_s26 + $0x600] sm:$0xff] %v921_v0   ;;  %926 = vst [vmem:[%s12292_s26 + $0x608] sm:$0xff] %v925_v1   ;;  %v933_v3 = vld [vmem:[%s12287_s25 + $0xc18] sm:$0xff]   ;;  %v937_v4 = vld [vmem:[%s12287_s25 + $0xc20] sm:$0xff]  }
  0x73   : > { %930 = vst [vmem:[%s12292_s26 + $0x610] sm:$0xff] %v929_v2   ;;  %v941_v5 = vld [vmem:[%s12287_s25 + $0xc28] sm:$0xff]   ;;  %934 = vst [vmem:[%s12292_s26 + $0x618] sm:$0xff] %v933_v3   ;;  %v945_v6 = vld [vmem:[%s12287_s25 + $0xc30] sm:$0xff]  }
  0x74   : > { %938 = vst [vmem:[%s12292_s26 + $0x620] sm:$0xff] %v937_v4   ;;  %942 = vst [vmem:[%s12292_s26 + $0x628] sm:$0xff] %v941_v5   ;;  %v949_v7 = vld [vmem:[%s12287_s25 + $0xc38] sm:$0xff]   ;;  %v953_v8 = vld [vmem:[%s12287_s25 + $0xc40] sm:$0xff]  }
  0x75   : > { %946 = vst [vmem:[%s12292_s26 + $0x630] sm:$0xff] %v945_v6   ;;  %950 = vst [vmem:[%s12292_s26 + $0x638] sm:$0xff] %v949_v7   ;;  %v957_v9 = vld [vmem:[%s12287_s25 + $0xc48] sm:$0xff]   ;;  %v961_v10 = vld [vmem:[%s12287_s25 + $0xc50] sm:$0xff]  }
  0x76   : > { %954 = vst [vmem:[%s12292_s26 + $0x640] sm:$0xff] %v953_v8   ;;  %v965_v11 = vld [vmem:[%s12287_s25 + $0xc58] sm:$0xff]   ;;  %958 = vst [vmem:[%s12292_s26 + $0x648] sm:$0xff] %v957_v9   ;;  %v969_v12 = vld [vmem:[%s12287_s25 + $0xc60] sm:$0xff]  }
  0x77   : > { %962 = vst [vmem:[%s12292_s26 + $0x650] sm:$0xff] %v961_v10   ;;  %966 = vst [vmem:[%s12292_s26 + $0x658] sm:$0xff] %v965_v11   ;;  %v973_v13 = vld [vmem:[%s12287_s25 + $0xc68] sm:$0xff]   ;;  %v977_v14 = vld [vmem:[%s12287_s25 + $0xc70] sm:$0xff]  }
  0x78   : > { %970 = vst [vmem:[%s12292_s26 + $0x660] sm:$0xff] %v969_v12   ;;  %974 = vst [vmem:[%s12292_s26 + $0x668] sm:$0xff] %v973_v13   ;;  %v981_v15 = vld [vmem:[%s12287_s25 + $0xc78] sm:$0xff]   ;;  %v985_v16 = vld [vmem:[%s12287_s25 + $0xc80] sm:$0xff]  }
  0x79   : > { %978 = vst [vmem:[%s12292_s26 + $0x670] sm:$0xff] %v977_v14   ;;  %v989_v17 = vld [vmem:[%s12287_s25 + $0xc88] sm:$0xff]   ;;  %982 = vst [vmem:[%s12292_s26 + $0x678] sm:$0xff] %v981_v15   ;;  %v993_v18 = vld [vmem:[%s12287_s25 + $0xc90] sm:$0xff]  }
  0x7a   : > { %986 = vst [vmem:[%s12292_s26 + $0x680] sm:$0xff] %v985_v16   ;;  %990 = vst [vmem:[%s12292_s26 + $0x688] sm:$0xff] %v989_v17   ;;  %v997_v19 = vld [vmem:[%s12287_s25 + $0xc98] sm:$0xff]   ;;  %v1001_v20 = vld [vmem:[%s12287_s25 + $0xca0] sm:$0xff]  }
  0x7b   : > { %994 = vst [vmem:[%s12292_s26 + $0x690] sm:$0xff] %v993_v18   ;;  %998 = vst [vmem:[%s12292_s26 + $0x698] sm:$0xff] %v997_v19   ;;  %v1005_v21 = vld [vmem:[%s12287_s25 + $0xca8] sm:$0xff]   ;;  %v1009_v22 = vld [vmem:[%s12287_s25 + $0xcb0] sm:$0xff]  }
  0x7c   : > { %1002 = vst [vmem:[%s12292_s26 + $0x6a0] sm:$0xff] %v1001_v20   ;;  %v1013_v23 = vld [vmem:[%s12287_s25 + $0xcb8] sm:$0xff]   ;;  %1006 = vst [vmem:[%s12292_s26 + $0x6a8] sm:$0xff] %v1005_v21   ;;  %v1017_v24 = vld [vmem:[%s12287_s25 + $0xcc0] sm:$0xff]  }
  0x7d   : > { %1010 = vst [vmem:[%s12292_s26 + $0x6b0] sm:$0xff] %v1009_v22   ;;  %1014 = vst [vmem:[%s12292_s26 + $0x6b8] sm:$0xff] %v1013_v23   ;;  %v1021_v25 = vld [vmem:[%s12287_s25 + $0xcc8] sm:$0xff]   ;;  %v1025_v26 = vld [vmem:[%s12287_s25 + $0xcd0] sm:$0xff]  }
  0x7e   : > { %1018 = vst [vmem:[%s12292_s26 + $0x6c0] sm:$0xff] %v1017_v24   ;;  %1022 = vst [vmem:[%s12292_s26 + $0x6c8] sm:$0xff] %v1021_v25   ;;  %v1029_v27 = vld [vmem:[%s12287_s25 + $0xcd8] sm:$0xff]   ;;  %v1033_v28 = vld [vmem:[%s12287_s25 + $0xce0] sm:$0xff]  }
  0x7f   : > { %1026 = vst [vmem:[%s12292_s26 + $0x6d0] sm:$0xff] %v1025_v26   ;;  %v1037_v29 = vld [vmem:[%s12287_s25 + $0xce8] sm:$0xff]   ;;  %1030 = vst [vmem:[%s12292_s26 + $0x6d8] sm:$0xff] %v1029_v27   ;;  %v1041_v30 = vld [vmem:[%s12287_s25 + $0xcf0] sm:$0xff]  }
  0x80   : > { %1034 = vst [vmem:[%s12292_s26 + $0x6e0] sm:$0xff] %v1033_v28   ;;  %1038 = vst [vmem:[%s12292_s26 + $0x6e8] sm:$0xff] %v1037_v29   ;;  %v1045_v31 = vld [vmem:[%s12287_s25 + $0xcf8] sm:$0xff]   ;;  %v1049_v32 = vld [vmem:[%s12287_s25 + $0xd00] sm:$0xff]  }
  0x81   : > { %1042 = vst [vmem:[%s12292_s26 + $0x6f0] sm:$0xff] %v1041_v30   ;;  %1046 = vst [vmem:[%s12292_s26 + $0x6f8] sm:$0xff] %v1045_v31   ;;  %v1053_v33 = vld [vmem:[%s12287_s25 + $0xd08] sm:$0xff]   ;;  %v1057_v34 = vld [vmem:[%s12287_s25 + $0xd10] sm:$0xff]  }
  0x82   : > { %1050 = vst [vmem:[%s12292_s26 + $0x700] sm:$0xff] %v1049_v32   ;;  %v1061_v35 = vld [vmem:[%s12287_s25 + $0xd18] sm:$0xff]   ;;  %1054 = vst [vmem:[%s12292_s26 + $0x708] sm:$0xff] %v1053_v33   ;;  %v1065_v36 = vld [vmem:[%s12287_s25 + $0xd20] sm:$0xff]  }
  0x83   : > { %1058 = vst [vmem:[%s12292_s26 + $0x710] sm:$0xff] %v1057_v34   ;;  %1062 = vst [vmem:[%s12292_s26 + $0x718] sm:$0xff] %v1061_v35   ;;  %v1069_v37 = vld [vmem:[%s12287_s25 + $0xd28] sm:$0xff]   ;;  %v1073_v38 = vld [vmem:[%s12287_s25 + $0xd30] sm:$0xff]  }
  0x84   : > { %1066 = vst [vmem:[%s12292_s26 + $0x720] sm:$0xff] %v1065_v36   ;;  %1070 = vst [vmem:[%s12292_s26 + $0x728] sm:$0xff] %v1069_v37   ;;  %v1077_v39 = vld [vmem:[%s12287_s25 + $0xd38] sm:$0xff]   ;;  %v1081_v40 = vld [vmem:[%s12287_s25 + $0xd40] sm:$0xff]  }
  0x85   : > { %1074 = vst [vmem:[%s12292_s26 + $0x730] sm:$0xff] %v1073_v38   ;;  %v1085_v41 = vld [vmem:[%s12287_s25 + $0xd48] sm:$0xff]   ;;  %1078 = vst [vmem:[%s12292_s26 + $0x738] sm:$0xff] %v1077_v39   ;;  %v1089_v42 = vld [vmem:[%s12287_s25 + $0xd50] sm:$0xff]  }
  0x86   : > { %1082 = vst [vmem:[%s12292_s26 + $0x740] sm:$0xff] %v1081_v40   ;;  %1086 = vst [vmem:[%s12292_s26 + $0x748] sm:$0xff] %v1085_v41   ;;  %v1093_v43 = vld [vmem:[%s12287_s25 + $0xd58] sm:$0xff]   ;;  %v1097_v44 = vld [vmem:[%s12287_s25 + $0xd60] sm:$0xff]  }
  0x87   : > { %1090 = vst [vmem:[%s12292_s26 + $0x750] sm:$0xff] %v1089_v42   ;;  %1094 = vst [vmem:[%s12292_s26 + $0x758] sm:$0xff] %v1093_v43   ;;  %v1101_v45 = vld [vmem:[%s12287_s25 + $0xd68] sm:$0xff]   ;;  %v1105_v46 = vld [vmem:[%s12287_s25 + $0xd70] sm:$0xff]  }
  0x88   : > { %1098 = vst [vmem:[%s12292_s26 + $0x760] sm:$0xff] %v1097_v44   ;;  %v1109_v47 = vld [vmem:[%s12287_s25 + $0xd78] sm:$0xff]   ;;  %1102 = vst [vmem:[%s12292_s26 + $0x768] sm:$0xff] %v1101_v45   ;;  %v1113_v48 = vld [vmem:[%s12287_s25 + $0xd80] sm:$0xff]  }
  0x89   : > { %1106 = vst [vmem:[%s12292_s26 + $0x770] sm:$0xff] %v1105_v46   ;;  %1110 = vst [vmem:[%s12292_s26 + $0x778] sm:$0xff] %v1109_v47   ;;  %v1117_v49 = vld [vmem:[%s12287_s25 + $0xd88] sm:$0xff]   ;;  %v1121_v50 = vld [vmem:[%s12287_s25 + $0xd90] sm:$0xff]  }
  0x8a   : > { %1114 = vst [vmem:[%s12292_s26 + $0x780] sm:$0xff] %v1113_v48   ;;  %1118 = vst [vmem:[%s12292_s26 + $0x788] sm:$0xff] %v1117_v49   ;;  %v1125_v51 = vld [vmem:[%s12287_s25 + $0xd98] sm:$0xff]   ;;  %v1129_v52 = vld [vmem:[%s12287_s25 + $0xda0] sm:$0xff]  }
  0x8b   : > { %1122 = vst [vmem:[%s12292_s26 + $0x790] sm:$0xff] %v1121_v50   ;;  %v1133_v53 = vld [vmem:[%s12287_s25 + $0xda8] sm:$0xff]   ;;  %1126 = vst [vmem:[%s12292_s26 + $0x798] sm:$0xff] %v1125_v51   ;;  %v1137_v54 = vld [vmem:[%s12287_s25 + $0xdb0] sm:$0xff]  }
  0x8c   : > { %1130 = vst [vmem:[%s12292_s26 + $0x7a0] sm:$0xff] %v1129_v52   ;;  %1134 = vst [vmem:[%s12292_s26 + $0x7a8] sm:$0xff] %v1133_v53   ;;  %v1141_v55 = vld [vmem:[%s12287_s25 + $0xdb8] sm:$0xff]   ;;  %v1145_v56 = vld [vmem:[%s12287_s25 + $0xdc0] sm:$0xff]  }
  0x8d   : > { %1138 = vst [vmem:[%s12292_s26 + $0x7b0] sm:$0xff] %v1137_v54   ;;  %1142 = vst [vmem:[%s12292_s26 + $0x7b8] sm:$0xff] %v1141_v55   ;;  %v1149_v57 = vld [vmem:[%s12287_s25 + $0xdc8] sm:$0xff]   ;;  %v1153_v58 = vld [vmem:[%s12287_s25 + $0xdd0] sm:$0xff]  }
  0x8e   : > { %1146 = vst [vmem:[%s12292_s26 + $0x7c0] sm:$0xff] %v1145_v56   ;;  %v1157_v59 = vld [vmem:[%s12287_s25 + $0xdd8] sm:$0xff]   ;;  %1150 = vst [vmem:[%s12292_s26 + $0x7c8] sm:$0xff] %v1149_v57   ;;  %v1161_v60 = vld [vmem:[%s12287_s25 + $0xde0] sm:$0xff]  }
  0x8f   : > { %1154 = vst [vmem:[%s12292_s26 + $0x7d0] sm:$0xff] %v1153_v58   ;;  %1158 = vst [vmem:[%s12292_s26 + $0x7d8] sm:$0xff] %v1157_v59   ;;  %v1165_v61 = vld [vmem:[%s12287_s25 + $0xde8] sm:$0xff]   ;;  %v1169_v62 = vld [vmem:[%s12287_s25 + $0xdf0] sm:$0xff]  }
  0x90   : > { %1162 = vst [vmem:[%s12292_s26 + $0x7e0] sm:$0xff] %v1161_v60   ;;  %1166 = vst [vmem:[%s12292_s26 + $0x7e8] sm:$0xff] %v1165_v61   ;;  %v1173_v63 = vld [vmem:[%s12287_s25 + $0xdf8] sm:$0xff]  }
  0x91   : > { %1170 = vst [vmem:[%s12292_s26 + $0x7f0] sm:$0xff] %v1169_v62   ;;  %1174 = vst [vmem:[%s12292_s26 + $0x7f8] sm:$0xff] %v1173_v63  }
  0x92 PF: > { %p10367_p5 = scmp.ge.s32.totalorder %s12230_s14, 1  ;;  %p4300_p6 = scmp.lt.s32.totalorder %s12230_s14, 3 }
  0x94   : > { %p4301_p7 = pnand %p10367_p5, %p4300_p6 }
  0x96   : > { %4304 = sbr.rel (%p4301_p7) target bundleno = 897 (0x381), region = 80 }
  0x9d   : > { %v11948_v0 = vld [vmem:[%s14514_s1] sm:$0xff]   ;;  %vm6914_vm0 = vcmask 1044480   ;;  %v11949_v1 = vld [vmem:[%s14514_s1 + $0x8] sm:$0x3f]   ;;  %vm6915_vm1 = vcmask 1045504   ;;  %s4307_s4 = sand.u32 1, %s12222_s12  }
  0x9e   : > { %11403 = vmatprep.subr.bf16.mxu0 %v11948_v0  ;;  %11919 = vmatprep.subr.bf16.mxu1 %v11948_v0  ;;  %v12232_v2 = vmov 65535   ;;  %s10368_s5 = sshll.u32 %s4307_s4, 11  ;;  %vm6145_vm2 = vcmask 220160   ;;  %s10369_s7 = sshll.u32 %s10360_s15, 7  ;;  %vm10161_vm3 = vcmask 125952  }
  0x9f   : > { %11404 = vmatpush3.bf16.msra.mxu0 %v11948_v0  ;;  %11921 = vmatpush3.bf16.msra.mxu1 %v11948_v0  ;;  %v6916_v3 = vsel %vm6914_vm0, 4294967295, %v12232_v2  ;;  %s12812_s6 = scalar_lea.vmem [#allocation2], %s10368_s5  ;;  %p4332_p8 = scmp.lt.s32.totalorder %s10369_s7, 255 }
  0xa0   : > { %v6917_v4 = vsel %vm6915_vm1, %v6916_v3, 0  ;;  %v11950_v6 = vld [vmem:[%s12812_s6] sm:$0xff]   ;;  %v11952_v8 = vld [vmem:[%s12812_s6 + $0x8] sm:$0xff]   ;;  %v11954_v10 = vld [vmem:[%s12812_s6 + $0x10] sm:$0xff]  }
  0xa1   : > { %v6919_v5 = vand.u32 %v11949_v1, %v6917_v4  ;;  %v11951_v7 = vld [vmem:[%s12812_s6 + $0x400] sm:$0xff]   ;;  %v11953_v9 = vld [vmem:[%s12812_s6 + $0x408] sm:$0xff]   ;;  %11407 = vmatprep.mubr.msk.bf16.mxu0 %vm6145_vm2, %v11950_v6  ;;  %v11955_v11 = vld [vmem:[%s12812_s6 + $0x410] sm:$0xff]   ;;  %s14943_s7 = smov (!%p4332_p8, %s10369_s7), 255 }
  0xa2   : > { %11663 = vmatprep.mubr.msk.bf16.mxu1 %vm6145_vm2, %v11951_v7  ;;  %v11956_v12 = vld [vmem:[%s12812_s6 + $0x18] sm:$0xff]   ;;  %v11958_v14 = vld [vmem:[%s12812_s6 + $0x20] sm:$0xff]   ;;  %v11960_v16 = vld [vmem:[%s12812_s6 + $0x28] sm:$0xff]   ;;  %s10370_s10 = sshll.u32 %s14943_s7, 2 }
  0xa3   : > { %11405 = vmatprep.subr.bf16.mxu0 %v6919_v5  ;;  %11920 = vmatprep.subr.bf16.mxu1 %v6919_v5  ;;  %v11957_v13 = vld [vmem:[%s12812_s6 + $0x418] sm:$0xff]   ;;  %v11959_v15 = vld [vmem:[%s12812_s6 + $0x420] sm:$0xff]   ;;  %v11961_v17 = vld [vmem:[%s12812_s6 + $0x428] sm:$0xff]   ;;  %s13834_s14 = scalar_lea.vmem %s14516_s3, %s10370_s10 }
  0xa4   : > { %11406 = vmatpush3.bf16.msra.mxu0 %v6919_v5  ;;  %11922 = vmatpush3.bf16.msra.mxu1 %v6919_v5  ;;  %v11962_v18 = vld [vmem:[%s12812_s6 + $0x30] sm:$0xff]   ;;  %v11964_v20 = vld [vmem:[%s12812_s6 + $0x38] sm:$0xff]   ;;  %v11966_v22 = vld [vmem:[%s12812_s6 + $0x40] sm:$0xff]  }
  0xa5   : > { %v11963_v19 = vld [vmem:[%s12812_s6 + $0x430] sm:$0xff]   ;;  %v11965_v21 = vld [vmem:[%s12812_s6 + $0x438] sm:$0xff]   ;;  %v11967_v23 = vld [vmem:[%s12812_s6 + $0x440] sm:$0xff]  }
  0xa6   : > { %v11968_v24 = vld [vmem:[%s12812_s6 + $0x48] sm:$0xff]   ;;  %v11970_v26 = vld [vmem:[%s12812_s6 + $0x50] sm:$0xff]   ;;  %v11972_v28 = vld [vmem:[%s12812_s6 + $0x58] sm:$0xff]  }
  0xa7   : > { %11408 = vmatmul.mubr.msk.bf16.vlgmr.msra.gmra.mrb[0].mxu0 %vm6145_vm2, %v11952_v8  ;;  %11664 = vmatmul.mubr.msk.bf16.vlgmr.msra.gmra.mrb[0].mxu1 %vm6145_vm2, %v11953_v9  ;;  %v11969_v25 = vld [vmem:[%s12812_s6 + $0x448] sm:$0xff]   ;;  %v11971_v27 = vld [vmem:[%s12812_s6 + $0x450] sm:$0xff]   ;;  %v11973_v29 = vld [vmem:[%s12812_s6 + $0x458] sm:$0xff]  }
  0xa8   : > { %11411 = vmatprep.mubr.msk.bf16.mxu0 %vm6145_vm2, %v11954_v10  ;;  %11667 = vmatprep.mubr.msk.bf16.mxu1 %vm6145_vm2, %v11955_v11  ;;  %v11974_v30 = vld [vmem:[%s12812_s6 + $0x60] sm:$0xff]   ;;  %v11976_v32 = vld [vmem:[%s12812_s6 + $0x68] sm:$0xff]   ;;  %v11978_v34 = vld [vmem:[%s12812_s6 + $0x70] sm:$0xff]  }
  0xa9   : > { %v11975_v31 = vld [vmem:[%s12812_s6 + $0x460] sm:$0xff]   ;;  %v11977_v33 = vld [vmem:[%s12812_s6 + $0x468] sm:$0xff]   ;;  %v11979_v35 = vld [vmem:[%s12812_s6 + $0x470] sm:$0xff]  }
  0xaa   : > { %v11980_v36 = vld [vmem:[%s12812_s6 + $0x78] sm:$0xff]   ;;  %v11982_v38 = vld [vmem:[%s12812_s6 + $0x80] sm:$0xff]   ;;  %v11984_v40 = vld [vmem:[%s12812_s6 + $0x88] sm:$0xff]  }
  0xab   : > { %v11981_v37 = vld [vmem:[%s12812_s6 + $0x478] sm:$0xff]   ;;  %v11983_v39 = vld [vmem:[%s12812_s6 + $0x480] sm:$0xff]   ;;  %v11985_v41 = vld [vmem:[%s12812_s6 + $0x488] sm:$0xff]  }
  0xac   : > { %v11986_v42 = vld [vmem:[%s12812_s6 + $0x90] sm:$0xff]   ;;  %v11988_v44 = vld [vmem:[%s12812_s6 + $0x98] sm:$0xff]   ;;  %v11990_v46 = vld [vmem:[%s12812_s6 + $0xa0] sm:$0xff]  }
  0xad   : > { %v11987_v43 = vld [vmem:[%s12812_s6 + $0x490] sm:$0xff]   ;;  %v11989_v45 = vld [vmem:[%s12812_s6 + $0x498] sm:$0xff]   ;;  %v11991_v47 = vld [vmem:[%s12812_s6 + $0x4a0] sm:$0xff]  }
  0xae   : > { %v11992_v48 = vld [vmem:[%s12812_s6 + $0xa8] sm:$0xff]   ;;  %v11994_v50 = vld [vmem:[%s12812_s6 + $0xb0] sm:$0xff]   ;;  %v11996_v52 = vld [vmem:[%s12812_s6 + $0xb8] sm:$0xff]  }
  0xaf   : > { %11412 = vmatmul.mubr.msk.bf16.gmra.mrb[4].mxu0 %vm6145_vm2, %v11956_v12  ;;  %11668 = vmatmul.mubr.msk.bf16.gmra.mrb[4].mxu1 %vm6145_vm2, %v11957_v13  ;;  %v11993_v49 = vld [vmem:[%s12812_s6 + $0x4a8] sm:$0xff]   ;;  %v11995_v51 = vld [vmem:[%s12812_s6 + $0x4b0] sm:$0xff]   ;;  %v11997_v53 = vld [vmem:[%s12812_s6 + $0x4b8] sm:$0xff]  }
  0xb0   : > { %11415 = vmatprep.mubr.msk.bf16.mxu0 %vm6145_vm2, %v11958_v14  ;;  %11671 = vmatprep.mubr.msk.bf16.mxu1 %vm6145_vm2, %v11959_v15  ;;  %v11998_v54 = vld [vmem:[%s12812_s6 + $0xc0] sm:$0xff]   ;;  %v12000_v56 = vld [vmem:[%s12812_s6 + $0xc8] sm:$0xff]   ;;  %v12002_v58 = vld [vmem:[%s12812_s6 + $0xd0] sm:$0xff]  }
  0xb1   : > { %v11999_v55 = vld [vmem:[%s12812_s6 + $0x4c0] sm:$0xff]   ;;  %v12001_v57 = vld [vmem:[%s12812_s6 + $0x4c8] sm:$0xff]   ;;  %v12003_v59 = vld [vmem:[%s12812_s6 + $0x4d0] sm:$0xff]  }
  0xb2   : > { %v12004_v60 = vld [vmem:[%s12812_s6 + $0xd8] sm:$0xff]   ;;  %v12006_v62 = vld [vmem:[%s12812_s6 + $0xe0] sm:$0xff]   ;;  %v12008_v0 = vld [vmem:[%s12812_s6 + $0xe8] sm:$0xff]  }
  0xb3   : > { %v12005_v61 = vld [vmem:[%s12812_s6 + $0x4d8] sm:$0xff]   ;;  %v12007_v63 = vld [vmem:[%s12812_s6 + $0x4e0] sm:$0xff]   ;;  %v12009_v1 = vld [vmem:[%s12812_s6 + $0x4e8] sm:$0xff]  }
  0xb4   : > { %v12010_v2 = vld [vmem:[%s12812_s6 + $0xf0] sm:$0xff]   ;;  %v12012_v4 = vld [vmem:[%s12812_s6 + $0xf8] sm:$0xff]   ;;  %v12014_v6 = vld [vmem:[%s12812_s6 + $0x100] sm:$0xff]  }
  0xb5   : > { %v12011_v3 = vld [vmem:[%s12812_s6 + $0x4f0] sm:$0xff]   ;;  %v12013_v5 = vld [vmem:[%s12812_s6 + $0x4f8] sm:$0xff]   ;;  %v12015_v7 = vld [vmem:[%s12812_s6 + $0x500] sm:$0xff]  }
  0xb6   : > { %v12016_v8 = vld [vmem:[%s12812_s6 + $0x108] sm:$0xff]   ;;  %v12018_v10 = vld [vmem:[%s12812_s6 + $0x110] sm:$0xff]   ;;  %v12020_v12 = vld [vmem:[%s12812_s6 + $0x118] sm:$0xff]  }
  0xb7   : > { %11416 = vmatmul.mubr.msk.bf16.gmra.mrb[8].mxu0 %vm6145_vm2, %v11960_v16  ;;  %11672 = vmatmul.mubr.msk.bf16.gmra.mrb[8].mxu1 %vm6145_vm2, %v11961_v17  ;;  %v12017_v9 = vld [vmem:[%s12812_s6 + $0x508] sm:$0xff]   ;;  %v12019_v11 = vld [vmem:[%s12812_s6 + $0x510] sm:$0xff]   ;;  %v12021_v13 = vld [vmem:[%s12812_s6 + $0x518] sm:$0xff]  }
  0xb8   : > { %11419 = vmatprep.mubr.msk.bf16.mxu0 %vm6145_vm2, %v11962_v18  ;;  %11675 = vmatprep.mubr.msk.bf16.mxu1 %vm6145_vm2, %v11963_v19  ;;  %v12022_v14 = vld [vmem:[%s12812_s6 + $0x120] sm:$0xff]   ;;  %v12024_v16 = vld [vmem:[%s12812_s6 + $0x128] sm:$0xff]   ;;  %v12026_v18 = vld [vmem:[%s12812_s6 + $0x130] sm:$0xff]  }
  0xb9   : > { %v12023_v15 = vld [vmem:[%s12812_s6 + $0x520] sm:$0xff]   ;;  %v12025_v17 = vld [vmem:[%s12812_s6 + $0x528] sm:$0xff]   ;;  %v12027_v19 = vld [vmem:[%s12812_s6 + $0x530] sm:$0xff]  }
  0xbf   : > { %11420 = vmatmul.mubr.msk.bf16.gmra.mrb[12].mxu0 %vm6145_vm2, %v11964_v20  ;;  %11676 = vmatmul.mubr.msk.bf16.gmra.mrb[12].mxu1 %vm6145_vm2, %v11965_v21  ;;  %v12028_v20 = vld [vmem:[%s12812_s6 + $0x138] sm:$0xff]  }
  0xc0   : > { %11423 = vmatprep.mubr.msk.bf16.mxu0 %vm6145_vm2, %v11966_v22  ;;  %11679 = vmatprep.mubr.msk.bf16.mxu1 %vm6145_vm2, %v11967_v23  ;;  %v12029_v21 = vld [vmem:[%s12812_s6 + $0x538] sm:$0xff]   ;;  %v12030_v22 = vld [vmem:[%s12812_s6 + $0x140] sm:$0xff]  }
  0xc1   : > { %v12031_v23 = vld [vmem:[%s12812_s6 + $0x540] sm:$0xff]  }
  0xc7   : > { %11424 = vmatmul.mubr.msk.bf16.gmra.mrb[16].mxu0 %vm6145_vm2, %v11968_v24  ;;  %11680 = vmatmul.mubr.msk.bf16.gmra.mrb[16].mxu1 %vm6145_vm2, %v11969_v25  ;;  %v12032_v24 = vld [vmem:[%s12812_s6 + $0x148] sm:$0xff]  }
  0xc8   : > { %11427 = vmatprep.mubr.msk.bf16.mxu0 %vm6145_vm2, %v11970_v26  ;;  %11683 = vmatprep.mubr.msk.bf16.mxu1 %vm6145_vm2, %v11971_v27  ;;  %v12033_v25 = vld [vmem:[%s12812_s6 + $0x548] sm:$0xff]   ;;  %v12034_v26 = vld [vmem:[%s12812_s6 + $0x150] sm:$0xff]  }
  0xc9   : > { %v12035_v27 = vld [vmem:[%s12812_s6 + $0x550] sm:$0xff]  }
  0xcf   : > { %11428 = vmatmul.mubr.msk.bf16.gmra.mrb[20].mxu0 %vm6145_vm2, %v11972_v28  ;;  %11684 = vmatmul.mubr.msk.bf16.gmra.mrb[20].mxu1 %vm6145_vm2, %v11973_v29  ;;  %v12036_v28 = vld [vmem:[%s12812_s6 + $0x158] sm:$0xff]  }
  0xd0   : > { %11431 = vmatprep.mubr.msk.bf16.mxu0 %vm6145_vm2, %v11974_v30  ;;  %11687 = vmatprep.mubr.msk.bf16.mxu1 %vm6145_vm2, %v11975_v31  ;;  %v12037_v29 = vld [vmem:[%s12812_s6 + $0x558] sm:$0xff]   ;;  %v12038_v30 = vld [vmem:[%s12812_s6 + $0x160] sm:$0xff]  }
  0xd1   : > { %v12039_v31 = vld [vmem:[%s12812_s6 + $0x560] sm:$0xff]  }
  0xd7   : > { %11432 = vmatmul.mubr.msk.bf16.gmra.mrb[24].mxu0 %vm6145_vm2, %v11976_v32  ;;  %11688 = vmatmul.mubr.msk.bf16.gmra.mrb[24].mxu1 %vm6145_vm2, %v11977_v33  ;;  %v12040_v32 = vld [vmem:[%s12812_s6 + $0x168] sm:$0xff]  }
  0xd8   : > { %11435 = vmatprep.mubr.msk.bf16.mxu0 %vm6145_vm2, %v11978_v34  ;;  %11691 = vmatprep.mubr.msk.bf16.mxu1 %vm6145_vm2, %v11979_v35  ;;  %v12041_v33 = vld [vmem:[%s12812_s6 + $0x568] sm:$0xff]   ;;  %v12042_v34 = vld [vmem:[%s12812_s6 + $0x170] sm:$0xff]  }
  0xd9   : > { %v12043_v35 = vld [vmem:[%s12812_s6 + $0x570] sm:$0xff]  }
  0xdf   : > { %11436 = vmatmul.mubr.msk.bf16.gmra.mrb[28].mxu0 %vm6145_vm2, %v11980_v36  ;;  %11692 = vmatmul.mubr.msk.bf16.gmra.mrb[28].mxu1 %vm6145_vm2, %v11981_v37  ;;  %v12044_v36 = vld [vmem:[%s12812_s6 + $0x178] sm:$0xff]  }
  0xe0   : > { %11439 = vmatprep.mubr.msk.bf16.mxu0 %vm6145_vm2, %v11982_v38  ;;  %11695 = vmatprep.mubr.msk.bf16.mxu1 %vm6145_vm2, %v11983_v39  ;;  %v12045_v37 = vld [vmem:[%s12812_s6 + $0x578] sm:$0xff]   ;;  %v12046_v38 = vld [vmem:[%s12812_s6 + $0x180] sm:$0xff]  }
  0xe1   : > { %v12047_v39 = vld [vmem:[%s12812_s6 + $0x580] sm:$0xff]  }
  0xe7   : > { %11440 = vmatmul.mubr.msk.bf16.gmra.mrb[32].mxu0 %vm6145_vm2, %v11984_v40  ;;  %11696 = vmatmul.mubr.msk.bf16.gmra.mrb[32].mxu1 %vm6145_vm2, %v11985_v41  ;;  %v12048_v40 = vld [vmem:[%s12812_s6 + $0x188] sm:$0xff]  }
  0xe8   : > { %11443 = vmatprep.mubr.msk.bf16.mxu0 %vm6145_vm2, %v11986_v42  ;;  %11699 = vmatprep.mubr.msk.bf16.mxu1 %vm6145_vm2, %v11987_v43  ;;  %v12049_v41 = vld [vmem:[%s12812_s6 + $0x588] sm:$0xff]   ;;  %v12050_v42 = vld [vmem:[%s12812_s6 + $0x190] sm:$0xff]  }
  0xe9   : > { %v12051_v43 = vld [vmem:[%s12812_s6 + $0x590] sm:$0xff]  }
  0xef   : > { %11444 = vmatmul.mubr.msk.bf16.gmra.mrb[36].mxu0 %vm6145_vm2, %v11988_v44  ;;  %11700 = vmatmul.mubr.msk.bf16.gmra.mrb[36].mxu1 %vm6145_vm2, %v11989_v45  ;;  %v12052_v44 = vld [vmem:[%s12812_s6 + $0x198] sm:$0xff]  }
  0xf0   : > { %11447 = vmatprep.mubr.msk.bf16.mxu0 %vm6145_vm2, %v11990_v46  ;;  %11703 = vmatprep.mubr.msk.bf16.mxu1 %vm6145_vm2, %v11991_v47  ;;  %v12053_v45 = vld [vmem:[%s12812_s6 + $0x598] sm:$0xff]   ;;  %v12054_v46 = vld [vmem:[%s12812_s6 + $0x1a0] sm:$0xff]  }
  0xf1   : > { %v12055_v47 = vld [vmem:[%s12812_s6 + $0x5a0] sm:$0xff]  }
  0xf7   : > { %11448 = vmatmul.mubr.msk.bf16.gmra.mrb[40].mxu0 %vm6145_vm2, %v11992_v48  ;;  %11704 = vmatmul.mubr.msk.bf16.gmra.mrb[40].mxu1 %vm6145_vm2, %v11993_v49  ;;  %v12056_v48 = vld [vmem:[%s12812_s6 + $0x1a8] sm:$0xff]  }
  0xf8   : > { %11451 = vmatprep.mubr.msk.bf16.mxu0 %vm6145_vm2, %v11994_v50  ;;  %11707 = vmatprep.mubr.msk.bf16.mxu1 %vm6145_vm2, %v11995_v51  ;;  %v12057_v49 = vld [vmem:[%s12812_s6 + $0x5a8] sm:$0xff]   ;;  %v12058_v50 = vld [vmem:[%s12812_s6 + $0x1b0] sm:$0xff]  }
  0xf9   : > { %v12059_v51 = vld [vmem:[%s12812_s6 + $0x5b0] sm:$0xff]  }
  0xff   : > { %11452 = vmatmul.mubr.msk.bf16.gmra.mrb[44].mxu0 %vm6145_vm2, %v11996_v52  ;;  %11708 = vmatmul.mubr.msk.bf16.gmra.mrb[44].mxu1 %vm6145_vm2, %v11997_v53  ;;  %v12060_v52 = vld [vmem:[%s12812_s6 + $0x1b8] sm:$0xff]  }
 0x100   : > { %11455 = vmatprep.mubr.msk.bf16.mxu0 %vm6145_vm2, %v11998_v54  ;;  %11711 = vmatprep.mubr.msk.bf16.mxu1 %vm6145_vm2, %v11999_v55  ;;  %v12061_v53 = vld [vmem:[%s12812_s6 + $0x5b8] sm:$0xff]  }
 0x107   : > { %11456 = vmatmul.mubr.msk.bf16.gmra.mrb[48].mxu0 %vm6145_vm2, %v12000_v56  ;;  %11712 = vmatmul.mubr.msk.bf16.gmra.mrb[48].mxu1 %vm6145_vm2, %v12001_v57 }
 0x108   : > { %11459 = vmatprep.mubr.msk.bf16.mxu0 %vm6145_vm2, %v12002_v58  ;;  %11715 = vmatprep.mubr.msk.bf16.mxu1 %vm6145_vm2, %v12003_v59 }
 0x10f   : > { %11460 = vmatmul.mubr.msk.bf16.gmra.mrb[52].mxu0 %vm6145_vm2, %v12004_v60  ;;  %11716 = vmatmul.mubr.msk.bf16.gmra.mrb[52].mxu1 %vm6145_vm2, %v12005_v61  ;;  %v12062_v60 = vld [vmem:[%s12812_s6 + $0x1c0] sm:$0xff]  }
 0x110   : > { %11463 = vmatprep.mubr.msk.bf16.mxu0 %vm6145_vm2, %v12006_v62  ;;  %11719 = vmatprep.mubr.msk.bf16.mxu1 %vm6145_vm2, %v12007_v63  ;;  %v12063_v61 = vld [vmem:[%s12812_s6 + $0x5c0] sm:$0xff]  }
 0x117   : > { %11464 = vmatmul.mubr.msk.bf16.gmra.mrb[56].mxu0 %vm6145_vm2, %v12008_v0  ;;  %11720 = vmatmul.mubr.msk.bf16.gmra.mrb[56].mxu1 %vm6145_vm2, %v12009_v1  ;;  %v12064_v0 = vld [vmem:[%s12812_s6 + $0x1c8] sm:$0xff]  }
 0x118   : > { %11467 = vmatprep.mubr.msk.bf16.mxu0 %vm6145_vm2, %v12010_v2  ;;  %11723 = vmatprep.mubr.msk.bf16.mxu1 %vm6145_vm2, %v12011_v3  ;;  %v12065_v1 = vld [vmem:[%s12812_s6 + $0x5c8] sm:$0xff]  }
 0x11f   : > { %11468 = vmatmul.mubr.msk.bf16.gmra.mrb[60].mxu0 %vm6145_vm2, %v12012_v4  ;;  %11724 = vmatmul.mubr.msk.bf16.gmra.mrb[60].mxu1 %vm6145_vm2, %v12013_v5 }
 0x120   : > { %11471 = vmatprep.mubr.msk.bf16.mxu0 %vm6145_vm2, %v12014_v6  ;;  %11727 = vmatprep.mubr.msk.bf16.mxu1 %vm6145_vm2, %v12015_v7 }
 0x127   : > { %11472 = vmatmul.mubr.msk.bf16.gmra.mrb[64].mxu0 %vm6145_vm2, %v12016_v8  ;;  %11728 = vmatmul.mubr.msk.bf16.gmra.mrb[64].mxu1 %vm6145_vm2, %v12017_v9  ;;  %v12066_v8 = vld [vmem:[%s12812_s6 + $0x1d0] sm:$0xff]  }
 0x128   : > { %11475 = vmatprep.mubr.msk.bf16.mxu0 %vm6145_vm2, %v12018_v10  ;;  %11731 = vmatprep.mubr.msk.bf16.mxu1 %vm6145_vm2, %v12019_v11  ;;  %v12067_v9 = vld [vmem:[%s12812_s6 + $0x5d0] sm:$0xff]  }
 0x12f   : > { %11476 = vmatmul.mubr.msk.bf16.gmra.mrb[68].mxu0 %vm6145_vm2, %v12020_v12  ;;  %11732 = vmatmul.mubr.msk.bf16.gmra.mrb[68].mxu1 %vm6145_vm2, %v12021_v13 }
 0x130   : > { %11479 = vmatprep.mubr.msk.bf16.mxu0 %vm6145_vm2, %v12022_v14  ;;  %11735 = vmatprep.mubr.msk.bf16.mxu1 %vm6145_vm2, %v12023_v15 }
 0x137   : > { %11480 = vmatmul.mubr.msk.bf16.gmra.mrb[72].mxu0 %vm6145_vm2, %v12024_v16  ;;  %11736 = vmatmul.mubr.msk.bf16.gmra.mrb[72].mxu1 %vm6145_vm2, %v12025_v17  ;;  %v12068_v16 = vld [vmem:[%s12812_s6 + $0x1d8] sm:$0xff]  }
 0x138   : > { %11483 = vmatprep.mubr.msk.bf16.mxu0 %vm6145_vm2, %v12026_v18  ;;  %11739 = vmatprep.mubr.msk.bf16.mxu1 %vm6145_vm2, %v12027_v19  ;;  %v12069_v17 = vld [vmem:[%s12812_s6 + $0x5d8] sm:$0xff]  }
 0x13f   : > { %11484 = vmatmul.mubr.msk.bf16.gmra.mrb[76].mxu0 %vm6145_vm2, %v12028_v20  ;;  %11740 = vmatmul.mubr.msk.bf16.gmra.mrb[76].mxu1 %vm6145_vm2, %v12029_v21  ;;  %v12070_v20 = vld [vmem:[%s12812_s6 + $0x1e0] sm:$0xff]  }
 0x140   : > { %11487 = vmatprep.mubr.msk.bf16.mxu0 %vm6145_vm2, %v12030_v22  ;;  %11743 = vmatprep.mubr.msk.bf16.mxu1 %vm6145_vm2, %v12031_v23  ;;  %v12071_v21 = vld [vmem:[%s12812_s6 + $0x5e0] sm:$0xff]  }
 0x147   : > { %11488 = vmatmul.mubr.msk.bf16.gmra.mrb[80].mxu0 %vm6145_vm2, %v12032_v24  ;;  %11744 = vmatmul.mubr.msk.bf16.gmra.mrb[80].mxu1 %vm6145_vm2, %v12033_v25 }
 0x148   : > { %11491 = vmatprep.mubr.msk.bf16.mxu0 %vm6145_vm2, %v12034_v26  ;;  %11747 = vmatprep.mubr.msk.bf16.mxu1 %vm6145_vm2, %v12035_v27 }
 0x14f   : > { %11492 = vmatmul.mubr.msk.bf16.gmra.mrb[84].mxu0 %vm6145_vm2, %v12036_v28  ;;  %11748 = vmatmul.mubr.msk.bf16.gmra.mrb[84].mxu1 %vm6145_vm2, %v12037_v29  ;;  %v12072_v28 = vld [vmem:[%s12812_s6 + $0x1e8] sm:$0xff]  }
 0x150   : > { %11495 = vmatprep.mubr.msk.bf16.mxu0 %vm6145_vm2, %v12038_v30  ;;  %11751 = vmatprep.mubr.msk.bf16.mxu1 %vm6145_vm2, %v12039_v31  ;;  %v12073_v29 = vld [vmem:[%s12812_s6 + $0x5e8] sm:$0xff]  }
 0x157   : > { %11496 = vmatmul.mubr.msk.bf16.gmra.mrb[88].mxu0 %vm6145_vm2, %v12040_v32  ;;  %11752 = vmatmul.mubr.msk.bf16.gmra.mrb[88].mxu1 %vm6145_vm2, %v12041_v33  ;;  %v12074_v32 = vld [vmem:[%s12812_s6 + $0x1f0] sm:$0xff]  }
 0x158   : > { %11499 = vmatprep.mubr.msk.bf16.mxu0 %vm6145_vm2, %v12042_v34  ;;  %11755 = vmatprep.mubr.msk.bf16.mxu1 %vm6145_vm2, %v12043_v35  ;;  %v12075_v33 = vld [vmem:[%s12812_s6 + $0x5f0] sm:$0xff]  }
 0x15f   : > { %11500 = vmatmul.mubr.msk.bf16.gmra.mrb[92].mxu0 %vm6145_vm2, %v12044_v36  ;;  %11756 = vmatmul.mubr.msk.bf16.gmra.mrb[92].mxu1 %vm6145_vm2, %v12045_v37 }
 0x160   : > { %11503 = vmatprep.mubr.msk.bf16.mxu0 %vm6145_vm2, %v12046_v38  ;;  %11759 = vmatprep.mubr.msk.bf16.mxu1 %vm6145_vm2, %v12047_v39 }
 0x167   : > { %11504 = vmatmul.mubr.msk.bf16.gmra.mrb[96].mxu0 %vm6145_vm2, %v12048_v40  ;;  %11760 = vmatmul.mubr.msk.bf16.gmra.mrb[96].mxu1 %vm6145_vm2, %v12049_v41  ;;  %v12076_v40 = vld [vmem:[%s12812_s6 + $0x1f8] sm:$0xff]  }
 0x168   : > { %11507 = vmatprep.mubr.msk.bf16.mxu0 %vm6145_vm2, %v12050_v42  ;;  %11763 = vmatprep.mubr.msk.bf16.mxu1 %vm6145_vm2, %v12051_v43  ;;  %v12077_v41 = vld [vmem:[%s12812_s6 + $0x5f8] sm:$0xff]  }
 0x16f   : > { %11508 = vmatmul.mubr.msk.bf16.gmra.mrb[100].mxu0 %vm6145_vm2, %v12052_v44  ;;  %11764 = vmatmul.mubr.msk.bf16.gmra.mrb[100].mxu1 %vm6145_vm2, %v12053_v45  ;;  %v12078_v44 = vld [vmem:[%s12812_s6 + $0x200] sm:$0xff]  }
 0x170   : > { %11511 = vmatprep.mubr.msk.bf16.mxu0 %vm6145_vm2, %v12054_v46  ;;  %11767 = vmatprep.mubr.msk.bf16.mxu1 %vm6145_vm2, %v12055_v47  ;;  %v12079_v45 = vld [vmem:[%s12812_s6 + $0x600] sm:$0xff]  }
 0x177   : > { %11512 = vmatmul.mubr.msk.bf16.gmra.mrb[104].mxu0 %vm6145_vm2, %v12056_v48  ;;  %11768 = vmatmul.mubr.msk.bf16.gmra.mrb[104].mxu1 %vm6145_vm2, %v12057_v49 }
 0x178   : > { %11515 = vmatprep.mubr.msk.bf16.mxu0 %vm6145_vm2, %v12058_v50  ;;  %11771 = vmatprep.mubr.msk.bf16.mxu1 %vm6145_vm2, %v12059_v51 }
 0x17a   : > { %v13036_v54 = vpop.f32.mrb[0].mxu0  ;;  %v13038_v55 = vpop.f32.mrb[0].mxu1 }
 0x17b   : > { %v13040_v56 = vpop.f32.mrb[1].mxu0  ;;  %v13042_v57 = vpop.f32.mrb[1].mxu1 }
 0x17c   : > { %v13044_v58 = vpop.f32.mrb[2].mxu0  ;;  %v13046_v59 = vpop.f32.mrb[2].mxu1 }
 0x17d   : > { %v13050_v62 = vpop.f32.mrb[3].mxu0  ;;  %v13052_v63 = vpop.f32.mrb[3].mxu1 }
 0x17f   : > { %11516 = vmatmul.mubr.msk.bf16.gmra.mrb[108].mxu0 %vm6145_vm2, %v12060_v52  ;;  %11772 = vmatmul.mubr.msk.bf16.gmra.mrb[108].mxu1 %vm6145_vm2, %v12061_v53  ;;  %v12080_v52 = vld [vmem:[%s12812_s6 + $0x208] sm:$0xff]  }
 0x180   : > { %11519 = vmatprep.mubr.msk.bf16.mxu0 %vm6145_vm2, %v12062_v60  ;;  %11775 = vmatprep.mubr.msk.bf16.mxu1 %vm6145_vm2, %v12063_v61  ;;  %v12081_v53 = vld [vmem:[%s12812_s6 + $0x608] sm:$0xff]  }
 0x182   : > { %v13060_v2 = vpop.f32.mrb[4].mxu0  ;;  %v13062_v3 = vpop.f32.mrb[4].mxu1 }
 0x183   : > { %v13064_v4 = vpop.f32.mrb[5].mxu0  ;;  %v13066_v5 = vpop.f32.mrb[5].mxu1 }
 0x184   : > { %v13068_v6 = vpop.f32.mrb[6].mxu0  ;;  %v13070_v7 = vpop.f32.mrb[6].mxu1 }
 0x185   : > { %v13074_v10 = vpop.f32.mrb[7].mxu0  ;;  %v13076_v11 = vpop.f32.mrb[7].mxu1 }
 0x187   : > { %11520 = vmatmul.mubr.msk.bf16.gmra.mrb[112].mxu0 %vm6145_vm2, %v12064_v0  ;;  %11776 = vmatmul.mubr.msk.bf16.gmra.mrb[112].mxu1 %vm6145_vm2, %v12065_v1  ;;  %v12082_v0 = vld [vmem:[%s12812_s6 + $0x210] sm:$0xff]  }
 0x188   : > { %11523 = vmatprep.mubr.msk.bf16.mxu0 %vm6145_vm2, %v12066_v8  ;;  %11779 = vmatprep.mubr.msk.bf16.mxu1 %vm6145_vm2, %v12067_v9  ;;  %v12083_v1 = vld [vmem:[%s12812_s6 + $0x610] sm:$0xff]  }
 0x18a   : > { %v13082_v12 = vpop.f32.mrb[8].mxu0  ;;  %v13084_v13 = vpop.f32.mrb[8].mxu1 }
 0x18b   : > { %v13086_v14 = vpop.f32.mrb[9].mxu0  ;;  %v13088_v15 = vpop.f32.mrb[9].mxu1 }
 0x18c   : > { %v13092_v18 = vpop.f32.mrb[10].mxu0  ;;  %v13094_v19 = vpop.f32.mrb[10].mxu1 }
 0x18d   : > { %v13098_v22 = vpop.f32.mrb[11].mxu0  ;;  %v13100_v23 = vpop.f32.mrb[11].mxu1 }
 0x18f   : > { %11524 = vmatmul.mubr.msk.bf16.gmra.mrb[116].mxu0 %vm6145_vm2, %v12068_v16  ;;  %11780 = vmatmul.mubr.msk.bf16.gmra.mrb[116].mxu1 %vm6145_vm2, %v12069_v17 }
 0x190   : > { %11527 = vmatprep.mubr.msk.bf16.mxu0 %vm6145_vm2, %v12070_v20  ;;  %11783 = vmatprep.mubr.msk.bf16.mxu1 %vm6145_vm2, %v12071_v21 }
 0x192   : > { %v13106_v24 = vpop.f32.mrb[12].mxu0  ;;  %v13108_v25 = vpop.f32.mrb[12].mxu1 }
 0x193   : > { %v13110_v26 = vpop.f32.mrb[13].mxu0  ;;  %v13112_v27 = vpop.f32.mrb[13].mxu1 }
 0x194   : > { %v13116_v30 = vpop.f32.mrb[14].mxu0  ;;  %v13118_v31 = vpop.f32.mrb[14].mxu1 }
 0x195   : > { %v13122_v34 = vpop.f32.mrb[15].mxu0  ;;  %v13124_v35 = vpop.f32.mrb[15].mxu1 }
 0x197   : > { %11528 = vmatmul.mubr.msk.bf16.gmra.mrb[120].mxu0 %vm6145_vm2, %v12072_v28  ;;  %11784 = vmatmul.mubr.msk.bf16.gmra.mrb[120].mxu1 %vm6145_vm2, %v12073_v29  ;;  %v12084_v28 = vld [vmem:[%s12812_s6 + $0x218] sm:$0xff]  }
 0x198   : > { %11531 = vmatprep.mubr.msk.bf16.mxu0 %vm6145_vm2, %v12074_v32  ;;  %11787 = vmatprep.mubr.msk.bf16.mxu1 %vm6145_vm2, %v12075_v33  ;;  %v12085_v29 = vld [vmem:[%s12812_s6 + $0x618] sm:$0xff]  }
 0x19a   : > { %v13130_v36 = vpop.f32.mrb[16].mxu0  ;;  %v13132_v37 = vpop.f32.mrb[16].mxu1 }
 0x19b   : > { %v13134_v38 = vpop.f32.mrb[17].mxu0  ;;  %v13136_v39 = vpop.f32.mrb[17].mxu1 }
 0x19c   : > { %v13140_v42 = vpop.f32.mrb[18].mxu0  ;;  %v13142_v43 = vpop.f32.mrb[18].mxu1 }
 0x19d   : > { %v13146_v46 = vpop.f32.mrb[19].mxu0  ;;  %v13148_v47 = vpop.f32.mrb[19].mxu1 }
 0x19f   : > { %11532 = vmatmul.mubr.msk.bf16.gmra.mrb[124].mxu0 %vm6145_vm2, %v12076_v40  ;;  %11788 = vmatmul.mubr.msk.bf16.gmra.mrb[124].mxu1 %vm6145_vm2, %v12077_v41  ;;  %v12086_v40 = vld [vmem:[%s12812_s6 + $0x220] sm:$0xff]  }
 0x1a0   : > { %11535 = vmatprep.mubr.msk.bf16.mxu0 %vm6145_vm2, %v12078_v44  ;;  %11791 = vmatprep.mubr.msk.bf16.mxu1 %vm6145_vm2, %v12079_v45  ;;  %v12087_v41 = vld [vmem:[%s12812_s6 + $0x620] sm:$0xff]  }
 0x1a2   : > { %v13154_v48 = vpop.f32.mrb[20].mxu0  ;;  %v13156_v49 = vpop.f32.mrb[20].mxu1 }
 0x1a3   : > { %v13158_v50 = vpop.f32.mrb[21].mxu0  ;;  %v13160_v51 = vpop.f32.mrb[21].mxu1 }
 0x1a4   : > { %v13164_v60 = vpop.f32.mrb[22].mxu0  ;;  %v13166_v61 = vpop.f32.mrb[22].mxu1 }
 0x1a5   : > { %14517 = vst [vmem:[#allocation3_spill] sm:$0xff] %v13166_v61  ;;  %v13170_v8 = vpop.f32.mrb[23].mxu0  ;;  %v13172_v9 = vpop.f32.mrb[23].mxu1 }
 0x1a6   : > { %14518 = vst [vmem:[#allocation4_spill] sm:$0xff] %v13170_v8  ;;  %14519 = vst [vmem:[#allocation5_spill] sm:$0xff] %v13172_v9 }
 0x1a7   : > { %11536 = vmatmul.mubr.msk.bf16.gmra.mrb[128].mxu0 %vm6145_vm2, %v12080_v52  ;;  %11792 = vmatmul.mubr.msk.bf16.gmra.mrb[128].mxu1 %vm6145_vm2, %v12081_v53 }
 0x1a8   : > { %11539 = vmatprep.mubr.msk.bf16.mxu0 %vm6145_vm2, %v12082_v0  ;;  %11795 = vmatprep.mubr.msk.bf16.mxu1 %vm6145_vm2, %v12083_v1 }
 0x1aa   : > { %v13178_v16 = vpop.f32.mrb[24].mxu0  ;;  %v13180_v17 = vpop.f32.mrb[24].mxu1 }
 0x1ab   : > { %14520 = vst [vmem:[#allocation6_spill] sm:$0xff] %v13178_v16  ;;  %14521 = vst [vmem:[#allocation7_spill] sm:$0xff] %v13180_v17  ;;  %v13182_v20 = vpop.f32.mrb[25].mxu0  ;;  %v13184_v21 = vpop.f32.mrb[25].mxu1 }
 0x1ac   : > { %14522 = vst [vmem:[#allocation8_spill] sm:$0xff] %v13182_v20  ;;  %14523 = vst [vmem:[#allocation9_spill] sm:$0xff] %v13184_v21  ;;  %v13188_v32 = vpop.f32.mrb[26].mxu0  ;;  %v13190_v33 = vpop.f32.mrb[26].mxu1  ;;  %v12191_v21 = vld [vmem:[%s12812_s6 + $0x7c0] sm:$0xff]  }
 0x1ad   : > { %14524 = vst [vmem:[#allocation10_spill] sm:$0xff] %v13188_v32  ;;  %14525 = vst [vmem:[#allocation11_spill] sm:$0xff] %v13190_v33  ;;  %v13194_v44 = vpop.f32.mrb[27].mxu0  ;;  %v13196_v45 = vpop.f32.mrb[27].mxu1  ;;  %v12088_v33 = vld [vmem:[%s12812_s6 + $0x228] sm:$0xff]  }
 0x1ae   : > { %14526 = vst [vmem:[#allocation12_spill] sm:$0xff] %v13194_v44  ;;  %14527 = vst [vmem:[#allocation13_spill] sm:$0xff] %v13196_v45  ;;  %v12089_v44 = vld [vmem:[%s12812_s6 + $0x628] sm:$0xff]  }
 0x1af   : > { %11540 = vmatmul.mubr.msk.bf16.gmra.mrb[132].mxu0 %vm6145_vm2, %v12084_v28  ;;  %11796 = vmatmul.mubr.msk.bf16.gmra.mrb[132].mxu1 %vm6145_vm2, %v12085_v29  ;;  %v12090_v29 = vld [vmem:[%s12812_s6 + $0x230] sm:$0xff]  }
 0x1b0   : > { %11543 = vmatprep.mubr.msk.bf16.mxu0 %vm6145_vm2, %v12086_v40  ;;  %11799 = vmatprep.mubr.msk.bf16.mxu1 %vm6145_vm2, %v12087_v41  ;;  %v12091_v40 = vld [vmem:[%s12812_s6 + $0x630] sm:$0xff]  }
 0x1b2   : > { %v13202_v52 = vpop.f32.mrb[28].mxu0  ;;  %v13204_v53 = vpop.f32.mrb[28].mxu1 }
 0x1b3   : > { %14528 = vst [vmem:[#allocation14_spill] sm:$0xff] %v13202_v52  ;;  %14529 = vst [vmem:[#allocation15_spill] sm:$0xff] %v13204_v53  ;;  %v13206_v0 = vpop.f32.mrb[29].mxu0  ;;  %v13208_v1 = vpop.f32.mrb[29].mxu1  ;;  %v12092_v53 = vld [vmem:[%s12812_s6 + $0x238] sm:$0xff]  }
 0x1b4   : > { %14530 = vst [vmem:[#allocation16_spill] sm:$0xff] %v13206_v0  ;;  %14531 = vst [vmem:[#allocation17_spill] sm:$0xff] %v13208_v1  ;;  %v13212_v45 = vpop.f32.mrb[30].mxu0  ;;  %v13214_v28 = vpop.f32.mrb[30].mxu1 }
 0x1b5   : > { %14532 = vst [vmem:[#allocation18_spill] sm:$0xff] %v13212_v45  ;;  %14533 = vst [vmem:[#allocation19_spill] sm:$0xff] %v13214_v28  ;;  %v13218_v41 = vpop.f32.mrb[31].mxu0  ;;  %v13220_v52 = vpop.f32.mrb[31].mxu1 }
 0x1b6   : > { %14534 = vst [vmem:[#allocation20_spill] sm:$0xff] %v13218_v41  ;;  %14535 = vst [vmem:[#allocation21_spill] sm:$0xff] %v13220_v52  ;;  %v12093_v41 = vld [vmem:[%s12812_s6 + $0x638] sm:$0xff]  }
 0x1b7   : > { %11544 = vmatmul.mubr.msk.bf16.gmra.mrb[136].mxu0 %vm6145_vm2, %v12088_v33  ;;  %11800 = vmatmul.mubr.msk.bf16.gmra.mrb[136].mxu1 %vm6145_vm2, %v12089_v44  ;;  %v12094_v44 = vld [vmem:[%s12812_s6 + $0x240] sm:$0xff]  }
 0x1b8   : > { %11547 = vmatprep.mubr.msk.bf16.mxu0 %vm6145_vm2, %v12090_v29  ;;  %11803 = vmatprep.mubr.msk.bf16.mxu1 %vm6145_vm2, %v12091_v40  ;;  %v12095_v29 = vld [vmem:[%s12812_s6 + $0x640] sm:$0xff]  }
 0x1ba   : > { %v13226_v1 = vpop.f32.mrb[32].mxu0  ;;  %v13228_v45 = vpop.f32.mrb[32].mxu1 }
 0x1bb   : > { %14536 = vst [vmem:[#allocation22_spill] sm:$0xff] %v13226_v1  ;;  %14537 = vst [vmem:[#allocation23_spill] sm:$0xff] %v13228_v45  ;;  %v13230_v28 = vpop.f32.mrb[33].mxu0  ;;  %v13232_v0 = vpop.f32.mrb[33].mxu1  ;;  %v12096_v45 = vld [vmem:[%s12812_s6 + $0x248] sm:$0xff]  }
 0x1bc   : > { %14538 = vst [vmem:[#allocation24_spill] sm:$0xff] %v13230_v28  ;;  %14539 = vst [vmem:[#allocation25_spill] sm:$0xff] %v13232_v0  ;;  %v13236_v52 = vpop.f32.mrb[34].mxu0  ;;  %v13238_v33 = vpop.f32.mrb[34].mxu1 }
 0x1bd   : > { %14540 = vst [vmem:[#allocation26_spill] sm:$0xff] %v13236_v52  ;;  %14541 = vst [vmem:[#allocation27_spill] sm:$0xff] %v13238_v33  ;;  %v13242_v40 = vpop.f32.mrb[35].mxu0  ;;  %v13244_v1 = vpop.f32.mrb[35].mxu1 }
 0x1be   : > { %14542 = vst [vmem:[#allocation28_spill] sm:$0xff] %v13242_v40  ;;  %14543 = vst [vmem:[#allocation29_spill] sm:$0xff] %v13244_v1  ;;  %v12097_v40 = vld [vmem:[%s12812_s6 + $0x648] sm:$0xff]  }
 0x1bf   : > { %11548 = vmatmul.mubr.msk.bf16.gmra.mrb[140].mxu0 %vm6145_vm2, %v12092_v53  ;;  %11804 = vmatmul.mubr.msk.bf16.gmra.mrb[140].mxu1 %vm6145_vm2, %v12093_v41  ;;  %v12098_v41 = vld [vmem:[%s12812_s6 + $0x250] sm:$0xff]  }
 0x1c0   : > { %11551 = vmatprep.mubr.msk.bf16.mxu0 %vm6145_vm2, %v12094_v44  ;;  %11807 = vmatprep.mubr.msk.bf16.mxu1 %vm6145_vm2, %v12095_v29  ;;  %v12099_v44 = vld [vmem:[%s12812_s6 + $0x650] sm:$0xff]  }
 0x1c2   : > { %v13250_v0 = vpop.f32.mrb[36].mxu0  ;;  %v13252_v52 = vpop.f32.mrb[36].mxu1 }
 0x1c3   : > { %14544 = vst [vmem:[#allocation30_spill] sm:$0xff] %v13250_v0  ;;  %14545 = vst [vmem:[#allocation31_spill] sm:$0xff] %v13252_v52  ;;  %v13254_v33 = vpop.f32.mrb[37].mxu0  ;;  %v13256_v28 = vpop.f32.mrb[37].mxu1  ;;  %v12100_v52 = vld [vmem:[%s12812_s6 + $0x258] sm:$0xff]  }
 0x1c4   : > { %14546 = vst [vmem:[#allocation32_spill] sm:$0xff] %v13254_v33  ;;  %14547 = vst [vmem:[#allocation33_spill] sm:$0xff] %v13256_v28  ;;  %v13260_v1 = vpop.f32.mrb[38].mxu0  ;;  %v13262_v53 = vpop.f32.mrb[38].mxu1 }
 0x1c5   : > { %14548 = vst [vmem:[#allocation34_spill] sm:$0xff] %v13260_v1  ;;  %14549 = vst [vmem:[#allocation35_spill] sm:$0xff] %v13262_v53  ;;  %v13266_v29 = vpop.f32.mrb[39].mxu0  ;;  %v13268_v0 = vpop.f32.mrb[39].mxu1 }
 0x1c6   : > { %14550 = vst [vmem:[#allocation36_spill] sm:$0xff] %v13266_v29  ;;  %14551 = vst [vmem:[#allocation37_spill] sm:$0xff] %v13268_v0  ;;  %v12101_v29 = vld [vmem:[%s12812_s6 + $0x658] sm:$0xff]  }
 0x1c7   : > { %11552 = vmatmul.mubr.msk.bf16.gmra.mrb[144].mxu0 %vm6145_vm2, %v12096_v45  ;;  %11808 = vmatmul.mubr.msk.bf16.gmra.mrb[144].mxu1 %vm6145_vm2, %v12097_v40  ;;  %v12102_v40 = vld [vmem:[%s12812_s6 + $0x260] sm:$0xff]  }
 0x1c8   : > { %11555 = vmatprep.mubr.msk.bf16.mxu0 %vm6145_vm2, %v12098_v41  ;;  %11811 = vmatprep.mubr.msk.bf16.mxu1 %vm6145_vm2, %v12099_v44  ;;  %v12103_v41 = vld [vmem:[%s12812_s6 + $0x660] sm:$0xff]  }
 0x1ca   : > { %v13274_v28 = vpop.f32.mrb[40].mxu0  ;;  %v13276_v1 = vpop.f32.mrb[40].mxu1 }
 0x1cb   : > { %14552 = vst [vmem:[#allocation38_spill] sm:$0xff] %v13274_v28  ;;  %14553 = vst [vmem:[#allocation39_spill] sm:$0xff] %v13276_v1  ;;  %v13278_v53 = vpop.f32.mrb[41].mxu0  ;;  %v13280_v33 = vpop.f32.mrb[41].mxu1  ;;  %v12104_v1 = vld [vmem:[%s12812_s6 + $0x268] sm:$0xff]  }
 0x1cc   : > { %14554 = vst [vmem:[#allocation40_spill] sm:$0xff] %v13278_v53  ;;  %14555 = vst [vmem:[#allocation41_spill] sm:$0xff] %v13280_v33  ;;  %v13284_v0 = vpop.f32.mrb[42].mxu0  ;;  %v13286_v45 = vpop.f32.mrb[42].mxu1 }
 0x1cd   : > { %14556 = vst [vmem:[#allocation42_spill] sm:$0xff] %v13284_v0  ;;  %14557 = vst [vmem:[#allocation43_spill] sm:$0xff] %v13286_v45  ;;  %v13290_v44 = vpop.f32.mrb[43].mxu0  ;;  %v13292_v28 = vpop.f32.mrb[43].mxu1 }
 0x1ce   : > { %14558 = vst [vmem:[#allocation44_spill] sm:$0xff] %v13290_v44  ;;  %14559 = vst [vmem:[#allocation45_spill] sm:$0xff] %v13292_v28  ;;  %v12105_v44 = vld [vmem:[%s12812_s6 + $0x668] sm:$0xff]  }
 0x1cf   : > { %11556 = vmatmul.mubr.msk.bf16.gmra.mrb[148].mxu0 %vm6145_vm2, %v12100_v52  ;;  %11812 = vmatmul.mubr.msk.bf16.gmra.mrb[148].mxu1 %vm6145_vm2, %v12101_v29  ;;  %v12106_v29 = vld [vmem:[%s12812_s6 + $0x270] sm:$0xff]  }
 0x1d0   : > { %11559 = vmatprep.mubr.msk.bf16.mxu0 %vm6145_vm2, %v12102_v40  ;;  %11815 = vmatprep.mubr.msk.bf16.mxu1 %vm6145_vm2, %v12103_v41  ;;  %v12107_v40 = vld [vmem:[%s12812_s6 + $0x670] sm:$0xff]  }
 0x1d2   : > { %v13298_v33 = vpop.f32.mrb[44].mxu0  ;;  %v13300_v0 = vpop.f32.mrb[44].mxu1 }
 0x1d3   : > { %14560 = vst [vmem:[#allocation46_spill] sm:$0xff] %v13298_v33  ;;  %14561 = vst [vmem:[#allocation47_spill] sm:$0xff] %v13300_v0  ;;  %v13302_v45 = vpop.f32.mrb[45].mxu0  ;;  %v13304_v53 = vpop.f32.mrb[45].mxu1  ;;  %v12108_v0 = vld [vmem:[%s12812_s6 + $0x278] sm:$0xff]  }
 0x1d4   : > { %14562 = vst [vmem:[#allocation48_spill] sm:$0xff] %v13302_v45  ;;  %14563 = vst [vmem:[#allocation49_spill] sm:$0xff] %v13304_v53  ;;  %v13308_v28 = vpop.f32.mrb[46].mxu0  ;;  %v13310_v52 = vpop.f32.mrb[46].mxu1 }
 0x1d5   : > { %14564 = vst [vmem:[#allocation50_spill] sm:$0xff] %v13308_v28  ;;  %14565 = vst [vmem:[#allocation51_spill] sm:$0xff] %v13310_v52  ;;  %v13314_v41 = vpop.f32.mrb[47].mxu0  ;;  %v13316_v33 = vpop.f32.mrb[47].mxu1 }
 0x1d6   : > { %14566 = vst [vmem:[#allocation52_spill] sm:$0xff] %v13314_v41  ;;  %14567 = vst [vmem:[#allocation53_spill] sm:$0xff] %v13316_v33  ;;  %v12109_v41 = vld [vmem:[%s12812_s6 + $0x678] sm:$0xff]  }
 0x1d7   : > { %11560 = vmatmul.mubr.msk.bf16.gmra.mrb[152].mxu0 %vm6145_vm2, %v12104_v1  ;;  %11816 = vmatmul.mubr.msk.bf16.gmra.mrb[152].mxu1 %vm6145_vm2, %v12105_v44  ;;  %v12110_v44 = vld [vmem:[%s12812_s6 + $0x280] sm:$0xff]  }
 0x1d8   : > { %11563 = vmatprep.mubr.msk.bf16.mxu0 %vm6145_vm2, %v12106_v29  ;;  %11819 = vmatprep.mubr.msk.bf16.mxu1 %vm6145_vm2, %v12107_v40  ;;  %v12111_v29 = vld [vmem:[%s12812_s6 + $0x680] sm:$0xff]  }
 0x1da   : > { %v13322_v53 = vpop.f32.mrb[48].mxu0  ;;  %v13324_v28 = vpop.f32.mrb[48].mxu1 }
 0x1db   : > { %14568 = vst [vmem:[#allocation54_spill] sm:$0xff] %v13322_v53  ;;  %14569 = vst [vmem:[#allocation55_spill] sm:$0xff] %v13324_v28  ;;  %v13326_v52 = vpop.f32.mrb[49].mxu0  ;;  %v13328_v45 = vpop.f32.mrb[49].mxu1  ;;  %v12112_v28 = vld [vmem:[%s12812_s6 + $0x288] sm:$0xff]  }
 0x1dc   : > { %14570 = vst [vmem:[#allocation56_spill] sm:$0xff] %v13326_v52  ;;  %14571 = vst [vmem:[#allocation57_spill] sm:$0xff] %v13328_v45  ;;  %v13332_v33 = vpop.f32.mrb[50].mxu0  ;;  %v13334_v1 = vpop.f32.mrb[50].mxu1 }
 0x1dd   : > { %14572 = vst [vmem:[#allocation58_spill] sm:$0xff] %v13332_v33  ;;  %14573 = vst [vmem:[#allocation59_spill] sm:$0xff] %v13334_v1  ;;  %v13338_v40 = vpop.f32.mrb[51].mxu0  ;;  %v13340_v53 = vpop.f32.mrb[51].mxu1 }
 0x1de   : > { %14574 = vst [vmem:[#allocation60_spill] sm:$0xff] %v13338_v40  ;;  %14575 = vst [vmem:[#allocation61_spill] sm:$0xff] %v13340_v53  ;;  %v12113_v40 = vld [vmem:[%s12812_s6 + $0x688] sm:$0xff]  }
 0x1df   : > { %11564 = vmatmul.mubr.msk.bf16.gmra.mrb[156].mxu0 %vm6145_vm2, %v12108_v0  ;;  %11820 = vmatmul.mubr.msk.bf16.gmra.mrb[156].mxu1 %vm6145_vm2, %v12109_v41  ;;  %v12114_v41 = vld [vmem:[%s12812_s6 + $0x290] sm:$0xff]  }
 0x1e0   : > { %11567 = vmatprep.mubr.msk.bf16.mxu0 %vm6145_vm2, %v12110_v44  ;;  %11823 = vmatprep.mubr.msk.bf16.mxu1 %vm6145_vm2, %v12111_v29  ;;  %v12115_v44 = vld [vmem:[%s12812_s6 + $0x690] sm:$0xff]  }
 0x1e2   : > { %v13346_v45 = vpop.f32.mrb[52].mxu0  ;;  %v13348_v33 = vpop.f32.mrb[52].mxu1 }
 0x1e3   : > { %14576 = vst [vmem:[#allocation62_spill] sm:$0xff] %v13346_v45  ;;  %14577 = vst [vmem:[#allocation63_spill] sm:$0xff] %v13348_v33  ;;  %v13350_v1 = vpop.f32.mrb[53].mxu0  ;;  %v13352_v52 = vpop.f32.mrb[53].mxu1  ;;  %v12116_v33 = vld [vmem:[%s12812_s6 + $0x298] sm:$0xff]  }
 0x1e4   : > { %14578 = vst [vmem:[#allocation64_spill] sm:$0xff] %v13350_v1  ;;  %14579 = vst [vmem:[#allocation65_spill] sm:$0xff] %v13352_v52  ;;  %v13356_v53 = vpop.f32.mrb[54].mxu0  ;;  %v13358_v0 = vpop.f32.mrb[54].mxu1 }
 0x1e5   : > { %14580 = vst [vmem:[#allocation66_spill] sm:$0xff] %v13356_v53  ;;  %14581 = vst [vmem:[#allocation67_spill] sm:$0xff] %v13358_v0  ;;  %v13362_v29 = vpop.f32.mrb[55].mxu0  ;;  %v13364_v45 = vpop.f32.mrb[55].mxu1 }
 0x1e6   : > { %14582 = vst [vmem:[#allocation68_spill] sm:$0xff] %v13362_v29  ;;  %14583 = vst [vmem:[#allocation69_spill] sm:$0xff] %v13364_v45  ;;  %v12117_v29 = vld [vmem:[%s12812_s6 + $0x698] sm:$0xff]  }
 0x1e7   : > { %11568 = vmatmul.mubr.msk.bf16.gmra.mrb[160].mxu0 %vm6145_vm2, %v12112_v28  ;;  %11824 = vmatmul.mubr.msk.bf16.gmra.mrb[160].mxu1 %vm6145_vm2, %v12113_v40  ;;  %v12118_v40 = vld [vmem:[%s12812_s6 + $0x2a0] sm:$0xff]  }
 0x1e8   : > { %11571 = vmatprep.mubr.msk.bf16.mxu0 %vm6145_vm2, %v12114_v41  ;;  %11827 = vmatprep.mubr.msk.bf16.mxu1 %vm6145_vm2, %v12115_v44  ;;  %v12119_v41 = vld [vmem:[%s12812_s6 + $0x6a0] sm:$0xff]  }
 0x1ea   : > { %v13370_v52 = vpop.f32.mrb[56].mxu0  ;;  %v13372_v53 = vpop.f32.mrb[56].mxu1 }
 0x1eb   : > { %14584 = vst [vmem:[#allocation70_spill] sm:$0xff] %v13370_v52  ;;  %14585 = vst [vmem:[#allocation71_spill] sm:$0xff] %v13372_v53  ;;  %v13374_v0 = vpop.f32.mrb[57].mxu0  ;;  %v13376_v1 = vpop.f32.mrb[57].mxu1  ;;  %v12120_v53 = vld [vmem:[%s12812_s6 + $0x2a8] sm:$0xff]  }
 0x1ec   : > { %14586 = vst [vmem:[#allocation72_spill] sm:$0xff] %v13374_v0  ;;  %14587 = vst [vmem:[#allocation73_spill] sm:$0xff] %v13376_v1  ;;  %v13380_v45 = vpop.f32.mrb[58].mxu0  ;;  %v13382_v28 = vpop.f32.mrb[58].mxu1 }
 0x1ed   : > { %14588 = vst [vmem:[#allocation74_spill] sm:$0xff] %v13380_v45  ;;  %14589 = vst [vmem:[#allocation75_spill] sm:$0xff] %v13382_v28  ;;  %v13386_v44 = vpop.f32.mrb[59].mxu0  ;;  %v13388_v52 = vpop.f32.mrb[59].mxu1 }
 0x1ee   : > { %14590 = vst [vmem:[#allocation76_spill] sm:$0xff] %v13386_v44  ;;  %14591 = vst [vmem:[#allocation77_spill] sm:$0xff] %v13388_v52  ;;  %v12121_v44 = vld [vmem:[%s12812_s6 + $0x6a8] sm:$0xff]  }
 0x1ef   : > { %11572 = vmatmul.mubr.msk.bf16.gmra.mrb[164].mxu0 %vm6145_vm2, %v12116_v33  ;;  %11828 = vmatmul.mubr.msk.bf16.gmra.mrb[164].mxu1 %vm6145_vm2, %v12117_v29  ;;  %v12122_v29 = vld [vmem:[%s12812_s6 + $0x2b0] sm:$0xff]  }
 0x1f0   : > { %11575 = vmatprep.mubr.msk.bf16.mxu0 %vm6145_vm2, %v12118_v40  ;;  %11831 = vmatprep.mubr.msk.bf16.mxu1 %vm6145_vm2, %v12119_v41  ;;  %v12123_v40 = vld [vmem:[%s12812_s6 + $0x6b0] sm:$0xff]  }
 0x1f2   : > { %v13394_v1 = vpop.f32.mrb[60].mxu0  ;;  %v13396_v45 = vpop.f32.mrb[60].mxu1 }
 0x1f3   : > { %14592 = vst [vmem:[#allocation78_spill] sm:$0xff] %v13394_v1  ;;  %14593 = vst [vmem:[#allocation79_spill] sm:$0xff] %v13396_v45  ;;  %v13398_v28 = vpop.f32.mrb[61].mxu0  ;;  %v13400_v0 = vpop.f32.mrb[61].mxu1  ;;  %v12124_v45 = vld [vmem:[%s12812_s6 + $0x2b8] sm:$0xff]  }
 0x1f4   : > { %14594 = vst [vmem:[#allocation80_spill] sm:$0xff] %v13398_v28  ;;  %14595 = vst [vmem:[#allocation81_spill] sm:$0xff] %v13400_v0  ;;  %v13404_v52 = vpop.f32.mrb[62].mxu0  ;;  %v13406_v33 = vpop.f32.mrb[62].mxu1 }
 0x1f5   : > { %14596 = vst [vmem:[#allocation82_spill] sm:$0xff] %v13404_v52  ;;  %14597 = vst [vmem:[#allocation83_spill] sm:$0xff] %v13406_v33  ;;  %v13410_v41 = vpop.f32.mrb[63].mxu0  ;;  %v13412_v1 = vpop.f32.mrb[63].mxu1 }
 0x1f6   : > { %14598 = vst [vmem:[#allocation84_spill] sm:$0xff] %v13410_v41  ;;  %14599 = vst [vmem:[#allocation85_spill] sm:$0xff] %v13412_v1  ;;  %v12125_v41 = vld [vmem:[%s12812_s6 + $0x6b8] sm:$0xff]  }
 0x1f7   : > { %11576 = vmatmul.mubr.msk.bf16.gmra.mrb[168].mxu0 %vm6145_vm2, %v12120_v53  ;;  %11832 = vmatmul.mubr.msk.bf16.gmra.mrb[168].mxu1 %vm6145_vm2, %v12121_v44  ;;  %v12126_v44 = vld [vmem:[%s12812_s6 + $0x2c0] sm:$0xff]  }
 0x1f8   : > { %11579 = vmatprep.mubr.msk.bf16.mxu0 %vm6145_vm2, %v12122_v29  ;;  %11835 = vmatprep.mubr.msk.bf16.mxu1 %vm6145_vm2, %v12123_v40  ;;  %v12127_v29 = vld [vmem:[%s12812_s6 + $0x6c0] sm:$0xff]  }
 0x1fa   : > { %v13418_v0 = vpop.f32.mrb[64].mxu0  ;;  %v13420_v52 = vpop.f32.mrb[64].mxu1 }
 0x1fb   : > { %14600 = vst [vmem:[#allocation86_spill] sm:$0xff] %v13418_v0  ;;  %14601 = vst [vmem:[#allocation87_spill] sm:$0xff] %v13420_v52  ;;  %v13422_v33 = vpop.f32.mrb[65].mxu0  ;;  %v13424_v28 = vpop.f32.mrb[65].mxu1  ;;  %v12128_v52 = vld [vmem:[%s12812_s6 + $0x2c8] sm:$0xff]  }
 0x1fc   : > { %14602 = vst [vmem:[#allocation88_spill] sm:$0xff] %v13422_v33  ;;  %14603 = vst [vmem:[#allocation89_spill] sm:$0xff] %v13424_v28  ;;  %v13428_v1 = vpop.f32.mrb[66].mxu0  ;;  %v13430_v53 = vpop.f32.mrb[66].mxu1 }
 0x1fd   : > { %14604 = vst [vmem:[#allocation90_spill] sm:$0xff] %v13428_v1  ;;  %14605 = vst [vmem:[#allocation91_spill] sm:$0xff] %v13430_v53  ;;  %v13434_v40 = vpop.f32.mrb[67].mxu0  ;;  %v13436_v0 = vpop.f32.mrb[67].mxu1 }
 0x1fe   : > { %14606 = vst [vmem:[#allocation92_spill] sm:$0xff] %v13434_v40  ;;  %14607 = vst [vmem:[#allocation93_spill] sm:$0xff] %v13436_v0  ;;  %v12129_v40 = vld [vmem:[%s12812_s6 + $0x6c8] sm:$0xff]  }
 0x1ff   : > { %11580 = vmatmul.mubr.msk.bf16.gmra.mrb[172].mxu0 %vm6145_vm2, %v12124_v45  ;;  %11836 = vmatmul.mubr.msk.bf16.gmra.mrb[172].mxu1 %vm6145_vm2, %v12125_v41  ;;  %v12130_v41 = vld [vmem:[%s12812_s6 + $0x2d0] sm:$0xff]  }
 0x200   : > { %11583 = vmatprep.mubr.msk.bf16.mxu0 %vm6145_vm2, %v12126_v44  ;;  %11839 = vmatprep.mubr.msk.bf16.mxu1 %vm6145_vm2, %v12127_v29  ;;  %v12131_v44 = vld [vmem:[%s12812_s6 + $0x6d0] sm:$0xff]  }
 0x202   : > { %v13442_v28 = vpop.f32.mrb[68].mxu0  ;;  %v13444_v1 = vpop.f32.mrb[68].mxu1 }
 0x203   : > { %14608 = vst [vmem:[#allocation94_spill] sm:$0xff] %v13442_v28  ;;  %14609 = vst [vmem:[#allocation95_spill] sm:$0xff] %v13444_v1  ;;  %v13446_v53 = vpop.f32.mrb[69].mxu0  ;;  %v13448_v33 = vpop.f32.mrb[69].mxu1  ;;  %v12132_v1 = vld [vmem:[%s12812_s6 + $0x2d8] sm:$0xff]  }
 0x204   : > { %14610 = vst [vmem:[#allocation96_spill] sm:$0xff] %v13446_v53  ;;  %14611 = vst [vmem:[#allocation97_spill] sm:$0xff] %v13448_v33  ;;  %v13452_v0 = vpop.f32.mrb[70].mxu0  ;;  %v13454_v45 = vpop.f32.mrb[70].mxu1 }
 0x205   : > { %14612 = vst [vmem:[#allocation98_spill] sm:$0xff] %v13452_v0  ;;  %14613 = vst [vmem:[#allocation99_spill] sm:$0xff] %v13454_v45  ;;  %v13458_v29 = vpop.f32.mrb[71].mxu0  ;;  %v13460_v28 = vpop.f32.mrb[71].mxu1 }
 0x206   : > { %14614 = vst [vmem:[#allocation100_spill] sm:$0xff] %v13458_v29  ;;  %14615 = vst [vmem:[#allocation101_spill] sm:$0xff] %v13460_v28  ;;  %v12133_v29 = vld [vmem:[%s12812_s6 + $0x6d8] sm:$0xff]  }
 0x207   : > { %11584 = vmatmul.mubr.msk.bf16.gmra.mrb[176].mxu0 %vm6145_vm2, %v12128_v52  ;;  %11840 = vmatmul.mubr.msk.bf16.gmra.mrb[176].mxu1 %vm6145_vm2, %v12129_v40  ;;  %v12134_v40 = vld [vmem:[%s12812_s6 + $0x2e0] sm:$0xff]  }
 0x208   : > { %11587 = vmatprep.mubr.msk.bf16.mxu0 %vm6145_vm2, %v12130_v41  ;;  %11843 = vmatprep.mubr.msk.bf16.mxu1 %vm6145_vm2, %v12131_v44  ;;  %v12135_v41 = vld [vmem:[%s12812_s6 + $0x6e0] sm:$0xff]  }
 0x20a   : > { %v13466_v33 = vpop.f32.mrb[72].mxu0  ;;  %v13468_v0 = vpop.f32.mrb[72].mxu1 }
 0x20b   : > { %14616 = vst [vmem:[#allocation102_spill] sm:$0xff] %v13466_v33  ;;  %14617 = vst [vmem:[#allocation103_spill] sm:$0xff] %v13468_v0  ;;  %v13470_v45 = vpop.f32.mrb[73].mxu0  ;;  %v13472_v53 = vpop.f32.mrb[73].mxu1  ;;  %v12136_v0 = vld [vmem:[%s12812_s6 + $0x2e8] sm:$0xff]  }
 0x20c   : > { %14618 = vst [vmem:[#allocation104_spill] sm:$0xff] %v13470_v45  ;;  %14619 = vst [vmem:[#allocation105_spill] sm:$0xff] %v13472_v53  ;;  %v13476_v28 = vpop.f32.mrb[74].mxu0  ;;  %v13478_v52 = vpop.f32.mrb[74].mxu1 }
 0x20d   : > { %14620 = vst [vmem:[#allocation106_spill] sm:$0xff] %v13476_v28  ;;  %14621 = vst [vmem:[#allocation107_spill] sm:$0xff] %v13478_v52  ;;  %v13482_v44 = vpop.f32.mrb[75].mxu0  ;;  %v13484_v33 = vpop.f32.mrb[75].mxu1 }
 0x20e   : > { %14622 = vst [vmem:[#allocation108_spill] sm:$0xff] %v13482_v44  ;;  %14623 = vst [vmem:[#allocation109_spill] sm:$0xff] %v13484_v33  ;;  %v12137_v44 = vld [vmem:[%s12812_s6 + $0x6e8] sm:$0xff]  }
 0x20f   : > { %11588 = vmatmul.mubr.msk.bf16.gmra.mrb[180].mxu0 %vm6145_vm2, %v12132_v1  ;;  %11844 = vmatmul.mubr.msk.bf16.gmra.mrb[180].mxu1 %vm6145_vm2, %v12133_v29  ;;  %v12138_v29 = vld [vmem:[%s12812_s6 + $0x2f0] sm:$0xff]  }
 0x210   : > { %11591 = vmatprep.mubr.msk.bf16.mxu0 %vm6145_vm2, %v12134_v40  ;;  %11847 = vmatprep.mubr.msk.bf16.mxu1 %vm6145_vm2, %v12135_v41  ;;  %v12139_v40 = vld [vmem:[%s12812_s6 + $0x6f0] sm:$0xff]  }
 0x212   : > { %v13490_v53 = vpop.f32.mrb[76].mxu0  ;;  %v13492_v28 = vpop.f32.mrb[76].mxu1 }
 0x213   : > { %14624 = vst [vmem:[#allocation110_spill] sm:$0xff] %v13490_v53  ;;  %14625 = vst [vmem:[#allocation111_spill] sm:$0xff] %v13492_v28  ;;  %v13494_v52 = vpop.f32.mrb[77].mxu0  ;;  %v13496_v45 = vpop.f32.mrb[77].mxu1  ;;  %v12140_v28 = vld [vmem:[%s12812_s6 + $0x2f8] sm:$0xff]  }
 0x214   : > { %14626 = vst [vmem:[#allocation112_spill] sm:$0xff] %v13494_v52  ;;  %14627 = vst [vmem:[#allocation113_spill] sm:$0xff] %v13496_v45  ;;  %v13500_v33 = vpop.f32.mrb[78].mxu0  ;;  %v13502_v1 = vpop.f32.mrb[78].mxu1 }
 0x215   : > { %14628 = vst [vmem:[#allocation114_spill] sm:$0xff] %v13500_v33  ;;  %14629 = vst [vmem:[#allocation115_spill] sm:$0xff] %v13502_v1  ;;  %v13506_v41 = vpop.f32.mrb[79].mxu0  ;;  %v13508_v53 = vpop.f32.mrb[79].mxu1 }
 0x216   : > { %14630 = vst [vmem:[#allocation116_spill] sm:$0xff] %v13506_v41  ;;  %14631 = vst [vmem:[#allocation117_spill] sm:$0xff] %v13508_v53  ;;  %v12141_v41 = vld [vmem:[%s12812_s6 + $0x6f8] sm:$0xff]  }
 0x217   : > { %11592 = vmatmul.mubr.msk.bf16.gmra.mrb[184].mxu0 %vm6145_vm2, %v12136_v0  ;;  %11848 = vmatmul.mubr.msk.bf16.gmra.mrb[184].mxu1 %vm6145_vm2, %v12137_v44  ;;  %v12142_v44 = vld [vmem:[%s12812_s6 + $0x300] sm:$0xff]  }
 0x218   : > { %11595 = vmatprep.mubr.msk.bf16.mxu0 %vm6145_vm2, %v12138_v29  ;;  %11851 = vmatprep.mubr.msk.bf16.mxu1 %vm6145_vm2, %v12139_v40  ;;  %v12143_v29 = vld [vmem:[%s12812_s6 + $0x700] sm:$0xff]  }
 0x21a   : > { %v13514_v45 = vpop.f32.mrb[80].mxu0  ;;  %v13516_v33 = vpop.f32.mrb[80].mxu1 }
 0x21b   : > { %14632 = vst [vmem:[#allocation118_spill] sm:$0xff] %v13514_v45  ;;  %14633 = vst [vmem:[#allocation119_spill] sm:$0xff] %v13516_v33  ;;  %v13518_v1 = vpop.f32.mrb[81].mxu0  ;;  %v13520_v52 = vpop.f32.mrb[81].mxu1  ;;  %v12144_v33 = vld [vmem:[%s12812_s6 + $0x308] sm:$0xff]  }
 0x21c   : > { %14634 = vst [vmem:[#allocation120_spill] sm:$0xff] %v13518_v1  ;;  %14635 = vst [vmem:[#allocation121_spill] sm:$0xff] %v13520_v52  ;;  %v13524_v53 = vpop.f32.mrb[82].mxu0  ;;  %v13526_v0 = vpop.f32.mrb[82].mxu1 }
 0x21d   : > { %14636 = vst [vmem:[#allocation122_spill] sm:$0xff] %v13524_v53  ;;  %14637 = vst [vmem:[#allocation123_spill] sm:$0xff] %v13526_v0  ;;  %v13530_v40 = vpop.f32.mrb[83].mxu0  ;;  %v13532_v45 = vpop.f32.mrb[83].mxu1 }
 0x21e   : > { %14638 = vst [vmem:[#allocation124_spill] sm:$0xff] %v13530_v40  ;;  %14639 = vst [vmem:[#allocation125_spill] sm:$0xff] %v13532_v45  ;;  %v12145_v40 = vld [vmem:[%s12812_s6 + $0x708] sm:$0xff]  }
 0x21f   : > { %11596 = vmatmul.mubr.msk.bf16.gmra.mrb[188].mxu0 %vm6145_vm2, %v12140_v28  ;;  %11852 = vmatmul.mubr.msk.bf16.gmra.mrb[188].mxu1 %vm6145_vm2, %v12141_v41  ;;  %v12146_v41 = vld [vmem:[%s12812_s6 + $0x310] sm:$0xff]  }
 0x220   : > { %11599 = vmatprep.mubr.msk.bf16.mxu0 %vm6145_vm2, %v12142_v44  ;;  %11855 = vmatprep.mubr.msk.bf16.mxu1 %vm6145_vm2, %v12143_v29  ;;  %v12147_v44 = vld [vmem:[%s12812_s6 + $0x710] sm:$0xff]  }
 0x222   : > { %v13538_v52 = vpop.f32.mrb[84].mxu0  ;;  %v13540_v53 = vpop.f32.mrb[84].mxu1 }
 0x223   : > { %14640 = vst [vmem:[#allocation126_spill] sm:$0xff] %v13538_v52  ;;  %14641 = vst [vmem:[#allocation127_spill] sm:$0xff] %v13540_v53  ;;  %v13542_v0 = vpop.f32.mrb[85].mxu0  ;;  %v13544_v1 = vpop.f32.mrb[85].mxu1  ;;  %v12148_v53 = vld [vmem:[%s12812_s6 + $0x318] sm:$0xff]  }
 0x224   : > { %14642 = vst [vmem:[#allocation128_spill] sm:$0xff] %v13542_v0  ;;  %14643 = vst [vmem:[#allocation129_spill] sm:$0xff] %v13544_v1  ;;  %v13548_v45 = vpop.f32.mrb[86].mxu0  ;;  %v13550_v28 = vpop.f32.mrb[86].mxu1 }
 0x225   : > { %14644 = vst [vmem:[#allocation130_spill] sm:$0xff] %v13548_v45  ;;  %14645 = vst [vmem:[#allocation131_spill] sm:$0xff] %v13550_v28  ;;  %v13554_v29 = vpop.f32.mrb[87].mxu0  ;;  %v13556_v52 = vpop.f32.mrb[87].mxu1 }
 0x226   : > { %14646 = vst [vmem:[#allocation132_spill] sm:$0xff] %v13554_v29  ;;  %14647 = vst [vmem:[#allocation133_spill] sm:$0xff] %v13556_v52  ;;  %v12149_v29 = vld [vmem:[%s12812_s6 + $0x718] sm:$0xff]  }
 0x227   : > { %11600 = vmatmul.mubr.msk.bf16.gmra.mrb[192].mxu0 %vm6145_vm2, %v12144_v33  ;;  %11856 = vmatmul.mubr.msk.bf16.gmra.mrb[192].mxu1 %vm6145_vm2, %v12145_v40  ;;  %v12150_v40 = vld [vmem:[%s12812_s6 + $0x320] sm:$0xff]  }
 0x228   : > { %11603 = vmatprep.mubr.msk.bf16.mxu0 %vm6145_vm2, %v12146_v41  ;;  %11859 = vmatprep.mubr.msk.bf16.mxu1 %vm6145_vm2, %v12147_v44  ;;  %v12151_v41 = vld [vmem:[%s12812_s6 + $0x720] sm:$0xff]  }
 0x22a   : > { %v13562_v1 = vpop.f32.mrb[88].mxu0  ;;  %v13564_v45 = vpop.f32.mrb[88].mxu1 }
 0x22b   : > { %14648 = vst [vmem:[#allocation134_spill] sm:$0xff] %v13562_v1  ;;  %14649 = vst [vmem:[#allocation135_spill] sm:$0xff] %v13564_v45  ;;  %v13566_v28 = vpop.f32.mrb[89].mxu0  ;;  %v13568_v0 = vpop.f32.mrb[89].mxu1  ;;  %v12152_v45 = vld [vmem:[%s12812_s6 + $0x328] sm:$0xff]  }
 0x22c   : > { %14650 = vst [vmem:[#allocation136_spill] sm:$0xff] %v13566_v28  ;;  %14651 = vst [vmem:[#allocation137_spill] sm:$0xff] %v13568_v0  ;;  %v13572_v52 = vpop.f32.mrb[90].mxu0  ;;  %v13574_v33 = vpop.f32.mrb[90].mxu1 }
 0x22d   : > { %14652 = vst [vmem:[#allocation138_spill] sm:$0xff] %v13572_v52  ;;  %14653 = vst [vmem:[#allocation139_spill] sm:$0xff] %v13574_v33  ;;  %v13578_v44 = vpop.f32.mrb[91].mxu0  ;;  %v13580_v1 = vpop.f32.mrb[91].mxu1 }
 0x22e   : > { %14654 = vst [vmem:[#allocation140_spill] sm:$0xff] %v13578_v44  ;;  %14655 = vst [vmem:[#allocation141_spill] sm:$0xff] %v13580_v1  ;;  %v12153_v44 = vld [vmem:[%s12812_s6 + $0x728] sm:$0xff]  }
 0x22f   : > { %11604 = vmatmul.mubr.msk.bf16.gmra.mrb[196].mxu0 %vm6145_vm2, %v12148_v53  ;;  %11860 = vmatmul.mubr.msk.bf16.gmra.mrb[196].mxu1 %vm6145_vm2, %v12149_v29  ;;  %v12154_v29 = vld [vmem:[%s12812_s6 + $0x330] sm:$0xff]  }
 0x230   : > { %11607 = vmatprep.mubr.msk.bf16.mxu0 %vm6145_vm2, %v12150_v40  ;;  %11863 = vmatprep.mubr.msk.bf16.mxu1 %vm6145_vm2, %v12151_v41  ;;  %v12155_v40 = vld [vmem:[%s12812_s6 + $0x730] sm:$0xff]  }
 0x232   : > { %v13586_v0 = vpop.f32.mrb[92].mxu0  ;;  %v13588_v52 = vpop.f32.mrb[92].mxu1 }
 0x233   : > { %14656 = vst [vmem:[#allocation142_spill] sm:$0xff] %v13586_v0  ;;  %14657 = vst [vmem:[#allocation143_spill] sm:$0xff] %v13588_v52  ;;  %v13590_v33 = vpop.f32.mrb[93].mxu0  ;;  %v13592_v28 = vpop.f32.mrb[93].mxu1  ;;  %v12156_v52 = vld [vmem:[%s12812_s6 + $0x338] sm:$0xff]  }
 0x234   : > { %14658 = vst [vmem:[#allocation144_spill] sm:$0xff] %v13590_v33  ;;  %14659 = vst [vmem:[#allocation145_spill] sm:$0xff] %v13592_v28  ;;  %v13596_v1 = vpop.f32.mrb[94].mxu0  ;;  %v13598_v53 = vpop.f32.mrb[94].mxu1 }
 0x235   : > { %14660 = vst [vmem:[#allocation146_spill] sm:$0xff] %v13596_v1  ;;  %14661 = vst [vmem:[#allocation147_spill] sm:$0xff] %v13598_v53  ;;  %v13602_v41 = vpop.f32.mrb[95].mxu0  ;;  %v13604_v0 = vpop.f32.mrb[95].mxu1 }
 0x236   : > { %14662 = vst [vmem:[#allocation148_spill] sm:$0xff] %v13602_v41  ;;  %14663 = vst [vmem:[#allocation149_spill] sm:$0xff] %v13604_v0  ;;  %v12157_v41 = vld [vmem:[%s12812_s6 + $0x738] sm:$0xff]  }
 0x237   : > { %11608 = vmatmul.mubr.msk.bf16.gmra.mrb[200].mxu0 %vm6145_vm2, %v12152_v45  ;;  %11864 = vmatmul.mubr.msk.bf16.gmra.mrb[200].mxu1 %vm6145_vm2, %v12153_v44  ;;  %v12158_v44 = vld [vmem:[%s12812_s6 + $0x340] sm:$0xff]  }
 0x238   : > { %11611 = vmatprep.mubr.msk.bf16.mxu0 %vm6145_vm2, %v12154_v29  ;;  %11867 = vmatprep.mubr.msk.bf16.mxu1 %vm6145_vm2, %v12155_v40  ;;  %v12159_v29 = vld [vmem:[%s12812_s6 + $0x740] sm:$0xff]  }
 0x23a   : > { %v13610_v28 = vpop.f32.mrb[96].mxu0  ;;  %v13612_v1 = vpop.f32.mrb[96].mxu1 }
 0x23b   : > { %14664 = vst [vmem:[#allocation150_spill] sm:$0xff] %v13610_v28  ;;  %14665 = vst [vmem:[#allocation151_spill] sm:$0xff] %v13612_v1  ;;  %v13614_v53 = vpop.f32.mrb[97].mxu0  ;;  %v13616_v33 = vpop.f32.mrb[97].mxu1  ;;  %v12160_v1 = vld [vmem:[%s12812_s6 + $0x348] sm:$0xff]  }
 0x23c   : > { %14666 = vst [vmem:[#allocation152_spill] sm:$0xff] %v13614_v53  ;;  %14667 = vst [vmem:[#allocation153_spill] sm:$0xff] %v13616_v33  ;;  %v13620_v0 = vpop.f32.mrb[98].mxu0  ;;  %v13622_v45 = vpop.f32.mrb[98].mxu1 }
 0x23d   : > { %14668 = vst [vmem:[#allocation154_spill] sm:$0xff] %v13620_v0  ;;  %14669 = vst [vmem:[#allocation155_spill] sm:$0xff] %v13622_v45  ;;  %v13626_v40 = vpop.f32.mrb[99].mxu0  ;;  %v13628_v28 = vpop.f32.mrb[99].mxu1 }
 0x23e   : > { %14670 = vst [vmem:[#allocation156_spill] sm:$0xff] %v13626_v40  ;;  %14671 = vst [vmem:[#allocation157_spill] sm:$0xff] %v13628_v28  ;;  %v12161_v40 = vld [vmem:[%s12812_s6 + $0x748] sm:$0xff]  }
 0x23f   : > { %11612 = vmatmul.mubr.msk.bf16.gmra.mrb[204].mxu0 %vm6145_vm2, %v12156_v52  ;;  %11868 = vmatmul.mubr.msk.bf16.gmra.mrb[204].mxu1 %vm6145_vm2, %v12157_v41  ;;  %v12162_v41 = vld [vmem:[%s12812_s6 + $0x350] sm:$0xff]  }
 0x240   : > { %11615 = vmatprep.mubr.msk.bf16.mxu0 %vm6145_vm2, %v12158_v44  ;;  %11871 = vmatprep.mubr.msk.bf16.mxu1 %vm6145_vm2, %v12159_v29  ;;  %v12163_v44 = vld [vmem:[%s12812_s6 + $0x750] sm:$0xff]  }
 0x242   : > { %v13634_v33 = vpop.f32.mrb[100].mxu0  ;;  %v13636_v0 = vpop.f32.mrb[100].mxu1 }
 0x243   : > { %14672 = vst [vmem:[#allocation158_spill] sm:$0xff] %v13634_v33  ;;  %14673 = vst [vmem:[#allocation159_spill] sm:$0xff] %v13636_v0  ;;  %v13638_v45 = vpop.f32.mrb[101].mxu0  ;;  %v13640_v53 = vpop.f32.mrb[101].mxu1  ;;  %v12164_v0 = vld [vmem:[%s12812_s6 + $0x358] sm:$0xff]  }
 0x244   : > { %14674 = vst [vmem:[#allocation160_spill] sm:$0xff] %v13638_v45  ;;  %14675 = vst [vmem:[#allocation161_spill] sm:$0xff] %v13640_v53  ;;  %v13644_v28 = vpop.f32.mrb[102].mxu0  ;;  %v13646_v52 = vpop.f32.mrb[102].mxu1 }
 0x245   : > { %14676 = vst [vmem:[#allocation162_spill] sm:$0xff] %v13644_v28  ;;  %14677 = vst [vmem:[#allocation163_spill] sm:$0xff] %v13646_v52  ;;  %v13650_v29 = vpop.f32.mrb[103].mxu0  ;;  %v13652_v33 = vpop.f32.mrb[103].mxu1 }
 0x246   : > { %14678 = vst [vmem:[#allocation164_spill] sm:$0xff] %v13650_v29  ;;  %14679 = vst [vmem:[#allocation165_spill] sm:$0xff] %v13652_v33  ;;  %v12165_v29 = vld [vmem:[%s12812_s6 + $0x758] sm:$0xff]  }
 0x247   : > { %11616 = vmatmul.mubr.msk.bf16.gmra.mrb[208].mxu0 %vm6145_vm2, %v12160_v1  ;;  %11872 = vmatmul.mubr.msk.bf16.gmra.mrb[208].mxu1 %vm6145_vm2, %v12161_v40  ;;  %v12166_v40 = vld [vmem:[%s12812_s6 + $0x360] sm:$0xff]  }
 0x248   : > { %11619 = vmatprep.mubr.msk.bf16.mxu0 %vm6145_vm2, %v12162_v41  ;;  %11875 = vmatprep.mubr.msk.bf16.mxu1 %vm6145_vm2, %v12163_v44  ;;  %v12167_v41 = vld [vmem:[%s12812_s6 + $0x760] sm:$0xff]  }
 0x24a   : > { %v13658_v53 = vpop.f32.mrb[104].mxu0  ;;  %v13660_v28 = vpop.f32.mrb[104].mxu1 }
 0x24b   : > { %14680 = vst [vmem:[#allocation166_spill] sm:$0xff] %v13658_v53  ;;  %14681 = vst [vmem:[#allocation167_spill] sm:$0xff] %v13660_v28  ;;  %v13662_v52 = vpop.f32.mrb[105].mxu0  ;;  %v13664_v45 = vpop.f32.mrb[105].mxu1  ;;  %v12168_v28 = vld [vmem:[%s12812_s6 + $0x368] sm:$0xff]  }
 0x24c   : > { %14682 = vst [vmem:[#allocation168_spill] sm:$0xff] %v13662_v52  ;;  %14683 = vst [vmem:[#allocation169_spill] sm:$0xff] %v13664_v45  ;;  %v13668_v33 = vpop.f32.mrb[106].mxu0  ;;  %v13670_v1 = vpop.f32.mrb[106].mxu1 }
 0x24d   : > { %14684 = vst [vmem:[#allocation170_spill] sm:$0xff] %v13668_v33  ;;  %14685 = vst [vmem:[#allocation171_spill] sm:$0xff] %v13670_v1  ;;  %v13674_v44 = vpop.f32.mrb[107].mxu0  ;;  %v13676_v53 = vpop.f32.mrb[107].mxu1 }
 0x24e   : > { %14686 = vst [vmem:[#allocation172_spill] sm:$0xff] %v13674_v44  ;;  %14687 = vst [vmem:[#allocation173_spill] sm:$0xff] %v13676_v53  ;;  %v12169_v44 = vld [vmem:[%s12812_s6 + $0x768] sm:$0xff]  }
 0x24f   : > { %11620 = vmatmul.mubr.msk.bf16.gmra.mrb[212].mxu0 %vm6145_vm2, %v12164_v0  ;;  %11876 = vmatmul.mubr.msk.bf16.gmra.mrb[212].mxu1 %vm6145_vm2, %v12165_v29  ;;  %v12170_v29 = vld [vmem:[%s12812_s6 + $0x370] sm:$0xff]  }
 0x250   : > { %11623 = vmatprep.mubr.msk.bf16.mxu0 %vm6145_vm2, %v12166_v40  ;;  %11879 = vmatprep.mubr.msk.bf16.mxu1 %vm6145_vm2, %v12167_v41  ;;  %v12171_v40 = vld [vmem:[%s12812_s6 + $0x770] sm:$0xff]  }
 0x252   : > { %v13682_v45 = vpop.f32.mrb[108].mxu0  ;;  %v13684_v33 = vpop.f32.mrb[108].mxu1 }
 0x253   : > { %14688 = vst [vmem:[#allocation174_spill] sm:$0xff] %v13682_v45  ;;  %14689 = vst [vmem:[#allocation175_spill] sm:$0xff] %v13684_v33  ;;  %v13686_v1 = vpop.f32.mrb[109].mxu0  ;;  %v13688_v52 = vpop.f32.mrb[109].mxu1  ;;  %v12172_v33 = vld [vmem:[%s12812_s6 + $0x378] sm:$0xff]  }
 0x254   : > { %14690 = vst [vmem:[#allocation176_spill] sm:$0xff] %v13686_v1  ;;  %14691 = vst [vmem:[#allocation177_spill] sm:$0xff] %v13688_v52  ;;  %v13692_v53 = vpop.f32.mrb[110].mxu0  ;;  %v13694_v0 = vpop.f32.mrb[110].mxu1 }
 0x255   : > { %14692 = vst [vmem:[#allocation178_spill] sm:$0xff] %v13692_v53  ;;  %14693 = vst [vmem:[#allocation179_spill] sm:$0xff] %v13694_v0  ;;  %v13698_v41 = vpop.f32.mrb[111].mxu0  ;;  %v13700_v45 = vpop.f32.mrb[111].mxu1 }
 0x256   : > { %14694 = vst [vmem:[#allocation180_spill] sm:$0xff] %v13698_v41  ;;  %14695 = vst [vmem:[#allocation181_spill] sm:$0xff] %v13700_v45  ;;  %v12173_v41 = vld [vmem:[%s12812_s6 + $0x778] sm:$0xff]  }
 0x257   : > { %11624 = vmatmul.mubr.msk.bf16.gmra.mrb[216].mxu0 %vm6145_vm2, %v12168_v28  ;;  %11880 = vmatmul.mubr.msk.bf16.gmra.mrb[216].mxu1 %vm6145_vm2, %v12169_v44  ;;  %v12174_v44 = vld [vmem:[%s12812_s6 + $0x380] sm:$0xff]  }
 0x258   : > { %11627 = vmatprep.mubr.msk.bf16.mxu0 %vm6145_vm2, %v12170_v29  ;;  %11883 = vmatprep.mubr.msk.bf16.mxu1 %vm6145_vm2, %v12171_v40  ;;  %v12175_v29 = vld [vmem:[%s12812_s6 + $0x780] sm:$0xff]  }
 0x25a   : > { %v13706_v52 = vpop.f32.mrb[112].mxu0  ;;  %v13708_v53 = vpop.f32.mrb[112].mxu1 }
 0x25b   : > { %14696 = vst [vmem:[#allocation182_spill] sm:$0xff] %v13706_v52  ;;  %14697 = vst [vmem:[#allocation183_spill] sm:$0xff] %v13708_v53  ;;  %v13710_v0 = vpop.f32.mrb[113].mxu0  ;;  %v13712_v1 = vpop.f32.mrb[113].mxu1  ;;  %v12176_v53 = vld [vmem:[%s12812_s6 + $0x388] sm:$0xff]  }
 0x25c   : > { %14698 = vst [vmem:[#allocation184_spill] sm:$0xff] %v13710_v0  ;;  %14699 = vst [vmem:[#allocation185_spill] sm:$0xff] %v13712_v1  ;;  %v13716_v45 = vpop.f32.mrb[114].mxu0  ;;  %v13718_v28 = vpop.f32.mrb[114].mxu1 }
 0x25d   : > { %14700 = vst [vmem:[#allocation186_spill] sm:$0xff] %v13716_v45  ;;  %14701 = vst [vmem:[#allocation187_spill] sm:$0xff] %v13718_v28  ;;  %v13722_v40 = vpop.f32.mrb[115].mxu0  ;;  %v13724_v52 = vpop.f32.mrb[115].mxu1 }
 0x25e   : > { %14702 = vst [vmem:[#allocation188_spill] sm:$0xff] %v13722_v40  ;;  %14703 = vst [vmem:[#allocation189_spill] sm:$0xff] %v13724_v52  ;;  %v12177_v40 = vld [vmem:[%s12812_s6 + $0x788] sm:$0xff]  }
 0x25f   : > { %11628 = vmatmul.mubr.msk.bf16.gmra.mrb[220].mxu0 %vm6145_vm2, %v12172_v33  ;;  %11884 = vmatmul.mubr.msk.bf16.gmra.mrb[220].mxu1 %vm6145_vm2, %v12173_v41  ;;  %v12178_v41 = vld [vmem:[%s12812_s6 + $0x390] sm:$0xff]  }
 0x260   : > { %11631 = vmatprep.mubr.msk.bf16.mxu0 %vm6145_vm2, %v12174_v44  ;;  %11887 = vmatprep.mubr.msk.bf16.mxu1 %vm6145_vm2, %v12175_v29  ;;  %v12179_v44 = vld [vmem:[%s12812_s6 + $0x790] sm:$0xff]  }
 0x262   : > { %v13730_v1 = vpop.f32.mrb[116].mxu0  ;;  %v13732_v45 = vpop.f32.mrb[116].mxu1 }
 0x263   : > { %14704 = vst [vmem:[#allocation190_spill] sm:$0xff] %v13730_v1  ;;  %14705 = vst [vmem:[#allocation191_spill] sm:$0xff] %v13732_v45  ;;  %v13734_v28 = vpop.f32.mrb[117].mxu0  ;;  %v13736_v0 = vpop.f32.mrb[117].mxu1  ;;  %v12180_v45 = vld [vmem:[%s12812_s6 + $0x398] sm:$0xff]  }
 0x264   : > { %14706 = vst [vmem:[#allocation192_spill] sm:$0xff] %v13734_v28  ;;  %14707 = vst [vmem:[#allocation193_spill] sm:$0xff] %v13736_v0  ;;  %v13740_v52 = vpop.f32.mrb[118].mxu0  ;;  %v13742_v33 = vpop.f32.mrb[118].mxu1 }
 0x265   : > { %14708 = vst [vmem:[#allocation194_spill] sm:$0xff] %v13740_v52  ;;  %14709 = vst [vmem:[#allocation195_spill] sm:$0xff] %v13742_v33  ;;  %v13746_v29 = vpop.f32.mrb[119].mxu0  ;;  %v13748_v1 = vpop.f32.mrb[119].mxu1 }
 0x266   : > { %14710 = vst [vmem:[#allocation196_spill] sm:$0xff] %v13746_v29  ;;  %14711 = vst [vmem:[#allocation197_spill] sm:$0xff] %v13748_v1  ;;  %v12181_v29 = vld [vmem:[%s12812_s6 + $0x798] sm:$0xff]  }
 0x267   : > { %11632 = vmatmul.mubr.msk.bf16.gmra.mrb[224].mxu0 %vm6145_vm2, %v12176_v53  ;;  %11888 = vmatmul.mubr.msk.bf16.gmra.mrb[224].mxu1 %vm6145_vm2, %v12177_v40  ;;  %v12182_v40 = vld [vmem:[%s12812_s6 + $0x3a0] sm:$0xff]  }
 0x268   : > { %11635 = vmatprep.mubr.msk.bf16.mxu0 %vm6145_vm2, %v12178_v41  ;;  %11891 = vmatprep.mubr.msk.bf16.mxu1 %vm6145_vm2, %v12179_v44  ;;  %v12183_v41 = vld [vmem:[%s12812_s6 + $0x7a0] sm:$0xff]  }
 0x26a   : > { %v13754_v0 = vpop.f32.mrb[120].mxu0  ;;  %v13756_v52 = vpop.f32.mrb[120].mxu1 }
 0x26b   : > { %14712 = vst [vmem:[#allocation198_spill] sm:$0xff] %v13754_v0  ;;  %14713 = vst [vmem:[#allocation199_spill] sm:$0xff] %v13756_v52  ;;  %v13758_v33 = vpop.f32.mrb[121].mxu0  ;;  %v13760_v28 = vpop.f32.mrb[121].mxu1  ;;  %v12185_v0 = vld [vmem:[%s12812_s6 + $0x7a8] sm:$0xff]  }
 0x26c   : > { %14714 = vst [vmem:[#allocation200_spill] sm:$0xff] %v13758_v33  ;;  %14715 = vst [vmem:[#allocation201_spill] sm:$0xff] %v13760_v28  ;;  %v13764_v1 = vpop.f32.mrb[122].mxu0  ;;  %v13766_v53 = vpop.f32.mrb[122].mxu1 }
 0x26d   : > { %14716 = vst [vmem:[#allocation202_spill] sm:$0xff] %v13764_v1  ;;  %14717 = vst [vmem:[#allocation203_spill] sm:$0xff] %v13766_v53  ;;  %v13770_v44 = vpop.f32.mrb[123].mxu0  ;;  %v13772_v52 = vpop.f32.mrb[123].mxu1 }
 0x26e   : > { %14718 = vst [vmem:[#allocation204_spill] sm:$0xff] %v13770_v44  ;;  %14719 = vst [vmem:[#allocation205_spill] sm:$0xff] %v13772_v52  ;;  %v12184_v44 = vld [vmem:[%s12812_s6 + $0x3a8] sm:$0xff]  }
 0x26f   : > { %11636 = vmatmul.mubr.msk.bf16.gmra.mrb[228].mxu0 %vm6145_vm2, %v12180_v45  ;;  %11892 = vmatmul.mubr.msk.bf16.gmra.mrb[228].mxu1 %vm6145_vm2, %v12181_v29  ;;  %v12186_v45 = vld [vmem:[%s12812_s6 + $0x3b0] sm:$0xff]  }
 0x270   : > { %11639 = vmatprep.mubr.msk.bf16.mxu0 %vm6145_vm2, %v12182_v40  ;;  %11895 = vmatprep.mubr.msk.bf16.mxu1 %vm6145_vm2, %v12183_v41  ;;  %v12187_v29 = vld [vmem:[%s12812_s6 + $0x7b0] sm:$0xff]  }
 0x272   : > { %v13778_v1 = vpop.f32.mrb[124].mxu0  ;;  %v13780_v53 = vpop.f32.mrb[124].mxu1 }
 0x273   : > { %14720 = vst [vmem:[#allocation206_spill] sm:$0xff] %v13778_v1  ;;  %14721 = vst [vmem:[#allocation207_spill] sm:$0xff] %v13780_v53  ;;  %v13782_v28 = vpop.f32.mrb[125].mxu0  ;;  %v13784_v33 = vpop.f32.mrb[125].mxu1  ;;  %v12189_v53 = vld [vmem:[%s12812_s6 + $0x7b8] sm:$0xff]  }
 0x274   : > { %14722 = vst [vmem:[#allocation208_spill] sm:$0xff] %v13782_v28  ;;  %14723 = vst [vmem:[#allocation209_spill] sm:$0xff] %v13784_v33  ;;  %v13788_v32 = vpop.f32.mrb[126].mxu0  ;;  %v13790_v52 = vpop.f32.mrb[126].mxu1 }
 0x275   : > { %14724 = vst [vmem:[#allocation210_spill] sm:$0xff] %v13788_v32  ;;  %14725 = vst [vmem:[#allocation211_spill] sm:$0xff] %v13790_v52  ;;  %v13796_v40 = vpop.f32.mrb[127].mxu0  ;;  %v13798_v41 = vpop.f32.mrb[127].mxu1 }
 0x276   : > { %14726 = vst [vmem:[#allocation212_spill] sm:$0xff] %v13796_v40  ;;  %14727 = vst [vmem:[#allocation213_spill] sm:$0xff] %v13798_v41 }
 0x277   : > { %11640 = vmatmul.mubr.msk.bf16.gmra.mrb[232].mxu0 %vm6145_vm2, %v12184_v44  ;;  %11896 = vmatmul.mubr.msk.bf16.gmra.mrb[232].mxu1 %vm6145_vm2, %v12185_v0  ;;  %v12188_v44 = vld [vmem:[%s12812_s6 + $0x3b8] sm:$0xff]   ;;  %v13813_v0 = vld [vmem:[%s14515_s2] ss:$0 sm:$0xff] }
 0x278   : > { %11643 = vmatprep.mubr.msk.bf16.mxu0 %vm6145_vm2, %v12186_v45  ;;  %11899 = vmatprep.mubr.msk.bf16.mxu1 %vm6145_vm2, %v12187_v29 }
 0x27a   : > { %v11537_v52 = vpop.f32.mrb[128].mxu0  ;;  %v11793_v32 = vpop.f32.mrb[128].mxu1 }
 0x27b   : > { %v9004_v33 = vmax.f32 %v13036_v54, %v11537_v52  ;;  %v9132_v40 = vmax.f32 %v13038_v55, %v11793_v32  ;;  %v7467_v41 = vpop.f32.mrb[129].mxu0  ;;  %v8491_v28 = vpop.f32.mrb[129].mxu1  ;;  %v12190_v52 = vld [vmem:[%s12812_s6 + $0x3c0] sm:$0xff]  }
 0x27c   : > { %v9002_v45 = vmax.f32 %v13040_v56, %v7467_v41  ;;  %v9130_v29 = vmax.f32 %v13042_v57, %v8491_v28  ;;  %v11538_v1 = vpop.f32.mrb[130].mxu0  ;;  %v11794_v54 = vpop.f32.mrb[130].mxu1 }
 0x27d   : > { %v9260_v20 = vmax.f32 %v9004_v33, %v9132_v40  ;;  %v9005_v55 = vmax.f32 %v13044_v58, %v11538_v1  ;;  %v9133_v32 = vmax.f32 %v13046_v59, %v11794_v54  ;;  %v7470_v17 = vpop.f32.mrb[131].mxu0  ;;  %v8494_v16 = vpop.f32.mrb[131].mxu1  ;;  %v12193_v40 = vld [vmem:[%s12812_s6 + $0x7c8] sm:$0xff]  }
 0x27e   : > { %v9258_v9 = vmax.f32 %v9002_v45, %v9130_v29  ;;  %v9003_v8 = vmax.f32 %v13050_v62, %v7470_v17  ;;  %v9131_v61 = vmax.f32 %v13052_v63, %v8494_v16 }
 0x27f   : > { %v9395_v56 = vadd.f32 %v13813_v0, %v9260_v20  ;;  %v9261_v57 = vmax.f32 %v9005_v55, %v9133_v32  ;;  %11644 = vmatmul.mubr.msk.bf16.gmra.mrb[236].mxu0 %vm6145_vm2, %v12188_v44  ;;  %11900 = vmatmul.mubr.msk.bf16.gmra.mrb[236].mxu1 %vm6145_vm2, %v12189_v53  ;;  %v12192_v53 = vld [vmem:[%s12812_s6 + $0x3c8] sm:$0xff]   ;;  %v12194_v55 = vld [vmem:[%s12812_s6 + $0x3d0] sm:$0xff]  }
 0x280   : > { %v9393_v28 = vadd.f32 %v13813_v0, %v9258_v9  ;;  %v9259_v58 = vmax.f32 %v9003_v8, %v9131_v61  ;;  %11647 = vmatprep.mubr.msk.bf16.mxu0 %vm6145_vm2, %v12190_v52  ;;  %11903 = vmatprep.mubr.msk.bf16.mxu1 %vm6145_vm2, %v12191_v21  ;;  %v12195_v32 = vld [vmem:[%s12812_s6 + $0x7d0] sm:$0xff]  }
 0x281   : > { %v9523_v59 = vmax.f32 %v9395_v56, 0.0  ;;  %v9396_v62 = vadd.f32 %v13813_v0, %v9261_v57 }
 0x282   : > { %v9521_v63 = vmax.f32 %v9393_v28, 0.0  ;;  %v9394_v16 = vadd.f32 %v13813_v0, %v9259_v58  ;;  %v11541_v9 = vpop.f32.mrb[132].mxu0  ;;  %v11797_v61 = vpop.f32.mrb[132].mxu1 }
 0x283   : > { %v11019_v8 = vpack.c.bf16 %v9523_v59, %v9523_v59  ;;  %v9524_v17 = vmax.f32 %v9396_v62, 0.0  ;;  %v9008_v20 = vmax.f32 %v13060_v2, %v11541_v9  ;;  %v9136_v21 = vmax.f32 %v13062_v3, %v11797_v61  ;;  %v7483_v1 = vpop.f32.mrb[133].mxu0  ;;  %v8507_v33 = vpop.f32.mrb[133].mxu1 }
 0x284   : > { %v11017_v41 = vpack.c.bf16 %v9521_v63, %v9521_v63  ;;  %v9522_v44 = vmax.f32 %v9394_v16, 0.0  ;;  %v9006_v45 = vmax.f32 %v13064_v4, %v7483_v1  ;;  %v9134_v29 = vmax.f32 %v13066_v5, %v8507_v33  ;;  %v11542_v54 = vpop.f32.mrb[134].mxu0  ;;  %v11798_v52 = vpop.f32.mrb[134].mxu1 }
 0x285   : > { %10164 = vst.msk [vmem:[%s13834_s14 + $0x8] sm:$0xf] %vm10161_vm3, %v11019_v8  ;;  %v11020_v2 = vpack.c.bf16 %v9524_v17, %v9524_v17  ;;  %v9264_v3 = vmax.f32 %v9008_v20, %v9136_v21  ;;  %v9009_v56 = vmax.f32 %v13068_v6, %v11542_v54  ;;  %v9137_v57 = vmax.f32 %v13070_v7, %v11798_v52  ;;  %v7486_v28 = vpop.f32.mrb[135].mxu0  ;;  %v8510_v58 = vpop.f32.mrb[135].mxu1 }
 0x286   : > { %10162 = vst.msk [vmem:[%s13834_s14] sm:$0xf] %vm10161_vm3, %v11017_v41  ;;  %v11018_v4 = vpack.c.bf16 %v9522_v44, %v9522_v44  ;;  %v9262_v5 = vmax.f32 %v9006_v45, %v9134_v29  ;;  %v9007_v59 = vmax.f32 %v13074_v10, %v7486_v28  ;;  %v9135_v62 = vmax.f32 %v13076_v11, %v8510_v58  ;;  %v12196_v41 = vld [vmem:[%s12812_s6 + $0x3d8] sm:$0xff]  }
 0x287   : > { %10165 = vst.msk [vmem:[%s13834_s14 + $0xc] sm:$0xf] %vm10161_vm3, %v11020_v2  ;;  %v9399_v63 = vadd.f32 %v13813_v0, %v9264_v3  ;;  %v9265_v16 = vmax.f32 %v9009_v56, %v9137_v57  ;;  %11648 = vmatmul.mubr.msk.bf16.gmra.mrb[240].mxu0 %vm6145_vm2, %v12192_v53  ;;  %11904 = vmatmul.mubr.msk.bf16.gmra.mrb[240].mxu1 %vm6145_vm2, %v12193_v40  ;;  %v12197_v44 = vld [vmem:[%s12812_s6 + $0x7d8] sm:$0xff]   ;;  %v12198_v2 = vld [vmem:[%s12812_s6 + $0x3e0] sm:$0xff]  }
 0x288   : > { %10163 = vst.msk [vmem:[%s13834_s14 + $0x4] sm:$0xf] %vm10161_vm3, %v11018_v4  ;;  %v9397_v6 = vadd.f32 %v13813_v0, %v9262_v5  ;;  %v9263_v7 = vmax.f32 %v9007_v59, %v9135_v62  ;;  %11651 = vmatprep.mubr.msk.bf16.mxu0 %vm6145_vm2, %v12194_v55  ;;  %11907 = vmatprep.mubr.msk.bf16.mxu1 %vm6145_vm2, %v12195_v32  ;;  %v12199_v3 = vld [vmem:[%s12812_s6 + $0x7e0] sm:$0xff]  }
 0x289   : > { %v9527_v10 = vmax.f32 %v9399_v63, 0.0  ;;  %v9400_v11 = vadd.f32 %v13813_v0, %v9265_v16 }
 0x28a   : > { %v9525_v9 = vmax.f32 %v9397_v6, 0.0  ;;  %v9398_v61 = vadd.f32 %v13813_v0, %v9263_v7  ;;  %v11545_v8 = vpop.f32.mrb[136].mxu0  ;;  %v11801_v17 = vpop.f32.mrb[136].mxu1 }
 0x28b   : > { %v11023_v20 = vpack.c.bf16 %v9527_v10, %v9527_v10  ;;  %v9528_v21 = vmax.f32 %v9400_v11, 0.0  ;;  %v9012_v1 = vmax.f32 %v13082_v12, %v11545_v8  ;;  %v9140_v33 = vmax.f32 %v13084_v13, %v11801_v17  ;;  %v7499_v53 = vpop.f32.mrb[137].mxu0  ;;  %v8523_v40 = vpop.f32.mrb[137].mxu1 }
 0x28c   : > { %v11021_v45 = vpack.c.bf16 %v9525_v9, %v9525_v9  ;;  %v9526_v29 = vmax.f32 %v9398_v61, 0.0  ;;  %v9010_v54 = vmax.f32 %v13086_v14, %v7499_v53  ;;  %v9138_v52 = vmax.f32 %v13088_v15, %v8523_v40  ;;  %v11546_v55 = vpop.f32.mrb[138].mxu0  ;;  %v11802_v32 = vpop.f32.mrb[138].mxu1 }
 0x28d   : > { %10168 = vst.msk [vmem:[%s13834_s14 + $0x18] sm:$0xf] %vm10161_vm3, %v11023_v20  ;;  %v11024_v12 = vpack.c.bf16 %v9528_v21, %v9528_v21  ;;  %v9268_v13 = vmax.f32 %v9012_v1, %v9140_v33  ;;  %v9013_v56 = vmax.f32 %v13092_v18, %v11546_v55  ;;  %v9141_v57 = vmax.f32 %v13094_v19, %v11802_v32  ;;  %v7502_v28 = vpop.f32.mrb[139].mxu0  ;;  %v8526_v58 = vpop.f32.mrb[139].mxu1  ;;  %v12200_v20 = vld [vmem:[%s12812_s6 + $0x3e8] sm:$0xff]  }
 0x28e   : > { %10166 = vst.msk [vmem:[%s13834_s14 + $0x10] sm:$0xf] %vm10161_vm3, %v11021_v45  ;;  %v11022_v14 = vpack.c.bf16 %v9526_v29, %v9526_v29  ;;  %v9266_v15 = vmax.f32 %v9010_v54, %v9138_v52  ;;  %v9011_v4 = vmax.f32 %v13098_v22, %v7502_v28  ;;  %v9139_v5 = vmax.f32 %v13100_v23, %v8526_v58  ;;  %v12201_v21 = vld [vmem:[%s12812_s6 + $0x7e8] sm:$0xff]   ;;  %v12202_v45 = vld [vmem:[%s12812_s6 + $0x3f0] sm:$0xff]  }
 0x28f   : > { %10169 = vst.msk [vmem:[%s13834_s14 + $0x1c] sm:$0xf] %vm10161_vm3, %v11024_v12  ;;  %v9403_v59 = vadd.f32 %v13813_v0, %v9268_v13  ;;  %v9269_v62 = vmax.f32 %v9013_v56, %v9141_v57  ;;  %11652 = vmatmul.mubr.msk.bf16.gmra.mrb[244].mxu0 %vm6145_vm2, %v12196_v41  ;;  %11908 = vmatmul.mubr.msk.bf16.gmra.mrb[244].mxu1 %vm6145_vm2, %v12197_v44  ;;  %v12203_v29 = vld [vmem:[%s12812_s6 + $0x7f0] sm:$0xff]  }
 0x290   : > { %10167 = vst.msk [vmem:[%s13834_s14 + $0x14] sm:$0xf] %vm10161_vm3, %v11022_v14  ;;  %v9401_v18 = vadd.f32 %v13813_v0, %v9266_v15  ;;  %v9267_v19 = vmax.f32 %v9011_v4, %v9139_v5  ;;  %11655 = vmatprep.mubr.msk.bf16.mxu0 %vm6145_vm2, %v12198_v2  ;;  %11911 = vmatprep.mubr.msk.bf16.mxu1 %vm6145_vm2, %v12199_v3 }
 0x291   : > { %v9531_v22 = vmax.f32 %v9403_v59, 0.0  ;;  %v9404_v23 = vadd.f32 %v13813_v0, %v9269_v62 }
 0x292   : > { %v9529_v63 = vmax.f32 %v9401_v18, 0.0  ;;  %v9402_v16 = vadd.f32 %v13813_v0, %v9267_v19  ;;  %v11549_v6 = vpop.f32.mrb[140].mxu0  ;;  %v11805_v7 = vpop.f32.mrb[140].mxu1  ;;  %v12204_v18 = vld [vmem:[%s12812_s6 + $0x3f8] sm:$0xff]  }
 0x293   : > { %v11027_v10 = vpack.c.bf16 %v9531_v22, %v9531_v22  ;;  %v9532_v11 = vmax.f32 %v9404_v23, 0.0  ;;  %v9016_v9 = vmax.f32 %v13106_v24, %v11549_v6  ;;  %v9144_v61 = vmax.f32 %v13108_v25, %v11805_v7  ;;  %v7515_v8 = vpop.f32.mrb[141].mxu0  ;;  %v8539_v17 = vpop.f32.mrb[141].mxu1  ;;  %v12205_v19 = vld [vmem:[%s12812_s6 + $0x7f8] sm:$0xff]  }
 0x294   : > { %v11025_v1 = vpack.c.bf16 %v9529_v63, %v9529_v63  ;;  %v9530_v33 = vmax.f32 %v9402_v16, 0.0  ;;  %v9014_v53 = vmax.f32 %v13110_v26, %v7515_v8  ;;  %v9142_v40 = vmax.f32 %v13112_v27, %v8539_v17  ;;  %v11550_v41 = vpop.f32.mrb[142].mxu0  ;;  %v11806_v44 = vpop.f32.mrb[142].mxu1 }
 0x295   : > { %10172 = vst.msk [vmem:[%s13834_s14 + $0x28] sm:$0xf] %vm10161_vm3, %v11027_v10  ;;  %v11028_v24 = vpack.c.bf16 %v9532_v11, %v9532_v11  ;;  %v9272_v25 = vmax.f32 %v9016_v9, %v9144_v61  ;;  %v9017_v54 = vmax.f32 %v13116_v30, %v11550_v41  ;;  %v9145_v52 = vmax.f32 %v13118_v31, %v11806_v44  ;;  %v7518_v55 = vpop.f32.mrb[143].mxu0  ;;  %v8542_v32 = vpop.f32.mrb[143].mxu1 }
 0x296   : > { %10170 = vst.msk [vmem:[%s13834_s14 + $0x20] sm:$0xf] %vm10161_vm3, %v11025_v1  ;;  %v11026_v26 = vpack.c.bf16 %v9530_v33, %v9530_v33  ;;  %v9270_v27 = vmax.f32 %v9014_v53, %v9142_v40  ;;  %v9015_v2 = vmax.f32 %v13122_v34, %v7518_v55  ;;  %v9143_v3 = vmax.f32 %v13124_v35, %v8542_v32 }
 0x297   : > { %10173 = vst.msk [vmem:[%s13834_s14 + $0x2c] sm:$0xf] %vm10161_vm3, %v11028_v24  ;;  %v9407_v12 = vadd.f32 %v13813_v0, %v9272_v25  ;;  %v9273_v13 = vmax.f32 %v9017_v54, %v9145_v52  ;;  %11656 = vmatmul.mubr.msk.bf16.gmra.mrb[248].mxu0 %vm6145_vm2, %v12200_v20  ;;  %11912 = vmatmul.mubr.msk.bf16.gmra.mrb[248].mxu1 %vm6145_vm2, %v12201_v21 }
 0x298   : > { %10171 = vst.msk [vmem:[%s13834_s14 + $0x24] sm:$0xf] %vm10161_vm3, %v11026_v26  ;;  %v9405_v30 = vadd.f32 %v13813_v0, %v9270_v27  ;;  %v9271_v31 = vmax.f32 %v9015_v2, %v9143_v3  ;;  %11659 = vmatprep.mubr.msk.bf16.mxu0 %vm6145_vm2, %v12202_v45  ;;  %11915 = vmatprep.mubr.msk.bf16.mxu1 %vm6145_vm2, %v12203_v29 }
 0x299   : > { %v9535_v34 = vmax.f32 %v9407_v12, 0.0  ;;  %v9408_v35 = vadd.f32 %v13813_v0, %v9273_v13 }
 0x29a   : > { %v9533_v56 = vmax.f32 %v9405_v30, 0.0  ;;  %v9406_v57 = vadd.f32 %v13813_v0, %v9271_v31  ;;  %v11553_v28 = vpop.f32.mrb[144].mxu0  ;;  %v11809_v58 = vpop.f32.mrb[144].mxu1 }
 0x29b   : > { %v11031_v14 = vpack.c.bf16 %v9535_v34, %v9535_v34  ;;  %v9536_v15 = vmax.f32 %v9408_v35, 0.0  ;;  %v9020_v4 = vmax.f32 %v13130_v36, %v11553_v28  ;;  %v9148_v5 = vmax.f32 %v13132_v37, %v11809_v58  ;;  %v7531_v59 = vpop.f32.mrb[145].mxu0  ;;  %v8555_v62 = vpop.f32.mrb[145].mxu1  ;;  %v14729_v34 = vld [vmem:[#allocation4_spill] sm:$0xff] }
 0x29c   : > { %v11029_v22 = vpack.c.bf16 %v9533_v56, %v9533_v56  ;;  %v9534_v23 = vmax.f32 %v9406_v57, 0.0  ;;  %v9018_v63 = vmax.f32 %v13134_v38, %v7531_v59  ;;  %v9146_v16 = vmax.f32 %v13136_v39, %v8555_v62  ;;  %v11554_v6 = vpop.f32.mrb[146].mxu0  ;;  %v11810_v7 = vpop.f32.mrb[146].mxu1 }
 0x29d   : > { %10176 = vst.msk [vmem:[%s13834_s14 + $0x38] sm:$0xf] %vm10161_vm3, %v11031_v14  ;;  %v11032_v10 = vpack.c.bf16 %v9536_v15, %v9536_v15  ;;  %v9276_v36 = vmax.f32 %v9020_v4, %v9148_v5  ;;  %v9021_v37 = vmax.f32 %v13140_v42, %v11554_v6  ;;  %v9149_v11 = vmax.f32 %v13142_v43, %v11810_v7  ;;  %v7534_v9 = vpop.f32.mrb[147].mxu0  ;;  %v8558_v61 = vpop.f32.mrb[147].mxu1 }
 0x29e   : > { %10174 = vst.msk [vmem:[%s13834_s14 + $0x30] sm:$0xf] %vm10161_vm3, %v11029_v22  ;;  %v11030_v8 = vpack.c.bf16 %v9534_v23, %v9534_v23  ;;  %v9274_v38 = vmax.f32 %v9018_v63, %v9146_v16  ;;  %v9019_v17 = vmax.f32 %v13146_v46, %v7534_v9  ;;  %v9147_v39 = vmax.f32 %v13148_v47, %v8558_v61  ;;  %v14731_v22 = vld [vmem:[#allocation6_spill] sm:$0xff]  ;;  %v14732_v63 = vld [vmem:[#allocation7_spill] sm:$0xff]  ;;  %v14734_v9 = vld [vmem:[#allocation9_spill] sm:$0xff] }
 0x29f   : > { %10177 = vst.msk [vmem:[%s13834_s14 + $0x3c] sm:$0xf] %vm10161_vm3, %v11032_v10  ;;  %v9411_v20 = vadd.f32 %v13813_v0, %v9276_v36  ;;  %v9277_v21 = vmax.f32 %v9021_v37, %v9149_v11  ;;  %11660 = vmatmul.mubr.msk.bf16.gmra.mrb[252].mxu0 %vm6145_vm2, %v12204_v18  ;;  %11916 = vmatmul.mubr.msk.bf16.gmra.mrb[252].mxu1 %vm6145_vm2, %v12205_v19  ;;  %v14733_v37 = vld [vmem:[#allocation8_spill] sm:$0xff] }
 0x2a0   : > { %10175 = vst.msk [vmem:[%s13834_s14 + $0x34] sm:$0xf] %vm10161_vm3, %v11030_v8  ;;  %v9409_v42 = vadd.f32 %v13813_v0, %v9274_v38  ;;  %v9275_v43 = vmax.f32 %v9019_v17, %v9147_v39 }
 0x2a1   : > { %v9539_v1 = vmax.f32 %v9411_v20, 0.0  ;;  %v9412_v33 = vadd.f32 %v13813_v0, %v9277_v21  ;;  %v14735_v20 = vld [vmem:[#allocation10_spill] sm:$0xff] }
 0x2a2   : > { %v9537_v46 = vmax.f32 %v9409_v42, 0.0  ;;  %v9410_v47 = vadd.f32 %v13813_v0, %v9275_v43  ;;  %v11557_v53 = vpop.f32.mrb[148].mxu0  ;;  %v11813_v40 = vpop.f32.mrb[148].mxu1  ;;  %v14736_v42 = vld [vmem:[#allocation11_spill] sm:$0xff] }
 0x2a3   : > { %v11035_v41 = vpack.c.bf16 %v9539_v1, %v9539_v1  ;;  %v9540_v44 = vmax.f32 %v9412_v33, 0.0  ;;  %v9024_v45 = vmax.f32 %v13154_v48, %v11557_v53  ;;  %v9152_v29 = vmax.f32 %v13156_v49, %v11813_v40  ;;  %v7547_v24 = vpop.f32.mrb[149].mxu0  ;;  %v8571_v25 = vpop.f32.mrb[149].mxu1  ;;  %v14728_v49 = vld [vmem:[#allocation3_spill] sm:$0xff]  ;;  %v14737_v53 = vld [vmem:[#allocation12_spill] sm:$0xff] }
 0x2a4   : > { %v11033_v54 = vpack.c.bf16 %v9537_v46, %v9537_v46  ;;  %v9538_v52 = vmax.f32 %v9410_v47, 0.0  ;;  %v9022_v55 = vmax.f32 %v13158_v50, %v7547_v24  ;;  %v9150_v32 = vmax.f32 %v13160_v51, %v8571_v25  ;;  %v11558_v26 = vpop.f32.mrb[150].mxu0  ;;  %v11814_v27 = vpop.f32.mrb[150].mxu1  ;;  %v14730_v51 = vld [vmem:[#allocation5_spill] sm:$0xff] }
 0x2a5   : > { %10180 = vst.msk [vmem:[%s13834_s14 + $0x48] sm:$0xf] %vm10161_vm3, %v11035_v41  ;;  %v11036_v2 = vpack.c.bf16 %v9540_v44, %v9540_v44  ;;  %v9280_v3 = vmax.f32 %v9024_v45, %v9152_v29  ;;  %v9025_v48 = vmax.f32 %v13164_v60, %v11558_v26  ;;  %v9153_v12 = vmax.f32 %v14728_v49, %v11814_v27  ;;  %v7550_v13 = vpop.f32.mrb[151].mxu0  ;;  %v8574_v30 = vpop.f32.mrb[151].mxu1  ;;  %v14738_v41 = vld [vmem:[#allocation13_spill] sm:$0xff] }
 0x2a6   : > { %10178 = vst.msk [vmem:[%s13834_s14 + $0x40] sm:$0xf] %vm10161_vm3, %v11033_v54  ;;  %v11034_v31 = vpack.c.bf16 %v9538_v52, %v9538_v52  ;;  %v9278_v50 = vmax.f32 %v9022_v55, %v9150_v32  ;;  %v9023_v35 = vmax.f32 %v14729_v34, %v7550_v13  ;;  %v9151_v56 = vmax.f32 %v14730_v51, %v8574_v30 }
 0x2a7   : > { %10181 = vst.msk [vmem:[%s13834_s14 + $0x4c] sm:$0xf] %vm10161_vm3, %v11036_v2  ;;  %v9415_v57 = vadd.f32 %v13813_v0, %v9280_v3  ;;  %v9281_v28 = vmax.f32 %v9025_v48, %v9153_v12  ;;  %v14739_v48 = vld [vmem:[#allocation14_spill] sm:$0xff]  ;;  %v14740_v12 = vld [vmem:[#allocation15_spill] sm:$0xff] }
 0x2a8   : > { %10179 = vst.msk [vmem:[%s13834_s14 + $0x44] sm:$0xf] %vm10161_vm3, %v11034_v31  ;;  %v9413_v60 = vadd.f32 %v13813_v0, %v9278_v50  ;;  %v9279_v58 = vmax.f32 %v9023_v35, %v9151_v56  ;;  %v14741_v35 = vld [vmem:[#allocation16_spill] sm:$0xff]  ;;  %v14742_v56 = vld [vmem:[#allocation17_spill] sm:$0xff] }
 0x2a9   : > { %v9543_v14 = vmax.f32 %v9415_v57, 0.0  ;;  %v9416_v15 = vadd.f32 %v13813_v0, %v9281_v28 }
 0x2aa   : > { %v9541_v4 = vmax.f32 %v9413_v60, 0.0  ;;  %v9414_v5 = vadd.f32 %v13813_v0, %v9279_v58  ;;  %v11561_v59 = vpop.f32.mrb[152].mxu0  ;;  %v11817_v62 = vpop.f32.mrb[152].mxu1 }
 0x2ab   : > { %v11039_v18 = vpack.c.bf16 %v9543_v14, %v9543_v14  ;;  %v9544_v19 = vmax.f32 %v9416_v15, 0.0  ;;  %v9028_v23 = vmax.f32 %v14731_v22, %v11561_v59  ;;  %v9156_v16 = vmax.f32 %v14732_v63, %v11817_v62  ;;  %v7563_v6 = vpop.f32.mrb[153].mxu0  ;;  %v8587_v7 = vpop.f32.mrb[153].mxu1  ;;  %v14743_v15 = vld [vmem:[#allocation18_spill] sm:$0xff] }
 0x2ac   : > { %v11037_v10 = vpack.c.bf16 %v9541_v4, %v9541_v4  ;;  %v9542_v36 = vmax.f32 %v9414_v5, 0.0  ;;  %v9026_v11 = vmax.f32 %v14733_v37, %v7563_v6  ;;  %v9154_v61 = vmax.f32 %v14734_v9, %v8587_v7  ;;  %v11562_v8 = vpop.f32.mrb[154].mxu0  ;;  %v11818_v38 = vpop.f32.mrb[154].mxu1  ;;  %v14744_v5 = vld [vmem:[#allocation19_spill] sm:$0xff] }
 0x2ad   : > { %10184 = vst.msk [vmem:[%s13834_s14 + $0x58] sm:$0xf] %vm10161_vm3, %v11039_v18  ;;  %v11040_v17 = vpack.c.bf16 %v9544_v19, %v9544_v19  ;;  %v9284_v39 = vmax.f32 %v9028_v23, %v9156_v16  ;;  %v9029_v21 = vmax.f32 %v14735_v20, %v11562_v8  ;;  %v9157_v43 = vmax.f32 %v14736_v42, %v11818_v38  ;;  %v7566_v1 = vpop.f32.mrb[155].mxu0  ;;  %v8590_v33 = vpop.f32.mrb[155].mxu1  ;;  %v14745_v23 = vld [vmem:[#allocation20_spill] sm:$0xff]  ;;  %v14746_v16 = vld [vmem:[#allocation21_spill] sm:$0xff] }
 0x2ae   : > { %10182 = vst.msk [vmem:[%s13834_s14 + $0x50] sm:$0xf] %vm10161_vm3, %v11037_v10  ;;  %v11038_v46 = vpack.c.bf16 %v9542_v36, %v9542_v36  ;;  %v9282_v47 = vmax.f32 %v9026_v11, %v9154_v61  ;;  %v9027_v40 = vmax.f32 %v14737_v53, %v7566_v1  ;;  %v9155_v44 = vmax.f32 %v14738_v41, %v8590_v33 }
 0x2af   : > { %10185 = vst.msk [vmem:[%s13834_s14 + $0x5c] sm:$0xf] %vm10161_vm3, %v11040_v17  ;;  %v9419_v45 = vadd.f32 %v13813_v0, %v9284_v39  ;;  %v9285_v29 = vmax.f32 %v9029_v21, %v9157_v43  ;;  %v14747_v21 = vld [vmem:[#allocation22_spill] sm:$0xff]  ;;  %v14748_v43 = vld [vmem:[#allocation23_spill] sm:$0xff] }
 0x2b0   : > { %10183 = vst.msk [vmem:[%s13834_s14 + $0x54] sm:$0xf] %vm10161_vm3, %v11038_v46  ;;  %v9417_v24 = vadd.f32 %v13813_v0, %v9282_v47  ;;  %v9283_v25 = vmax.f32 %v9027_v40, %v9155_v44  ;;  %v14749_v40 = vld [vmem:[#allocation24_spill] sm:$0xff]  ;;  %v14750_v44 = vld [vmem:[#allocation25_spill] sm:$0xff] }
 0x2b1   : > { %v9547_v54 = vmax.f32 %v9419_v45, 0.0  ;;  %v9420_v52 = vadd.f32 %v13813_v0, %v9285_v29 }
 0x2b2   : > { %v9545_v55 = vmax.f32 %v9417_v24, 0.0  ;;  %v9418_v32 = vadd.f32 %v13813_v0, %v9283_v25  ;;  %v11565_v26 = vpop.f32.mrb[156].mxu0  ;;  %v11821_v27 = vpop.f32.mrb[156].mxu1 }
 0x2b3   : > { %v11043_v2 = vpack.c.bf16 %v9547_v54, %v9547_v54  ;;  %v9548_v3 = vmax.f32 %v9420_v52, 0.0  ;;  %v9032_v49 = vmax.f32 %v14739_v48, %v11565_v26  ;;  %v9160_v13 = vmax.f32 %v14740_v12, %v11821_v27  ;;  %v7579_v30 = vpop.f32.mrb[157].mxu0  ;;  %v8603_v31 = vpop.f32.mrb[157].mxu1  ;;  %v14751_v52 = vld [vmem:[#allocation26_spill] sm:$0xff] }
 0x2b4   : > { %v11041_v50 = vpack.c.bf16 %v9545_v55, %v9545_v55  ;;  %v9546_v34 = vmax.f32 %v9418_v32, 0.0  ;;  %v9030_v51 = vmax.f32 %v14741_v35, %v7579_v30  ;;  %v9158_v57 = vmax.f32 %v14742_v56, %v8603_v31  ;;  %v11566_v28 = vpop.f32.mrb[158].mxu0  ;;  %v11822_v60 = vpop.f32.mrb[158].mxu1  ;;  %v14752_v32 = vld [vmem:[#allocation27_spill] sm:$0xff] }
 0x2b5   : > { %10188 = vst.msk [vmem:[%s13834_s14 + $0x68] sm:$0xf] %vm10161_vm3, %v11043_v2  ;;  %v11044_v58 = vpack.c.bf16 %v9548_v3, %v9548_v3  ;;  %v9288_v14 = vmax.f32 %v9032_v49, %v9160_v13  ;;  %v9033_v4 = vmax.f32 %v14743_v15, %v11566_v28  ;;  %v9161_v59 = vmax.f32 %v14744_v5, %v11822_v60  ;;  %v7582_v62 = vpop.f32.mrb[159].mxu0  ;;  %v8606_v18 = vpop.f32.mrb[159].mxu1  ;;  %v14753_v49 = vld [vmem:[#allocation28_spill] sm:$0xff]  ;;  %v14754_v13 = vld [vmem:[#allocation29_spill] sm:$0xff] }
 0x2b6   : > { %10186 = vst.msk [vmem:[%s13834_s14 + $0x60] sm:$0xf] %vm10161_vm3, %v11041_v50  ;;  %v11042_v19 = vpack.c.bf16 %v9546_v34, %v9546_v34  ;;  %v9286_v22 = vmax.f32 %v9030_v51, %v9158_v57  ;;  %v9031_v63 = vmax.f32 %v14745_v23, %v7582_v62  ;;  %v9159_v6 = vmax.f32 %v14746_v16, %v8606_v18 }
 0x2b7   : > { %10189 = vst.msk [vmem:[%s13834_s14 + $0x6c] sm:$0xf] %vm10161_vm3, %v11044_v58  ;;  %v9423_v7 = vadd.f32 %v13813_v0, %v9288_v14  ;;  %v9289_v10 = vmax.f32 %v9033_v4, %v9161_v59  ;;  %v14755_v4 = vld [vmem:[#allocation30_spill] sm:$0xff]  ;;  %v14756_v59 = vld [vmem:[#allocation31_spill] sm:$0xff] }
 0x2b8   : > { %10187 = vst.msk [vmem:[%s13834_s14 + $0x64] sm:$0xf] %vm10161_vm3, %v11042_v19  ;;  %v9421_v36 = vadd.f32 %v13813_v0, %v9286_v22  ;;  %v9287_v37 = vmax.f32 %v9031_v63, %v9159_v6  ;;  %v14757_v63 = vld [vmem:[#allocation32_spill] sm:$0xff]  ;;  %v14758_v6 = vld [vmem:[#allocation33_spill] sm:$0xff] }
 0x2b9   : > { %v9551_v11 = vmax.f32 %v9423_v7, 0.0  ;;  %v9424_v9 = vadd.f32 %v13813_v0, %v9289_v10 }
 0x2ba   : > { %v9549_v61 = vmax.f32 %v9421_v36, 0.0  ;;  %v9422_v8 = vadd.f32 %v13813_v0, %v9287_v37  ;;  %v11569_v38 = vpop.f32.mrb[160].mxu0  ;;  %v11825_v17 = vpop.f32.mrb[160].mxu1 }
 0x2bb   : > { %v11047_v39 = vpack.c.bf16 %v9551_v11, %v9551_v11  ;;  %v9552_v20 = vmax.f32 %v9424_v9, 0.0  ;;  %v9036_v42 = vmax.f32 %v14747_v21, %v11569_v38  ;;  %v9164_v1 = vmax.f32 %v14748_v43, %v11825_v17  ;;  %v7595_v33 = vpop.f32.mrb[161].mxu0  ;;  %v8619_v46 = vpop.f32.mrb[161].mxu1  ;;  %v14759_v9 = vld [vmem:[#allocation34_spill] sm:$0xff] }
 0x2bc   : > { %v11045_v47 = vpack.c.bf16 %v9549_v61, %v9549_v61  ;;  %v9550_v53 = vmax.f32 %v9422_v8, 0.0  ;;  %v9034_v41 = vmax.f32 %v14749_v40, %v7595_v33  ;;  %v9162_v45 = vmax.f32 %v14750_v44, %v8619_v46  ;;  %v11570_v29 = vpop.f32.mrb[162].mxu0  ;;  %v11826_v24 = vpop.f32.mrb[162].mxu1  ;;  %v14760_v8 = vld [vmem:[#allocation35_spill] sm:$0xff] }
 0x2bd   : > { %10192 = vst.msk [vmem:[%s13834_s14 + $0x78] sm:$0xf] %vm10161_vm3, %v11047_v39  ;;  %v11048_v25 = vpack.c.bf16 %v9552_v20, %v9552_v20  ;;  %v9292_v54 = vmax.f32 %v9036_v42, %v9164_v1  ;;  %v9037_v55 = vmax.f32 %v14751_v52, %v11570_v29  ;;  %v9165_v26 = vmax.f32 %v14752_v32, %v11826_v24  ;;  %v7598_v27 = vpop.f32.mrb[163].mxu0  ;;  %v8622_v2 = vpop.f32.mrb[163].mxu1  ;;  %v14761_v42 = vld [vmem:[#allocation36_spill] sm:$0xff]  ;;  %v14762_v1 = vld [vmem:[#allocation37_spill] sm:$0xff] }
 0x2be   : > { %10190 = vst.msk [vmem:[%s13834_s14 + $0x70] sm:$0xf] %vm10161_vm3, %v11045_v47  ;;  %v11046_v3 = vpack.c.bf16 %v9550_v53, %v9550_v53  ;;  %v9290_v48 = vmax.f32 %v9034_v41, %v9162_v45  ;;  %v9035_v12 = vmax.f32 %v14753_v49, %v7598_v27  ;;  %v9163_v30 = vmax.f32 %v14754_v13, %v8622_v2 }
 0x2bf   : > { %10193 = vst.msk [vmem:[%s13834_s14 + $0x7c] sm:$0xf] %vm10161_vm3, %v11048_v25  ;;  %v9427_v31 = vadd.f32 %v13813_v0, %v9292_v54  ;;  %v9293_v50 = vmax.f32 %v9037_v55, %v9165_v26  ;;  %v14763_v55 = vld [vmem:[#allocation38_spill] sm:$0xff]  ;;  %v14764_v26 = vld [vmem:[#allocation39_spill] sm:$0xff] }
 0x2c0   : > { %10191 = vst.msk [vmem:[%s13834_s14 + $0x74] sm:$0xf] %vm10161_vm3, %v11046_v3  ;;  %v9425_v34 = vadd.f32 %v13813_v0, %v9290_v48  ;;  %v9291_v35 = vmax.f32 %v9035_v12, %v9163_v30  ;;  %v14765_v12 = vld [vmem:[#allocation40_spill] sm:$0xff]  ;;  %v14766_v30 = vld [vmem:[#allocation41_spill] sm:$0xff] }
 0x2c1   : > { %v9555_v51 = vmax.f32 %v9427_v31, 0.0  ;;  %v9428_v56 = vadd.f32 %v13813_v0, %v9293_v50 }
 0x2c2   : > { %v9553_v57 = vmax.f32 %v9425_v34, 0.0  ;;  %v9426_v28 = vadd.f32 %v13813_v0, %v9291_v35  ;;  %v11573_v60 = vpop.f32.mrb[164].mxu0  ;;  %v11829_v58 = vpop.f32.mrb[164].mxu1 }
 0x2c3   : > { %v11051_v14 = vpack.c.bf16 %v9555_v51, %v9555_v51  ;;  %v9556_v15 = vmax.f32 %v9428_v56, 0.0  ;;  %v9040_v5 = vmax.f32 %v14755_v4, %v11573_v60  ;;  %v9168_v62 = vmax.f32 %v14756_v59, %v11829_v58  ;;  %v7611_v18 = vpop.f32.mrb[165].mxu0  ;;  %v8635_v19 = vpop.f32.mrb[165].mxu1  ;;  %v14767_v56 = vld [vmem:[#allocation42_spill] sm:$0xff] }
 0x2c4   : > { %v11049_v22 = vpack.c.bf16 %v9553_v57, %v9553_v57  ;;  %v9554_v23 = vmax.f32 %v9426_v28, 0.0  ;;  %v9038_v16 = vmax.f32 %v14757_v63, %v7611_v18  ;;  %v9166_v7 = vmax.f32 %v14758_v6, %v8635_v19  ;;  %v11574_v10 = vpop.f32.mrb[166].mxu0  ;;  %v11830_v36 = vpop.f32.mrb[166].mxu1  ;;  %v14768_v28 = vld [vmem:[#allocation43_spill] sm:$0xff] }
 0x2c5   : > { %10196 = vst.msk [vmem:[%s13834_s14 + $0x88] sm:$0xf] %vm10161_vm3, %v11051_v14  ;;  %v11052_v37 = vpack.c.bf16 %v9556_v15, %v9556_v15  ;;  %v9296_v11 = vmax.f32 %v9040_v5, %v9168_v62  ;;  %v9041_v61 = vmax.f32 %v14759_v9, %v11574_v10  ;;  %v9169_v38 = vmax.f32 %v14760_v8, %v11830_v36  ;;  %v7614_v17 = vpop.f32.mrb[167].mxu0  ;;  %v8638_v39 = vpop.f32.mrb[167].mxu1  ;;  %v14769_v5 = vld [vmem:[#allocation44_spill] sm:$0xff]  ;;  %v14770_v62 = vld [vmem:[#allocation45_spill] sm:$0xff] }
 0x2c6   : > { %10194 = vst.msk [vmem:[%s13834_s14 + $0x80] sm:$0xf] %vm10161_vm3, %v11049_v22  ;;  %v11050_v20 = vpack.c.bf16 %v9554_v23, %v9554_v23  ;;  %v9294_v21 = vmax.f32 %v9038_v16, %v9166_v7  ;;  %v9039_v43 = vmax.f32 %v14761_v42, %v7614_v17  ;;  %v9167_v33 = vmax.f32 %v14762_v1, %v8638_v39 }
 0x2c7   : > { %10197 = vst.msk [vmem:[%s13834_s14 + $0x8c] sm:$0xf] %vm10161_vm3, %v11052_v37  ;;  %v9431_v46 = vadd.f32 %v13813_v0, %v9296_v11  ;;  %v9297_v47 = vmax.f32 %v9041_v61, %v9169_v38  ;;  %v14771_v61 = vld [vmem:[#allocation46_spill] sm:$0xff]  ;;  %v14772_v38 = vld [vmem:[#allocation47_spill] sm:$0xff] }
 0x2c8   : > { %10195 = vst.msk [vmem:[%s13834_s14 + $0x84] sm:$0xf] %vm10161_vm3, %v11050_v20  ;;  %v9429_v53 = vadd.f32 %v13813_v0, %v9294_v21  ;;  %v9295_v40 = vmax.f32 %v9039_v43, %v9167_v33  ;;  %v14773_v43 = vld [vmem:[#allocation48_spill] sm:$0xff]  ;;  %v14774_v33 = vld [vmem:[#allocation49_spill] sm:$0xff] }
 0x2c9   : > { %v9559_v41 = vmax.f32 %v9431_v46, 0.0  ;;  %v9432_v44 = vadd.f32 %v13813_v0, %v9297_v47 }
 0x2ca   : > { %v9557_v45 = vmax.f32 %v9429_v53, 0.0  ;;  %v9430_v29 = vadd.f32 %v13813_v0, %v9295_v40  ;;  %v11577_v24 = vpop.f32.mrb[168].mxu0  ;;  %v11833_v25 = vpop.f32.mrb[168].mxu1 }
 0x2cb   : > { %v11055_v54 = vpack.c.bf16 %v9559_v41, %v9559_v41  ;;  %v9560_v52 = vmax.f32 %v9432_v44, 0.0  ;;  %v9044_v32 = vmax.f32 %v14763_v55, %v11577_v24  ;;  %v9172_v27 = vmax.f32 %v14764_v26, %v11833_v25  ;;  %v7627_v2 = vpop.f32.mrb[169].mxu0  ;;  %v8651_v3 = vpop.f32.mrb[169].mxu1  ;;  %v14775_v44 = vld [vmem:[#allocation50_spill] sm:$0xff] }
 0x2cc   : > { %v11053_v48 = vpack.c.bf16 %v9557_v45, %v9557_v45  ;;  %v9558_v49 = vmax.f32 %v9430_v29, 0.0  ;;  %v9042_v13 = vmax.f32 %v14765_v12, %v7627_v2  ;;  %v9170_v31 = vmax.f32 %v14766_v30, %v8651_v3  ;;  %v11578_v50 = vpop.f32.mrb[170].mxu0  ;;  %v11834_v34 = vpop.f32.mrb[170].mxu1  ;;  %v14776_v29 = vld [vmem:[#allocation51_spill] sm:$0xff] }
 0x2cd   : > { %10200 = vst.msk [vmem:[%s13834_s14 + $0x98] sm:$0xf] %vm10161_vm3, %v11055_v54  ;;  %v11056_v35 = vpack.c.bf16 %v9560_v52, %v9560_v52  ;;  %v9300_v51 = vmax.f32 %v9044_v32, %v9172_v27  ;;  %v9045_v57 = vmax.f32 %v14767_v56, %v11578_v50  ;;  %v9173_v60 = vmax.f32 %v14768_v28, %v11834_v34  ;;  %v7630_v58 = vpop.f32.mrb[171].mxu0  ;;  %v8654_v14 = vpop.f32.mrb[171].mxu1  ;;  %v14777_v32 = vld [vmem:[#allocation52_spill] sm:$0xff]  ;;  %v14778_v27 = vld [vmem:[#allocation53_spill] sm:$0xff] }
 0x2ce   : > { %10198 = vst.msk [vmem:[%s13834_s14 + $0x90] sm:$0xf] %vm10161_vm3, %v11053_v48  ;;  %v11054_v15 = vpack.c.bf16 %v9558_v49, %v9558_v49  ;;  %v9298_v4 = vmax.f32 %v9042_v13, %v9170_v31  ;;  %v9043_v59 = vmax.f32 %v14769_v5, %v7630_v58  ;;  %v9171_v18 = vmax.f32 %v14770_v62, %v8654_v14 }
 0x2cf   : > { %10201 = vst.msk [vmem:[%s13834_s14 + $0x9c] sm:$0xf] %vm10161_vm3, %v11056_v35  ;;  %v9435_v19 = vadd.f32 %v13813_v0, %v9300_v51  ;;  %v9301_v22 = vmax.f32 %v9045_v57, %v9173_v60  ;;  %v14779_v57 = vld [vmem:[#allocation54_spill] sm:$0xff]  ;;  %v14780_v60 = vld [vmem:[#allocation55_spill] sm:$0xff] }
 0x2d0   : > { %10199 = vst.msk [vmem:[%s13834_s14 + $0x94] sm:$0xf] %vm10161_vm3, %v11054_v15  ;;  %v9433_v23 = vadd.f32 %v13813_v0, %v9298_v4  ;;  %v9299_v63 = vmax.f32 %v9043_v59, %v9171_v18  ;;  %v14781_v59 = vld [vmem:[#allocation56_spill] sm:$0xff]  ;;  %v14782_v18 = vld [vmem:[#allocation57_spill] sm:$0xff] }
 0x2d1   : > { %v9563_v16 = vmax.f32 %v9435_v19, 0.0  ;;  %v9436_v6 = vadd.f32 %v13813_v0, %v9301_v22 }
 0x2d2   : > { %v9561_v7 = vmax.f32 %v9433_v23, 0.0  ;;  %v9434_v10 = vadd.f32 %v13813_v0, %v9299_v63  ;;  %v11581_v36 = vpop.f32.mrb[172].mxu0  ;;  %v11837_v37 = vpop.f32.mrb[172].mxu1 }
 0x2d3   : > { %v11059_v11 = vpack.c.bf16 %v9563_v16, %v9563_v16  ;;  %v9564_v9 = vmax.f32 %v9436_v6, 0.0  ;;  %v9048_v8 = vmax.f32 %v14771_v61, %v11581_v36  ;;  %v9176_v17 = vmax.f32 %v14772_v38, %v11837_v37  ;;  %v7643_v39 = vpop.f32.mrb[173].mxu0  ;;  %v8667_v20 = vpop.f32.mrb[173].mxu1  ;;  %v14783_v6 = vld [vmem:[#allocation58_spill] sm:$0xff] }
 0x2d4   : > { %v11057_v21 = vpack.c.bf16 %v9561_v7, %v9561_v7  ;;  %v9562_v42 = vmax.f32 %v9434_v10, 0.0  ;;  %v9046_v1 = vmax.f32 %v14773_v43, %v7643_v39  ;;  %v9174_v46 = vmax.f32 %v14774_v33, %v8667_v20  ;;  %v11582_v47 = vpop.f32.mrb[174].mxu0  ;;  %v11838_v53 = vpop.f32.mrb[174].mxu1  ;;  %v14784_v10 = vld [vmem:[#allocation59_spill] sm:$0xff] }
 0x2d5   : > { %10204 = vst.msk [vmem:[%s13834_s14 + $0xa8] sm:$0xf] %vm10161_vm3, %v11059_v11  ;;  %v11060_v40 = vpack.c.bf16 %v9564_v9, %v9564_v9  ;;  %v9304_v41 = vmax.f32 %v9048_v8, %v9176_v17  ;;  %v9049_v45 = vmax.f32 %v14775_v44, %v11582_v47  ;;  %v9177_v24 = vmax.f32 %v14776_v29, %v11838_v53  ;;  %v7646_v25 = vpop.f32.mrb[175].mxu0  ;;  %v8670_v54 = vpop.f32.mrb[175].mxu1  ;;  %v14785_v8 = vld [vmem:[#allocation60_spill] sm:$0xff]  ;;  %v14786_v17 = vld [vmem:[#allocation61_spill] sm:$0xff] }
 0x2d6   : > { %10202 = vst.msk [vmem:[%s13834_s14 + $0xa0] sm:$0xf] %vm10161_vm3, %v11057_v21  ;;  %v11058_v52 = vpack.c.bf16 %v9562_v42, %v9562_v42  ;;  %v9302_v55 = vmax.f32 %v9046_v1, %v9174_v46  ;;  %v9047_v26 = vmax.f32 %v14777_v32, %v7646_v25  ;;  %v9175_v2 = vmax.f32 %v14778_v27, %v8670_v54 }
 0x2d7   : > { %10205 = vst.msk [vmem:[%s13834_s14 + $0xac] sm:$0xf] %vm10161_vm3, %v11060_v40  ;;  %v9439_v3 = vadd.f32 %v13813_v0, %v9304_v41  ;;  %v9305_v48 = vmax.f32 %v9049_v45, %v9177_v24  ;;  %v14787_v45 = vld [vmem:[#allocation62_spill] sm:$0xff]  ;;  %v14788_v24 = vld [vmem:[#allocation63_spill] sm:$0xff] }
 0x2d8   : > { %10203 = vst.msk [vmem:[%s13834_s14 + $0xa4] sm:$0xf] %vm10161_vm3, %v11058_v52  ;;  %v9437_v49 = vadd.f32 %v13813_v0, %v9302_v55  ;;  %v9303_v12 = vmax.f32 %v9047_v26, %v9175_v2  ;;  %v14789_v26 = vld [vmem:[#allocation64_spill] sm:$0xff]  ;;  %v14790_v2 = vld [vmem:[#allocation65_spill] sm:$0xff] }
 0x2d9   : > { %v9567_v13 = vmax.f32 %v9439_v3, 0.0  ;;  %v9440_v30 = vadd.f32 %v13813_v0, %v9305_v48 }
 0x2da   : > { %v9565_v31 = vmax.f32 %v9437_v49, 0.0  ;;  %v9438_v50 = vadd.f32 %v13813_v0, %v9303_v12  ;;  %v11585_v34 = vpop.f32.mrb[176].mxu0  ;;  %v11841_v35 = vpop.f32.mrb[176].mxu1 }
 0x2db   : > { %v11063_v51 = vpack.c.bf16 %v9567_v13, %v9567_v13  ;;  %v9568_v56 = vmax.f32 %v9440_v30, 0.0  ;;  %v9052_v28 = vmax.f32 %v14779_v57, %v11585_v34  ;;  %v9180_v58 = vmax.f32 %v14780_v60, %v11841_v35  ;;  %v7659_v14 = vpop.f32.mrb[177].mxu0  ;;  %v8683_v15 = vpop.f32.mrb[177].mxu1  ;;  %v14791_v13 = vld [vmem:[#allocation66_spill] sm:$0xff]  ;;  %v14793_v57 = vld [vmem:[#allocation68_spill] sm:$0xff]  ;;  %v14794_v60 = vld [vmem:[#allocation69_spill] sm:$0xff] }
 0x2dc   : > { %v11061_v4 = vpack.c.bf16 %v9565_v31, %v9565_v31  ;;  %v9566_v5 = vmax.f32 %v9438_v50, 0.0  ;;  %v9050_v62 = vmax.f32 %v14781_v59, %v7659_v14  ;;  %v9178_v19 = vmax.f32 %v14782_v18, %v8683_v15  ;;  %v11586_v22 = vpop.f32.mrb[178].mxu0  ;;  %v11842_v23 = vpop.f32.mrb[178].mxu1  ;;  %v14792_v31 = vld [vmem:[#allocation67_spill] sm:$0xff] }
 0x2dd   : > { %10208 = vst.msk [vmem:[%s13834_s14 + $0xb8] sm:$0xf] %vm10161_vm3, %v11063_v51  ;;  %v11064_v63 = vpack.c.bf16 %v9568_v56, %v9568_v56  ;;  %v9308_v16 = vmax.f32 %v9052_v28, %v9180_v58  ;;  %v9053_v7 = vmax.f32 %v14783_v6, %v11586_v22  ;;  %v9181_v36 = vmax.f32 %v14784_v10, %v11842_v23  ;;  %v7662_v37 = vpop.f32.mrb[179].mxu0  ;;  %v8686_v11 = vpop.f32.mrb[179].mxu1  ;;  %v14122_v14 = vld [vmem:[%s14515_s2] ss:$0 sm:$0xff] }
 0x2de   : > { %10206 = vst.msk [vmem:[%s13834_s14 + $0xb0] sm:$0xf] %vm10161_vm3, %v11061_v4  ;;  %v11062_v9 = vpack.c.bf16 %v9566_v5, %v9566_v5  ;;  %v9306_v61 = vmax.f32 %v9050_v62, %v9178_v19  ;;  %v9051_v38 = vmax.f32 %v14785_v8, %v7662_v37  ;;  %v9179_v39 = vmax.f32 %v14786_v17, %v8686_v11 }
 0x2df   : > { %10209 = vst.msk [vmem:[%s13834_s14 + $0xbc] sm:$0xf] %vm10161_vm3, %v11064_v63  ;;  %v9443_v20 = vadd.f32 %v13813_v0, %v9308_v16  ;;  %v9309_v21 = vmax.f32 %v9053_v7, %v9181_v36  ;;  %v14795_v7 = vld [vmem:[#allocation70_spill] sm:$0xff]  ;;  %v14796_v36 = vld [vmem:[#allocation71_spill] sm:$0xff] }
 0x2e0   : > { %10207 = vst.msk [vmem:[%s13834_s14 + $0xb4] sm:$0xf] %vm10161_vm3, %v11062_v9  ;;  %v9441_v42 = vadd.f32 %v13813_v0, %v9306_v61  ;;  %v9307_v43 = vmax.f32 %v9051_v38, %v9179_v39  ;;  %v14797_v38 = vld [vmem:[#allocation72_spill] sm:$0xff]  ;;  %v14798_v39 = vld [vmem:[#allocation73_spill] sm:$0xff] }
 0x2e1   : > { %v9571_v1 = vmax.f32 %v9443_v20, 0.0  ;;  %v9444_v33 = vadd.f32 %v13813_v0, %v9309_v21 }
 0x2e2   : > { %v9569_v46 = vmax.f32 %v9441_v42, 0.0  ;;  %v9442_v47 = vadd.f32 %v13813_v0, %v9307_v43  ;;  %v11589_v53 = vpop.f32.mrb[180].mxu0  ;;  %v11845_v40 = vpop.f32.mrb[180].mxu1 }
 0x2e3   : > { %v11067_v41 = vpack.c.bf16 %v9571_v1, %v9571_v1  ;;  %v9572_v44 = vmax.f32 %v9444_v33, 0.0  ;;  %v9056_v29 = vmax.f32 %v14787_v45, %v11589_v53  ;;  %v9184_v25 = vmax.f32 %v14788_v24, %v11845_v40  ;;  %v7675_v54 = vpop.f32.mrb[181].mxu0  ;;  %v8699_v52 = vpop.f32.mrb[181].mxu1  ;;  %v14799_v33 = vld [vmem:[#allocation74_spill] sm:$0xff] }
 0x2e4   : > { %v11065_v55 = vpack.c.bf16 %v9569_v46, %v9569_v46  ;;  %v9570_v32 = vmax.f32 %v9442_v47, 0.0  ;;  %v9054_v27 = vmax.f32 %v14789_v26, %v7675_v54  ;;  %v9182_v3 = vmax.f32 %v14790_v2, %v8699_v52  ;;  %v11590_v48 = vpop.f32.mrb[182].mxu0  ;;  %v11846_v0 = vpop.f32.mrb[182].mxu1  ;;  %v14800_v47 = vld [vmem:[#allocation75_spill] sm:$0xff] }
 0x2e5   : > { %10212 = vst.msk [vmem:[%s13834_s14 + $0xc8] sm:$0xf] %vm10161_vm3, %v11067_v41  ;;  %v11068_v49 = vpack.c.bf16 %v9572_v44, %v9572_v44  ;;  %v9312_v12 = vmax.f32 %v9056_v29, %v9184_v25  ;;  %v9057_v30 = vmax.f32 %v14791_v13, %v11590_v48  ;;  %v9185_v50 = vmax.f32 %v14792_v31, %v11846_v0  ;;  %v7678_v34 = vpop.f32.mrb[183].mxu0  ;;  %v8702_v35 = vpop.f32.mrb[183].mxu1  ;;  %v14801_v29 = vld [vmem:[#allocation76_spill] sm:$0xff]  ;;  %v14802_v25 = vld [vmem:[#allocation77_spill] sm:$0xff] }
 0x2e6   : > { %10210 = vst.msk [vmem:[%s13834_s14 + $0xc0] sm:$0xf] %vm10161_vm3, %v11065_v55  ;;  %v11066_v51 = vpack.c.bf16 %v9570_v32, %v9570_v32  ;;  %v9310_v56 = vmax.f32 %v9054_v27, %v9182_v3  ;;  %v9055_v28 = vmax.f32 %v14793_v57, %v7678_v34  ;;  %v9183_v58 = vmax.f32 %v14794_v60, %v8702_v35 }
 0x2e7   : > { %10213 = vst.msk [vmem:[%s13834_s14 + $0xcc] sm:$0xf] %vm10161_vm3, %v11068_v49  ;;  %v9447_v15 = vadd.f32 %v14122_v14, %v9312_v12  ;;  %v9313_v4 = vmax.f32 %v9057_v30, %v9185_v50  ;;  %v14803_v30 = vld [vmem:[#allocation78_spill] sm:$0xff]  ;;  %v14804_v50 = vld [vmem:[#allocation79_spill] sm:$0xff] }
 0x2e8   : > { %10211 = vst.msk [vmem:[%s13834_s14 + $0xc4] sm:$0xf] %vm10161_vm3, %v11066_v51  ;;  %v9445_v5 = vadd.f32 %v14122_v14, %v9310_v56  ;;  %v9311_v59 = vmax.f32 %v9055_v28, %v9183_v58  ;;  %v14805_v28 = vld [vmem:[#allocation80_spill] sm:$0xff]  ;;  %v14806_v58 = vld [vmem:[#allocation81_spill] sm:$0xff] }
 0x2e9   : > { %v9575_v62 = vmax.f32 %v9447_v15, 0.0  ;;  %v9448_v18 = vadd.f32 %v14122_v14, %v9313_v4 }
 0x2ea   : > { %v9573_v19 = vmax.f32 %v9445_v5, 0.0  ;;  %v9446_v22 = vadd.f32 %v14122_v14, %v9311_v59  ;;  %v11593_v23 = vpop.f32.mrb[184].mxu0  ;;  %v11849_v63 = vpop.f32.mrb[184].mxu1 }
 0x2eb   : > { %v11071_v16 = vpack.c.bf16 %v9575_v62, %v9575_v62  ;;  %v9576_v6 = vmax.f32 %v9448_v18, 0.0  ;;  %v9060_v10 = vmax.f32 %v14795_v7, %v11593_v23  ;;  %v9188_v37 = vmax.f32 %v14796_v36, %v11849_v63  ;;  %v7691_v11 = vpop.f32.mrb[185].mxu0  ;;  %v8715_v9 = vpop.f32.mrb[185].mxu1  ;;  %v14807_v18 = vld [vmem:[#allocation82_spill] sm:$0xff] }
 0x2ec   : > { %v11069_v61 = vpack.c.bf16 %v9573_v19, %v9573_v19  ;;  %v9574_v8 = vmax.f32 %v9446_v22, 0.0  ;;  %v9058_v17 = vmax.f32 %v14797_v38, %v7691_v11  ;;  %v9186_v20 = vmax.f32 %v14798_v39, %v8715_v9  ;;  %v11594_v21 = vpop.f32.mrb[186].mxu0  ;;  %v11850_v42 = vpop.f32.mrb[186].mxu1  ;;  %v14808_v22 = vld [vmem:[#allocation83_spill] sm:$0xff] }
 0x2ed   : > { %10216 = vst.msk [vmem:[%s13834_s14 + $0xd8] sm:$0xf] %vm10161_vm3, %v11071_v16  ;;  %v11072_v43 = vpack.c.bf16 %v9576_v6, %v9576_v6  ;;  %v9316_v1 = vmax.f32 %v9060_v10, %v9188_v37  ;;  %v9061_v46 = vmax.f32 %v14799_v33, %v11594_v21  ;;  %v9189_v53 = vmax.f32 %v14800_v47, %v11850_v42  ;;  %v7694_v40 = vpop.f32.mrb[187].mxu0  ;;  %v8718_v41 = vpop.f32.mrb[187].mxu1  ;;  %v14809_v10 = vld [vmem:[#allocation84_spill] sm:$0xff]  ;;  %v14810_v37 = vld [vmem:[#allocation85_spill] sm:$0xff] }
 0x2ee   : > { %10214 = vst.msk [vmem:[%s13834_s14 + $0xd0] sm:$0xf] %vm10161_vm3, %v11069_v61  ;;  %v11070_v44 = vpack.c.bf16 %v9574_v8, %v9574_v8  ;;  %v9314_v45 = vmax.f32 %v9058_v17, %v9186_v20  ;;  %v9059_v24 = vmax.f32 %v14801_v29, %v7694_v40  ;;  %v9187_v54 = vmax.f32 %v14802_v25, %v8718_v41 }
 0x2ef   : > { %10217 = vst.msk [vmem:[%s13834_s14 + $0xdc] sm:$0xf] %vm10161_vm3, %v11072_v43  ;;  %v9451_v52 = vadd.f32 %v14122_v14, %v9316_v1  ;;  %v9317_v55 = vmax.f32 %v9061_v46, %v9189_v53  ;;  %v14811_v46 = vld [vmem:[#allocation86_spill] sm:$0xff]  ;;  %v14812_v53 = vld [vmem:[#allocation87_spill] sm:$0xff] }
 0x2f0   : > { %10215 = vst.msk [vmem:[%s13834_s14 + $0xd4] sm:$0xf] %vm10161_vm3, %v11070_v44  ;;  %v9449_v32 = vadd.f32 %v14122_v14, %v9314_v45  ;;  %v9315_v26 = vmax.f32 %v9059_v24, %v9187_v54  ;;  %v14813_v24 = vld [vmem:[#allocation88_spill] sm:$0xff]  ;;  %v14814_v54 = vld [vmem:[#allocation89_spill] sm:$0xff] }
 0x2f1   : > { %v9579_v27 = vmax.f32 %v9451_v52, 0.0  ;;  %v9452_v2 = vadd.f32 %v14122_v14, %v9317_v55 }
 0x2f2   : > { %v9577_v3 = vmax.f32 %v9449_v32, 0.0  ;;  %v9450_v48 = vadd.f32 %v14122_v14, %v9315_v26  ;;  %v11597_v0 = vpop.f32.mrb[188].mxu0  ;;  %v11853_v49 = vpop.f32.mrb[188].mxu1 }
 0x2f3   : > { %v11075_v12 = vpack.c.bf16 %v9579_v27, %v9579_v27  ;;  %v9580_v13 = vmax.f32 %v9452_v2, 0.0  ;;  %v9064_v31 = vmax.f32 %v14803_v30, %v11597_v0  ;;  %v9192_v34 = vmax.f32 %v14804_v50, %v11853_v49  ;;  %v7707_v35 = vpop.f32.mrb[189].mxu0  ;;  %v8731_v51 = vpop.f32.mrb[189].mxu1  ;;  %v14815_v2 = vld [vmem:[#allocation90_spill] sm:$0xff] }
 0x2f4   : > { %v11073_v56 = vpack.c.bf16 %v9577_v3, %v9577_v3  ;;  %v9578_v57 = vmax.f32 %v9450_v48, 0.0  ;;  %v9062_v60 = vmax.f32 %v14805_v28, %v7707_v35  ;;  %v9190_v15 = vmax.f32 %v14806_v58, %v8731_v51  ;;  %v11598_v4 = vpop.f32.mrb[190].mxu0  ;;  %v11854_v5 = vpop.f32.mrb[190].mxu1  ;;  %v14816_v48 = vld [vmem:[#allocation91_spill] sm:$0xff] }
 0x2f5   : > { %10220 = vst.msk [vmem:[%s13834_s14 + $0xe8] sm:$0xf] %vm10161_vm3, %v11075_v12  ;;  %v11076_v59 = vpack.c.bf16 %v9580_v13, %v9580_v13  ;;  %v9320_v62 = vmax.f32 %v9064_v31, %v9192_v34  ;;  %v9065_v19 = vmax.f32 %v14807_v18, %v11598_v4  ;;  %v9193_v23 = vmax.f32 %v14808_v22, %v11854_v5  ;;  %v7710_v63 = vpop.f32.mrb[191].mxu0  ;;  %v8734_v16 = vpop.f32.mrb[191].mxu1  ;;  %v14817_v31 = vld [vmem:[#allocation92_spill] sm:$0xff]  ;;  %v14818_v34 = vld [vmem:[#allocation93_spill] sm:$0xff] }
 0x2f6   : > { %10218 = vst.msk [vmem:[%s13834_s14 + $0xe0] sm:$0xf] %vm10161_vm3, %v11073_v56  ;;  %v11074_v6 = vpack.c.bf16 %v9578_v57, %v9578_v57  ;;  %v9318_v7 = vmax.f32 %v9062_v60, %v9190_v15  ;;  %v9063_v36 = vmax.f32 %v14809_v10, %v7710_v63  ;;  %v9191_v11 = vmax.f32 %v14810_v37, %v8734_v16 }
 0x2f7   : > { %10221 = vst.msk [vmem:[%s13834_s14 + $0xec] sm:$0xf] %vm10161_vm3, %v11076_v59  ;;  %v9455_v9 = vadd.f32 %v14122_v14, %v9320_v62  ;;  %v9321_v61 = vmax.f32 %v9065_v19, %v9193_v23  ;;  %v14819_v19 = vld [vmem:[#allocation94_spill] sm:$0xff]  ;;  %v14820_v23 = vld [vmem:[#allocation95_spill] sm:$0xff] }
 0x2f8   : > { %10219 = vst.msk [vmem:[%s13834_s14 + $0xe4] sm:$0xf] %vm10161_vm3, %v11074_v6  ;;  %v9453_v8 = vadd.f32 %v14122_v14, %v9318_v7  ;;  %v9319_v38 = vmax.f32 %v9063_v36, %v9191_v11  ;;  %v14821_v36 = vld [vmem:[#allocation96_spill] sm:$0xff]  ;;  %v14822_v11 = vld [vmem:[#allocation97_spill] sm:$0xff] }
 0x2f9   : > { %v9583_v17 = vmax.f32 %v9455_v9, 0.0  ;;  %v9456_v39 = vadd.f32 %v14122_v14, %v9321_v61 }
 0x2fa   : > { %v9581_v20 = vmax.f32 %v9453_v8, 0.0  ;;  %v9454_v21 = vadd.f32 %v14122_v14, %v9319_v38  ;;  %v11601_v42 = vpop.f32.mrb[192].mxu0  ;;  %v11857_v43 = vpop.f32.mrb[192].mxu1 }
 0x2fb   : > { %v11079_v1 = vpack.c.bf16 %v9583_v17, %v9583_v17  ;;  %v9584_v33 = vmax.f32 %v9456_v39, 0.0  ;;  %v9068_v47 = vmax.f32 %v14811_v46, %v11601_v42  ;;  %v9196_v40 = vmax.f32 %v14812_v53, %v11857_v43  ;;  %v7723_v41 = vpop.f32.mrb[193].mxu0  ;;  %v8747_v44 = vpop.f32.mrb[193].mxu1  ;;  %v14823_v39 = vld [vmem:[#allocation98_spill] sm:$0xff] }
 0x2fc   : > { %v11077_v45 = vpack.c.bf16 %v9581_v20, %v9581_v20  ;;  %v9582_v29 = vmax.f32 %v9454_v21, 0.0  ;;  %v9066_v25 = vmax.f32 %v14813_v24, %v7723_v41  ;;  %v9194_v52 = vmax.f32 %v14814_v54, %v8747_v44  ;;  %v11602_v55 = vpop.f32.mrb[194].mxu0  ;;  %v11858_v32 = vpop.f32.mrb[194].mxu1  ;;  %v14824_v21 = vld [vmem:[#allocation99_spill] sm:$0xff] }
 0x2fd   : > { %10224 = vst.msk [vmem:[%s13834_s14 + $0xf8] sm:$0xf] %vm10161_vm3, %v11079_v1  ;;  %v11080_v26 = vpack.c.bf16 %v9584_v33, %v9584_v33  ;;  %v9324_v27 = vmax.f32 %v9068_v47, %v9196_v40  ;;  %v9069_v3 = vmax.f32 %v14815_v2, %v11602_v55  ;;  %v9197_v0 = vmax.f32 %v14816_v48, %v11858_v32  ;;  %v7726_v49 = vpop.f32.mrb[195].mxu0  ;;  %v8750_v12 = vpop.f32.mrb[195].mxu1  ;;  %v14825_v47 = vld [vmem:[#allocation100_spill] sm:$0xff]  ;;  %v14826_v40 = vld [vmem:[#allocation101_spill] sm:$0xff] }
 0x2fe   : > { %10222 = vst.msk [vmem:[%s13834_s14 + $0xf0] sm:$0xf] %vm10161_vm3, %v11077_v45  ;;  %v11078_v13 = vpack.c.bf16 %v9582_v29, %v9582_v29  ;;  %v9322_v30 = vmax.f32 %v9066_v25, %v9194_v52  ;;  %v9067_v50 = vmax.f32 %v14817_v31, %v7726_v49  ;;  %v9195_v35 = vmax.f32 %v14818_v34, %v8750_v12 }
 0x2ff   : > { %10225 = vst.msk [vmem:[%s13834_s14 + $0xfc] sm:$0xf] %vm10161_vm3, %v11080_v26  ;;  %v9459_v51 = vadd.f32 %v14122_v14, %v9324_v27  ;;  %v9325_v56 = vmax.f32 %v9069_v3, %v9197_v0  ;;  %v14827_v3 = vld [vmem:[#allocation102_spill] sm:$0xff]  ;;  %v14828_v0 = vld [vmem:[#allocation103_spill] sm:$0xff] }
 0x300   : > { %10223 = vst.msk [vmem:[%s13834_s14 + $0xf4] sm:$0xf] %vm10161_vm3, %v11078_v13  ;;  %v9457_v57 = vadd.f32 %v14122_v14, %v9322_v30  ;;  %v9323_v28 = vmax.f32 %v9067_v50, %v9195_v35  ;;  %v14829_v50 = vld [vmem:[#allocation104_spill] sm:$0xff]  ;;  %v14830_v35 = vld [vmem:[#allocation105_spill] sm:$0xff] }
 0x301   : > { %v9587_v60 = vmax.f32 %v9459_v51, 0.0  ;;  %v9460_v58 = vadd.f32 %v14122_v14, %v9325_v56 }
 0x302   : > { %v9585_v15 = vmax.f32 %v9457_v57, 0.0  ;;  %v9458_v4 = vadd.f32 %v14122_v14, %v9323_v28  ;;  %v11605_v5 = vpop.f32.mrb[196].mxu0  ;;  %v11861_v59 = vpop.f32.mrb[196].mxu1 }
 0x303   : > { %v11083_v62 = vpack.c.bf16 %v9587_v60, %v9587_v60  ;;  %v9588_v18 = vmax.f32 %v9460_v58, 0.0  ;;  %v9072_v22 = vmax.f32 %v14819_v19, %v11605_v5  ;;  %v9200_v63 = vmax.f32 %v14820_v23, %v11861_v59  ;;  %v7739_v16 = vpop.f32.mrb[197].mxu0  ;;  %v8763_v6 = vpop.f32.mrb[197].mxu1  ;;  %v14831_v58 = vld [vmem:[#allocation106_spill] sm:$0xff] }
 0x304   : > { %v11081_v7 = vpack.c.bf16 %v9585_v15, %v9585_v15  ;;  %v9586_v10 = vmax.f32 %v9458_v4, 0.0  ;;  %v9070_v37 = vmax.f32 %v14821_v36, %v7739_v16  ;;  %v9198_v9 = vmax.f32 %v14822_v11, %v8763_v6  ;;  %v11606_v61 = vpop.f32.mrb[198].mxu0  ;;  %v11862_v8 = vpop.f32.mrb[198].mxu1  ;;  %v14832_v4 = vld [vmem:[#allocation107_spill] sm:$0xff] }
 0x305   : > { %10228 = vst.msk [vmem:[%s13834_s14 + $0x108] sm:$0xf] %vm10161_vm3, %v11083_v62  ;;  %v11084_v38 = vpack.c.bf16 %v9588_v18, %v9588_v18  ;;  %v9328_v17 = vmax.f32 %v9072_v22, %v9200_v63  ;;  %v9073_v20 = vmax.f32 %v14823_v39, %v11606_v61  ;;  %v9201_v42 = vmax.f32 %v14824_v21, %v11862_v8  ;;  %v7742_v43 = vpop.f32.mrb[199].mxu0  ;;  %v8766_v1 = vpop.f32.mrb[199].mxu1  ;;  %v14833_v22 = vld [vmem:[#allocation108_spill] sm:$0xff]  ;;  %v14834_v63 = vld [vmem:[#allocation109_spill] sm:$0xff] }
 0x306   : > { %10226 = vst.msk [vmem:[%s13834_s14 + $0x100] sm:$0xf] %vm10161_vm3, %v11081_v7  ;;  %v11082_v33 = vpack.c.bf16 %v9586_v10, %v9586_v10  ;;  %v9326_v46 = vmax.f32 %v9070_v37, %v9198_v9  ;;  %v9071_v53 = vmax.f32 %v14825_v47, %v7742_v43  ;;  %v9199_v41 = vmax.f32 %v14826_v40, %v8766_v1 }
 0x307   : > { %10229 = vst.msk [vmem:[%s13834_s14 + $0x10c] sm:$0xf] %vm10161_vm3, %v11084_v38  ;;  %v9463_v44 = vadd.f32 %v14122_v14, %v9328_v17  ;;  %v9329_v45 = vmax.f32 %v9073_v20, %v9201_v42  ;;  %v14835_v20 = vld [vmem:[#allocation110_spill] sm:$0xff]  ;;  %v14836_v42 = vld [vmem:[#allocation111_spill] sm:$0xff] }
 0x308   : > { %10227 = vst.msk [vmem:[%s13834_s14 + $0x104] sm:$0xf] %vm10161_vm3, %v11082_v33  ;;  %v9461_v29 = vadd.f32 %v14122_v14, %v9326_v46  ;;  %v9327_v24 = vmax.f32 %v9071_v53, %v9199_v41  ;;  %v14837_v53 = vld [vmem:[#allocation112_spill] sm:$0xff]  ;;  %v14838_v41 = vld [vmem:[#allocation113_spill] sm:$0xff] }
 0x309   : > { %v9591_v25 = vmax.f32 %v9463_v44, 0.0  ;;  %v9464_v54 = vadd.f32 %v14122_v14, %v9329_v45 }
 0x30a   : > { %v9589_v52 = vmax.f32 %v9461_v29, 0.0  ;;  %v9462_v55 = vadd.f32 %v14122_v14, %v9327_v24  ;;  %v11609_v32 = vpop.f32.mrb[200].mxu0  ;;  %v11865_v26 = vpop.f32.mrb[200].mxu1 }
 0x30b   : > { %v11087_v27 = vpack.c.bf16 %v9591_v25, %v9591_v25  ;;  %v9592_v2 = vmax.f32 %v9464_v54, 0.0  ;;  %v9076_v48 = vmax.f32 %v14827_v3, %v11609_v32  ;;  %v9204_v49 = vmax.f32 %v14828_v0, %v11865_v26  ;;  %v7755_v12 = vpop.f32.mrb[201].mxu0  ;;  %v8779_v13 = vpop.f32.mrb[201].mxu1  ;;  %v14839_v54 = vld [vmem:[#allocation114_spill] sm:$0xff] }
 0x30c   : > { %v11085_v30 = vpack.c.bf16 %v9589_v52, %v9589_v52  ;;  %v9590_v31 = vmax.f32 %v9462_v55, 0.0  ;;  %v9074_v34 = vmax.f32 %v14829_v50, %v7755_v12  ;;  %v9202_v51 = vmax.f32 %v14830_v35, %v8779_v13  ;;  %v11610_v56 = vpop.f32.mrb[202].mxu0  ;;  %v11866_v57 = vpop.f32.mrb[202].mxu1  ;;  %v14840_v55 = vld [vmem:[#allocation115_spill] sm:$0xff] }
 0x30d   : > { %10232 = vst.msk [vmem:[%s13834_s14 + $0x118] sm:$0xf] %vm10161_vm3, %v11087_v27  ;;  %v11088_v28 = vpack.c.bf16 %v9592_v2, %v9592_v2  ;;  %v9332_v60 = vmax.f32 %v9076_v48, %v9204_v49  ;;  %v9077_v15 = vmax.f32 %v14831_v58, %v11610_v56  ;;  %v9205_v5 = vmax.f32 %v14832_v4, %v11866_v57  ;;  %v7758_v59 = vpop.f32.mrb[203].mxu0  ;;  %v8782_v62 = vpop.f32.mrb[203].mxu1  ;;  %v14841_v48 = vld [vmem:[#allocation116_spill] sm:$0xff]  ;;  %v14842_v49 = vld [vmem:[#allocation117_spill] sm:$0xff] }
 0x30e   : > { %10230 = vst.msk [vmem:[%s13834_s14 + $0x110] sm:$0xf] %vm10161_vm3, %v11085_v30  ;;  %v11086_v18 = vpack.c.bf16 %v9590_v31, %v9590_v31  ;;  %v9330_v19 = vmax.f32 %v9074_v34, %v9202_v51  ;;  %v9075_v23 = vmax.f32 %v14833_v22, %v7758_v59  ;;  %v9203_v16 = vmax.f32 %v14834_v63, %v8782_v62 }
 0x30f   : > { %10233 = vst.msk [vmem:[%s13834_s14 + $0x11c] sm:$0xf] %vm10161_vm3, %v11088_v28  ;;  %v9467_v6 = vadd.f32 %v14122_v14, %v9332_v60  ;;  %v9333_v7 = vmax.f32 %v9077_v15, %v9205_v5  ;;  %v14843_v15 = vld [vmem:[#allocation118_spill] sm:$0xff]  ;;  %v14844_v5 = vld [vmem:[#allocation119_spill] sm:$0xff] }
 0x310   : > { %10231 = vst.msk [vmem:[%s13834_s14 + $0x114] sm:$0xf] %vm10161_vm3, %v11086_v18  ;;  %v9465_v10 = vadd.f32 %v14122_v14, %v9330_v19  ;;  %v9331_v36 = vmax.f32 %v9075_v23, %v9203_v16  ;;  %v14845_v23 = vld [vmem:[#allocation120_spill] sm:$0xff]  ;;  %v14846_v16 = vld [vmem:[#allocation121_spill] sm:$0xff] }
 0x311   : > { %v9595_v37 = vmax.f32 %v9467_v6, 0.0  ;;  %v9468_v11 = vadd.f32 %v14122_v14, %v9333_v7 }
 0x312   : > { %v9593_v9 = vmax.f32 %v9465_v10, 0.0  ;;  %v9466_v61 = vadd.f32 %v14122_v14, %v9331_v36  ;;  %v11613_v8 = vpop.f32.mrb[204].mxu0  ;;  %v11869_v38 = vpop.f32.mrb[204].mxu1 }
 0x313   : > { %v11091_v17 = vpack.c.bf16 %v9595_v37, %v9595_v37  ;;  %v9596_v39 = vmax.f32 %v9468_v11, 0.0  ;;  %v9080_v21 = vmax.f32 %v14835_v20, %v11613_v8  ;;  %v9208_v43 = vmax.f32 %v14836_v42, %v11869_v38  ;;  %v7771_v1 = vpop.f32.mrb[205].mxu0  ;;  %v8795_v33 = vpop.f32.mrb[205].mxu1  ;;  %v14847_v11 = vld [vmem:[#allocation122_spill] sm:$0xff] }
 0x314   : > { %v11089_v46 = vpack.c.bf16 %v9593_v9, %v9593_v9  ;;  %v9594_v47 = vmax.f32 %v9466_v61, 0.0  ;;  %v9078_v40 = vmax.f32 %v14837_v53, %v7771_v1  ;;  %v9206_v44 = vmax.f32 %v14838_v41, %v8795_v33  ;;  %v11614_v45 = vpop.f32.mrb[206].mxu0  ;;  %v11870_v29 = vpop.f32.mrb[206].mxu1  ;;  %v14848_v61 = vld [vmem:[#allocation123_spill] sm:$0xff] }
 0x315   : > { %10236 = vst.msk [vmem:[%s13834_s14 + $0x128] sm:$0xf] %vm10161_vm3, %v11091_v17  ;;  %v11092_v24 = vpack.c.bf16 %v9596_v39, %v9596_v39  ;;  %v9336_v25 = vmax.f32 %v9080_v21, %v9208_v43  ;;  %v9081_v52 = vmax.f32 %v14839_v54, %v11614_v45  ;;  %v9209_v32 = vmax.f32 %v14840_v55, %v11870_v29  ;;  %v7774_v26 = vpop.f32.mrb[207].mxu0  ;;  %v8798_v27 = vpop.f32.mrb[207].mxu1  ;;  %v14849_v21 = vld [vmem:[#allocation124_spill] sm:$0xff]  ;;  %v14850_v43 = vld [vmem:[#allocation125_spill] sm:$0xff] }
 0x316   : > { %10234 = vst.msk [vmem:[%s13834_s14 + $0x120] sm:$0xf] %vm10161_vm3, %v11089_v46  ;;  %v11090_v2 = vpack.c.bf16 %v9594_v47, %v9594_v47  ;;  %v9334_v3 = vmax.f32 %v9078_v40, %v9206_v44  ;;  %v9079_v0 = vmax.f32 %v14841_v48, %v7774_v26  ;;  %v9207_v12 = vmax.f32 %v14842_v49, %v8798_v27 }
 0x317   : > { %10237 = vst.msk [vmem:[%s13834_s14 + $0x12c] sm:$0xf] %vm10161_vm3, %v11092_v24  ;;  %v9471_v13 = vadd.f32 %v14122_v14, %v9336_v25  ;;  %v9337_v30 = vmax.f32 %v9081_v52, %v9209_v32  ;;  %v14851_v52 = vld [vmem:[#allocation126_spill] sm:$0xff]  ;;  %v14852_v32 = vld [vmem:[#allocation127_spill] sm:$0xff] }
 0x318   : > { %10235 = vst.msk [vmem:[%s13834_s14 + $0x124] sm:$0xf] %vm10161_vm3, %v11090_v2  ;;  %v9469_v31 = vadd.f32 %v14122_v14, %v9334_v3  ;;  %v9335_v50 = vmax.f32 %v9079_v0, %v9207_v12  ;;  %v14853_v0 = vld [vmem:[#allocation128_spill] sm:$0xff]  ;;  %v14854_v12 = vld [vmem:[#allocation129_spill] sm:$0xff] }
 0x319   : > { %v9599_v34 = vmax.f32 %v9471_v13, 0.0  ;;  %v9472_v35 = vadd.f32 %v14122_v14, %v9337_v30 }
 0x31a   : > { %v9597_v51 = vmax.f32 %v9469_v31, 0.0  ;;  %v9470_v56 = vadd.f32 %v14122_v14, %v9335_v50  ;;  %v11617_v57 = vpop.f32.mrb[208].mxu0  ;;  %v11873_v28 = vpop.f32.mrb[208].mxu1 }
 0x31b   : > { %v11095_v60 = vpack.c.bf16 %v9599_v34, %v9599_v34  ;;  %v9600_v58 = vmax.f32 %v9472_v35, 0.0  ;;  %v9084_v4 = vmax.f32 %v14843_v15, %v11617_v57  ;;  %v9212_v59 = vmax.f32 %v14844_v5, %v11873_v28  ;;  %v7787_v62 = vpop.f32.mrb[209].mxu0  ;;  %v8811_v18 = vpop.f32.mrb[209].mxu1  ;;  %v14855_v35 = vld [vmem:[#allocation130_spill] sm:$0xff] }
 0x31c   : > { %v11093_v19 = vpack.c.bf16 %v9597_v51, %v9597_v51  ;;  %v9598_v22 = vmax.f32 %v9470_v56, 0.0  ;;  %v9082_v63 = vmax.f32 %v14845_v23, %v7787_v62  ;;  %v9210_v6 = vmax.f32 %v14846_v16, %v8811_v18  ;;  %v11618_v7 = vpop.f32.mrb[210].mxu0  ;;  %v11874_v10 = vpop.f32.mrb[210].mxu1  ;;  %v14856_v56 = vld [vmem:[#allocation131_spill] sm:$0xff] }
 0x31d   : > { %10240 = vst.msk [vmem:[%s13834_s14 + $0x138] sm:$0xf] %vm10161_vm3, %v11095_v60  ;;  %v11096_v36 = vpack.c.bf16 %v9600_v58, %v9600_v58  ;;  %v9340_v37 = vmax.f32 %v9084_v4, %v9212_v59  ;;  %v9085_v9 = vmax.f32 %v14847_v11, %v11618_v7  ;;  %v9213_v8 = vmax.f32 %v14848_v61, %v11874_v10  ;;  %v7790_v38 = vpop.f32.mrb[211].mxu0  ;;  %v8814_v17 = vpop.f32.mrb[211].mxu1  ;;  %v14857_v4 = vld [vmem:[#allocation132_spill] sm:$0xff]  ;;  %v14858_v59 = vld [vmem:[#allocation133_spill] sm:$0xff] }
 0x31e   : > { %10238 = vst.msk [vmem:[%s13834_s14 + $0x130] sm:$0xf] %vm10161_vm3, %v11093_v19  ;;  %v11094_v39 = vpack.c.bf16 %v9598_v22, %v9598_v22  ;;  %v9338_v20 = vmax.f32 %v9082_v63, %v9210_v6  ;;  %v9083_v42 = vmax.f32 %v14849_v21, %v7790_v38  ;;  %v9211_v1 = vmax.f32 %v14850_v43, %v8814_v17 }
 0x31f   : > { %10241 = vst.msk [vmem:[%s13834_s14 + $0x13c] sm:$0xf] %vm10161_vm3, %v11096_v36  ;;  %v9475_v33 = vadd.f32 %v14122_v14, %v9340_v37  ;;  %v9341_v46 = vmax.f32 %v9085_v9, %v9213_v8  ;;  %v14859_v9 = vld [vmem:[#allocation134_spill] sm:$0xff]  ;;  %v14860_v8 = vld [vmem:[#allocation135_spill] sm:$0xff] }
 0x320   : > { %10239 = vst.msk [vmem:[%s13834_s14 + $0x134] sm:$0xf] %vm10161_vm3, %v11094_v39  ;;  %v9473_v47 = vadd.f32 %v14122_v14, %v9338_v20  ;;  %v9339_v53 = vmax.f32 %v9083_v42, %v9211_v1  ;;  %v14861_v42 = vld [vmem:[#allocation136_spill] sm:$0xff]  ;;  %v14862_v1 = vld [vmem:[#allocation137_spill] sm:$0xff] }
 0x321   : > { %v9603_v40 = vmax.f32 %v9475_v33, 0.0  ;;  %v9476_v41 = vadd.f32 %v14122_v14, %v9341_v46 }
 0x322   : > { %v9601_v44 = vmax.f32 %v9473_v47, 0.0  ;;  %v9474_v45 = vadd.f32 %v14122_v14, %v9339_v53  ;;  %v11621_v29 = vpop.f32.mrb[212].mxu0  ;;  %v11877_v24 = vpop.f32.mrb[212].mxu1 }
 0x323   : > { %v11099_v25 = vpack.c.bf16 %v9603_v40, %v9603_v40  ;;  %v9604_v54 = vmax.f32 %v9476_v41, 0.0  ;;  %v9088_v55 = vmax.f32 %v14851_v52, %v11621_v29  ;;  %v9216_v26 = vmax.f32 %v14852_v32, %v11877_v24  ;;  %v7803_v27 = vpop.f32.mrb[213].mxu0  ;;  %v8827_v2 = vpop.f32.mrb[213].mxu1  ;;  %v14863_v41 = vld [vmem:[#allocation138_spill] sm:$0xff] }
 0x324   : > { %v11097_v3 = vpack.c.bf16 %v9601_v44, %v9601_v44  ;;  %v9602_v48 = vmax.f32 %v9474_v45, 0.0  ;;  %v9086_v49 = vmax.f32 %v14853_v0, %v7803_v27  ;;  %v9214_v13 = vmax.f32 %v14854_v12, %v8827_v2  ;;  %v11622_v30 = vpop.f32.mrb[214].mxu0  ;;  %v11878_v31 = vpop.f32.mrb[214].mxu1  ;;  %v14864_v45 = vld [vmem:[#allocation139_spill] sm:$0xff] }
 0x325   : > { %10244 = vst.msk [vmem:[%s13834_s14 + $0x148] sm:$0xf] %vm10161_vm3, %v11099_v25  ;;  %v11100_v50 = vpack.c.bf16 %v9604_v54, %v9604_v54  ;;  %v9344_v34 = vmax.f32 %v9088_v55, %v9216_v26  ;;  %v9089_v51 = vmax.f32 %v14855_v35, %v11622_v30  ;;  %v9217_v57 = vmax.f32 %v14856_v56, %v11878_v31  ;;  %v7806_v28 = vpop.f32.mrb[215].mxu0  ;;  %v8830_v60 = vpop.f32.mrb[215].mxu1  ;;  %v14865_v55 = vld [vmem:[#allocation140_spill] sm:$0xff]  ;;  %v14866_v26 = vld [vmem:[#allocation141_spill] sm:$0xff] }
 0x326   : > { %10242 = vst.msk [vmem:[%s13834_s14 + $0x140] sm:$0xf] %vm10161_vm3, %v11097_v3  ;;  %v11098_v58 = vpack.c.bf16 %v9602_v48, %v9602_v48  ;;  %v9342_v15 = vmax.f32 %v9086_v49, %v9214_v13  ;;  %v9087_v5 = vmax.f32 %v14857_v4, %v7806_v28  ;;  %v9215_v62 = vmax.f32 %v14858_v59, %v8830_v60 }
 0x327   : > { %10245 = vst.msk [vmem:[%s13834_s14 + $0x14c] sm:$0xf] %vm10161_vm3, %v11100_v50  ;;  %v9479_v18 = vadd.f32 %v14122_v14, %v9344_v34  ;;  %v9345_v19 = vmax.f32 %v9089_v51, %v9217_v57  ;;  %v14867_v51 = vld [vmem:[#allocation142_spill] sm:$0xff]  ;;  %v14868_v57 = vld [vmem:[#allocation143_spill] sm:$0xff] }
 0x328   : > { %10243 = vst.msk [vmem:[%s13834_s14 + $0x144] sm:$0xf] %vm10161_vm3, %v11098_v58  ;;  %v9477_v22 = vadd.f32 %v14122_v14, %v9342_v15  ;;  %v9343_v23 = vmax.f32 %v9087_v5, %v9215_v62  ;;  %v14869_v5 = vld [vmem:[#allocation144_spill] sm:$0xff]  ;;  %v14870_v62 = vld [vmem:[#allocation145_spill] sm:$0xff] }
 0x329   : > { %v9607_v63 = vmax.f32 %v9479_v18, 0.0  ;;  %v9480_v16 = vadd.f32 %v14122_v14, %v9345_v19 }
 0x32a   : > { %v9605_v6 = vmax.f32 %v9477_v22, 0.0  ;;  %v9478_v7 = vadd.f32 %v14122_v14, %v9343_v23  ;;  %v11625_v10 = vpop.f32.mrb[216].mxu0  ;;  %v11881_v36 = vpop.f32.mrb[216].mxu1 }
 0x32b   : > { %v11103_v37 = vpack.c.bf16 %v9607_v63, %v9607_v63  ;;  %v9608_v11 = vmax.f32 %v9480_v16, 0.0  ;;  %v9092_v61 = vmax.f32 %v14859_v9, %v11625_v10  ;;  %v9220_v38 = vmax.f32 %v14860_v8, %v11881_v36  ;;  %v7819_v17 = vpop.f32.mrb[217].mxu0  ;;  %v8843_v39 = vpop.f32.mrb[217].mxu1  ;;  %v14871_v16 = vld [vmem:[#allocation146_spill] sm:$0xff] }
 0x32c   : > { %v11101_v20 = vpack.c.bf16 %v9605_v6, %v9605_v6  ;;  %v9606_v21 = vmax.f32 %v9478_v7, 0.0  ;;  %v9090_v43 = vmax.f32 %v14861_v42, %v7819_v17  ;;  %v9218_v33 = vmax.f32 %v14862_v1, %v8843_v39  ;;  %v11626_v46 = vpop.f32.mrb[218].mxu0  ;;  %v11882_v47 = vpop.f32.mrb[218].mxu1  ;;  %v14872_v7 = vld [vmem:[#allocation147_spill] sm:$0xff] }
 0x32d   : > { %10248 = vst.msk [vmem:[%s13834_s14 + $0x158] sm:$0xf] %vm10161_vm3, %v11103_v37  ;;  %v11104_v53 = vpack.c.bf16 %v9608_v11, %v9608_v11  ;;  %v9348_v40 = vmax.f32 %v9092_v61, %v9220_v38  ;;  %v9093_v44 = vmax.f32 %v14863_v41, %v11626_v46  ;;  %v9221_v29 = vmax.f32 %v14864_v45, %v11882_v47  ;;  %v7822_v24 = vpop.f32.mrb[219].mxu0  ;;  %v8846_v25 = vpop.f32.mrb[219].mxu1  ;;  %v14873_v61 = vld [vmem:[#allocation148_spill] sm:$0xff]  ;;  %v14874_v38 = vld [vmem:[#allocation149_spill] sm:$0xff] }
 0x32e   : > { %10246 = vst.msk [vmem:[%s13834_s14 + $0x150] sm:$0xf] %vm10161_vm3, %v11101_v20  ;;  %v11102_v54 = vpack.c.bf16 %v9606_v21, %v9606_v21  ;;  %v9346_v52 = vmax.f32 %v9090_v43, %v9218_v33  ;;  %v9091_v32 = vmax.f32 %v14865_v55, %v7822_v24  ;;  %v9219_v27 = vmax.f32 %v14866_v26, %v8846_v25 }
 0x32f   : > { %10249 = vst.msk [vmem:[%s13834_s14 + $0x15c] sm:$0xf] %vm10161_vm3, %v11104_v53  ;;  %v9483_v2 = vadd.f32 %v14122_v14, %v9348_v40  ;;  %v9349_v3 = vmax.f32 %v9093_v44, %v9221_v29  ;;  %v14875_v44 = vld [vmem:[#allocation150_spill] sm:$0xff]  ;;  %v14876_v29 = vld [vmem:[#allocation151_spill] sm:$0xff] }
 0x330   : > { %10247 = vst.msk [vmem:[%s13834_s14 + $0x154] sm:$0xf] %vm10161_vm3, %v11102_v54  ;;  %v9481_v48 = vadd.f32 %v14122_v14, %v9346_v52  ;;  %v9347_v0 = vmax.f32 %v9091_v32, %v9219_v27  ;;  %v14877_v32 = vld [vmem:[#allocation152_spill] sm:$0xff]  ;;  %v14878_v27 = vld [vmem:[#allocation153_spill] sm:$0xff] }
 0x331   : > { %v9611_v49 = vmax.f32 %v9483_v2, 0.0  ;;  %v9484_v12 = vadd.f32 %v14122_v14, %v9349_v3 }
 0x332   : > { %v9609_v13 = vmax.f32 %v9481_v48, 0.0  ;;  %v9482_v30 = vadd.f32 %v14122_v14, %v9347_v0  ;;  %v11629_v31 = vpop.f32.mrb[220].mxu0  ;;  %v11885_v50 = vpop.f32.mrb[220].mxu1 }
 0x333   : > { %v11107_v34 = vpack.c.bf16 %v9611_v49, %v9611_v49  ;;  %v9612_v35 = vmax.f32 %v9484_v12, 0.0  ;;  %v9096_v56 = vmax.f32 %v14867_v51, %v11629_v31  ;;  %v9224_v28 = vmax.f32 %v14868_v57, %v11885_v50  ;;  %v7835_v60 = vpop.f32.mrb[221].mxu0  ;;  %v8859_v58 = vpop.f32.mrb[221].mxu1  ;;  %v14879_v12 = vld [vmem:[#allocation154_spill] sm:$0xff] }
 0x334   : > { %v11105_v15 = vpack.c.bf16 %v9609_v13, %v9609_v13  ;;  %v9610_v4 = vmax.f32 %v9482_v30, 0.0  ;;  %v9094_v59 = vmax.f32 %v14869_v5, %v7835_v60  ;;  %v9222_v18 = vmax.f32 %v14870_v62, %v8859_v58  ;;  %v11630_v19 = vpop.f32.mrb[222].mxu0  ;;  %v11886_v22 = vpop.f32.mrb[222].mxu1  ;;  %v14880_v30 = vld [vmem:[#allocation155_spill] sm:$0xff] }
 0x335   : > { %10252 = vst.msk [vmem:[%s13834_s14 + $0x168] sm:$0xf] %vm10161_vm3, %v11107_v34  ;;  %v11108_v23 = vpack.c.bf16 %v9612_v35, %v9612_v35  ;;  %v9352_v63 = vmax.f32 %v9096_v56, %v9224_v28  ;;  %v9097_v6 = vmax.f32 %v14871_v16, %v11630_v19  ;;  %v9225_v10 = vmax.f32 %v14872_v7, %v11886_v22  ;;  %v7838_v36 = vpop.f32.mrb[223].mxu0  ;;  %v8862_v37 = vpop.f32.mrb[223].mxu1  ;;  %v14881_v56 = vld [vmem:[#allocation156_spill] sm:$0xff]  ;;  %v14882_v28 = vld [vmem:[#allocation157_spill] sm:$0xff] }
 0x336   : > { %10250 = vst.msk [vmem:[%s13834_s14 + $0x160] sm:$0xf] %vm10161_vm3, %v11105_v15  ;;  %v11106_v11 = vpack.c.bf16 %v9610_v4, %v9610_v4  ;;  %v9350_v9 = vmax.f32 %v9094_v59, %v9222_v18  ;;  %v9095_v8 = vmax.f32 %v14873_v61, %v7838_v36  ;;  %v9223_v17 = vmax.f32 %v14874_v38, %v8862_v37 }
 0x337   : > { %10253 = vst.msk [vmem:[%s13834_s14 + $0x16c] sm:$0xf] %vm10161_vm3, %v11108_v23  ;;  %v9487_v39 = vadd.f32 %v14122_v14, %v9352_v63  ;;  %v9353_v20 = vmax.f32 %v9097_v6, %v9225_v10  ;;  %v14883_v6 = vld [vmem:[#allocation158_spill] sm:$0xff]  ;;  %v14884_v10 = vld [vmem:[#allocation159_spill] sm:$0xff] }
 0x338   : > { %10251 = vst.msk [vmem:[%s13834_s14 + $0x164] sm:$0xf] %vm10161_vm3, %v11106_v11  ;;  %v9485_v21 = vadd.f32 %v14122_v14, %v9350_v9  ;;  %v9351_v42 = vmax.f32 %v9095_v8, %v9223_v17  ;;  %v14885_v8 = vld [vmem:[#allocation160_spill] sm:$0xff]  ;;  %v14886_v17 = vld [vmem:[#allocation161_spill] sm:$0xff] }
 0x339   : > { %v9615_v43 = vmax.f32 %v9487_v39, 0.0  ;;  %v9488_v1 = vadd.f32 %v14122_v14, %v9353_v20 }
 0x33a   : > { %v9613_v33 = vmax.f32 %v9485_v21, 0.0  ;;  %v9486_v46 = vadd.f32 %v14122_v14, %v9351_v42  ;;  %v11633_v47 = vpop.f32.mrb[224].mxu0  ;;  %v11889_v53 = vpop.f32.mrb[224].mxu1 }
 0x33b   : > { %v11111_v40 = vpack.c.bf16 %v9615_v43, %v9615_v43  ;;  %v9616_v41 = vmax.f32 %v9488_v1, 0.0  ;;  %v9100_v45 = vmax.f32 %v14875_v44, %v11633_v47  ;;  %v9228_v24 = vmax.f32 %v14876_v29, %v11889_v53  ;;  %v7851_v25 = vpop.f32.mrb[225].mxu0  ;;  %v8875_v54 = vpop.f32.mrb[225].mxu1  ;;  %v14887_v1 = vld [vmem:[#allocation162_spill] sm:$0xff] }
 0x33c   : > { %v11109_v52 = vpack.c.bf16 %v9613_v33, %v9613_v33  ;;  %v9614_v55 = vmax.f32 %v9486_v46, 0.0  ;;  %v9098_v26 = vmax.f32 %v14877_v32, %v7851_v25  ;;  %v9226_v2 = vmax.f32 %v14878_v27, %v8875_v54  ;;  %v11634_v3 = vpop.f32.mrb[226].mxu0  ;;  %v11890_v48 = vpop.f32.mrb[226].mxu1  ;;  %v14888_v46 = vld [vmem:[#allocation163_spill] sm:$0xff] }
 0x33d   : > { %10256 = vst.msk [vmem:[%s13834_s14 + $0x178] sm:$0xf] %vm10161_vm3, %v11111_v40  ;;  %v11112_v0 = vpack.c.bf16 %v9616_v41, %v9616_v41  ;;  %v9356_v49 = vmax.f32 %v9100_v45, %v9228_v24  ;;  %v9101_v13 = vmax.f32 %v14879_v12, %v11634_v3  ;;  %v9229_v31 = vmax.f32 %v14880_v30, %v11890_v48  ;;  %v7854_v50 = vpop.f32.mrb[227].mxu0  ;;  %v8878_v34 = vpop.f32.mrb[227].mxu1  ;;  %v14889_v45 = vld [vmem:[#allocation164_spill] sm:$0xff]  ;;  %v14890_v24 = vld [vmem:[#allocation165_spill] sm:$0xff] }
 0x33e   : > { %10254 = vst.msk [vmem:[%s13834_s14 + $0x170] sm:$0xf] %vm10161_vm3, %v11109_v52  ;;  %v11110_v35 = vpack.c.bf16 %v9614_v55, %v9614_v55  ;;  %v9354_v51 = vmax.f32 %v9098_v26, %v9226_v2  ;;  %v9099_v57 = vmax.f32 %v14881_v56, %v7854_v50  ;;  %v9227_v60 = vmax.f32 %v14882_v28, %v8878_v34 }
 0x33f   : > { %10257 = vst.msk [vmem:[%s13834_s14 + $0x17c] sm:$0xf] %vm10161_vm3, %v11112_v0  ;;  %v9491_v58 = vadd.f32 %v14122_v14, %v9356_v49  ;;  %v9357_v15 = vmax.f32 %v9101_v13, %v9229_v31  ;;  %v14891_v13 = vld [vmem:[#allocation166_spill] sm:$0xff]  ;;  %v14892_v31 = vld [vmem:[#allocation167_spill] sm:$0xff] }
 0x340   : > { %10255 = vst.msk [vmem:[%s13834_s14 + $0x174] sm:$0xf] %vm10161_vm3, %v11110_v35  ;;  %v9489_v4 = vadd.f32 %v14122_v14, %v9354_v51  ;;  %v9355_v5 = vmax.f32 %v9099_v57, %v9227_v60  ;;  %v14893_v57 = vld [vmem:[#allocation168_spill] sm:$0xff]  ;;  %v14894_v60 = vld [vmem:[#allocation169_spill] sm:$0xff] }
 0x341   : > { %v9619_v59 = vmax.f32 %v9491_v58, 0.0  ;;  %v9492_v62 = vadd.f32 %v14122_v14, %v9357_v15 }
 0x342   : > { %v9617_v18 = vmax.f32 %v9489_v4, 0.0  ;;  %v9490_v19 = vadd.f32 %v14122_v14, %v9355_v5  ;;  %v11637_v22 = vpop.f32.mrb[228].mxu0  ;;  %v11893_v23 = vpop.f32.mrb[228].mxu1 }
 0x343   : > { %v11115_v63 = vpack.c.bf16 %v9619_v59, %v9619_v59  ;;  %v9620_v16 = vmax.f32 %v9492_v62, 0.0  ;;  %v9104_v7 = vmax.f32 %v14883_v6, %v11637_v22  ;;  %v9232_v36 = vmax.f32 %v14884_v10, %v11893_v23  ;;  %v7867_v37 = vpop.f32.mrb[229].mxu0  ;;  %v8891_v11 = vpop.f32.mrb[229].mxu1  ;;  %v14895_v62 = vld [vmem:[#allocation170_spill] sm:$0xff] }
 0x344   : > { %v11113_v9 = vpack.c.bf16 %v9617_v18, %v9617_v18  ;;  %v9618_v61 = vmax.f32 %v9490_v19, 0.0  ;;  %v9102_v38 = vmax.f32 %v14885_v8, %v7867_v37  ;;  %v9230_v39 = vmax.f32 %v14886_v17, %v8891_v11  ;;  %v11638_v20 = vpop.f32.mrb[230].mxu0  ;;  %v11894_v21 = vpop.f32.mrb[230].mxu1  ;;  %v14896_v19 = vld [vmem:[#allocation171_spill] sm:$0xff] }
 0x345   : > { %10260 = vst.msk [vmem:[%s13834_s14 + $0x188] sm:$0xf] %vm10161_vm3, %v11115_v63  ;;  %v11116_v42 = vpack.c.bf16 %v9620_v16, %v9620_v16  ;;  %v9360_v43 = vmax.f32 %v9104_v7, %v9232_v36  ;;  %v9105_v33 = vmax.f32 %v14887_v1, %v11638_v20  ;;  %v9233_v47 = vmax.f32 %v14888_v46, %v11894_v21  ;;  %v7870_v53 = vpop.f32.mrb[231].mxu0  ;;  %v8894_v40 = vpop.f32.mrb[231].mxu1  ;;  %v14897_v7 = vld [vmem:[#allocation172_spill] sm:$0xff]  ;;  %v14898_v36 = vld [vmem:[#allocation173_spill] sm:$0xff] }
 0x346   : > { %10258 = vst.msk [vmem:[%s13834_s14 + $0x180] sm:$0xf] %vm10161_vm3, %v11113_v9  ;;  %v11114_v41 = vpack.c.bf16 %v9618_v61, %v9618_v61  ;;  %v9358_v44 = vmax.f32 %v9102_v38, %v9230_v39  ;;  %v9103_v29 = vmax.f32 %v14889_v45, %v7870_v53  ;;  %v9231_v25 = vmax.f32 %v14890_v24, %v8894_v40 }
 0x347   : > { %10261 = vst.msk [vmem:[%s13834_s14 + $0x18c] sm:$0xf] %vm10161_vm3, %v11116_v42  ;;  %v9495_v54 = vadd.f32 %v14122_v14, %v9360_v43  ;;  %v9361_v52 = vmax.f32 %v9105_v33, %v9233_v47  ;;  %v14899_v33 = vld [vmem:[#allocation174_spill] sm:$0xff]  ;;  %v14900_v47 = vld [vmem:[#allocation175_spill] sm:$0xff] }
 0x348   : > { %10259 = vst.msk [vmem:[%s13834_s14 + $0x184] sm:$0xf] %vm10161_vm3, %v11114_v41  ;;  %v9493_v55 = vadd.f32 %v14122_v14, %v9358_v44  ;;  %v9359_v32 = vmax.f32 %v9103_v29, %v9231_v25  ;;  %v14901_v29 = vld [vmem:[#allocation176_spill] sm:$0xff]  ;;  %v14902_v25 = vld [vmem:[#allocation177_spill] sm:$0xff] }
 0x349   : > { %v9623_v26 = vmax.f32 %v9495_v54, 0.0  ;;  %v9496_v27 = vadd.f32 %v14122_v14, %v9361_v52 }
 0x34a   : > { %v9621_v2 = vmax.f32 %v9493_v55, 0.0  ;;  %v9494_v3 = vadd.f32 %v14122_v14, %v9359_v32  ;;  %v11641_v48 = vpop.f32.mrb[232].mxu0  ;;  %v11897_v0 = vpop.f32.mrb[232].mxu1 }
 0x34b   : > { %v11119_v49 = vpack.c.bf16 %v9623_v26, %v9623_v26  ;;  %v9624_v12 = vmax.f32 %v9496_v27, 0.0  ;;  %v9108_v30 = vmax.f32 %v14891_v13, %v11641_v48  ;;  %v9236_v50 = vmax.f32 %v14892_v31, %v11897_v0  ;;  %v7883_v34 = vpop.f32.mrb[233].mxu0  ;;  %v8907_v35 = vpop.f32.mrb[233].mxu1  ;;  %v14903_v27 = vld [vmem:[#allocation178_spill] sm:$0xff] }
 0x34c   : > { %v11117_v51 = vpack.c.bf16 %v9621_v2, %v9621_v2  ;;  %v9622_v56 = vmax.f32 %v9494_v3, 0.0  ;;  %v9106_v28 = vmax.f32 %v14893_v57, %v7883_v34  ;;  %v9234_v58 = vmax.f32 %v14894_v60, %v8907_v35  ;;  %v11642_v15 = vpop.f32.mrb[234].mxu0  ;;  %v11898_v4 = vpop.f32.mrb[234].mxu1  ;;  %v14904_v3 = vld [vmem:[#allocation179_spill] sm:$0xff] }
 0x34d   : > { %10264 = vst.msk [vmem:[%s13834_s14 + $0x198] sm:$0xf] %vm10161_vm3, %v11119_v49  ;;  %v11120_v5 = vpack.c.bf16 %v9624_v12, %v9624_v12  ;;  %v9364_v59 = vmax.f32 %v9108_v30, %v9236_v50  ;;  %v9109_v18 = vmax.f32 %v14895_v62, %v11642_v15  ;;  %v9237_v22 = vmax.f32 %v14896_v19, %v11898_v4  ;;  %v7886_v23 = vpop.f32.mrb[235].mxu0  ;;  %v8910_v63 = vpop.f32.mrb[235].mxu1  ;;  %v14905_v30 = vld [vmem:[#allocation180_spill] sm:$0xff]  ;;  %v14906_v50 = vld [vmem:[#allocation181_spill] sm:$0xff] }
 0x34e   : > { %10262 = vst.msk [vmem:[%s13834_s14 + $0x190] sm:$0xf] %vm10161_vm3, %v11117_v51  ;;  %v11118_v16 = vpack.c.bf16 %v9622_v56, %v9622_v56  ;;  %v9362_v6 = vmax.f32 %v9106_v28, %v9234_v58  ;;  %v9107_v10 = vmax.f32 %v14897_v7, %v7886_v23  ;;  %v9235_v37 = vmax.f32 %v14898_v36, %v8910_v63  ;;  %v14412_v15 = vld [vmem:[%s14515_s2] ss:$0 sm:$0xff]  ;;  %v14907_v19 = vld [vmem:[#allocation182_spill] sm:$0xff] }
 0x34f   : > { %10265 = vst.msk [vmem:[%s13834_s14 + $0x19c] sm:$0xf] %vm10161_vm3, %v11120_v5  ;;  %v9499_v11 = vadd.f32 %v14122_v14, %v9364_v59  ;;  %v9365_v9 = vmax.f32 %v9109_v18, %v9237_v22  ;;  %v14908_v23 = vld [vmem:[#allocation183_spill] sm:$0xff] }
 0x350   : > { %10263 = vst.msk [vmem:[%s13834_s14 + $0x194] sm:$0xf] %vm10161_vm3, %v11118_v16  ;;  %v9497_v61 = vadd.f32 %v14122_v14, %v9362_v6  ;;  %v9363_v8 = vmax.f32 %v9107_v10, %v9235_v37  ;;  %v14909_v10 = vld [vmem:[#allocation184_spill] sm:$0xff]  ;;  %v14910_v37 = vld [vmem:[#allocation185_spill] sm:$0xff] }
 0x351   : > { %v9627_v38 = vmax.f32 %v9499_v11, 0.0  ;;  %v9500_v17 = vadd.f32 %v14122_v14, %v9365_v9 }
 0x352   : > { %v9625_v39 = vmax.f32 %v9497_v61, 0.0  ;;  %v9498_v20 = vadd.f32 %v14122_v14, %v9363_v8  ;;  %v11645_v21 = vpop.f32.mrb[236].mxu0  ;;  %v11901_v42 = vpop.f32.mrb[236].mxu1 }
 0x353   : > { %v11123_v43 = vpack.c.bf16 %v9627_v38, %v9627_v38  ;;  %v9628_v1 = vmax.f32 %v9500_v17, 0.0  ;;  %v9112_v46 = vmax.f32 %v14899_v33, %v11645_v21  ;;  %v9240_v53 = vmax.f32 %v14900_v47, %v11901_v42  ;;  %v7899_v40 = vpop.f32.mrb[237].mxu0  ;;  %v8923_v41 = vpop.f32.mrb[237].mxu1  ;;  %v14911_v17 = vld [vmem:[#allocation186_spill] sm:$0xff] }
 0x354   : > { %v11121_v44 = vpack.c.bf16 %v9625_v39, %v9625_v39  ;;  %v9626_v45 = vmax.f32 %v9498_v20, 0.0  ;;  %v9110_v24 = vmax.f32 %v14901_v29, %v7899_v40  ;;  %v9238_v54 = vmax.f32 %v14902_v25, %v8923_v41  ;;  %v11646_v52 = vpop.f32.mrb[238].mxu0  ;;  %v11902_v55 = vpop.f32.mrb[238].mxu1  ;;  %v14912_v20 = vld [vmem:[#allocation187_spill] sm:$0xff] }
 0x355   : > { %10268 = vst.msk [vmem:[%s13834_s14 + $0x1a8] sm:$0xf] %vm10161_vm3, %v11123_v43  ;;  %v11124_v32 = vpack.c.bf16 %v9628_v1, %v9628_v1  ;;  %v9368_v26 = vmax.f32 %v9112_v46, %v9240_v53  ;;  %v9113_v2 = vmax.f32 %v14903_v27, %v11646_v52  ;;  %v9241_v48 = vmax.f32 %v14904_v3, %v11902_v55  ;;  %v7902_v0 = vpop.f32.mrb[239].mxu0  ;;  %v8926_v49 = vpop.f32.mrb[239].mxu1  ;;  %v14913_v46 = vld [vmem:[#allocation188_spill] sm:$0xff]  ;;  %v14914_v53 = vld [vmem:[#allocation189_spill] sm:$0xff] }
 0x356   : > { %10266 = vst.msk [vmem:[%s13834_s14 + $0x1a0] sm:$0xf] %vm10161_vm3, %v11121_v44  ;;  %v11122_v12 = vpack.c.bf16 %v9626_v45, %v9626_v45  ;;  %v9366_v13 = vmax.f32 %v9110_v24, %v9238_v54  ;;  %v9111_v31 = vmax.f32 %v14905_v30, %v7902_v0  ;;  %v9239_v34 = vmax.f32 %v14906_v50, %v8926_v49 }
 0x357   : > { %10269 = vst.msk [vmem:[%s13834_s14 + $0x1ac] sm:$0xf] %vm10161_vm3, %v11124_v32  ;;  %v9503_v35 = vadd.f32 %v14122_v14, %v9368_v26  ;;  %v9369_v51 = vmax.f32 %v9113_v2, %v9241_v48  ;;  %v14915_v2 = vld [vmem:[#allocation190_spill] sm:$0xff]  ;;  %v14916_v48 = vld [vmem:[#allocation191_spill] sm:$0xff] }
 0x358   : > { %10267 = vst.msk [vmem:[%s13834_s14 + $0x1a4] sm:$0xf] %vm10161_vm3, %v11122_v12  ;;  %v9501_v56 = vadd.f32 %v14122_v14, %v9366_v13  ;;  %v9367_v57 = vmax.f32 %v9111_v31, %v9239_v34  ;;  %v14917_v31 = vld [vmem:[#allocation192_spill] sm:$0xff]  ;;  %v14918_v34 = vld [vmem:[#allocation193_spill] sm:$0xff] }
 0x359   : > { %v9631_v28 = vmax.f32 %v9503_v35, 0.0  ;;  %v9504_v60 = vadd.f32 %v14122_v14, %v9369_v51 }
 0x35a   : > { %v9629_v58 = vmax.f32 %v9501_v56, 0.0  ;;  %v9502_v4 = vadd.f32 %v14412_v15, %v9367_v57  ;;  %v11649_v5 = vpop.f32.mrb[240].mxu0  ;;  %v11905_v59 = vpop.f32.mrb[240].mxu1 }
 0x35b   : > { %v11127_v62 = vpack.c.bf16 %v9631_v28, %v9631_v28  ;;  %v9632_v18 = vmax.f32 %v9504_v60, 0.0  ;;  %v9116_v22 = vmax.f32 %v14907_v19, %v11649_v5  ;;  %v9244_v63 = vmax.f32 %v14908_v23, %v11905_v59  ;;  %v7915_v16 = vpop.f32.mrb[241].mxu0  ;;  %v8939_v14 = vpop.f32.mrb[241].mxu1  ;;  %v14919_v60 = vld [vmem:[#allocation194_spill] sm:$0xff] }
 0x35c   : > { %v11125_v6 = vpack.c.bf16 %v9629_v58, %v9629_v58  ;;  %v9630_v7 = vmax.f32 %v9502_v4, 0.0  ;;  %v9114_v36 = vmax.f32 %v14909_v10, %v7915_v16  ;;  %v9242_v11 = vmax.f32 %v14910_v37, %v8939_v14  ;;  %v11650_v9 = vpop.f32.mrb[242].mxu0  ;;  %v11906_v61 = vpop.f32.mrb[242].mxu1  ;;  %v14920_v4 = vld [vmem:[#allocation195_spill] sm:$0xff] }
 0x35d   : > { %10272 = vst.msk [vmem:[%s13834_s14 + $0x1b8] sm:$0xf] %vm10161_vm3, %v11127_v62  ;;  %v11128_v8 = vpack.c.bf16 %v9632_v18, %v9632_v18  ;;  %v9372_v38 = vmax.f32 %v9116_v22, %v9244_v63  ;;  %v9117_v39 = vmax.f32 %v14911_v17, %v11650_v9  ;;  %v9245_v21 = vmax.f32 %v14912_v20, %v11906_v61  ;;  %v7918_v42 = vpop.f32.mrb[243].mxu0  ;;  %v8942_v43 = vpop.f32.mrb[243].mxu1  ;;  %v14921_v22 = vld [vmem:[#allocation196_spill] sm:$0xff]  ;;  %v14922_v63 = vld [vmem:[#allocation197_spill] sm:$0xff] }
 0x35e   : > { %10270 = vst.msk [vmem:[%s13834_s14 + $0x1b0] sm:$0xf] %vm10161_vm3, %v11125_v6  ;;  %v11126_v1 = vpack.c.bf16 %v9630_v7, %v9630_v7  ;;  %v9370_v33 = vmax.f32 %v9114_v36, %v9242_v11  ;;  %v9115_v47 = vmax.f32 %v14913_v46, %v7918_v42  ;;  %v9243_v40 = vmax.f32 %v14914_v53, %v8942_v43 }
 0x35f   : > { %10273 = vst.msk [vmem:[%s13834_s14 + $0x1bc] sm:$0xf] %vm10161_vm3, %v11128_v8  ;;  %v9507_v41 = vadd.f32 %v14412_v15, %v9372_v38  ;;  %v9373_v44 = vmax.f32 %v9117_v39, %v9245_v21  ;;  %v14923_v39 = vld [vmem:[#allocation198_spill] sm:$0xff]  ;;  %v14924_v21 = vld [vmem:[#allocation199_spill] sm:$0xff] }
 0x360   : > { %10271 = vst.msk [vmem:[%s13834_s14 + $0x1b4] sm:$0xf] %vm10161_vm3, %v11126_v1  ;;  %v9505_v45 = vadd.f32 %v14412_v15, %v9370_v33  ;;  %v9371_v29 = vmax.f32 %v9115_v47, %v9243_v40  ;;  %v14925_v47 = vld [vmem:[#allocation200_spill] sm:$0xff]  ;;  %v14926_v40 = vld [vmem:[#allocation201_spill] sm:$0xff] }
 0x361   : > { %v9635_v24 = vmax.f32 %v9507_v41, 0.0  ;;  %v9508_v25 = vadd.f32 %v14412_v15, %v9373_v44 }
 0x362   : > { %v9633_v54 = vmax.f32 %v9505_v45, 0.0  ;;  %v9506_v52 = vadd.f32 %v14412_v15, %v9371_v29  ;;  %v11653_v55 = vpop.f32.mrb[244].mxu0  ;;  %v11909_v32 = vpop.f32.mrb[244].mxu1 }
 0x363   : > { %v11131_v26 = vpack.c.bf16 %v9635_v24, %v9635_v24  ;;  %v9636_v27 = vmax.f32 %v9508_v25, 0.0  ;;  %v9120_v3 = vmax.f32 %v14915_v2, %v11653_v55  ;;  %v9248_v0 = vmax.f32 %v14916_v48, %v11909_v32  ;;  %v7931_v49 = vpop.f32.mrb[245].mxu0  ;;  %v8955_v12 = vpop.f32.mrb[245].mxu1  ;;  %v14927_v25 = vld [vmem:[#allocation202_spill] sm:$0xff] }
 0x364   : > { %v11129_v13 = vpack.c.bf16 %v9633_v54, %v9633_v54  ;;  %v9634_v30 = vmax.f32 %v9506_v52, 0.0  ;;  %v9118_v50 = vmax.f32 %v14917_v31, %v7931_v49  ;;  %v9246_v35 = vmax.f32 %v14918_v34, %v8955_v12  ;;  %v11654_v51 = vpop.f32.mrb[246].mxu0  ;;  %v11910_v56 = vpop.f32.mrb[246].mxu1  ;;  %v14928_v52 = vld [vmem:[#allocation203_spill] sm:$0xff] }
 0x365   : > { %10276 = vst.msk [vmem:[%s13834_s14 + $0x1c8] sm:$0xf] %vm10161_vm3, %v11131_v26  ;;  %v11132_v57 = vpack.c.bf16 %v9636_v27, %v9636_v27  ;;  %v9376_v28 = vmax.f32 %v9120_v3, %v9248_v0  ;;  %v9121_v58 = vmax.f32 %v14919_v60, %v11654_v51  ;;  %v9249_v5 = vmax.f32 %v14920_v4, %v11910_v56  ;;  %v7934_v59 = vpop.f32.mrb[247].mxu0  ;;  %v8958_v62 = vpop.f32.mrb[247].mxu1  ;;  %v14929_v3 = vld [vmem:[#allocation204_spill] sm:$0xff]  ;;  %v14930_v0 = vld [vmem:[#allocation205_spill] sm:$0xff] }
 0x366   : > { %10274 = vst.msk [vmem:[%s13834_s14 + $0x1c0] sm:$0xf] %vm10161_vm3, %v11129_v13  ;;  %v11130_v18 = vpack.c.bf16 %v9634_v30, %v9634_v30  ;;  %v9374_v19 = vmax.f32 %v9118_v50, %v9246_v35  ;;  %v9119_v23 = vmax.f32 %v14921_v22, %v7934_v59  ;;  %v9247_v16 = vmax.f32 %v14922_v63, %v8958_v62 }
 0x367   : > { %10277 = vst.msk [vmem:[%s13834_s14 + $0x1cc] sm:$0xf] %vm10161_vm3, %v11132_v57  ;;  %v9511_v14 = vadd.f32 %v14412_v15, %v9376_v28  ;;  %v9377_v6 = vmax.f32 %v9121_v58, %v9249_v5  ;;  %v14931_v58 = vld [vmem:[#allocation206_spill] sm:$0xff]  ;;  %v14932_v5 = vld [vmem:[#allocation207_spill] sm:$0xff] }
 0x368   : > { %10275 = vst.msk [vmem:[%s13834_s14 + $0x1c4] sm:$0xf] %vm10161_vm3, %v11130_v18  ;;  %v9509_v7 = vadd.f32 %v14412_v15, %v9374_v19  ;;  %v9375_v10 = vmax.f32 %v9119_v23, %v9247_v16  ;;  %v14933_v23 = vld [vmem:[#allocation208_spill] sm:$0xff]  ;;  %v14934_v16 = vld [vmem:[#allocation209_spill] sm:$0xff] }
 0x369   : > { %v9639_v36 = vmax.f32 %v9511_v14, 0.0  ;;  %v9512_v37 = vadd.f32 %v14412_v15, %v9377_v6 }
 0x36a   : > { %v9637_v11 = vmax.f32 %v9509_v7, 0.0  ;;  %v9510_v9 = vadd.f32 %v14412_v15, %v9375_v10  ;;  %v11657_v61 = vpop.f32.mrb[248].mxu0  ;;  %v11913_v8 = vpop.f32.mrb[248].mxu1 }
 0x36b   : > { %v11135_v38 = vpack.c.bf16 %v9639_v36, %v9639_v36  ;;  %v9640_v17 = vmax.f32 %v9512_v37, 0.0  ;;  %v9124_v20 = vmax.f32 %v14923_v39, %v11657_v61  ;;  %v9252_v42 = vmax.f32 %v14924_v21, %v11913_v8  ;;  %v7947_v43 = vpop.f32.mrb[249].mxu0  ;;  %v8971_v1 = vpop.f32.mrb[249].mxu1  ;;  %v14935_v37 = vld [vmem:[#allocation210_spill] sm:$0xff] }
 0x36c   : > { %v11133_v33 = vpack.c.bf16 %v9637_v11, %v9637_v11  ;;  %v9638_v46 = vmax.f32 %v9510_v9, 0.0  ;;  %v9122_v53 = vmax.f32 %v14925_v47, %v7947_v43  ;;  %v9250_v41 = vmax.f32 %v14926_v40, %v8971_v1  ;;  %v11658_v44 = vpop.f32.mrb[250].mxu0  ;;  %v11914_v45 = vpop.f32.mrb[250].mxu1  ;;  %v14936_v9 = vld [vmem:[#allocation211_spill] sm:$0xff] }
 0x36d   : > { %10280 = vst.msk [vmem:[%s13834_s14 + $0x1d8] sm:$0xf] %vm10161_vm3, %v11135_v38  ;;  %v11136_v29 = vpack.c.bf16 %v9640_v17, %v9640_v17  ;;  %v9380_v24 = vmax.f32 %v9124_v20, %v9252_v42  ;;  %v9125_v54 = vmax.f32 %v14927_v25, %v11658_v44  ;;  %v9253_v55 = vmax.f32 %v14928_v52, %v11914_v45  ;;  %v7950_v32 = vpop.f32.mrb[251].mxu0  ;;  %v8974_v26 = vpop.f32.mrb[251].mxu1  ;;  %v14937_v20 = vld [vmem:[#allocation212_spill] sm:$0xff]  ;;  %v14938_v42 = vld [vmem:[#allocation213_spill] sm:$0xff] }
 0x36e   : > { %10278 = vst.msk [vmem:[%s13834_s14 + $0x1d0] sm:$0xf] %vm10161_vm3, %v11133_v33  ;;  %v11134_v27 = vpack.c.bf16 %v9638_v46, %v9638_v46  ;;  %v9378_v2 = vmax.f32 %v9122_v53, %v9250_v41  ;;  %v9123_v48 = vmax.f32 %v14929_v3, %v7950_v32  ;;  %v9251_v49 = vmax.f32 %v14930_v0, %v8974_v26 }
 0x36f   : > { %10281 = vst.msk [vmem:[%s13834_s14 + $0x1dc] sm:$0xf] %vm10161_vm3, %v11136_v29  ;;  %v9515_v12 = vadd.f32 %v14412_v15, %v9380_v24  ;;  %v9381_v13 = vmax.f32 %v9125_v54, %v9253_v55 }
 0x370   : > { %10279 = vst.msk [vmem:[%s13834_s14 + $0x1d4] sm:$0xf] %vm10161_vm3, %v11134_v27  ;;  %v9513_v30 = vadd.f32 %v14412_v15, %v9378_v2  ;;  %v9379_v31 = vmax.f32 %v9123_v48, %v9251_v49 }
 0x371   : > { %v9643_v50 = vmax.f32 %v9515_v12, 0.0  ;;  %v9516_v34 = vadd.f32 %v14412_v15, %v9381_v13 }
 0x372   : > { %v9641_v35 = vmax.f32 %v9513_v30, 0.0  ;;  %v9514_v51 = vadd.f32 %v14412_v15, %v9379_v31  ;;  %v11661_v56 = vpop.f32.mrb[252].mxu0  ;;  %v11917_v57 = vpop.f32.mrb[252].mxu1 }
 0x373   : > { %v11139_v28 = vpack.c.bf16 %v9643_v50, %v9643_v50  ;;  %v9644_v60 = vmax.f32 %v9516_v34, 0.0  ;;  %v9128_v4 = vmax.f32 %v14931_v58, %v11661_v56  ;;  %v9256_v59 = vmax.f32 %v14932_v5, %v11917_v57  ;;  %v7963_v62 = vpop.f32.mrb[253].mxu0  ;;  %v8987_v18 = vpop.f32.mrb[253].mxu1 }
 0x374   : > { %v11137_v19 = vpack.c.bf16 %v9641_v35, %v9641_v35  ;;  %v9642_v22 = vmax.f32 %v9514_v51, 0.0  ;;  %v9126_v63 = vmax.f32 %v14933_v23, %v7963_v62  ;;  %v9254_v14 = vmax.f32 %v14934_v16, %v8987_v18  ;;  %v11662_v6 = vpop.f32.mrb[254].mxu0  ;;  %v11918_v7 = vpop.f32.mrb[254].mxu1 }
 0x375   : > { %10284 = vst.msk [vmem:[%s13834_s14 + $0x1e8] sm:$0xf] %vm10161_vm3, %v11139_v28  ;;  %v11140_v10 = vpack.c.bf16 %v9644_v60, %v9644_v60  ;;  %v9384_v36 = vmax.f32 %v9128_v4, %v9256_v59  ;;  %v9129_v11 = vmax.f32 %v14935_v37, %v11662_v6  ;;  %v9257_v61 = vmax.f32 %v14936_v9, %v11918_v7  ;;  %v7966_v8 = vpop.f32.mrb[255].mxu0  ;;  %v8990_v38 = vpop.f32.mrb[255].mxu1 }
 0x376   : > { %10282 = vst.msk [vmem:[%s13834_s14 + $0x1e0] sm:$0xf] %vm10161_vm3, %v11137_v19  ;;  %v11138_v17 = vpack.c.bf16 %v9642_v22, %v9642_v22  ;;  %v9382_v39 = vmax.f32 %v9126_v63, %v9254_v14  ;;  %v9127_v21 = vmax.f32 %v14937_v20, %v7966_v8  ;;  %v9255_v43 = vmax.f32 %v14938_v42, %v8990_v38 }
 0x377   : > { %10285 = vst.msk [vmem:[%s13834_s14 + $0x1ec] sm:$0xf] %vm10161_vm3, %v11140_v10  ;;  %v9519_v1 = vadd.f32 %v14412_v15, %v9384_v36  ;;  %v9385_v33 = vmax.f32 %v9129_v11, %v9257_v61 }
 0x378   : > { %10283 = vst.msk [vmem:[%s13834_s14 + $0x1e4] sm:$0xf] %vm10161_vm3, %v11138_v17  ;;  %v9517_v46 = vadd.f32 %v14412_v15, %v9382_v39  ;;  %v9383_v47 = vmax.f32 %v9127_v21, %v9255_v43 }
 0x379   : > { %v9647_v53 = vmax.f32 %v9519_v1, 0.0  ;;  %v9520_v40 = vadd.f32 %v14412_v15, %v9385_v33 }
 0x37a   : > { %v9645_v41 = vmax.f32 %v9517_v46, 0.0  ;;  %v9518_v44 = vadd.f32 %v14412_v15, %v9383_v47 }
 0x37b   : > { %v11143_v45 = vpack.c.bf16 %v9647_v53, %v9647_v53  ;;  %v9648_v29 = vmax.f32 %v9520_v40, 0.0 }
 0x37c   : > { %v11141_v24 = vpack.c.bf16 %v9645_v41, %v9645_v41  ;;  %v9646_v25 = vmax.f32 %v9518_v44, 0.0 }
 0x37d   : > { %10288 = vst.msk [vmem:[%s13834_s14 + $0x1f8] sm:$0xf] %vm10161_vm3, %v11143_v45  ;;  %v11144_v54 = vpack.c.bf16 %v9648_v29, %v9648_v29 }
 0x37e   : > { %10286 = vst.msk [vmem:[%s13834_s14 + $0x1f0] sm:$0xf] %vm10161_vm3, %v11141_v24  ;;  %v11142_v52 = vpack.c.bf16 %v9646_v25, %v9646_v25 }
 0x37f   : > { %10289 = vst.msk [vmem:[%s13834_s14 + $0x1fc] sm:$0xf] %vm10161_vm3, %v11144_v54 }
 0x380   : > { %10287 = vst.msk [vmem:[%s13834_s14 + $0x1f4] sm:$0xf] %vm10161_vm3, %v11142_v52 }
 0x381 PF: > { %p10_p9 = scmp.ge.s32.totalorder %s12270_s16, 4   ;;  %s14939_s12 = smov %s12226_s13 }
 0x382   : > { %s14940_s13 = smov %s12279_s19  ;;  %s14941_s14 = smov %s12270_s16 }
 0x383   :  { %12 = sbr.rel (!%p10_p9) target bundleno = 2 (0x2), region = 123 }

// kernel: iris_forward.5
= control target key start
LH: loop header
LB: loop body
LE: loop exit
PB: predicated region body
PF: predicated region fallthrough
CT: control target
= control target key end

     0   :  { %s3193_s12 = smov 0   ;;  %s3195_s13 = smov 0   ;;  %s4021_s0 = inlined_call_operand.vmem [shape: bf16[4,512,144], index: 0, kind: input, shape index: {}]   ;;  %s4022_s1 = inlined_call_operand.vmem [shape: bf16[144,32], index: 1, kind: input, shape index: {}]   ;;  %s4023_s2 = inlined_call_operand.vmem [shape: f32[1,32], index: 2, kind: input, shape index: {}]   ;;  %s4024_s3 = inlined_call_operand.vmem [shape: bf16[512,32], index: 3, kind: output, shape index: {}]  }
   0x1   :  { %s3197_s14 = smov 0  }
   0x2 LB: > { %s2622_s15 = sadd.s32 4294967295, %s3170_s14   ;;  %s3210_s16 = sadd.s32 1, %s3170_s14   ;;  %s3170_s14 = sphi %s3197_s14, %s4057_s14   ;;  %s3166_s13 = sphi %s3195_s13, %s4056_s13   ;;  %s3162_s12 = sphi %s3193_s12, %s4055_s12  }
   0x3   : > { %s17_s17 = ssub.s32 %s3170_s14, %s3210_s16  ;;  %s20_s18 = sadd.s32 1, %s3166_s13 }
   0x4   : > { %p18_p0 = scmp.eq.s32.totalorder %s17_s17, 0  ;;  %p27_p1 = scmp.ne.s32.totalorder %s3166_s13, %s3162_s12 }
   0x5   : > { %p28_p2 = scmp.eq.s32.totalorder %s3170_s14, 0  ;;  %p2625_p4 = scmp.ge.s32.totalorder %s3170_s14, 2 }
   0x6   : > { %s3219_s19 = scalar_select %p18_p0, %s3166_s13, %s20_s18  }
   0x7   : > { %p29_p3 = por %p28_p2, %p27_p1  ;;  %127 = sbr.rel (%p2625_p4) target bundleno = 82 (0x52), region = 24 }
   0xe   : > { %130 = sbr.rel (!%p29_p3) target bundleno = 82 (0x52), region = 28  ;;  %s132_s20 = sand.u32 (%p29_p3), 1, %s3166_s13  }
   0xf   : > { %s2871_s21 = sshll.u32 (%p29_p3), %s3170_s14, 8  ;;  %s2626_s22 = sshll.u32 (%p29_p3), %s132_s20, 10 }
  0x10   : > { %s3227_s25 = scalar_lea.vmem (%p29_p3), %s4021_s0, %s2871_s21  ;;  %s3232_s26 = scalar_lea.vmem (%p29_p3), [#allocation2], %s2626_s22 }
  0x11   : > { %v420_v0 = vld [vmem:[%s3227_s25] sm:$0xff] (%p29_p3)  ;;  %v422_v1 = vld [vmem:[%s3227_s25 + $0x8] sm:$0xff] (%p29_p3)  ;;  %v424_v2 = vld [vmem:[%s3227_s25 + $0x10] sm:$0xff] (%p29_p3) }
  0x12   : > { %421 = vst [vmem:[%s3232_s26] sm:$0xff] (%p29_p3), %v420_v0  ;;  %423 = vst [vmem:[%s3232_s26 + $0x8] sm:$0xff] (%p29_p3), %v422_v1  ;;  %v426_v3 = vld [vmem:[%s3227_s25 + $0x18] sm:$0xff] (%p29_p3)  ;;  %v428_v4 = vld [vmem:[%s3227_s25 + $0x20] sm:$0xff] (%p29_p3) }
  0x13   : > { %425 = vst [vmem:[%s3232_s26 + $0x10] sm:$0xff] (%p29_p3), %v424_v2  ;;  %v430_v5 = vld [vmem:[%s3227_s25 + $0x28] sm:$0xff] (%p29_p3)  ;;  %427 = vst [vmem:[%s3232_s26 + $0x18] sm:$0xff] (%p29_p3), %v426_v3  ;;  %v432_v6 = vld [vmem:[%s3227_s25 + $0x30] sm:$0xff] (%p29_p3) }
  0x14   : > { %429 = vst [vmem:[%s3232_s26 + $0x20] sm:$0xff] (%p29_p3), %v428_v4  ;;  %431 = vst [vmem:[%s3232_s26 + $0x28] sm:$0xff] (%p29_p3), %v430_v5  ;;  %v434_v7 = vld [vmem:[%s3227_s25 + $0x38] sm:$0xff] (%p29_p3)  ;;  %v436_v8 = vld [vmem:[%s3227_s25 + $0x40] sm:$0xff] (%p29_p3) }
  0x15   : > { %433 = vst [vmem:[%s3232_s26 + $0x30] sm:$0xff] %v432_v6  ;;  %435 = vst [vmem:[%s3232_s26 + $0x38] sm:$0xff] %v434_v7  ;;  %v438_v9 = vld [vmem:[%s3227_s25 + $0x48] sm:$0xff]  ;;  %v440_v10 = vld [vmem:[%s3227_s25 + $0x50] sm:$0xff] }
  0x16   : > { %437 = vst [vmem:[%s3232_s26 + $0x40] sm:$0xff] %v436_v8  ;;  %v442_v11 = vld [vmem:[%s3227_s25 + $0x58] sm:$0xff]  ;;  %439 = vst [vmem:[%s3232_s26 + $0x48] sm:$0xff] %v438_v9  ;;  %v444_v12 = vld [vmem:[%s3227_s25 + $0x60] sm:$0xff] }
  0x17   : > { %441 = vst [vmem:[%s3232_s26 + $0x50] sm:$0xff] %v440_v10  ;;  %443 = vst [vmem:[%s3232_s26 + $0x58] sm:$0xff] %v442_v11  ;;  %v446_v13 = vld [vmem:[%s3227_s25 + $0x68] sm:$0xff]  ;;  %v448_v14 = vld [vmem:[%s3227_s25 + $0x70] sm:$0xff] }
  0x18   : > { %445 = vst [vmem:[%s3232_s26 + $0x60] sm:$0xff] %v444_v12  ;;  %447 = vst [vmem:[%s3232_s26 + $0x68] sm:$0xff] %v446_v13  ;;  %v450_v15 = vld [vmem:[%s3227_s25 + $0x78] sm:$0xff]  ;;  %v452_v16 = vld [vmem:[%s3227_s25 + $0x80] sm:$0xff] }
  0x19   : > { %449 = vst [vmem:[%s3232_s26 + $0x70] sm:$0xff] %v448_v14  ;;  %v454_v17 = vld [vmem:[%s3227_s25 + $0x88] sm:$0xff]  ;;  %451 = vst [vmem:[%s3232_s26 + $0x78] sm:$0xff] %v450_v15  ;;  %v456_v18 = vld [vmem:[%s3227_s25 + $0x90] sm:$0xff] }
  0x1a   : > { %453 = vst [vmem:[%s3232_s26 + $0x80] sm:$0xff] %v452_v16  ;;  %455 = vst [vmem:[%s3232_s26 + $0x88] sm:$0xff] %v454_v17  ;;  %v458_v19 = vld [vmem:[%s3227_s25 + $0x98] sm:$0xff]  ;;  %v460_v20 = vld [vmem:[%s3227_s25 + $0xa0] sm:$0xff] }
  0x1b   : > { %457 = vst [vmem:[%s3232_s26 + $0x90] sm:$0xff] %v456_v18  ;;  %459 = vst [vmem:[%s3232_s26 + $0x98] sm:$0xff] %v458_v19  ;;  %v462_v21 = vld [vmem:[%s3227_s25 + $0xa8] sm:$0xff]  ;;  %v464_v22 = vld [vmem:[%s3227_s25 + $0xb0] sm:$0xff] }
  0x1c   : > { %461 = vst [vmem:[%s3232_s26 + $0xa0] sm:$0xff] %v460_v20  ;;  %v466_v23 = vld [vmem:[%s3227_s25 + $0xb8] sm:$0xff]  ;;  %463 = vst [vmem:[%s3232_s26 + $0xa8] sm:$0xff] %v462_v21  ;;  %v468_v24 = vld [vmem:[%s3227_s25 + $0xc0] sm:$0xff] }
  0x1d   : > { %465 = vst [vmem:[%s3232_s26 + $0xb0] sm:$0xff] %v464_v22  ;;  %467 = vst [vmem:[%s3232_s26 + $0xb8] sm:$0xff] %v466_v23  ;;  %v470_v25 = vld [vmem:[%s3227_s25 + $0xc8] sm:$0xff]  ;;  %v472_v26 = vld [vmem:[%s3227_s25 + $0xd0] sm:$0xff] }
  0x1e   : > { %469 = vst [vmem:[%s3232_s26 + $0xc0] sm:$0xff] %v468_v24  ;;  %471 = vst [vmem:[%s3232_s26 + $0xc8] sm:$0xff] %v470_v25  ;;  %v474_v27 = vld [vmem:[%s3227_s25 + $0xd8] sm:$0xff]  ;;  %v476_v28 = vld [vmem:[%s3227_s25 + $0xe0] sm:$0xff] }
  0x1f   : > { %473 = vst [vmem:[%s3232_s26 + $0xd0] sm:$0xff] %v472_v26  ;;  %v478_v29 = vld [vmem:[%s3227_s25 + $0xe8] sm:$0xff]  ;;  %475 = vst [vmem:[%s3232_s26 + $0xd8] sm:$0xff] %v474_v27  ;;  %v480_v30 = vld [vmem:[%s3227_s25 + $0xf0] sm:$0xff] }
  0x20   : > { %477 = vst [vmem:[%s3232_s26 + $0xe0] sm:$0xff] %v476_v28  ;;  %479 = vst [vmem:[%s3232_s26 + $0xe8] sm:$0xff] %v478_v29  ;;  %v482_v31 = vld [vmem:[%s3227_s25 + $0xf8] sm:$0xff]  ;;  %v484_v32 = vld [vmem:[%s3227_s25 + $0x200] sm:$0xff] }
  0x21   : > { %481 = vst [vmem:[%s3232_s26 + $0xf0] sm:$0xff] %v480_v30  ;;  %483 = vst [vmem:[%s3232_s26 + $0xf8] sm:$0xff] %v482_v31  ;;  %v486_v33 = vld [vmem:[%s3227_s25 + $0x208] sm:$0xff]  ;;  %v488_v34 = vld [vmem:[%s3227_s25 + $0x210] sm:$0xff] }
  0x22   : > { %485 = vst [vmem:[%s3232_s26 + $0x100] sm:$0xff] %v484_v32  ;;  %v490_v35 = vld [vmem:[%s3227_s25 + $0x218] sm:$0xff]  ;;  %487 = vst [vmem:[%s3232_s26 + $0x108] sm:$0xff] %v486_v33  ;;  %v492_v36 = vld [vmem:[%s3227_s25 + $0x220] sm:$0xff] }
  0x23   : > { %489 = vst [vmem:[%s3232_s26 + $0x110] sm:$0xff] %v488_v34  ;;  %491 = vst [vmem:[%s3232_s26 + $0x118] sm:$0xff] %v490_v35  ;;  %v494_v37 = vld [vmem:[%s3227_s25 + $0x228] sm:$0xff]  ;;  %v496_v38 = vld [vmem:[%s3227_s25 + $0x230] sm:$0xff] }
  0x24   : > { %493 = vst [vmem:[%s3232_s26 + $0x120] sm:$0xff] %v492_v36  ;;  %495 = vst [vmem:[%s3232_s26 + $0x128] sm:$0xff] %v494_v37  ;;  %v498_v39 = vld [vmem:[%s3227_s25 + $0x238] sm:$0xff]  ;;  %v500_v40 = vld [vmem:[%s3227_s25 + $0x240] sm:$0xff] }
  0x25   : > { %497 = vst [vmem:[%s3232_s26 + $0x130] sm:$0xff] %v496_v38  ;;  %v502_v41 = vld [vmem:[%s3227_s25 + $0x248] sm:$0xff]  ;;  %499 = vst [vmem:[%s3232_s26 + $0x138] sm:$0xff] %v498_v39  ;;  %v504_v42 = vld [vmem:[%s3227_s25 + $0x250] sm:$0xff] }
  0x26   : > { %501 = vst [vmem:[%s3232_s26 + $0x140] sm:$0xff] %v500_v40  ;;  %503 = vst [vmem:[%s3232_s26 + $0x148] sm:$0xff] %v502_v41  ;;  %v506_v43 = vld [vmem:[%s3227_s25 + $0x258] sm:$0xff]  ;;  %v508_v44 = vld [vmem:[%s3227_s25 + $0x260] sm:$0xff] }
  0x27   : > { %505 = vst [vmem:[%s3232_s26 + $0x150] sm:$0xff] %v504_v42  ;;  %507 = vst [vmem:[%s3232_s26 + $0x158] sm:$0xff] %v506_v43  ;;  %v510_v45 = vld [vmem:[%s3227_s25 + $0x268] sm:$0xff]  ;;  %v512_v46 = vld [vmem:[%s3227_s25 + $0x270] sm:$0xff] }
  0x28   : > { %509 = vst [vmem:[%s3232_s26 + $0x160] sm:$0xff] %v508_v44  ;;  %v514_v47 = vld [vmem:[%s3227_s25 + $0x278] sm:$0xff]  ;;  %511 = vst [vmem:[%s3232_s26 + $0x168] sm:$0xff] %v510_v45  ;;  %v516_v48 = vld [vmem:[%s3227_s25 + $0x280] sm:$0xff] }
  0x29   : > { %513 = vst [vmem:[%s3232_s26 + $0x170] sm:$0xff] %v512_v46  ;;  %515 = vst [vmem:[%s3232_s26 + $0x178] sm:$0xff] %v514_v47  ;;  %v518_v49 = vld [vmem:[%s3227_s25 + $0x288] sm:$0xff]  ;;  %v520_v50 = vld [vmem:[%s3227_s25 + $0x290] sm:$0xff] }
  0x2a   : > { %517 = vst [vmem:[%s3232_s26 + $0x180] sm:$0xff] %v516_v48  ;;  %519 = vst [vmem:[%s3232_s26 + $0x188] sm:$0xff] %v518_v49  ;;  %v522_v51 = vld [vmem:[%s3227_s25 + $0x298] sm:$0xff]  ;;  %v524_v52 = vld [vmem:[%s3227_s25 + $0x2a0] sm:$0xff] }
  0x2b   : > { %521 = vst [vmem:[%s3232_s26 + $0x190] sm:$0xff] %v520_v50  ;;  %v526_v53 = vld [vmem:[%s3227_s25 + $0x2a8] sm:$0xff]  ;;  %523 = vst [vmem:[%s3232_s26 + $0x198] sm:$0xff] %v522_v51  ;;  %v528_v54 = vld [vmem:[%s3227_s25 + $0x2b0] sm:$0xff] }
  0x2c   : > { %525 = vst [vmem:[%s3232_s26 + $0x1a0] sm:$0xff] %v524_v52  ;;  %527 = vst [vmem:[%s3232_s26 + $0x1a8] sm:$0xff] %v526_v53  ;;  %v530_v55 = vld [vmem:[%s3227_s25 + $0x2b8] sm:$0xff]  ;;  %v532_v56 = vld [vmem:[%s3227_s25 + $0x2c0] sm:$0xff] }
  0x2d   : > { %529 = vst [vmem:[%s3232_s26 + $0x1b0] sm:$0xff] %v528_v54  ;;  %531 = vst [vmem:[%s3232_s26 + $0x1b8] sm:$0xff] %v530_v55  ;;  %v534_v57 = vld [vmem:[%s3227_s25 + $0x2c8] sm:$0xff]  ;;  %v536_v58 = vld [vmem:[%s3227_s25 + $0x2d0] sm:$0xff] }
  0x2e   : > { %533 = vst [vmem:[%s3232_s26 + $0x1c0] sm:$0xff] %v532_v56  ;;  %v538_v59 = vld [vmem:[%s3227_s25 + $0x2d8] sm:$0xff]  ;;  %535 = vst [vmem:[%s3232_s26 + $0x1c8] sm:$0xff] %v534_v57  ;;  %v540_v60 = vld [vmem:[%s3227_s25 + $0x2e0] sm:$0xff] }
  0x2f   : > { %537 = vst [vmem:[%s3232_s26 + $0x1d0] sm:$0xff] %v536_v58  ;;  %539 = vst [vmem:[%s3232_s26 + $0x1d8] sm:$0xff] %v538_v59  ;;  %v542_v61 = vld [vmem:[%s3227_s25 + $0x2e8] sm:$0xff]  ;;  %v544_v62 = vld [vmem:[%s3227_s25 + $0x2f0] sm:$0xff] }
  0x30   : > { %541 = vst [vmem:[%s3232_s26 + $0x1e0] sm:$0xff] %v540_v60  ;;  %543 = vst [vmem:[%s3232_s26 + $0x1e8] sm:$0xff] %v542_v61  ;;  %v546_v63 = vld [vmem:[%s3227_s25 + $0x2f8] sm:$0xff]  ;;  %v548_v0 = vld [vmem:[%s3227_s25 + $0x400] sm:$0xff] }
  0x31   : > { %545 = vst [vmem:[%s3232_s26 + $0x1f0] sm:$0xff] %v544_v62  ;;  %v550_v1 = vld [vmem:[%s3227_s25 + $0x408] sm:$0xff]  ;;  %547 = vst [vmem:[%s3232_s26 + $0x1f8] sm:$0xff] %v546_v63  ;;  %v552_v2 = vld [vmem:[%s3227_s25 + $0x410] sm:$0xff] }
  0x32   : > { %549 = vst [vmem:[%s3232_s26 + $0x200] sm:$0xff] %v548_v0  ;;  %551 = vst [vmem:[%s3232_s26 + $0x208] sm:$0xff] %v550_v1  ;;  %v554_v3 = vld [vmem:[%s3227_s25 + $0x418] sm:$0xff]  ;;  %v556_v4 = vld [vmem:[%s3227_s25 + $0x420] sm:$0xff] }
  0x33   : > { %553 = vst [vmem:[%s3232_s26 + $0x210] sm:$0xff] %v552_v2  ;;  %555 = vst [vmem:[%s3232_s26 + $0x218] sm:$0xff] %v554_v3  ;;  %v558_v5 = vld [vmem:[%s3227_s25 + $0x428] sm:$0xff]  ;;  %v560_v6 = vld [vmem:[%s3227_s25 + $0x430] sm:$0xff] }
  0x34   : > { %557 = vst [vmem:[%s3232_s26 + $0x220] sm:$0xff] %v556_v4  ;;  %v562_v7 = vld [vmem:[%s3227_s25 + $0x438] sm:$0xff]  ;;  %559 = vst [vmem:[%s3232_s26 + $0x228] sm:$0xff] %v558_v5  ;;  %v564_v8 = vld [vmem:[%s3227_s25 + $0x440] sm:$0xff] }
  0x35   : > { %561 = vst [vmem:[%s3232_s26 + $0x230] sm:$0xff] %v560_v6  ;;  %563 = vst [vmem:[%s3232_s26 + $0x238] sm:$0xff] %v562_v7  ;;  %v566_v9 = vld [vmem:[%s3227_s25 + $0x448] sm:$0xff]  ;;  %v568_v10 = vld [vmem:[%s3227_s25 + $0x450] sm:$0xff] }
  0x36   : > { %565 = vst [vmem:[%s3232_s26 + $0x240] sm:$0xff] %v564_v8  ;;  %567 = vst [vmem:[%s3232_s26 + $0x248] sm:$0xff] %v566_v9  ;;  %v570_v11 = vld [vmem:[%s3227_s25 + $0x458] sm:$0xff]  ;;  %v572_v12 = vld [vmem:[%s3227_s25 + $0x460] sm:$0xff] }
  0x37   : > { %569 = vst [vmem:[%s3232_s26 + $0x250] sm:$0xff] %v568_v10  ;;  %v574_v13 = vld [vmem:[%s3227_s25 + $0x468] sm:$0xff]  ;;  %571 = vst [vmem:[%s3232_s26 + $0x258] sm:$0xff] %v570_v11  ;;  %v576_v14 = vld [vmem:[%s3227_s25 + $0x470] sm:$0xff] }
  0x38   : > { %573 = vst [vmem:[%s3232_s26 + $0x260] sm:$0xff] %v572_v12  ;;  %575 = vst [vmem:[%s3232_s26 + $0x268] sm:$0xff] %v574_v13  ;;  %v578_v15 = vld [vmem:[%s3227_s25 + $0x478] sm:$0xff]  ;;  %v580_v16 = vld [vmem:[%s3227_s25 + $0x480] sm:$0xff] }
  0x39   : > { %577 = vst [vmem:[%s3232_s26 + $0x270] sm:$0xff] %v576_v14  ;;  %579 = vst [vmem:[%s3232_s26 + $0x278] sm:$0xff] %v578_v15  ;;  %v582_v17 = vld [vmem:[%s3227_s25 + $0x488] sm:$0xff]  ;;  %v584_v18 = vld [vmem:[%s3227_s25 + $0x490] sm:$0xff] }
  0x3a   : > { %581 = vst [vmem:[%s3232_s26 + $0x280] sm:$0xff] %v580_v16  ;;  %v586_v19 = vld [vmem:[%s3227_s25 + $0x498] sm:$0xff]  ;;  %583 = vst [vmem:[%s3232_s26 + $0x288] sm:$0xff] %v582_v17  ;;  %v588_v20 = vld [vmem:[%s3227_s25 + $0x4a0] sm:$0xff] }
  0x3b   : > { %585 = vst [vmem:[%s3232_s26 + $0x290] sm:$0xff] %v584_v18  ;;  %587 = vst [vmem:[%s3232_s26 + $0x298] sm:$0xff] %v586_v19  ;;  %v590_v21 = vld [vmem:[%s3227_s25 + $0x4a8] sm:$0xff]  ;;  %v592_v22 = vld [vmem:[%s3227_s25 + $0x4b0] sm:$0xff] }
  0x3c   : > { %589 = vst [vmem:[%s3232_s26 + $0x2a0] sm:$0xff] %v588_v20  ;;  %591 = vst [vmem:[%s3232_s26 + $0x2a8] sm:$0xff] %v590_v21  ;;  %v594_v23 = vld [vmem:[%s3227_s25 + $0x4b8] sm:$0xff]  ;;  %v596_v24 = vld [vmem:[%s3227_s25 + $0x4c0] sm:$0xff] }
  0x3d   : > { %593 = vst [vmem:[%s3232_s26 + $0x2b0] sm:$0xff] %v592_v22  ;;  %v598_v25 = vld [vmem:[%s3227_s25 + $0x4c8] sm:$0xff]  ;;  %595 = vst [vmem:[%s3232_s26 + $0x2b8] sm:$0xff] %v594_v23  ;;  %v600_v26 = vld [vmem:[%s3227_s25 + $0x4d0] sm:$0xff] }
  0x3e   : > { %597 = vst [vmem:[%s3232_s26 + $0x2c0] sm:$0xff] %v596_v24  ;;  %599 = vst [vmem:[%s3232_s26 + $0x2c8] sm:$0xff] %v598_v25  ;;  %v602_v27 = vld [vmem:[%s3227_s25 + $0x4d8] sm:$0xff]  ;;  %v604_v28 = vld [vmem:[%s3227_s25 + $0x4e0] sm:$0xff] }
  0x3f   : > { %601 = vst [vmem:[%s3232_s26 + $0x2d0] sm:$0xff] %v600_v26  ;;  %603 = vst [vmem:[%s3232_s26 + $0x2d8] sm:$0xff] %v602_v27  ;;  %v606_v29 = vld [vmem:[%s3227_s25 + $0x4e8] sm:$0xff]  ;;  %v608_v30 = vld [vmem:[%s3227_s25 + $0x4f0] sm:$0xff] }
  0x40   : > { %605 = vst [vmem:[%s3232_s26 + $0x2e0] sm:$0xff] %v604_v28  ;;  %v610_v31 = vld [vmem:[%s3227_s25 + $0x4f8] sm:$0xff]  ;;  %607 = vst [vmem:[%s3232_s26 + $0x2e8] sm:$0xff] %v606_v29  ;;  %v612_v32 = vld [vmem:[%s3227_s25 + $0x600] sm:$0xff] }
  0x41   : > { %609 = vst [vmem:[%s3232_s26 + $0x2f0] sm:$0xff] %v608_v30  ;;  %611 = vst [vmem:[%s3232_s26 + $0x2f8] sm:$0xff] %v610_v31  ;;  %v614_v33 = vld [vmem:[%s3227_s25 + $0x608] sm:$0xff]  ;;  %v616_v34 = vld [vmem:[%s3227_s25 + $0x610] sm:$0xff] }
  0x42   : > { %613 = vst [vmem:[%s3232_s26 + $0x300] sm:$0xff] %v612_v32  ;;  %615 = vst [vmem:[%s3232_s26 + $0x308] sm:$0xff] %v614_v33  ;;  %v618_v35 = vld [vmem:[%s3227_s25 + $0x618] sm:$0xff]  ;;  %v620_v36 = vld [vmem:[%s3227_s25 + $0x620] sm:$0xff] }
  0x43   : > { %617 = vst [vmem:[%s3232_s26 + $0x310] sm:$0xff] %v616_v34  ;;  %v622_v37 = vld [vmem:[%s3227_s25 + $0x628] sm:$0xff]  ;;  %619 = vst [vmem:[%s3232_s26 + $0x318] sm:$0xff] %v618_v35  ;;  %v624_v38 = vld [vmem:[%s3227_s25 + $0x630] sm:$0xff] }
  0x44   : > { %621 = vst [vmem:[%s3232_s26 + $0x320] sm:$0xff] %v620_v36  ;;  %623 = vst [vmem:[%s3232_s26 + $0x328] sm:$0xff] %v622_v37  ;;  %v626_v39 = vld [vmem:[%s3227_s25 + $0x638] sm:$0xff]  ;;  %v628_v40 = vld [vmem:[%s3227_s25 + $0x640] sm:$0xff] }
  0x45   : > { %625 = vst [vmem:[%s3232_s26 + $0x330] sm:$0xff] %v624_v38  ;;  %627 = vst [vmem:[%s3232_s26 + $0x338] sm:$0xff] %v626_v39  ;;  %v630_v41 = vld [vmem:[%s3227_s25 + $0x648] sm:$0xff]  ;;  %v632_v42 = vld [vmem:[%s3227_s25 + $0x650] sm:$0xff] }
  0x46   : > { %629 = vst [vmem:[%s3232_s26 + $0x340] sm:$0xff] %v628_v40  ;;  %v634_v43 = vld [vmem:[%s3227_s25 + $0x658] sm:$0xff]  ;;  %631 = vst [vmem:[%s3232_s26 + $0x348] sm:$0xff] %v630_v41  ;;  %v636_v44 = vld [vmem:[%s3227_s25 + $0x660] sm:$0xff] }
  0x47   : > { %633 = vst [vmem:[%s3232_s26 + $0x350] sm:$0xff] %v632_v42  ;;  %635 = vst [vmem:[%s3232_s26 + $0x358] sm:$0xff] %v634_v43  ;;  %v638_v45 = vld [vmem:[%s3227_s25 + $0x668] sm:$0xff]  ;;  %v640_v46 = vld [vmem:[%s3227_s25 + $0x670] sm:$0xff] }
  0x48   : > { %637 = vst [vmem:[%s3232_s26 + $0x360] sm:$0xff] %v636_v44  ;;  %639 = vst [vmem:[%s3232_s26 + $0x368] sm:$0xff] %v638_v45  ;;  %v642_v47 = vld [vmem:[%s3227_s25 + $0x678] sm:$0xff]  ;;  %v644_v48 = vld [vmem:[%s3227_s25 + $0x680] sm:$0xff] }
  0x49   : > { %641 = vst [vmem:[%s3232_s26 + $0x370] sm:$0xff] %v640_v46  ;;  %v646_v49 = vld [vmem:[%s3227_s25 + $0x688] sm:$0xff]  ;;  %643 = vst [vmem:[%s3232_s26 + $0x378] sm:$0xff] %v642_v47  ;;  %v648_v50 = vld [vmem:[%s3227_s25 + $0x690] sm:$0xff] }
  0x4a   : > { %645 = vst [vmem:[%s3232_s26 + $0x380] sm:$0xff] %v644_v48  ;;  %647 = vst [vmem:[%s3232_s26 + $0x388] sm:$0xff] %v646_v49  ;;  %v650_v51 = vld [vmem:[%s3227_s25 + $0x698] sm:$0xff]  ;;  %v652_v52 = vld [vmem:[%s3227_s25 + $0x6a0] sm:$0xff] }
  0x4b   : > { %649 = vst [vmem:[%s3232_s26 + $0x390] sm:$0xff] %v648_v50  ;;  %651 = vst [vmem:[%s3232_s26 + $0x398] sm:$0xff] %v650_v51  ;;  %v654_v53 = vld [vmem:[%s3227_s25 + $0x6a8] sm:$0xff]  ;;  %v656_v54 = vld [vmem:[%s3227_s25 + $0x6b0] sm:$0xff] }
  0x4c   : > { %653 = vst [vmem:[%s3232_s26 + $0x3a0] sm:$0xff] %v652_v52  ;;  %v658_v55 = vld [vmem:[%s3227_s25 + $0x6b8] sm:$0xff]  ;;  %655 = vst [vmem:[%s3232_s26 + $0x3a8] sm:$0xff] %v654_v53  ;;  %v660_v56 = vld [vmem:[%s3227_s25 + $0x6c0] sm:$0xff] }
  0x4d   : > { %657 = vst [vmem:[%s3232_s26 + $0x3b0] sm:$0xff] %v656_v54  ;;  %659 = vst [vmem:[%s3232_s26 + $0x3b8] sm:$0xff] %v658_v55  ;;  %v662_v57 = vld [vmem:[%s3227_s25 + $0x6c8] sm:$0xff]  ;;  %v664_v58 = vld [vmem:[%s3227_s25 + $0x6d0] sm:$0xff] }
  0x4e   : > { %661 = vst [vmem:[%s3232_s26 + $0x3c0] sm:$0xff] %v660_v56  ;;  %663 = vst [vmem:[%s3232_s26 + $0x3c8] sm:$0xff] %v662_v57  ;;  %v666_v59 = vld [vmem:[%s3227_s25 + $0x6d8] sm:$0xff]  ;;  %v668_v60 = vld [vmem:[%s3227_s25 + $0x6e0] sm:$0xff] }
  0x4f   : > { %665 = vst [vmem:[%s3232_s26 + $0x3d0] sm:$0xff] %v664_v58  ;;  %v670_v61 = vld [vmem:[%s3227_s25 + $0x6e8] sm:$0xff]  ;;  %667 = vst [vmem:[%s3232_s26 + $0x3d8] sm:$0xff] %v666_v59  ;;  %v672_v62 = vld [vmem:[%s3227_s25 + $0x6f0] sm:$0xff] }
  0x50   : > { %669 = vst [vmem:[%s3232_s26 + $0x3e0] sm:$0xff] %v668_v60  ;;  %671 = vst [vmem:[%s3232_s26 + $0x3e8] sm:$0xff] %v670_v61  ;;  %v674_v63 = vld [vmem:[%s3227_s25 + $0x6f8] sm:$0xff] }
  0x51   : > { %673 = vst [vmem:[%s3232_s26 + $0x3f0] sm:$0xff] %v672_v62  ;;  %675 = vst [vmem:[%s3232_s26 + $0x3f8] sm:$0xff] %v674_v63 }
  0x52 PF: > { %p2630_p5 = scmp.ge.s32.totalorder %s3170_s14, 1  ;;  %p680_p6 = scmp.lt.s32.totalorder %s3170_s14, 3 }
  0x54   : > { %p681_p7 = pnand %p2630_p5, %p680_p6 }
  0x56   : > { %684 = sbr.rel (%p681_p7) target bundleno = 603 (0x25b), region = 66 }
  0x5d   : > { %v2947_v0 = vld [vmem:[%s4022_s1] sm:$0xff]   ;;  %v3172_v1 = vmov 0   ;;  %s687_s29 = sand.u32 1, %s3162_s12   ;;  %v2948_v2 = vld [vmem:[%s4022_s1 + $0x8] sm:$0xff]   ;;  %v2949_v3 = vld [vmem:[%s4022_s1 + $0x10] sm:$0xff]   ;;  %vm1494_vm0 = vcmask 130048  }
  0x5e   : > { %1687 = vmatprep.subr.bf16.mxu0 %v3172_v1  ;;  %2904 = vmatprep.subr.bf16.mxu1 %v3172_v1  ;;  %s2631_s5 = sshll.u32 %s687_s29, 10  ;;  %v2950_v4 = vld [vmem:[%s4022_s1 + $0x18] sm:$0xff]   ;;  %v2951_v7 = vld [vmem:[%s4022_s1 + $0x20] sm:$0xff]   ;;  %v2952_v8 = vld [vmem:[%s4022_s1 + $0x28] sm:$0xff]   ;;  %s2632_s26 = sshll.u32 %s2622_s15, 5  ;;  %vm2527_vm1 = vcmask 257024  }
  0x5f   : > { %1688 = vmatpush1.bf16.msra.mxu0 %v2947_v0  ;;  %2913 = vmatpush1.bf16.msra.mxu1 %v2947_v0  ;;  %s3502_s10 = scalar_lea.vmem [#allocation2], %s2631_s5  ;;  %v2953_v9 = vld [vmem:[%s4022_s1 + $0x30] sm:$0xff]   ;;  %v2954_v10 = vld [vmem:[%s4022_s1 + $0x38] sm:$0xff]   ;;  %v2955_v11 = vld [vmem:[%s4022_s1 + $0x40] sm:$0xff]   ;;  %p712_p8 = scmp.lt.s32.totalorder %s2632_s26, 63 }
  0x60   : > { %1689 = vmatprep.subr.bf16.mxu0 %v3172_v1  ;;  %2905 = vmatprep.subr.bf16.mxu1 %v3172_v1  ;;  %v2958_v5 = vld [vmem:[%s3502_s10 + $0x4] ss:$8 sps:$4 sm:$0xff]   ;;  %v2956_v12 = vld [vmem:[%s3502_s10] ss:$8 sps:$4 sm:$0xff]   ;;  %v2962_v14 = vld [vmem:[%s3502_s10 + $0x14] ss:$8 sps:$4 sm:$0xff]  }
  0x61   : > { %v2961_v6 = vld [vmem:[%s3502_s10 + $0x204] ss:$8 sps:$4 sm:$0xff]   ;;  %2771 = vmatprep.mubr.msk.bf16.mxu0 %vm1494_vm0, %v2958_v5  ;;  %v2959_v13 = vld [vmem:[%s3502_s10 + $0x200] ss:$8 sps:$4 sm:$0xff]   ;;  %v2964_v15 = vld [vmem:[%s3502_s10 + $0x214] ss:$8 sps:$4 sm:$0xff]  }
  0x62   : > { %2803 = vmatprep.mubr.msk.bf16.mxu1 %vm1494_vm0, %v2961_v6  ;;  %v2966_v16 = vld [vmem:[%s3502_s10 + $0x10] ss:$8 sps:$4 sm:$0xff]   ;;  %v2968_v18 = vld [vmem:[%s3502_s10 + $0x24] ss:$8 sps:$4 sm:$0xff]   ;;  %v2972_v20 = vld [vmem:[%s3502_s10 + $0x20] ss:$8 sps:$4 sm:$0xff]  }
  0x63   : > { %1690 = vmatpush1.bf16.msra.mxu0 %v2948_v2  ;;  %2914 = vmatpush1.bf16.msra.mxu1 %v2948_v2  ;;  %v2967_v17 = vld [vmem:[%s3502_s10 + $0x210] ss:$8 sps:$4 sm:$0xff]   ;;  %v2970_v19 = vld [vmem:[%s3502_s10 + $0x224] ss:$8 sps:$4 sm:$0xff]   ;;  %v2973_v21 = vld [vmem:[%s3502_s10 + $0x220] ss:$8 sps:$4 sm:$0xff]  }
  0x64   : > { %1691 = vmatprep.subr.bf16.mxu0 %v3172_v1  ;;  %2906 = vmatprep.subr.bf16.mxu1 %v3172_v1  ;;  %v2974_v22 = vld [vmem:[%s3502_s10 + $0x34] ss:$8 sps:$4 sm:$0xff]   ;;  %v2978_v24 = vld [vmem:[%s3502_s10 + $0x30] ss:$8 sps:$4 sm:$0xff]   ;;  %v2980_v26 = vld [vmem:[%s3502_s10 + $0x44] ss:$8 sps:$4 sm:$0xff]  }
  0x65   : > { %v2976_v23 = vld [vmem:[%s3502_s10 + $0x234] ss:$8 sps:$4 sm:$0xff]   ;;  %v2979_v25 = vld [vmem:[%s3502_s10 + $0x230] ss:$8 sps:$4 sm:$0xff]   ;;  %v2982_v27 = vld [vmem:[%s3502_s10 + $0x244] ss:$8 sps:$4 sm:$0xff]  }
  0x66   : > { %v2984_v28 = vld [vmem:[%s3502_s10 + $0x40] ss:$8 sps:$4 sm:$0xff]   ;;  %v2986_v30 = vld [vmem:[%s3502_s10 + $0x54] ss:$8 sps:$4 sm:$0xff]   ;;  %v2990_v32 = vld [vmem:[%s3502_s10 + $0x50] ss:$8 sps:$4 sm:$0xff]  }
  0x67   : > { %1692 = vmatpush1.bf16.msra.mxu0 %v2949_v3  ;;  %2915 = vmatpush1.bf16.msra.mxu1 %v2949_v3  ;;  %v2985_v29 = vld [vmem:[%s3502_s10 + $0x240] ss:$8 sps:$4 sm:$0xff]   ;;  %v2988_v31 = vld [vmem:[%s3502_s10 + $0x254] ss:$8 sps:$4 sm:$0xff]   ;;  %v2991_v33 = vld [vmem:[%s3502_s10 + $0x250] ss:$8 sps:$4 sm:$0xff]  }
  0x68   : > { %1693 = vmatprep.subr.bf16.mxu0 %v3172_v1  ;;  %2907 = vmatprep.subr.bf16.mxu1 %v3172_v1  ;;  %v2992_v34 = vld [vmem:[%s3502_s10 + $0x64] ss:$8 sps:$4 sm:$0xff]   ;;  %v2996_v36 = vld [vmem:[%s3502_s10 + $0x60] ss:$8 sps:$4 sm:$0xff]   ;;  %v2998_v38 = vld [vmem:[%s3502_s10 + $0x74] ss:$8 sps:$4 sm:$0xff]  }
  0x69   : > { %v2994_v35 = vld [vmem:[%s3502_s10 + $0x264] ss:$8 sps:$4 sm:$0xff]   ;;  %v2997_v37 = vld [vmem:[%s3502_s10 + $0x260] ss:$8 sps:$4 sm:$0xff]   ;;  %v3000_v39 = vld [vmem:[%s3502_s10 + $0x274] ss:$8 sps:$4 sm:$0xff]  }
  0x6a   : > { %v3002_v40 = vld [vmem:[%s3502_s10 + $0x70] ss:$8 sps:$4 sm:$0xff]   ;;  %v3004_v42 = vld [vmem:[%s3502_s10 + $0x84] ss:$8 sps:$4 sm:$0xff]   ;;  %v3008_v44 = vld [vmem:[%s3502_s10 + $0x80] ss:$8 sps:$4 sm:$0xff]  }
  0x6b   : > { %1694 = vmatpush1.bf16.msra.mxu0 %v2950_v4  ;;  %2916 = vmatpush1.bf16.msra.mxu1 %v2950_v4  ;;  %v3003_v41 = vld [vmem:[%s3502_s10 + $0x270] ss:$8 sps:$4 sm:$0xff]   ;;  %v3006_v43 = vld [vmem:[%s3502_s10 + $0x284] ss:$8 sps:$4 sm:$0xff]   ;;  %v3009_v45 = vld [vmem:[%s3502_s10 + $0x280] ss:$8 sps:$4 sm:$0xff]  }
  0x6c   : > { %1695 = vmatprep.subr.bf16.mxu0 %v3172_v1  ;;  %2908 = vmatprep.subr.bf16.mxu1 %v3172_v1  ;;  %v3010_v46 = vld [vmem:[%s3502_s10 + $0x94] ss:$8 sps:$4 sm:$0xff]   ;;  %v3014_v48 = vld [vmem:[%s3502_s10 + $0x90] ss:$8 sps:$4 sm:$0xff]   ;;  %v3016_v50 = vld [vmem:[%s3502_s10 + $0xa4] ss:$8 sps:$4 sm:$0xff]  }
  0x6d   : > { %v3012_v47 = vld [vmem:[%s3502_s10 + $0x294] ss:$8 sps:$4 sm:$0xff]   ;;  %v3015_v49 = vld [vmem:[%s3502_s10 + $0x290] ss:$8 sps:$4 sm:$0xff]   ;;  %v3018_v51 = vld [vmem:[%s3502_s10 + $0x2a4] ss:$8 sps:$4 sm:$0xff]  }
  0x6e   : > { %v3020_v52 = vld [vmem:[%s3502_s10 + $0xa0] ss:$8 sps:$4 sm:$0xff]   ;;  %v3022_v54 = vld [vmem:[%s3502_s10 + $0xb4] ss:$8 sps:$4 sm:$0xff]   ;;  %v3026_v56 = vld [vmem:[%s3502_s10 + $0xb0] ss:$8 sps:$4 sm:$0xff]  }
  0x6f   : > { %1696 = vmatpush1.bf16.msra.mxu0 %v2951_v7  ;;  %2917 = vmatpush1.bf16.msra.mxu1 %v2951_v7  ;;  %v3021_v53 = vld [vmem:[%s3502_s10 + $0x2a0] ss:$8 sps:$4 sm:$0xff]   ;;  %v3024_v55 = vld [vmem:[%s3502_s10 + $0x2b4] ss:$8 sps:$4 sm:$0xff]   ;;  %v3027_v57 = vld [vmem:[%s3502_s10 + $0x2b0] ss:$8 sps:$4 sm:$0xff]  }
  0x70   : > { %1697 = vmatprep.subr.bf16.mxu0 %v3172_v1  ;;  %2909 = vmatprep.subr.bf16.mxu1 %v3172_v1  ;;  %v3028_v58 = vld [vmem:[%s3502_s10 + $0xc4] ss:$8 sps:$4 sm:$0xff]   ;;  %v3032_v60 = vld [vmem:[%s3502_s10 + $0xc0] ss:$8 sps:$4 sm:$0xff]   ;;  %v3034_v62 = vld [vmem:[%s3502_s10 + $0xd4] ss:$8 sps:$4 sm:$0xff]  }
  0x71   : > { %v3030_v59 = vld [vmem:[%s3502_s10 + $0x2c4] ss:$8 sps:$4 sm:$0xff]   ;;  %v3033_v61 = vld [vmem:[%s3502_s10 + $0x2c0] ss:$8 sps:$4 sm:$0xff]   ;;  %v3036_v63 = vld [vmem:[%s3502_s10 + $0x2d4] ss:$8 sps:$4 sm:$0xff]  }
  0x72   : > { %v3038_v0 = vld [vmem:[%s3502_s10 + $0xd0] ss:$8 sps:$4 sm:$0xff]   ;;  %v3040_v2 = vld [vmem:[%s3502_s10 + $0xe4] ss:$8 sps:$4 sm:$0xff]   ;;  %v3044_v4 = vld [vmem:[%s3502_s10 + $0xe0] ss:$8 sps:$4 sm:$0xff]  }
  0x73   : > { %1698 = vmatpush1.bf16.msra.mxu0 %v2952_v8  ;;  %2918 = vmatpush1.bf16.msra.mxu1 %v2952_v8  ;;  %v3042_v3 = vld [vmem:[%s3502_s10 + $0x2e4] ss:$8 sps:$4 sm:$0xff]   ;;  %v3045_v5 = vld [vmem:[%s3502_s10 + $0x2e0] ss:$8 sps:$4 sm:$0xff]   ;;  %v3046_v6 = vld [vmem:[%s3502_s10 + $0xf4] ss:$8 sps:$4 sm:$0xff]  }
  0x74   : > { %1699 = vmatprep.subr.bf16.mxu0 %v3172_v1  ;;  %2910 = vmatprep.subr.bf16.mxu1 %v3172_v1  ;;  %v3048_v7 = vld [vmem:[%s3502_s10 + $0x2f4] ss:$8 sps:$4 sm:$0xff]   ;;  %v3050_v8 = vld [vmem:[%s3502_s10 + $0xf0] ss:$8 sps:$4 sm:$0xff]   ;;  %s4059_s26 = smov (!%p712_p8, %s2632_s26), 63 }
  0x75   : > { %s2633_s14 = sshll.u32 %s4059_s26, 2 }
  0x76   : > { %s3855_s30 = scalar_lea.vmem %s4024_s3, %s2633_s14 }
  0x77   : > { %1700 = vmatpush1.bf16.msra.mxu0 %v2953_v9  ;;  %2919 = vmatpush1.bf16.msra.mxu1 %v2953_v9  ;;  %v3051_v9 = vld [vmem:[%s3502_s10 + $0x2f0] ss:$8 sps:$4 sm:$0xff]  }
  0x78   : > { %1701 = vmatprep.subr.bf16.mxu0 %v3172_v1  ;;  %2911 = vmatprep.subr.bf16.mxu1 %v3172_v1 }
  0x7b   : > { %1702 = vmatpush1.bf16.msra.mxu0 %v2954_v10  ;;  %2920 = vmatpush1.bf16.msra.mxu1 %v2954_v10  ;;  %v3052_v10 = vld [vmem:[%s3502_s10 + $0x104] ss:$8 sps:$4 sm:$0xff]  }
  0x7c   : > { %1703 = vmatprep.subr.bf16.mxu0 %v3172_v1  ;;  %2912 = vmatprep.subr.bf16.mxu1 %v3172_v1  ;;  %v3039_v1 = vld [vmem:[%s3502_s10 + $0x2d0] ss:$8 sps:$4 sm:$0xff]  }
  0x7f   : > { %1704 = vmatpush1.bf16.msra.mxu0 %v2955_v11  ;;  %2921 = vmatpush1.bf16.msra.mxu1 %v2955_v11  ;;  %v3054_v11 = vld [vmem:[%s3502_s10 + $0x304] ss:$8 sps:$4 sm:$0xff]  }
  0x82   : > { %1720 = vmatmul.mubr.bf16.vlgmr.msra.gmra.mrb[0].mxu0 %v2956_v12  ;;  %1976 = vmatmul.mubr.bf16.vlgmr.msra.gmra.mrb[0].mxu1 %v2959_v13  ;;  %v3056_v12 = vld [vmem:[%s3502_s10 + $0x100] ss:$8 sps:$4 sm:$0xff]  }
  0x83   : > { %2772 = vmatprep.mubr.msk.bf16.mxu0 %vm1494_vm0, %v2962_v14  ;;  %2804 = vmatprep.mubr.msk.bf16.mxu1 %vm1494_vm0, %v2964_v15  ;;  %v3057_v13 = vld [vmem:[%s3502_s10 + $0x300] ss:$8 sps:$4 sm:$0xff]   ;;  %v3058_v14 = vld [vmem:[%s3502_s10 + $0x114] ss:$8 sps:$4 sm:$0xff]  }
  0x84   : > { %v3060_v15 = vld [vmem:[%s3502_s10 + $0x314] ss:$8 sps:$4 sm:$0xff]  }
  0x8a   : > { %1728 = vmatmul.mubr.bf16.gmra.mrb[4].mxu0 %v2966_v16  ;;  %1984 = vmatmul.mubr.bf16.gmra.mrb[4].mxu1 %v2967_v17  ;;  %v3062_v16 = vld [vmem:[%s3502_s10 + $0x110] ss:$8 sps:$4 sm:$0xff]  }
  0x8b   : > { %2773 = vmatprep.mubr.msk.bf16.mxu0 %vm1494_vm0, %v2968_v18  ;;  %2805 = vmatprep.mubr.msk.bf16.mxu1 %vm1494_vm0, %v2970_v19  ;;  %v3063_v17 = vld [vmem:[%s3502_s10 + $0x310] ss:$8 sps:$4 sm:$0xff]   ;;  %v3064_v18 = vld [vmem:[%s3502_s10 + $0x124] ss:$8 sps:$4 sm:$0xff]  }
  0x8c   : > { %v3066_v19 = vld [vmem:[%s3502_s10 + $0x324] ss:$8 sps:$4 sm:$0xff]  }
  0x92   : > { %1736 = vmatmul.mubr.bf16.gmra.mrb[8].mxu0 %v2972_v20  ;;  %1992 = vmatmul.mubr.bf16.gmra.mrb[8].mxu1 %v2973_v21  ;;  %v3068_v20 = vld [vmem:[%s3502_s10 + $0x120] ss:$8 sps:$4 sm:$0xff]  }
  0x93   : > { %2774 = vmatprep.mubr.msk.bf16.mxu0 %vm1494_vm0, %v2974_v22  ;;  %2806 = vmatprep.mubr.msk.bf16.mxu1 %vm1494_vm0, %v2976_v23  ;;  %v3069_v21 = vld [vmem:[%s3502_s10 + $0x320] ss:$8 sps:$4 sm:$0xff]   ;;  %v3070_v22 = vld [vmem:[%s3502_s10 + $0x134] ss:$8 sps:$4 sm:$0xff]  }
  0x94   : > { %v3072_v23 = vld [vmem:[%s3502_s10 + $0x334] ss:$8 sps:$4 sm:$0xff]  }
  0x9a   : > { %1744 = vmatmul.mubr.bf16.gmra.mrb[12].mxu0 %v2978_v24  ;;  %2000 = vmatmul.mubr.bf16.gmra.mrb[12].mxu1 %v2979_v25  ;;  %v3074_v24 = vld [vmem:[%s3502_s10 + $0x130] ss:$8 sps:$4 sm:$0xff]  }
  0x9b   : > { %2775 = vmatprep.mubr.msk.bf16.mxu0 %vm1494_vm0, %v2980_v26  ;;  %2807 = vmatprep.mubr.msk.bf16.mxu1 %vm1494_vm0, %v2982_v27  ;;  %v3075_v25 = vld [vmem:[%s3502_s10 + $0x330] ss:$8 sps:$4 sm:$0xff]   ;;  %v3076_v26 = vld [vmem:[%s3502_s10 + $0x144] ss:$8 sps:$4 sm:$0xff]  }
  0x9c   : > { %v3078_v27 = vld [vmem:[%s3502_s10 + $0x344] ss:$8 sps:$4 sm:$0xff]  }
  0xa2   : > { %1752 = vmatmul.mubr.bf16.gmra.mrb[16].mxu0 %v2984_v28  ;;  %2008 = vmatmul.mubr.bf16.gmra.mrb[16].mxu1 %v2985_v29  ;;  %v3080_v28 = vld [vmem:[%s3502_s10 + $0x140] ss:$8 sps:$4 sm:$0xff]  }
  0xa3   : > { %2776 = vmatprep.mubr.msk.bf16.mxu0 %vm1494_vm0, %v2986_v30  ;;  %2808 = vmatprep.mubr.msk.bf16.mxu1 %vm1494_vm0, %v2988_v31  ;;  %v3081_v29 = vld [vmem:[%s3502_s10 + $0x340] ss:$8 sps:$4 sm:$0xff]   ;;  %v3082_v30 = vld [vmem:[%s3502_s10 + $0x154] ss:$8 sps:$4 sm:$0xff]  }
  0xa4   : > { %v3084_v31 = vld [vmem:[%s3502_s10 + $0x354] ss:$8 sps:$4 sm:$0xff]  }
  0xaa   : > { %1760 = vmatmul.mubr.bf16.gmra.mrb[20].mxu0 %v2990_v32  ;;  %2016 = vmatmul.mubr.bf16.gmra.mrb[20].mxu1 %v2991_v33  ;;  %v3086_v32 = vld [vmem:[%s3502_s10 + $0x150] ss:$8 sps:$4 sm:$0xff]  }
  0xab   : > { %2777 = vmatprep.mubr.msk.bf16.mxu0 %vm1494_vm0, %v2992_v34  ;;  %2809 = vmatprep.mubr.msk.bf16.mxu1 %vm1494_vm0, %v2994_v35  ;;  %v3087_v33 = vld [vmem:[%s3502_s10 + $0x350] ss:$8 sps:$4 sm:$0xff]   ;;  %v3088_v34 = vld [vmem:[%s3502_s10 + $0x164] ss:$8 sps:$4 sm:$0xff]  }
  0xac   : > { %v3090_v35 = vld [vmem:[%s3502_s10 + $0x364] ss:$8 sps:$4 sm:$0xff]  }
  0xb2   : > { %1768 = vmatmul.mubr.bf16.gmra.mrb[24].mxu0 %v2996_v36  ;;  %2024 = vmatmul.mubr.bf16.gmra.mrb[24].mxu1 %v2997_v37  ;;  %v3092_v36 = vld [vmem:[%s3502_s10 + $0x160] ss:$8 sps:$4 sm:$0xff]  }
  0xb3   : > { %2778 = vmatprep.mubr.msk.bf16.mxu0 %vm1494_vm0, %v2998_v38  ;;  %2810 = vmatprep.mubr.msk.bf16.mxu1 %vm1494_vm0, %v3000_v39  ;;  %v3093_v37 = vld [vmem:[%s3502_s10 + $0x360] ss:$8 sps:$4 sm:$0xff]   ;;  %v3094_v38 = vld [vmem:[%s3502_s10 + $0x174] ss:$8 sps:$4 sm:$0xff]  }
  0xb4   : > { %v3096_v39 = vld [vmem:[%s3502_s10 + $0x374] ss:$8 sps:$4 sm:$0xff]  }
  0xba   : > { %1776 = vmatmul.mubr.bf16.gmra.mrb[28].mxu0 %v3002_v40  ;;  %2032 = vmatmul.mubr.bf16.gmra.mrb[28].mxu1 %v3003_v41  ;;  %v3098_v40 = vld [vmem:[%s3502_s10 + $0x170] ss:$8 sps:$4 sm:$0xff]  }
  0xbb   : > { %2779 = vmatprep.mubr.msk.bf16.mxu0 %vm1494_vm0, %v3004_v42  ;;  %2811 = vmatprep.mubr.msk.bf16.mxu1 %vm1494_vm0, %v3006_v43  ;;  %v3099_v41 = vld [vmem:[%s3502_s10 + $0x370] ss:$8 sps:$4 sm:$0xff]   ;;  %v3100_v42 = vld [vmem:[%s3502_s10 + $0x184] ss:$8 sps:$4 sm:$0xff]  }
  0xbc   : > { %v3102_v43 = vld [vmem:[%s3502_s10 + $0x384] ss:$8 sps:$4 sm:$0xff]  }
  0xc2   : > { %1784 = vmatmul.mubr.bf16.gmra.mrb[32].mxu0 %v3008_v44  ;;  %2040 = vmatmul.mubr.bf16.gmra.mrb[32].mxu1 %v3009_v45  ;;  %v3104_v44 = vld [vmem:[%s3502_s10 + $0x180] ss:$8 sps:$4 sm:$0xff]  }
  0xc3   : > { %2780 = vmatprep.mubr.msk.bf16.mxu0 %vm1494_vm0, %v3010_v46  ;;  %2812 = vmatprep.mubr.msk.bf16.mxu1 %vm1494_vm0, %v3012_v47  ;;  %v3105_v45 = vld [vmem:[%s3502_s10 + $0x380] ss:$8 sps:$4 sm:$0xff]   ;;  %v3106_v46 = vld [vmem:[%s3502_s10 + $0x194] ss:$8 sps:$4 sm:$0xff]  }
  0xc4   : > { %v3108_v47 = vld [vmem:[%s3502_s10 + $0x394] ss:$8 sps:$4 sm:$0xff]  }
  0xca   : > { %1792 = vmatmul.mubr.bf16.gmra.mrb[36].mxu0 %v3014_v48  ;;  %2048 = vmatmul.mubr.bf16.gmra.mrb[36].mxu1 %v3015_v49  ;;  %v3110_v48 = vld [vmem:[%s3502_s10 + $0x190] ss:$8 sps:$4 sm:$0xff]  }
  0xcb   : > { %2781 = vmatprep.mubr.msk.bf16.mxu0 %vm1494_vm0, %v3016_v50  ;;  %2813 = vmatprep.mubr.msk.bf16.mxu1 %vm1494_vm0, %v3018_v51  ;;  %v3111_v49 = vld [vmem:[%s3502_s10 + $0x390] ss:$8 sps:$4 sm:$0xff]   ;;  %v3112_v50 = vld [vmem:[%s3502_s10 + $0x1a4] ss:$8 sps:$4 sm:$0xff]  }
  0xcc   : > { %v3114_v51 = vld [vmem:[%s3502_s10 + $0x3a4] ss:$8 sps:$4 sm:$0xff]  }
  0xd2   : > { %1800 = vmatmul.mubr.bf16.gmra.mrb[40].mxu0 %v3020_v52  ;;  %2056 = vmatmul.mubr.bf16.gmra.mrb[40].mxu1 %v3021_v53  ;;  %v3116_v52 = vld [vmem:[%s3502_s10 + $0x1a0] ss:$8 sps:$4 sm:$0xff]  }
  0xd3   : > { %2782 = vmatprep.mubr.msk.bf16.mxu0 %vm1494_vm0, %v3022_v54  ;;  %2814 = vmatprep.mubr.msk.bf16.mxu1 %vm1494_vm0, %v3024_v55  ;;  %v3117_v53 = vld [vmem:[%s3502_s10 + $0x3a0] ss:$8 sps:$4 sm:$0xff]   ;;  %v3118_v54 = vld [vmem:[%s3502_s10 + $0x1b4] ss:$8 sps:$4 sm:$0xff]  }
  0xd4   : > { %v3120_v55 = vld [vmem:[%s3502_s10 + $0x3b4] ss:$8 sps:$4 sm:$0xff]  }
  0xda   : > { %1808 = vmatmul.mubr.bf16.gmra.mrb[44].mxu0 %v3026_v56  ;;  %2064 = vmatmul.mubr.bf16.gmra.mrb[44].mxu1 %v3027_v57 }
  0xdb   : > { %2783 = vmatprep.mubr.msk.bf16.mxu0 %vm1494_vm0, %v3028_v58  ;;  %2815 = vmatprep.mubr.msk.bf16.mxu1 %vm1494_vm0, %v3030_v59 }
  0xe2   : > { %1816 = vmatmul.mubr.bf16.gmra.mrb[48].mxu0 %v3032_v60  ;;  %2072 = vmatmul.mubr.bf16.gmra.mrb[48].mxu1 %v3033_v61  ;;  %v3122_v60 = vld [vmem:[%s3502_s10 + $0x1b0] ss:$8 sps:$4 sm:$0xff]  }
  0xe3   : > { %2784 = vmatprep.mubr.msk.bf16.mxu0 %vm1494_vm0, %v3034_v62  ;;  %2816 = vmatprep.mubr.msk.bf16.mxu1 %vm1494_vm0, %v3036_v63  ;;  %v3123_v61 = vld [vmem:[%s3502_s10 + $0x3b0] ss:$8 sps:$4 sm:$0xff]  }
  0xea   : > { %1824 = vmatmul.mubr.bf16.gmra.mrb[52].mxu0 %v3038_v0  ;;  %2080 = vmatmul.mubr.bf16.gmra.mrb[52].mxu1 %v3039_v1  ;;  %v3124_v0 = vld [vmem:[%s3502_s10 + $0x1c4] ss:$8 sps:$4 sm:$0xff]  }
  0xeb   : > { %2785 = vmatprep.mubr.msk.bf16.mxu0 %vm1494_vm0, %v3040_v2  ;;  %2817 = vmatprep.mubr.msk.bf16.mxu1 %vm1494_vm0, %v3042_v3  ;;  %v3126_v1 = vld [vmem:[%s3502_s10 + $0x3c4] ss:$8 sps:$4 sm:$0xff]  }
  0xf2   : > { %1832 = vmatmul.mubr.bf16.gmra.mrb[56].mxu0 %v3044_v4  ;;  %2088 = vmatmul.mubr.bf16.gmra.mrb[56].mxu1 %v3045_v5 }
  0xf3   : > { %2786 = vmatprep.mubr.msk.bf16.mxu0 %vm1494_vm0, %v3046_v6  ;;  %2818 = vmatprep.mubr.msk.bf16.mxu1 %vm1494_vm0, %v3048_v7 }
  0xfa   : > { %1840 = vmatmul.mubr.bf16.gmra.mrb[60].mxu0 %v3050_v8  ;;  %2096 = vmatmul.mubr.bf16.gmra.mrb[60].mxu1 %v3051_v9  ;;  %v3128_v8 = vld [vmem:[%s3502_s10 + $0x1c0] ss:$8 sps:$4 sm:$0xff]  }
  0xfb   : > { %2787 = vmatprep.mubr.msk.bf16.mxu0 %vm1494_vm0, %v3052_v10  ;;  %2819 = vmatprep.mubr.msk.bf16.mxu1 %vm1494_vm0, %v3054_v11  ;;  %v3129_v9 = vld [vmem:[%s3502_s10 + $0x3c0] ss:$8 sps:$4 sm:$0xff]  }
 0x102   : > { %1848 = vmatmul.mubr.bf16.gmra.mrb[64].mxu0 %v3056_v12  ;;  %2104 = vmatmul.mubr.bf16.gmra.mrb[64].mxu1 %v3057_v13  ;;  %v3130_v12 = vld [vmem:[%s3502_s10 + $0x1d4] ss:$8 sps:$4 sm:$0xff]  }
 0x103   : > { %2788 = vmatprep.mubr.msk.bf16.mxu0 %vm1494_vm0, %v3058_v14  ;;  %2820 = vmatprep.mubr.msk.bf16.mxu1 %vm1494_vm0, %v3060_v15  ;;  %v3132_v13 = vld [vmem:[%s3502_s10 + $0x3d4] ss:$8 sps:$4 sm:$0xff]  }
 0x10a   : > { %1856 = vmatmul.mubr.bf16.gmra.mrb[68].mxu0 %v3062_v16  ;;  %2112 = vmatmul.mubr.bf16.gmra.mrb[68].mxu1 %v3063_v17 }
 0x10b   : > { %2789 = vmatprep.mubr.msk.bf16.mxu0 %vm1494_vm0, %v3064_v18  ;;  %2821 = vmatprep.mubr.msk.bf16.mxu1 %vm1494_vm0, %v3066_v19 }
 0x112   : > { %1864 = vmatmul.mubr.bf16.gmra.mrb[72].mxu0 %v3068_v20  ;;  %2120 = vmatmul.mubr.bf16.gmra.mrb[72].mxu1 %v3069_v21  ;;  %v3134_v20 = vld [vmem:[%s3502_s10 + $0x1d0] ss:$8 sps:$4 sm:$0xff]  }
 0x113   : > { %2790 = vmatprep.mubr.msk.bf16.mxu0 %vm1494_vm0, %v3070_v22  ;;  %2822 = vmatprep.mubr.msk.bf16.mxu1 %vm1494_vm0, %v3072_v23  ;;  %v3135_v21 = vld [vmem:[%s3502_s10 + $0x3d0] ss:$8 sps:$4 sm:$0xff]  }
 0x11a   : > { %1872 = vmatmul.mubr.bf16.gmra.mrb[76].mxu0 %v3074_v24  ;;  %2128 = vmatmul.mubr.bf16.gmra.mrb[76].mxu1 %v3075_v25  ;;  %v3136_v24 = vld [vmem:[%s3502_s10 + $0x1e4] ss:$8 sps:$4 sm:$0xff]  }
 0x11b   : > { %2791 = vmatprep.mubr.msk.bf16.mxu0 %vm1494_vm0, %v3076_v26  ;;  %2823 = vmatprep.mubr.msk.bf16.mxu1 %vm1494_vm0, %v3078_v27  ;;  %v3138_v25 = vld [vmem:[%s3502_s10 + $0x3e4] ss:$8 sps:$4 sm:$0xff]  }
 0x122   : > { %1880 = vmatmul.mubr.bf16.gmra.mrb[80].mxu0 %v3080_v28  ;;  %2136 = vmatmul.mubr.bf16.gmra.mrb[80].mxu1 %v3081_v29 }
 0x123   : > { %2792 = vmatprep.mubr.msk.bf16.mxu0 %vm1494_vm0, %v3082_v30  ;;  %2824 = vmatprep.mubr.msk.bf16.mxu1 %vm1494_vm0, %v3084_v31 }
 0x12a   : > { %1888 = vmatmul.mubr.bf16.gmra.mrb[84].mxu0 %v3086_v32  ;;  %2144 = vmatmul.mubr.bf16.gmra.mrb[84].mxu1 %v3087_v33  ;;  %v3140_v32 = vld [vmem:[%s3502_s10 + $0x1e0] ss:$8 sps:$4 sm:$0xff]  }
 0x12b   : > { %2793 = vmatprep.mubr.msk.bf16.mxu0 %vm1494_vm0, %v3088_v34  ;;  %2825 = vmatprep.mubr.msk.bf16.mxu1 %vm1494_vm0, %v3090_v35  ;;  %v3141_v33 = vld [vmem:[%s3502_s10 + $0x3e0] ss:$8 sps:$4 sm:$0xff]  }
 0x132   : > { %1896 = vmatmul.mubr.bf16.gmra.mrb[88].mxu0 %v3092_v36  ;;  %2152 = vmatmul.mubr.bf16.gmra.mrb[88].mxu1 %v3093_v37  ;;  %v3142_v36 = vld [vmem:[%s3502_s10 + $0x1f4] ss:$8 sps:$4 sm:$0xff]  }
 0x133   : > { %2794 = vmatprep.mubr.msk.bf16.mxu0 %vm1494_vm0, %v3094_v38  ;;  %2826 = vmatprep.mubr.msk.bf16.mxu1 %vm1494_vm0, %v3096_v39  ;;  %v3144_v37 = vld [vmem:[%s3502_s10 + $0x3f4] ss:$8 sps:$4 sm:$0xff]  }
 0x13a   : > { %1904 = vmatmul.mubr.bf16.gmra.mrb[92].mxu0 %v3098_v40  ;;  %2160 = vmatmul.mubr.bf16.gmra.mrb[92].mxu1 %v3099_v41 }
 0x13b   : > { %2795 = vmatprep.mubr.msk.bf16.mxu0 %vm1494_vm0, %v3100_v42  ;;  %2827 = vmatprep.mubr.msk.bf16.mxu1 %vm1494_vm0, %v3102_v43 }
 0x142   : > { %1912 = vmatmul.mubr.bf16.gmra.mrb[96].mxu0 %v3104_v44  ;;  %2168 = vmatmul.mubr.bf16.gmra.mrb[96].mxu1 %v3105_v45  ;;  %v3146_v44 = vld [vmem:[%s3502_s10 + $0x1f0] ss:$8 sps:$4 sm:$0xff]  }
 0x143   : > { %2796 = vmatprep.mubr.msk.bf16.mxu0 %vm1494_vm0, %v3106_v46  ;;  %2828 = vmatprep.mubr.msk.bf16.mxu1 %vm1494_vm0, %v3108_v47  ;;  %v3147_v45 = vld [vmem:[%s3502_s10 + $0x3f0] ss:$8 sps:$4 sm:$0xff]  }
 0x14a   : > { %1920 = vmatmul.mubr.bf16.gmra.mrb[100].mxu0 %v3110_v48  ;;  %2176 = vmatmul.mubr.bf16.gmra.mrb[100].mxu1 %v3111_v49 }
 0x14b   : > { %2797 = vmatprep.mubr.msk.bf16.mxu0 %vm1494_vm0, %v3112_v50  ;;  %2829 = vmatprep.mubr.msk.bf16.mxu1 %vm1494_vm0, %v3114_v51 }
 0x152   : > { %1928 = vmatmul.mubr.bf16.gmra.mrb[104].mxu0 %v3116_v52  ;;  %2184 = vmatmul.mubr.bf16.gmra.mrb[104].mxu1 %v3117_v53 }
 0x153   : > { %2798 = vmatprep.mubr.msk.bf16.mxu0 %vm1494_vm0, %v3118_v54  ;;  %2830 = vmatprep.mubr.msk.bf16.mxu1 %vm1494_vm0, %v3120_v55 }
 0x155   : > { %v3685_v56 = vpop.f32.mrb[0].mxu0  ;;  %v3687_v57 = vpop.f32.mrb[0].mxu1 }
 0x156   : > { %v1723_v58 = vpop.f32.mrb[1].mxu0  ;;  %v1979_v59 = vpop.f32.mrb[1].mxu1 }
 0x157   : > { %v3691_v62 = vpop.f32.mrb[2].mxu0  ;;  %v3693_v63 = vpop.f32.mrb[2].mxu1 }
 0x158   : > { %v1726_v2 = vpop.f32.mrb[3].mxu0  ;;  %v1982_v3 = vpop.f32.mrb[3].mxu1 }
 0x15a   : > { %1936 = vmatmul.mubr.bf16.gmra.mrb[108].mxu0 %v3122_v60  ;;  %2192 = vmatmul.mubr.bf16.gmra.mrb[108].mxu1 %v3123_v61 }
 0x15b   : > { %2799 = vmatprep.mubr.msk.bf16.mxu0 %vm1494_vm0, %v3124_v0  ;;  %2831 = vmatprep.mubr.msk.bf16.mxu1 %vm1494_vm0, %v3126_v1 }
 0x15d   : > { %v3699_v4 = vpop.f32.mrb[4].mxu0  ;;  %v3701_v5 = vpop.f32.mrb[4].mxu1 }
 0x15e   : > { %v1731_v6 = vpop.f32.mrb[5].mxu0  ;;  %v1987_v7 = vpop.f32.mrb[5].mxu1 }
 0x15f   : > { %v3705_v10 = vpop.f32.mrb[6].mxu0  ;;  %v3707_v11 = vpop.f32.mrb[6].mxu1 }
 0x160   : > { %v1734_v14 = vpop.f32.mrb[7].mxu0  ;;  %v1990_v15 = vpop.f32.mrb[7].mxu1 }
 0x162   : > { %1944 = vmatmul.mubr.bf16.gmra.mrb[112].mxu0 %v3128_v8  ;;  %2200 = vmatmul.mubr.bf16.gmra.mrb[112].mxu1 %v3129_v9 }
 0x163   : > { %2800 = vmatprep.mubr.msk.bf16.mxu0 %vm1494_vm0, %v3130_v12  ;;  %2832 = vmatprep.mubr.msk.bf16.mxu1 %vm1494_vm0, %v3132_v13 }
 0x165   : > { %v3713_v16 = vpop.f32.mrb[8].mxu0  ;;  %v3715_v17 = vpop.f32.mrb[8].mxu1 }
 0x166   : > { %v1739_v18 = vpop.f32.mrb[9].mxu0  ;;  %v1995_v19 = vpop.f32.mrb[9].mxu1 }
 0x167   : > { %v3719_v22 = vpop.f32.mrb[10].mxu0  ;;  %v3721_v23 = vpop.f32.mrb[10].mxu1 }
 0x168   : > { %v1742_v26 = vpop.f32.mrb[11].mxu0  ;;  %v1998_v27 = vpop.f32.mrb[11].mxu1 }
 0x16a   : > { %1952 = vmatmul.mubr.bf16.gmra.mrb[116].mxu0 %v3134_v20  ;;  %2208 = vmatmul.mubr.bf16.gmra.mrb[116].mxu1 %v3135_v21 }
 0x16b   : > { %2801 = vmatprep.mubr.msk.bf16.mxu0 %vm1494_vm0, %v3136_v24  ;;  %2833 = vmatprep.mubr.msk.bf16.mxu1 %vm1494_vm0, %v3138_v25 }
 0x16d   : > { %v3727_v28 = vpop.f32.mrb[12].mxu0  ;;  %v3729_v29 = vpop.f32.mrb[12].mxu1 }
 0x16e   : > { %v1747_v30 = vpop.f32.mrb[13].mxu0  ;;  %v2003_v31 = vpop.f32.mrb[13].mxu1 }
 0x16f   : > { %v3733_v34 = vpop.f32.mrb[14].mxu0  ;;  %v3735_v35 = vpop.f32.mrb[14].mxu1 }
 0x170   : > { %v1750_v38 = vpop.f32.mrb[15].mxu0  ;;  %v2006_v39 = vpop.f32.mrb[15].mxu1 }
 0x172   : > { %1960 = vmatmul.mubr.bf16.gmra.mrb[120].mxu0 %v3140_v32  ;;  %2216 = vmatmul.mubr.bf16.gmra.mrb[120].mxu1 %v3141_v33 }
 0x173   : > { %2802 = vmatprep.mubr.msk.bf16.mxu0 %vm1494_vm0, %v3142_v36  ;;  %2834 = vmatprep.mubr.msk.bf16.mxu1 %vm1494_vm0, %v3144_v37 }
 0x175   : > { %v3741_v40 = vpop.f32.mrb[16].mxu0  ;;  %v3743_v41 = vpop.f32.mrb[16].mxu1 }
 0x176   : > { %v1755_v42 = vpop.f32.mrb[17].mxu0  ;;  %v2011_v43 = vpop.f32.mrb[17].mxu1 }
 0x177   : > { %v3747_v46 = vpop.f32.mrb[18].mxu0  ;;  %v3749_v47 = vpop.f32.mrb[18].mxu1 }
 0x178   : > { %v1758_v48 = vpop.f32.mrb[19].mxu0  ;;  %v2014_v49 = vpop.f32.mrb[19].mxu1 }
 0x17a   : > { %1968 = vmatmul.mubr.bf16.gmra.mrb[124].mxu0 %v3146_v44  ;;  %2224 = vmatmul.mubr.bf16.gmra.mrb[124].mxu1 %v3147_v45 }
 0x17d   : > { %v3751_v50 = vpop.f32.mrb[20].mxu0  ;;  %v3753_v51 = vpop.f32.mrb[20].mxu1 }
 0x17e   : > { %v1763_v52 = vpop.f32.mrb[21].mxu0  ;;  %v2019_v53 = vpop.f32.mrb[21].mxu1 }
 0x17f   : > { %v3755_v54 = vpop.f32.mrb[22].mxu0  ;;  %v3757_v55 = vpop.f32.mrb[22].mxu1 }
 0x180   : > { %v1766_v58 = vpop.f32.mrb[23].mxu0  ;;  %v2022_v59 = vpop.f32.mrb[23].mxu1 }
 0x185   : > { %v3759_v60 = vpop.f32.mrb[24].mxu0  ;;  %v3761_v61 = vpop.f32.mrb[24].mxu1 }
 0x186   : > { %v1771_v0 = vpop.f32.mrb[25].mxu0  ;;  %v2027_v1 = vpop.f32.mrb[25].mxu1 }
 0x187   : > { %v3763_v2 = vpop.f32.mrb[26].mxu0  ;;  %v3765_v3 = vpop.f32.mrb[26].mxu1 }
 0x188   : > { %v1774_v6 = vpop.f32.mrb[27].mxu0  ;;  %v2030_v7 = vpop.f32.mrb[27].mxu1 }
 0x18d   : > { %v3767_v8 = vpop.f32.mrb[28].mxu0  ;;  %v3769_v9 = vpop.f32.mrb[28].mxu1 }
 0x18e   : > { %v1779_v12 = vpop.f32.mrb[29].mxu0  ;;  %v2035_v13 = vpop.f32.mrb[29].mxu1 }
 0x18f   : > { %v3771_v14 = vpop.f32.mrb[30].mxu0  ;;  %v3773_v15 = vpop.f32.mrb[30].mxu1 }
 0x190   : > { %v1782_v18 = vpop.f32.mrb[31].mxu0  ;;  %v2038_v19 = vpop.f32.mrb[31].mxu1 }
 0x195   : > { %v3775_v20 = vpop.f32.mrb[32].mxu0  ;;  %v3777_v21 = vpop.f32.mrb[32].mxu1 }
 0x196   : > { %v1787_v24 = vpop.f32.mrb[33].mxu0  ;;  %v2043_v25 = vpop.f32.mrb[33].mxu1 }
 0x197   : > { %v3779_v26 = vpop.f32.mrb[34].mxu0  ;;  %v3781_v27 = vpop.f32.mrb[34].mxu1 }
 0x198   : > { %v1790_v30 = vpop.f32.mrb[35].mxu0  ;;  %v2046_v31 = vpop.f32.mrb[35].mxu1 }
 0x19d   : > { %v3783_v32 = vpop.f32.mrb[36].mxu0  ;;  %v3785_v33 = vpop.f32.mrb[36].mxu1 }
 0x19e   : > { %v1795_v36 = vpop.f32.mrb[37].mxu0  ;;  %v2051_v37 = vpop.f32.mrb[37].mxu1 }
 0x19f   : > { %v3787_v38 = vpop.f32.mrb[38].mxu0  ;;  %v3789_v39 = vpop.f32.mrb[38].mxu1 }
 0x1a0   : > { %v1798_v42 = vpop.f32.mrb[39].mxu0  ;;  %v2054_v43 = vpop.f32.mrb[39].mxu1 }
 0x1a5   : > { %v3791_v44 = vpop.f32.mrb[40].mxu0  ;;  %v3793_v45 = vpop.f32.mrb[40].mxu1 }
 0x1a6   : > { %v1803_v48 = vpop.f32.mrb[41].mxu0  ;;  %v2059_v49 = vpop.f32.mrb[41].mxu1 }
 0x1a7   : > { %v3795_v52 = vpop.f32.mrb[42].mxu0  ;;  %v3797_v53 = vpop.f32.mrb[42].mxu1 }
 0x1a8   : > { %v1806_v58 = vpop.f32.mrb[43].mxu0  ;;  %v2062_v59 = vpop.f32.mrb[43].mxu1 }
 0x1ad   : > { %v3799_v0 = vpop.f32.mrb[44].mxu0  ;;  %v3801_v1 = vpop.f32.mrb[44].mxu1 }
 0x1ae   : > { %v1811_v6 = vpop.f32.mrb[45].mxu0  ;;  %v2067_v7 = vpop.f32.mrb[45].mxu1 }
 0x1af   : > { %v3803_v12 = vpop.f32.mrb[46].mxu0  ;;  %v3805_v13 = vpop.f32.mrb[46].mxu1 }
 0x1b0   : > { %v1814_v18 = vpop.f32.mrb[47].mxu0  ;;  %v2070_v19 = vpop.f32.mrb[47].mxu1 }
 0x1b5   : > { %v3807_v24 = vpop.f32.mrb[48].mxu0  ;;  %v3809_v25 = vpop.f32.mrb[48].mxu1 }
 0x1b6   : > { %4025 = vst [vmem:[#allocation3_spill] sm:$0xff] %v3809_v25  ;;  %v1819_v30 = vpop.f32.mrb[49].mxu0  ;;  %v2075_v31 = vpop.f32.mrb[49].mxu1 }
 0x1b7   : > { %v3811_v36 = vpop.f32.mrb[50].mxu0  ;;  %v3813_v37 = vpop.f32.mrb[50].mxu1 }
 0x1b8   : > { %4026 = vst [vmem:[#allocation4_spill] sm:$0xff] %v3811_v36  ;;  %4027 = vst [vmem:[#allocation5_spill] sm:$0xff] %v3813_v37  ;;  %v1822_v42 = vpop.f32.mrb[51].mxu0  ;;  %v2078_v43 = vpop.f32.mrb[51].mxu1 }
 0x1bd   : > { %v3815_v48 = vpop.f32.mrb[52].mxu0  ;;  %v3817_v49 = vpop.f32.mrb[52].mxu1 }
 0x1be   : > { %4028 = vst [vmem:[#allocation6_spill] sm:$0xff] %v3815_v48  ;;  %4029 = vst [vmem:[#allocation7_spill] sm:$0xff] %v3817_v49  ;;  %v1827_v58 = vpop.f32.mrb[53].mxu0  ;;  %v2083_v59 = vpop.f32.mrb[53].mxu1 }
 0x1bf   : > { %v3819_v6 = vpop.f32.mrb[54].mxu0  ;;  %v3821_v7 = vpop.f32.mrb[54].mxu1 }
 0x1c0   : > { %4030 = vst [vmem:[#allocation8_spill] sm:$0xff] %v3819_v6  ;;  %4031 = vst [vmem:[#allocation9_spill] sm:$0xff] %v3821_v7  ;;  %v1830_v18 = vpop.f32.mrb[55].mxu0  ;;  %v2086_v19 = vpop.f32.mrb[55].mxu1 }
 0x1c5   : > { %v3823_v30 = vpop.f32.mrb[56].mxu0  ;;  %v3825_v31 = vpop.f32.mrb[56].mxu1 }
 0x1c6   : > { %4032 = vst [vmem:[#allocation10_spill] sm:$0xff] %v3823_v30  ;;  %4033 = vst [vmem:[#allocation11_spill] sm:$0xff] %v3825_v31  ;;  %v1835_v37 = vpop.f32.mrb[57].mxu0  ;;  %v2091_v42 = vpop.f32.mrb[57].mxu1 }
 0x1c7   : > { %v3827_v43 = vpop.f32.mrb[58].mxu0  ;;  %v3829_v48 = vpop.f32.mrb[58].mxu1 }
 0x1c8   : > { %4034 = vst [vmem:[#allocation12_spill] sm:$0xff] %v3827_v43  ;;  %4035 = vst [vmem:[#allocation13_spill] sm:$0xff] %v3829_v48  ;;  %v1838_v49 = vpop.f32.mrb[59].mxu0  ;;  %v2094_v58 = vpop.f32.mrb[59].mxu1 }
 0x1cd   : > { %v3831_v59 = vpop.f32.mrb[60].mxu0  ;;  %v3833_v6 = vpop.f32.mrb[60].mxu1 }
 0x1ce   : > { %4036 = vst [vmem:[#allocation14_spill] sm:$0xff] %v3831_v59  ;;  %4037 = vst [vmem:[#allocation15_spill] sm:$0xff] %v3833_v6  ;;  %v1843_v7 = vpop.f32.mrb[61].mxu0  ;;  %v2099_v18 = vpop.f32.mrb[61].mxu1 }
 0x1cf   : > { %v3835_v36 = vpop.f32.mrb[62].mxu0  ;;  %v3837_v19 = vpop.f32.mrb[62].mxu1  ;;  %v3846_v7 = vld [vmem:[%s4023_s2] ss:$0 sm:$0xff] }
 0x1d0   : > { %4038 = vst [vmem:[#allocation16_spill] sm:$0xff] %v3835_v36  ;;  %4039 = vst [vmem:[#allocation17_spill] sm:$0xff] %v3837_v19  ;;  %v1846_v37 = vpop.f32.mrb[63].mxu0  ;;  %v2102_v42 = vpop.f32.mrb[63].mxu1 }
 0x1d5   : > { %v1849_v43 = vpop.f32.mrb[64].mxu0  ;;  %v2105_v31 = vpop.f32.mrb[64].mxu1 }
 0x1d6   : > { %v2232_v49 = vmax.f32 %v3685_v56, %v1849_v43  ;;  %v2264_v58 = vmax.f32 %v3687_v57, %v2105_v31  ;;  %v1851_v59 = vpop.f32.mrb[65].mxu0  ;;  %v2107_v6 = vpop.f32.mrb[65].mxu1 }
 0x1d7   : > { %v1852_v18 = vpop.f32.mrb[66].mxu0  ;;  %v2108_v19 = vpop.f32.mrb[66].mxu1 }
 0x1d8   : > { %v2296_v36 = vmax.f32 %v2232_v49, %v2264_v58  ;;  %v2233_v37 = vmax.f32 %v3691_v62, %v1852_v18  ;;  %v2265_v42 = vmax.f32 %v3693_v63, %v2108_v19  ;;  %v1854_v48 = vpop.f32.mrb[67].mxu0  ;;  %v2110_v30 = vpop.f32.mrb[67].mxu1 }
 0x1da   : > { %v2335_v56 = vadd.f32 %v3846_v7, %v2296_v36  ;;  %v2297_v57 = vmax.f32 %v2233_v37, %v2265_v42 }
 0x1dc   : > { %v2367_v31 = vmax.f32 %v2335_v56, 0.0  ;;  %v2336_v6 = vadd.f32 %v3846_v7, %v2297_v57 }
 0x1dd   : > { %v1857_v43 = vpop.f32.mrb[68].mxu0  ;;  %v2113_v62 = vpop.f32.mrb[68].mxu1 }
 0x1de   : > { %v2872_v63 = vpack.c.bf16 %v2367_v31, %v2367_v31  ;;  %v2368_v48 = vmax.f32 %v2336_v6, 0.0  ;;  %v2234_v30 = vmax.f32 %v3699_v4, %v1857_v43  ;;  %v2266_v36 = vmax.f32 %v3701_v5, %v2113_v62  ;;  %v1859_v59 = vpop.f32.mrb[69].mxu0  ;;  %v2115_v19 = vpop.f32.mrb[69].mxu1 }
 0x1df   : > { %v1860_v49 = vpop.f32.mrb[70].mxu0  ;;  %v2116_v58 = vpop.f32.mrb[70].mxu1 }
 0x1e0   : > { %2528 = vst.msk [vmem:[%s3855_s30] sm:$0xf] %vm2527_vm1, %v2872_v63  ;;  %v2873_v18 = vpack.c.bf16 %v2368_v48, %v2368_v48  ;;  %v2298_v37 = vmax.f32 %v2234_v30, %v2266_v36  ;;  %v2235_v42 = vmax.f32 %v3705_v10, %v1860_v49  ;;  %v2267_v56 = vmax.f32 %v3707_v11, %v2116_v58  ;;  %v1862_v57 = vpop.f32.mrb[71].mxu0  ;;  %v2118_v25 = vpop.f32.mrb[71].mxu1 }
 0x1e2   : > { %2529 = vst.msk [vmem:[%s3855_s30 + $0x4] sm:$0xf] %vm2527_vm1, %v2873_v18  ;;  %v2337_v4 = vadd.f32 %v3846_v7, %v2298_v37  ;;  %v2299_v5 = vmax.f32 %v2235_v42, %v2267_v56 }
 0x1e4   : > { %v2369_v31 = vmax.f32 %v2337_v4, 0.0  ;;  %v2338_v6 = vadd.f32 %v3846_v7, %v2299_v5 }
 0x1e5   : > { %v1865_v43 = vpop.f32.mrb[72].mxu0  ;;  %v2121_v62 = vpop.f32.mrb[72].mxu1 }
 0x1e6   : > { %v2874_v63 = vpack.c.bf16 %v2369_v31, %v2369_v31  ;;  %v2370_v48 = vmax.f32 %v2338_v6, 0.0  ;;  %v2236_v10 = vmax.f32 %v3713_v16, %v1865_v43  ;;  %v2268_v11 = vmax.f32 %v3715_v17, %v2121_v62  ;;  %v1867_v30 = vpop.f32.mrb[73].mxu0  ;;  %v2123_v25 = vpop.f32.mrb[73].mxu1 }
 0x1e7   : > { %v1868_v36 = vpop.f32.mrb[74].mxu0  ;;  %v2124_v59 = vpop.f32.mrb[74].mxu1 }
 0x1e8   : > { %2530 = vst.msk [vmem:[%s3855_s30 + $0x8] sm:$0xf] %vm2527_vm1, %v2874_v63  ;;  %v2875_v19 = vpack.c.bf16 %v2370_v48, %v2370_v48  ;;  %v2300_v49 = vmax.f32 %v2236_v10, %v2268_v11  ;;  %v2237_v58 = vmax.f32 %v3719_v22, %v1868_v36  ;;  %v2269_v18 = vmax.f32 %v3721_v23, %v2124_v59  ;;  %v1870_v37 = vpop.f32.mrb[75].mxu0  ;;  %v2126_v42 = vpop.f32.mrb[75].mxu1 }
 0x1ea   : > { %2531 = vst.msk [vmem:[%s3855_s30 + $0xc] sm:$0xf] %vm2527_vm1, %v2875_v19  ;;  %v2339_v16 = vadd.f32 %v3846_v7, %v2300_v49  ;;  %v2301_v17 = vmax.f32 %v2237_v58, %v2269_v18 }
 0x1ec   : > { %v2371_v56 = vmax.f32 %v2339_v16, 0.0  ;;  %v2340_v57 = vadd.f32 %v3846_v7, %v2301_v17 }
 0x1ed   : > { %v1873_v4 = vpop.f32.mrb[76].mxu0  ;;  %v2129_v5 = vpop.f32.mrb[76].mxu1 }
 0x1ee   : > { %v2876_v31 = vpack.c.bf16 %v2371_v56, %v2371_v56  ;;  %v2372_v6 = vmax.f32 %v2340_v57, 0.0  ;;  %v2238_v22 = vmax.f32 %v3727_v28, %v1873_v4  ;;  %v2270_v23 = vmax.f32 %v3729_v29, %v2129_v5  ;;  %v1875_v43 = vpop.f32.mrb[77].mxu0  ;;  %v2131_v62 = vpop.f32.mrb[77].mxu1 }
 0x1ef   : > { %v1876_v63 = vpop.f32.mrb[78].mxu0  ;;  %v2132_v48 = vpop.f32.mrb[78].mxu1 }
 0x1f0   : > { %2532 = vst.msk [vmem:[%s3855_s30 + $0x10] sm:$0xf] %vm2527_vm1, %v2876_v31  ;;  %v2877_v10 = vpack.c.bf16 %v2372_v6, %v2372_v6  ;;  %v2302_v11 = vmax.f32 %v2238_v22, %v2270_v23  ;;  %v2239_v30 = vmax.f32 %v3733_v34, %v1876_v63  ;;  %v2271_v25 = vmax.f32 %v3735_v35, %v2132_v48  ;;  %v1878_v36 = vpop.f32.mrb[79].mxu0  ;;  %v2134_v59 = vpop.f32.mrb[79].mxu1 }
 0x1f2   : > { %2533 = vst.msk [vmem:[%s3855_s30 + $0x14] sm:$0xf] %vm2527_vm1, %v2877_v10  ;;  %v2341_v28 = vadd.f32 %v3846_v7, %v2302_v11  ;;  %v2303_v29 = vmax.f32 %v2239_v30, %v2271_v25 }
 0x1f4   : > { %v2373_v19 = vmax.f32 %v2341_v28, 0.0  ;;  %v2342_v49 = vadd.f32 %v3846_v7, %v2303_v29 }
 0x1f5   : > { %v1881_v58 = vpop.f32.mrb[80].mxu0  ;;  %v2137_v18 = vpop.f32.mrb[80].mxu1 }
 0x1f6   : > { %v2878_v37 = vpack.c.bf16 %v2373_v19, %v2373_v19  ;;  %v2374_v42 = vmax.f32 %v2342_v49, 0.0  ;;  %v2240_v34 = vmax.f32 %v3741_v40, %v1881_v58  ;;  %v2272_v35 = vmax.f32 %v3743_v41, %v2137_v18  ;;  %v1883_v16 = vpop.f32.mrb[81].mxu0  ;;  %v2139_v17 = vpop.f32.mrb[81].mxu1 }
 0x1f7   : > { %v1884_v56 = vpop.f32.mrb[82].mxu0  ;;  %v2140_v57 = vpop.f32.mrb[82].mxu1 }
 0x1f8   : > { %2534 = vst.msk [vmem:[%s3855_s30 + $0x18] sm:$0xf] %vm2527_vm1, %v2878_v37  ;;  %v2879_v4 = vpack.c.bf16 %v2374_v42, %v2374_v42  ;;  %v2304_v5 = vmax.f32 %v2240_v34, %v2272_v35  ;;  %v2241_v31 = vmax.f32 %v3747_v46, %v1884_v56  ;;  %v2273_v6 = vmax.f32 %v3749_v47, %v2140_v57  ;;  %v1886_v22 = vpop.f32.mrb[83].mxu0  ;;  %v2142_v23 = vpop.f32.mrb[83].mxu1 }
 0x1fa   : > { %2535 = vst.msk [vmem:[%s3855_s30 + $0x1c] sm:$0xf] %vm2527_vm1, %v2879_v4  ;;  %v2343_v40 = vadd.f32 %v3846_v7, %v2304_v5  ;;  %v2305_v41 = vmax.f32 %v2241_v31, %v2273_v6 }
 0x1fc   : > { %v2375_v43 = vmax.f32 %v2343_v40, 0.0  ;;  %v2344_v62 = vadd.f32 %v3846_v7, %v2305_v41 }
 0x1fd   : > { %v1889_v63 = vpop.f32.mrb[84].mxu0  ;;  %v2145_v48 = vpop.f32.mrb[84].mxu1 }
 0x1fe   : > { %v2880_v10 = vpack.c.bf16 %v2375_v43, %v2375_v43  ;;  %v2376_v11 = vmax.f32 %v2344_v62, 0.0  ;;  %v2242_v46 = vmax.f32 %v3751_v50, %v1889_v63  ;;  %v2274_v47 = vmax.f32 %v3753_v51, %v2145_v48  ;;  %v1891_v30 = vpop.f32.mrb[85].mxu0  ;;  %v2147_v25 = vpop.f32.mrb[85].mxu1 }
 0x1ff   : > { %v1892_v36 = vpop.f32.mrb[86].mxu0  ;;  %v2148_v59 = vpop.f32.mrb[86].mxu1 }
 0x200   : > { %2536 = vst.msk [vmem:[%s3855_s30 + $0x20] sm:$0xf] %vm2527_vm1, %v2880_v10  ;;  %v2881_v28 = vpack.c.bf16 %v2376_v11, %v2376_v11  ;;  %v2306_v29 = vmax.f32 %v2242_v46, %v2274_v47  ;;  %v2243_v19 = vmax.f32 %v3755_v54, %v1892_v36  ;;  %v2275_v49 = vmax.f32 %v3757_v55, %v2148_v59  ;;  %v1894_v58 = vpop.f32.mrb[87].mxu0  ;;  %v2150_v18 = vpop.f32.mrb[87].mxu1 }
 0x202   : > { %2537 = vst.msk [vmem:[%s3855_s30 + $0x24] sm:$0xf] %vm2527_vm1, %v2881_v28  ;;  %v2345_v50 = vadd.f32 %v3846_v7, %v2306_v29  ;;  %v2307_v51 = vmax.f32 %v2243_v19, %v2275_v49 }
 0x204   : > { %v2377_v37 = vmax.f32 %v2345_v50, 0.0  ;;  %v2346_v42 = vadd.f32 %v3846_v7, %v2307_v51 }
 0x205   : > { %v1897_v34 = vpop.f32.mrb[88].mxu0  ;;  %v2153_v35 = vpop.f32.mrb[88].mxu1 }
 0x206   : > { %v2882_v16 = vpack.c.bf16 %v2377_v37, %v2377_v37  ;;  %v2378_v17 = vmax.f32 %v2346_v42, 0.0  ;;  %v2244_v54 = vmax.f32 %v3759_v60, %v1897_v34  ;;  %v2276_v55 = vmax.f32 %v3761_v61, %v2153_v35  ;;  %v1899_v56 = vpop.f32.mrb[89].mxu0  ;;  %v2155_v57 = vpop.f32.mrb[89].mxu1 }
 0x207   : > { %v1900_v4 = vpop.f32.mrb[90].mxu0  ;;  %v2156_v5 = vpop.f32.mrb[90].mxu1 }
 0x208   : > { %2538 = vst.msk [vmem:[%s3855_s30 + $0x28] sm:$0xf] %vm2527_vm1, %v2882_v16  ;;  %v2883_v31 = vpack.c.bf16 %v2378_v17, %v2378_v17  ;;  %v2308_v6 = vmax.f32 %v2244_v54, %v2276_v55  ;;  %v2245_v22 = vmax.f32 %v3763_v2, %v1900_v4  ;;  %v2277_v23 = vmax.f32 %v3765_v3, %v2156_v5  ;;  %v1902_v40 = vpop.f32.mrb[91].mxu0  ;;  %v2158_v41 = vpop.f32.mrb[91].mxu1 }
 0x20a   : > { %2539 = vst.msk [vmem:[%s3855_s30 + $0x2c] sm:$0xf] %vm2527_vm1, %v2883_v31  ;;  %v2347_v60 = vadd.f32 %v3846_v7, %v2308_v6  ;;  %v2309_v61 = vmax.f32 %v2245_v22, %v2277_v23 }
 0x20c   : > { %v2379_v43 = vmax.f32 %v2347_v60, 0.0  ;;  %v2348_v62 = vadd.f32 %v3846_v7, %v2309_v61 }
 0x20d   : > { %v1905_v63 = vpop.f32.mrb[92].mxu0  ;;  %v2161_v48 = vpop.f32.mrb[92].mxu1 }
 0x20e   : > { %v2884_v10 = vpack.c.bf16 %v2379_v43, %v2379_v43  ;;  %v2380_v11 = vmax.f32 %v2348_v62, 0.0  ;;  %v2246_v2 = vmax.f32 %v3767_v8, %v1905_v63  ;;  %v2278_v3 = vmax.f32 %v3769_v9, %v2161_v48  ;;  %v1907_v46 = vpop.f32.mrb[93].mxu0  ;;  %v2163_v47 = vpop.f32.mrb[93].mxu1 }
 0x20f   : > { %v1908_v30 = vpop.f32.mrb[94].mxu0  ;;  %v2164_v25 = vpop.f32.mrb[94].mxu1 }
 0x210   : > { %2540 = vst.msk [vmem:[%s3855_s30 + $0x30] sm:$0xf] %vm2527_vm1, %v2884_v10  ;;  %v2885_v36 = vpack.c.bf16 %v2380_v11, %v2380_v11  ;;  %v2310_v59 = vmax.f32 %v2246_v2, %v2278_v3  ;;  %v2247_v28 = vmax.f32 %v3771_v14, %v1908_v30  ;;  %v2279_v29 = vmax.f32 %v3773_v15, %v2164_v25  ;;  %v1910_v19 = vpop.f32.mrb[95].mxu0  ;;  %v2166_v49 = vpop.f32.mrb[95].mxu1 }
 0x212   : > { %2541 = vst.msk [vmem:[%s3855_s30 + $0x34] sm:$0xf] %vm2527_vm1, %v2885_v36  ;;  %v2349_v8 = vadd.f32 %v3846_v7, %v2310_v59  ;;  %v2311_v9 = vmax.f32 %v2247_v28, %v2279_v29 }
 0x214   : > { %v2381_v58 = vmax.f32 %v2349_v8, 0.0  ;;  %v2350_v18 = vadd.f32 %v3846_v7, %v2311_v9 }
 0x215   : > { %v1913_v50 = vpop.f32.mrb[96].mxu0  ;;  %v2169_v51 = vpop.f32.mrb[96].mxu1 }
 0x216   : > { %v2886_v37 = vpack.c.bf16 %v2381_v58, %v2381_v58  ;;  %v2382_v42 = vmax.f32 %v2350_v18, 0.0  ;;  %v2248_v14 = vmax.f32 %v3775_v20, %v1913_v50  ;;  %v2280_v15 = vmax.f32 %v3777_v21, %v2169_v51  ;;  %v1915_v34 = vpop.f32.mrb[97].mxu0  ;;  %v2171_v35 = vpop.f32.mrb[97].mxu1 }
 0x217   : > { %v1916_v16 = vpop.f32.mrb[98].mxu0  ;;  %v2172_v17 = vpop.f32.mrb[98].mxu1 }
 0x218   : > { %2542 = vst.msk [vmem:[%s3855_s30 + $0x38] sm:$0xf] %vm2527_vm1, %v2886_v37  ;;  %v2887_v54 = vpack.c.bf16 %v2382_v42, %v2382_v42  ;;  %v2312_v55 = vmax.f32 %v2248_v14, %v2280_v15  ;;  %v2249_v56 = vmax.f32 %v3779_v26, %v1916_v16  ;;  %v2281_v57 = vmax.f32 %v3781_v27, %v2172_v17  ;;  %v1918_v4 = vpop.f32.mrb[99].mxu0  ;;  %v2174_v5 = vpop.f32.mrb[99].mxu1 }
 0x21a   : > { %2543 = vst.msk [vmem:[%s3855_s30 + $0x3c] sm:$0xf] %vm2527_vm1, %v2887_v54  ;;  %v2351_v20 = vadd.f32 %v3846_v7, %v2312_v55  ;;  %v2313_v21 = vmax.f32 %v2249_v56, %v2281_v57 }
 0x21c   : > { %v2383_v31 = vmax.f32 %v2351_v20, 0.0  ;;  %v2352_v6 = vadd.f32 %v3846_v7, %v2313_v21 }
 0x21d   : > { %v1921_v22 = vpop.f32.mrb[100].mxu0  ;;  %v2177_v23 = vpop.f32.mrb[100].mxu1 }
 0x21e   : > { %v2888_v40 = vpack.c.bf16 %v2383_v31, %v2383_v31  ;;  %v2384_v41 = vmax.f32 %v2352_v6, 0.0  ;;  %v2250_v26 = vmax.f32 %v3783_v32, %v1921_v22  ;;  %v2282_v27 = vmax.f32 %v3785_v33, %v2177_v23  ;;  %v1923_v60 = vpop.f32.mrb[101].mxu0  ;;  %v2179_v61 = vpop.f32.mrb[101].mxu1 }
 0x21f   : > { %v1924_v43 = vpop.f32.mrb[102].mxu0  ;;  %v2180_v62 = vpop.f32.mrb[102].mxu1 }
 0x220   : > { %2544 = vst.msk [vmem:[%s3855_s30 + $0x40] sm:$0xf] %vm2527_vm1, %v2888_v40  ;;  %v2889_v63 = vpack.c.bf16 %v2384_v41, %v2384_v41  ;;  %v2314_v48 = vmax.f32 %v2250_v26, %v2282_v27  ;;  %v2251_v10 = vmax.f32 %v3787_v38, %v1924_v43  ;;  %v2283_v11 = vmax.f32 %v3789_v39, %v2180_v62  ;;  %v1926_v2 = vpop.f32.mrb[103].mxu0  ;;  %v2182_v3 = vpop.f32.mrb[103].mxu1  ;;  %v4040_v26 = vld [vmem:[#allocation3_spill] sm:$0xff] }
 0x222   : > { %2545 = vst.msk [vmem:[%s3855_s30 + $0x44] sm:$0xf] %vm2527_vm1, %v2889_v63  ;;  %v2353_v32 = vadd.f32 %v3846_v7, %v2314_v48  ;;  %v2315_v33 = vmax.f32 %v2251_v10, %v2283_v11  ;;  %v4041_v48 = vld [vmem:[#allocation4_spill] sm:$0xff]  ;;  %v4042_v11 = vld [vmem:[#allocation5_spill] sm:$0xff] }
 0x224   : > { %v2385_v46 = vmax.f32 %v2353_v32, 0.0  ;;  %v2354_v47 = vadd.f32 %v3846_v7, %v2315_v33 }
 0x225   : > { %v1929_v30 = vpop.f32.mrb[104].mxu0  ;;  %v2185_v25 = vpop.f32.mrb[104].mxu1 }
 0x226   : > { %v2890_v36 = vpack.c.bf16 %v2385_v46, %v2385_v46  ;;  %v2386_v59 = vmax.f32 %v2354_v47, 0.0  ;;  %v2252_v38 = vmax.f32 %v3791_v44, %v1929_v30  ;;  %v2284_v39 = vmax.f32 %v3793_v45, %v2185_v25  ;;  %v1931_v28 = vpop.f32.mrb[105].mxu0  ;;  %v2187_v29 = vpop.f32.mrb[105].mxu1 }
 0x227   : > { %v1932_v19 = vpop.f32.mrb[106].mxu0  ;;  %v2188_v49 = vpop.f32.mrb[106].mxu1  ;;  %v4044_v28 = vld [vmem:[#allocation7_spill] sm:$0xff] }
 0x228   : > { %2546 = vst.msk [vmem:[%s3855_s30 + $0x48] sm:$0xf] %vm2527_vm1, %v2890_v36  ;;  %v2891_v8 = vpack.c.bf16 %v2386_v59, %v2386_v59  ;;  %v2316_v9 = vmax.f32 %v2252_v38, %v2284_v39  ;;  %v2253_v58 = vmax.f32 %v3795_v52, %v1932_v19  ;;  %v2285_v18 = vmax.f32 %v3797_v53, %v2188_v49  ;;  %v1934_v50 = vpop.f32.mrb[107].mxu0  ;;  %v2190_v51 = vpop.f32.mrb[107].mxu1  ;;  %v4043_v38 = vld [vmem:[#allocation6_spill] sm:$0xff] }
 0x229   : > { %v4045_v50 = vld [vmem:[#allocation8_spill] sm:$0xff] }
 0x22a   : > { %2547 = vst.msk [vmem:[%s3855_s30 + $0x4c] sm:$0xf] %vm2527_vm1, %v2891_v8  ;;  %v2355_v44 = vadd.f32 %v3846_v7, %v2316_v9  ;;  %v2317_v45 = vmax.f32 %v2253_v58, %v2285_v18 }
 0x22c   : > { %v2387_v37 = vmax.f32 %v2355_v44, 0.0  ;;  %v2356_v42 = vadd.f32 %v3846_v7, %v2317_v45  ;;  %v4046_v44 = vld [vmem:[#allocation9_spill] sm:$0xff] }
 0x22d   : > { %v1937_v14 = vpop.f32.mrb[108].mxu0  ;;  %v2193_v15 = vpop.f32.mrb[108].mxu1 }
 0x22e   : > { %v2892_v34 = vpack.c.bf16 %v2387_v37, %v2387_v37  ;;  %v2388_v35 = vmax.f32 %v2356_v42, 0.0  ;;  %v2254_v52 = vmax.f32 %v3799_v0, %v1937_v14  ;;  %v2286_v53 = vmax.f32 %v3801_v1, %v2193_v15  ;;  %v1939_v16 = vpop.f32.mrb[109].mxu0  ;;  %v2195_v17 = vpop.f32.mrb[109].mxu1 }
 0x22f   : > { %v1940_v54 = vpop.f32.mrb[110].mxu0  ;;  %v2196_v55 = vpop.f32.mrb[110].mxu1 }
 0x230   : > { %2548 = vst.msk [vmem:[%s3855_s30 + $0x50] sm:$0xf] %vm2527_vm1, %v2892_v34  ;;  %v2893_v56 = vpack.c.bf16 %v2388_v35, %v2388_v35  ;;  %v2318_v57 = vmax.f32 %v2254_v52, %v2286_v53  ;;  %v2255_v4 = vmax.f32 %v3803_v12, %v1940_v54  ;;  %v2287_v5 = vmax.f32 %v3805_v13, %v2196_v55  ;;  %v1942_v20 = vpop.f32.mrb[111].mxu0  ;;  %v2198_v21 = vpop.f32.mrb[111].mxu1  ;;  %v4047_v54 = vld [vmem:[#allocation10_spill] sm:$0xff] }
 0x232   : > { %2549 = vst.msk [vmem:[%s3855_s30 + $0x54] sm:$0xf] %vm2527_vm1, %v2893_v56  ;;  %v2357_v0 = vadd.f32 %v3846_v7, %v2318_v57  ;;  %v2319_v1 = vmax.f32 %v2255_v4, %v2287_v5  ;;  %v4048_v56 = vld [vmem:[#allocation11_spill] sm:$0xff] }
 0x234   : > { %v2389_v31 = vmax.f32 %v2357_v0, 0.0  ;;  %v2358_v6 = vadd.f32 %v3846_v7, %v2319_v1 }
 0x235   : > { %v1945_v22 = vpop.f32.mrb[112].mxu0  ;;  %v2201_v23 = vpop.f32.mrb[112].mxu1 }
 0x236   : > { %v2894_v40 = vpack.c.bf16 %v2389_v31, %v2389_v31  ;;  %v2390_v41 = vmax.f32 %v2358_v6, 0.0  ;;  %v2256_v12 = vmax.f32 %v3807_v24, %v1945_v22  ;;  %v2288_v13 = vmax.f32 %v4040_v26, %v2201_v23  ;;  %v1947_v27 = vpop.f32.mrb[113].mxu0  ;;  %v2203_v60 = vpop.f32.mrb[113].mxu1  ;;  %v4049_v31 = vld [vmem:[#allocation12_spill] sm:$0xff]  ;;  %v4050_v22 = vld [vmem:[#allocation13_spill] sm:$0xff] }
 0x237   : > { %v1948_v61 = vpop.f32.mrb[114].mxu0  ;;  %v2204_v43 = vpop.f32.mrb[114].mxu1 }
 0x238   : > { %2550 = vst.msk [vmem:[%s3855_s30 + $0x58] sm:$0xf] %vm2527_vm1, %v2894_v40  ;;  %v2895_v62 = vpack.c.bf16 %v2390_v41, %v2390_v41  ;;  %v2320_v63 = vmax.f32 %v2256_v12, %v2288_v13  ;;  %v2257_v10 = vmax.f32 %v4041_v48, %v1948_v61  ;;  %v2289_v2 = vmax.f32 %v4042_v11, %v2204_v43  ;;  %v1950_v3 = vpop.f32.mrb[115].mxu0  ;;  %v2206_v32 = vpop.f32.mrb[115].mxu1 }
 0x23a   : > { %2551 = vst.msk [vmem:[%s3855_s30 + $0x5c] sm:$0xf] %vm2527_vm1, %v2895_v62  ;;  %v2359_v24 = vadd.f32 %v3846_v7, %v2320_v63  ;;  %v2321_v33 = vmax.f32 %v2257_v10, %v2289_v2  ;;  %v4051_v63 = vld [vmem:[#allocation14_spill] sm:$0xff]  ;;  %v4052_v10 = vld [vmem:[#allocation15_spill] sm:$0xff] }
 0x23c   : > { %v2391_v46 = vmax.f32 %v2359_v24, 0.0  ;;  %v2360_v47 = vadd.f32 %v3846_v7, %v2321_v33 }
 0x23d   : > { %v1953_v30 = vpop.f32.mrb[116].mxu0  ;;  %v2209_v25 = vpop.f32.mrb[116].mxu1 }
 0x23e   : > { %v2896_v36 = vpack.c.bf16 %v2391_v46, %v2391_v46  ;;  %v2392_v59 = vmax.f32 %v2360_v47, 0.0  ;;  %v2258_v39 = vmax.f32 %v4043_v38, %v1953_v30  ;;  %v2290_v29 = vmax.f32 %v4044_v28, %v2209_v25  ;;  %v1955_v19 = vpop.f32.mrb[117].mxu0  ;;  %v2211_v49 = vpop.f32.mrb[117].mxu1  ;;  %v4053_v47 = vld [vmem:[#allocation16_spill] sm:$0xff]  ;;  %v4054_v25 = vld [vmem:[#allocation17_spill] sm:$0xff] }
 0x23f   : > { %v1956_v8 = vpop.f32.mrb[118].mxu0  ;;  %v2212_v9 = vpop.f32.mrb[118].mxu1 }
 0x240   : > { %2552 = vst.msk [vmem:[%s3855_s30 + $0x60] sm:$0xf] %vm2527_vm1, %v2896_v36  ;;  %v2897_v58 = vpack.c.bf16 %v2392_v59, %v2392_v59  ;;  %v2322_v18 = vmax.f32 %v2258_v39, %v2290_v29  ;;  %v2259_v51 = vmax.f32 %v4045_v50, %v1956_v8  ;;  %v2291_v45 = vmax.f32 %v4046_v44, %v2212_v9  ;;  %v1958_v37 = vpop.f32.mrb[119].mxu0  ;;  %v2214_v42 = vpop.f32.mrb[119].mxu1 }
 0x242   : > { %2553 = vst.msk [vmem:[%s3855_s30 + $0x64] sm:$0xf] %vm2527_vm1, %v2897_v58  ;;  %v2361_v14 = vadd.f32 %v3846_v7, %v2322_v18  ;;  %v2323_v15 = vmax.f32 %v2259_v51, %v2291_v45 }
 0x244   : > { %v2393_v34 = vmax.f32 %v2361_v14, 0.0  ;;  %v2362_v35 = vadd.f32 %v3846_v7, %v2323_v15 }
 0x245   : > { %v1961_v52 = vpop.f32.mrb[120].mxu0  ;;  %v2217_v53 = vpop.f32.mrb[120].mxu1 }
 0x246   : > { %v2898_v16 = vpack.c.bf16 %v2393_v34, %v2393_v34  ;;  %v2394_v17 = vmax.f32 %v2362_v35, 0.0  ;;  %v2260_v55 = vmax.f32 %v4047_v54, %v1961_v52  ;;  %v2292_v57 = vmax.f32 %v4048_v56, %v2217_v53  ;;  %v1963_v4 = vpop.f32.mrb[121].mxu0  ;;  %v2219_v5 = vpop.f32.mrb[121].mxu1 }
 0x247   : > { %v1964_v20 = vpop.f32.mrb[122].mxu0  ;;  %v2220_v21 = vpop.f32.mrb[122].mxu1 }
 0x248   : > { %2554 = vst.msk [vmem:[%s3855_s30 + $0x68] sm:$0xf] %vm2527_vm1, %v2898_v16  ;;  %v2899_v0 = vpack.c.bf16 %v2394_v17, %v2394_v17  ;;  %v2324_v1 = vmax.f32 %v2260_v55, %v2292_v57  ;;  %v2261_v6 = vmax.f32 %v4049_v31, %v1964_v20  ;;  %v2293_v23 = vmax.f32 %v4050_v22, %v2220_v21  ;;  %v1966_v40 = vpop.f32.mrb[123].mxu0  ;;  %v2222_v41 = vpop.f32.mrb[123].mxu1 }
 0x24a   : > { %2555 = vst.msk [vmem:[%s3855_s30 + $0x6c] sm:$0xf] %vm2527_vm1, %v2899_v0  ;;  %v2363_v12 = vadd.f32 %v3846_v7, %v2324_v1  ;;  %v2325_v26 = vmax.f32 %v2261_v6, %v2293_v23 }
 0x24c   : > { %v2395_v13 = vmax.f32 %v2363_v12, 0.0  ;;  %v2364_v27 = vadd.f32 %v3846_v7, %v2325_v26 }
 0x24d   : > { %v1969_v60 = vpop.f32.mrb[124].mxu0  ;;  %v2225_v61 = vpop.f32.mrb[124].mxu1 }
 0x24e   : > { %v2900_v43 = vpack.c.bf16 %v2395_v13, %v2395_v13  ;;  %v2396_v62 = vmax.f32 %v2364_v27, 0.0  ;;  %v2262_v48 = vmax.f32 %v4051_v63, %v1969_v60  ;;  %v2294_v11 = vmax.f32 %v4052_v10, %v2225_v61  ;;  %v1971_v2 = vpop.f32.mrb[125].mxu0  ;;  %v2227_v3 = vpop.f32.mrb[125].mxu1 }
 0x24f   : > { %v1972_v32 = vpop.f32.mrb[126].mxu0  ;;  %v2228_v24 = vpop.f32.mrb[126].mxu1 }
 0x250   : > { %2556 = vst.msk [vmem:[%s3855_s30 + $0x70] sm:$0xf] %vm2527_vm1, %v2900_v43  ;;  %v2901_v33 = vpack.c.bf16 %v2396_v62, %v2396_v62  ;;  %v2326_v46 = vmax.f32 %v2262_v48, %v2294_v11  ;;  %v2263_v30 = vmax.f32 %v4053_v47, %v1972_v32  ;;  %v2295_v36 = vmax.f32 %v4054_v25, %v2228_v24  ;;  %v1974_v59 = vpop.f32.mrb[127].mxu0  ;;  %v2230_v38 = vpop.f32.mrb[127].mxu1 }
 0x252   : > { %2557 = vst.msk [vmem:[%s3855_s30 + $0x74] sm:$0xf] %vm2527_vm1, %v2901_v33  ;;  %v2365_v39 = vadd.f32 %v3846_v7, %v2326_v46  ;;  %v2327_v28 = vmax.f32 %v2263_v30, %v2295_v36 }
 0x254   : > { %v2397_v29 = vmax.f32 %v2365_v39, 0.0  ;;  %v2366_v19 = vadd.f32 %v3846_v7, %v2327_v28 }
 0x256   : > { %v2902_v49 = vpack.c.bf16 %v2397_v29, %v2397_v29  ;;  %v2398_v8 = vmax.f32 %v2366_v19, 0.0 }
 0x258   : > { %2558 = vst.msk [vmem:[%s3855_s30 + $0x78] sm:$0xf] %vm2527_vm1, %v2902_v49  ;;  %v2903_v9 = vpack.c.bf16 %v2398_v8, %v2398_v8 }
 0x25a   : > { %2559 = vst.msk [vmem:[%s3855_s30 + $0x7c] sm:$0xf] %vm2527_vm1, %v2903_v9 }
 0x25b PF: > { %p10_p9 = scmp.ge.s32.totalorder %s3210_s16, 4   ;;  %s4055_s12 = smov %s3166_s13 }
 0x25c   : > { %s4056_s13 = smov %s3219_s19  ;;  %s4057_s14 = smov %s3210_s16 }
 0x25d   :  { %12 = sbr.rel (!%p10_p9) target bundleno = 2 (0x2), region = 105 }

// kernel: iris_forward.6
= control target key start
LH: loop header
LB: loop body
LE: loop exit
PB: predicated region body
PF: predicated region fallthrough
CT: control target
= control target key end

     0   :  { %s1813_s12 = smov 0   ;;  %s1815_s13 = smov 0   ;;  %s2243_s0 = inlined_call_operand.vmem [shape: bf16[4,128,288], index: 0, kind: input, shape index: {}]   ;;  %s2244_s1 = inlined_call_operand.vmem [shape: bf16[288,64], index: 1, kind: input, shape index: {}]   ;;  %s2245_s2 = inlined_call_operand.vmem [shape: f32[1,64], index: 2, kind: input, shape index: {}]   ;;  %s2246_s3 = inlined_call_operand.vmem [shape: bf16[128,64], index: 3, kind: output, shape index: {}]  }
   0x1   :  { %s1817_s14 = smov 0  }
   0x2 LB: > { %s1303_s15 = sadd.s32 4294967295, %s1791_s14   ;;  %s1830_s16 = sadd.s32 1, %s1791_s14   ;;  %s1791_s14 = sphi %s1817_s14, %s2249_s14   ;;  %s1787_s13 = sphi %s1815_s13, %s2248_s13   ;;  %s1783_s12 = sphi %s1813_s12, %s2247_s12  }
   0x3   : > { %s17_s17 = ssub.s32 %s1791_s14, %s1830_s16  ;;  %s20_s18 = sadd.s32 1, %s1787_s13 }
   0x4   : > { %p18_p0 = scmp.eq.s32.totalorder %s17_s17, 0  ;;  %p27_p1 = scmp.ne.s32.totalorder %s1787_s13, %s1783_s12 }
   0x5   : > { %p28_p2 = scmp.eq.s32.totalorder %s1791_s14, 0  ;;  %p1306_p4 = scmp.ge.s32.totalorder %s1791_s14, 2 }
   0x6   : > { %s1839_s19 = scalar_select %p18_p0, %s1787_s13, %s20_s18  }
   0x7   : > { %p29_p3 = por %p28_p2, %p27_p1  ;;  %127 = sbr.rel (%p1306_p4) target bundleno = 56 (0x38), region = 24 }
   0xe   : > { %130 = sbr.rel (!%p29_p3) target bundleno = 56 (0x38), region = 28  ;;  %s132_s20 = sand.u32 (%p29_p3), 1, %s1787_s13  }
   0xf   : > { %s1661_s21 = smul.u32 (%p29_p3), 96, %s1791_s14 }
  0x10   : > { %s1660_s22 = smul.u32 (%p29_p3), 384, %s132_s20 }
  0x11   : > { %s1847_s25 = scalar_lea.vmem (%p29_p3), %s2243_s0, %s1661_s21 }
  0x12   : > { %v153_v0 = vld [vmem:[%s1847_s25] sm:$0xff] (%p29_p3)  ;;  %v155_v1 = vld [vmem:[%s1847_s25 + $0xc] sm:$0xff] (%p29_p3)  ;;  %v157_v2 = vld [vmem:[%s1847_s25 + $0x18] sm:$0xff] (%p29_p3)  ;;  %s1852_s26 = scalar_lea.vmem (%p29_p3), [#allocation2], %s1660_s22 }
  0x13   : > { %154 = vst [vmem:[%s1852_s26] sm:$0xff] (%p29_p3), %v153_v0  ;;  %156 = vst [vmem:[%s1852_s26 + $0xc] sm:$0xff] (%p29_p3), %v155_v1  ;;  %v159_v3 = vld [vmem:[%s1847_s25 + $0x24] sm:$0xff] (%p29_p3)  ;;  %v161_v4 = vld [vmem:[%s1847_s25 + $0x30] sm:$0xff] (%p29_p3) }
  0x14   : > { %158 = vst [vmem:[%s1852_s26 + $0x18] sm:$0xff] (%p29_p3), %v157_v2  ;;  %v163_v5 = vld [vmem:[%s1847_s25 + $0x3c] sm:$0xff] (%p29_p3)  ;;  %160 = vst [vmem:[%s1852_s26 + $0x24] sm:$0xff] (%p29_p3), %v159_v3  ;;  %v165_v6 = vld [vmem:[%s1847_s25 + $0x48] sm:$0xff] (%p29_p3) }
  0x15   : > { %162 = vst [vmem:[%s1852_s26 + $0x30] sm:$0xff] %v161_v4  ;;  %164 = vst [vmem:[%s1852_s26 + $0x3c] sm:$0xff] %v163_v5  ;;  %v167_v7 = vld [vmem:[%s1847_s25 + $0x54] sm:$0xff]  ;;  %v169_v8 = vld [vmem:[%s1847_s25 + $0xc0] sm:$0xff] }
  0x16   : > { %166 = vst [vmem:[%s1852_s26 + $0x48] sm:$0xff] %v165_v6  ;;  %168 = vst [vmem:[%s1852_s26 + $0x54] sm:$0xff] %v167_v7  ;;  %v171_v9 = vld [vmem:[%s1847_s25 + $0xcc] sm:$0xff]  ;;  %v173_v10 = vld [vmem:[%s1847_s25 + $0xd8] sm:$0xff] }
  0x17   : > { %170 = vst [vmem:[%s1852_s26 + $0x60] sm:$0xff] %v169_v8  ;;  %v175_v11 = vld [vmem:[%s1847_s25 + $0xe4] sm:$0xff]  ;;  %172 = vst [vmem:[%s1852_s26 + $0x6c] sm:$0xff] %v171_v9  ;;  %v177_v12 = vld [vmem:[%s1847_s25 + $0xf0] sm:$0xff] }
  0x18   : > { %174 = vst [vmem:[%s1852_s26 + $0x78] sm:$0xff] %v173_v10  ;;  %176 = vst [vmem:[%s1852_s26 + $0x84] sm:$0xff] %v175_v11  ;;  %v179_v13 = vld [vmem:[%s1847_s25 + $0xfc] sm:$0xff]  ;;  %v181_v14 = vld [vmem:[%s1847_s25 + $0x108] sm:$0xff] }
  0x19   : > { %178 = vst [vmem:[%s1852_s26 + $0x90] sm:$0xff] %v177_v12  ;;  %180 = vst [vmem:[%s1852_s26 + $0x9c] sm:$0xff] %v179_v13  ;;  %v183_v15 = vld [vmem:[%s1847_s25 + $0x114] sm:$0xff]  ;;  %v185_v16 = vld [vmem:[%s1847_s25 + $0x180] sm:$0xff] }
  0x1a   : > { %182 = vst [vmem:[%s1852_s26 + $0xa8] sm:$0xff] %v181_v14  ;;  %v187_v17 = vld [vmem:[%s1847_s25 + $0x18c] sm:$0xff]  ;;  %184 = vst [vmem:[%s1852_s26 + $0xb4] sm:$0xff] %v183_v15  ;;  %v189_v18 = vld [vmem:[%s1847_s25 + $0x198] sm:$0xff] }
  0x1b   : > { %186 = vst [vmem:[%s1852_s26 + $0xc0] sm:$0xff] %v185_v16  ;;  %188 = vst [vmem:[%s1852_s26 + $0xcc] sm:$0xff] %v187_v17  ;;  %v191_v19 = vld [vmem:[%s1847_s25 + $0x1a4] sm:$0xff]  ;;  %v193_v20 = vld [vmem:[%s1847_s25 + $0x1b0] sm:$0xff] }
  0x1c   : > { %190 = vst [vmem:[%s1852_s26 + $0xd8] sm:$0xff] %v189_v18  ;;  %192 = vst [vmem:[%s1852_s26 + $0xe4] sm:$0xff] %v191_v19  ;;  %v195_v21 = vld [vmem:[%s1847_s25 + $0x1bc] sm:$0xff]  ;;  %v197_v22 = vld [vmem:[%s1847_s25 + $0x1c8] sm:$0xff] }
  0x1d   : > { %194 = vst [vmem:[%s1852_s26 + $0xf0] sm:$0xff] %v193_v20  ;;  %v199_v23 = vld [vmem:[%s1847_s25 + $0x1d4] sm:$0xff]  ;;  %196 = vst [vmem:[%s1852_s26 + $0xfc] sm:$0xff] %v195_v21  ;;  %v201_v24 = vld [vmem:[%s1847_s25 + $0x240] sm:$0xff] }
  0x1e   : > { %198 = vst [vmem:[%s1852_s26 + $0x108] sm:$0xff] %v197_v22  ;;  %200 = vst [vmem:[%s1852_s26 + $0x114] sm:$0xff] %v199_v23  ;;  %v203_v25 = vld [vmem:[%s1847_s25 + $0x24c] sm:$0xff]  ;;  %v205_v26 = vld [vmem:[%s1847_s25 + $0x258] sm:$0xff] }
  0x1f   : > { %202 = vst [vmem:[%s1852_s26 + $0x120] sm:$0xff] %v201_v24  ;;  %204 = vst [vmem:[%s1852_s26 + $0x12c] sm:$0xff] %v203_v25  ;;  %v207_v27 = vld [vmem:[%s1847_s25 + $0x264] sm:$0xff]  ;;  %v209_v28 = vld [vmem:[%s1847_s25 + $0x270] sm:$0xff] }
  0x20   : > { %206 = vst [vmem:[%s1852_s26 + $0x138] sm:$0xff] %v205_v26  ;;  %v211_v29 = vld [vmem:[%s1847_s25 + $0x27c] sm:$0xff]  ;;  %208 = vst [vmem:[%s1852_s26 + $0x144] sm:$0xff] %v207_v27  ;;  %v213_v30 = vld [vmem:[%s1847_s25 + $0x288] sm:$0xff] }
  0x21   : > { %210 = vst [vmem:[%s1852_s26 + $0x150] sm:$0xff] %v209_v28  ;;  %212 = vst [vmem:[%s1852_s26 + $0x15c] sm:$0xff] %v211_v29  ;;  %v215_v31 = vld [vmem:[%s1847_s25 + $0x294] sm:$0xff]  ;;  %v1310_v32 = vld [vmem:[%s1847_s25 + $0x8] sm:$0xf] }
  0x22   : > { %214 = vst [vmem:[%s1852_s26 + $0x168] sm:$0xff] %v213_v30  ;;  %216 = vst [vmem:[%s1852_s26 + $0x174] sm:$0xff] %v215_v31  ;;  %v1312_v33 = vld [vmem:[%s1847_s25 + $0x14] sm:$0xf]  ;;  %v1314_v34 = vld [vmem:[%s1847_s25 + $0x20] sm:$0xf] }
  0x23   : > { %1311 = vst [vmem:[%s1852_s26 + $0x8] sm:$0xf] %v1310_v32  ;;  %v1316_v35 = vld [vmem:[%s1847_s25 + $0x2c] sm:$0xf]  ;;  %1313 = vst [vmem:[%s1852_s26 + $0x14] sm:$0xf] %v1312_v33 }
  0x24   : > { %1315 = vst [vmem:[%s1852_s26 + $0x20] sm:$0xf] %v1314_v34  ;;  %1317 = vst [vmem:[%s1852_s26 + $0x2c] sm:$0xf] %v1316_v35  ;;  %v1318_v36 = vld [vmem:[%s1847_s25 + $0x38] sm:$0xf] }
  0x25   : > { %v1320_v37 = vld [vmem:[%s1847_s25 + $0x44] sm:$0xf]  ;;  %v1322_v38 = vld [vmem:[%s1847_s25 + $0x50] sm:$0xf]  ;;  %1319 = vst [vmem:[%s1852_s26 + $0x38] sm:$0xf] %v1318_v36 }
  0x26   : > { %1321 = vst [vmem:[%s1852_s26 + $0x44] sm:$0xf] %v1320_v37  ;;  %1323 = vst [vmem:[%s1852_s26 + $0x50] sm:$0xf] %v1322_v38  ;;  %v1324_v39 = vld [vmem:[%s1847_s25 + $0x5c] sm:$0xf] }
  0x27   : > { %v1326_v40 = vld [vmem:[%s1847_s25 + $0xc8] sm:$0xf]  ;;  %v1328_v41 = vld [vmem:[%s1847_s25 + $0xd4] sm:$0xf]  ;;  %1325 = vst [vmem:[%s1852_s26 + $0x5c] sm:$0xf] %v1324_v39 }
  0x28   : > { %1327 = vst [vmem:[%s1852_s26 + $0x68] sm:$0xf] %v1326_v40  ;;  %1329 = vst [vmem:[%s1852_s26 + $0x74] sm:$0xf] %v1328_v41  ;;  %v1330_v42 = vld [vmem:[%s1847_s25 + $0xe0] sm:$0xf] }
  0x29   : > { %v1332_v43 = vld [vmem:[%s1847_s25 + $0xec] sm:$0xf]  ;;  %v1334_v44 = vld [vmem:[%s1847_s25 + $0xf8] sm:$0xf]  ;;  %1331 = vst [vmem:[%s1852_s26 + $0x80] sm:$0xf] %v1330_v42 }
  0x2a   : > { %1333 = vst [vmem:[%s1852_s26 + $0x8c] sm:$0xf] %v1332_v43  ;;  %1335 = vst [vmem:[%s1852_s26 + $0x98] sm:$0xf] %v1334_v44  ;;  %v1336_v45 = vld [vmem:[%s1847_s25 + $0x104] sm:$0xf] }
  0x2b   : > { %v1338_v46 = vld [vmem:[%s1847_s25 + $0x110] sm:$0xf]  ;;  %v1340_v47 = vld [vmem:[%s1847_s25 + $0x11c] sm:$0xf]  ;;  %1337 = vst [vmem:[%s1852_s26 + $0xa4] sm:$0xf] %v1336_v45 }
  0x2c   : > { %1339 = vst [vmem:[%s1852_s26 + $0xb0] sm:$0xf] %v1338_v46  ;;  %1341 = vst [vmem:[%s1852_s26 + $0xbc] sm:$0xf] %v1340_v47  ;;  %v1342_v48 = vld [vmem:[%s1847_s25 + $0x188] sm:$0xf] }
  0x2d   : > { %v1344_v49 = vld [vmem:[%s1847_s25 + $0x194] sm:$0xf]  ;;  %v1346_v50 = vld [vmem:[%s1847_s25 + $0x1a0] sm:$0xf]  ;;  %1343 = vst [vmem:[%s1852_s26 + $0xc8] sm:$0xf] %v1342_v48 }
  0x2e   : > { %1345 = vst [vmem:[%s1852_s26 + $0xd4] sm:$0xf] %v1344_v49  ;;  %1347 = vst [vmem:[%s1852_s26 + $0xe0] sm:$0xf] %v1346_v50  ;;  %v1348_v51 = vld [vmem:[%s1847_s25 + $0x1ac] sm:$0xf] }
  0x2f   : > { %v1350_v52 = vld [vmem:[%s1847_s25 + $0x1b8] sm:$0xf]  ;;  %v1352_v53 = vld [vmem:[%s1847_s25 + $0x1c4] sm:$0xf]  ;;  %1349 = vst [vmem:[%s1852_s26 + $0xec] sm:$0xf] %v1348_v51 }
  0x30   : > { %1351 = vst [vmem:[%s1852_s26 + $0xf8] sm:$0xf] %v1350_v52  ;;  %1353 = vst [vmem:[%s1852_s26 + $0x104] sm:$0xf] %v1352_v53  ;;  %v1354_v54 = vld [vmem:[%s1847_s25 + $0x1d0] sm:$0xf] }
  0x31   : > { %v1356_v55 = vld [vmem:[%s1847_s25 + $0x1dc] sm:$0xf]  ;;  %v1358_v56 = vld [vmem:[%s1847_s25 + $0x248] sm:$0xf]  ;;  %1355 = vst [vmem:[%s1852_s26 + $0x110] sm:$0xf] %v1354_v54 }
  0x32   : > { %1357 = vst [vmem:[%s1852_s26 + $0x11c] sm:$0xf] %v1356_v55  ;;  %1359 = vst [vmem:[%s1852_s26 + $0x128] sm:$0xf] %v1358_v56  ;;  %v1360_v57 = vld [vmem:[%s1847_s25 + $0x254] sm:$0xf] }
  0x33   : > { %v1362_v58 = vld [vmem:[%s1847_s25 + $0x260] sm:$0xf]  ;;  %v1364_v59 = vld [vmem:[%s1847_s25 + $0x26c] sm:$0xf]  ;;  %1361 = vst [vmem:[%s1852_s26 + $0x134] sm:$0xf] %v1360_v57 }
  0x34   : > { %1363 = vst [vmem:[%s1852_s26 + $0x140] sm:$0xf] %v1362_v58  ;;  %1365 = vst [vmem:[%s1852_s26 + $0x14c] sm:$0xf] %v1364_v59  ;;  %v1366_v60 = vld [vmem:[%s1847_s25 + $0x278] sm:$0xf] }
  0x35   : > { %v1368_v61 = vld [vmem:[%s1847_s25 + $0x284] sm:$0xf]  ;;  %v1370_v62 = vld [vmem:[%s1847_s25 + $0x290] sm:$0xf]  ;;  %1367 = vst [vmem:[%s1852_s26 + $0x158] sm:$0xf] %v1366_v60 }
  0x36   : > { %1369 = vst [vmem:[%s1852_s26 + $0x164] sm:$0xf] %v1368_v61  ;;  %1371 = vst [vmem:[%s1852_s26 + $0x170] sm:$0xf] %v1370_v62  ;;  %v1372_v63 = vld [vmem:[%s1847_s25 + $0x29c] sm:$0xf] }
  0x37   : > { %1373 = vst [vmem:[%s1852_s26 + $0x17c] sm:$0xf] %v1372_v63 }
  0x38 PF: > { %p1374_p5 = scmp.ge.s32.totalorder %s1791_s14, 1  ;;  %p292_p6 = scmp.lt.s32.totalorder %s1791_s14, 3 }
  0x3a   : > { %p293_p7 = pnand %p1374_p5, %p292_p6 }
  0x3b   : > { %v1687_v0 = vld [vmem:[%s2244_s1 + $0x40] sm:$0xff] (!%p293_p7)   ;;  %v1689_v2 = vld [vmem:[%s2244_s1 + $0x48] sm:$0xff] (!%p293_p7)   ;;  %v1691_v4 = vld [vmem:[%s2244_s1 + $0x50] sm:$0xff] (!%p293_p7)   ;;  %s299_s17 = sand.u32 (!%p293_p7), 1, %s1783_s12   ;;  %vm778_vm0 = vcmask (!%p293_p7), 261120   ;;  %s1375_s23 = sshll.u32 (!%p293_p7), %s1303_s15, 3 }
  0x3c   : > { %296 = sbr.rel (%p293_p7) target bundleno = 411 (0x19b), region = 54  ;;  %v1688_v1 = vld [vmem:[%s2244_s1] sm:$0xff] (!%p293_p7)   ;;  %1478 = vmatprep.subr.bf16.mxu0 (!%p293_p7), %v1687_v0  ;;  %1644 = vmatprep.subr.bf16.mxu1 (!%p293_p7), %v1687_v0  ;;  %v1690_v3 = vld [vmem:[%s2244_s1 + $0x8] sm:$0xff] (!%p293_p7)   ;;  %v1692_v5 = vld [vmem:[%s2244_s1 + $0x10] sm:$0xff] (!%p293_p7)   ;;  %p324_p8 = scmp.lt.s32.totalorder (!%p293_p7), %s1375_s23, 15  ;;  %vm1228_vm1 = vcmask (!%p293_p7), 519168  }
  0x3d   : > { %1479 = vmatpush3.bf16.msra.mxu0 (!%p293_p7), %v1688_v1  ;;  %1652 = vmatpush3.bf16.msra.mxu1 (!%p293_p7), %v1688_v1  ;;  %v1693_v6 = vld [vmem:[%s2244_s1 + $0x58] sm:$0xff] (!%p293_p7)   ;;  %s1662_s21 = smul.u32 (!%p293_p7), 384, %s299_s17  ;;  %v1695_v8 = vld [vmem:[%s2244_s1 + $0x60] sm:$0xff] (!%p293_p7)   ;;  %v1697_v10 = vld [vmem:[%s2244_s1 + $0x68] sm:$0xff] (!%p293_p7)  }
  0x3e   : > { %1480 = vmatprep.subr.bf16.mxu0 (!%p293_p7), %v1689_v2  ;;  %1645 = vmatprep.subr.bf16.mxu1 (!%p293_p7), %v1689_v2  ;;  %v1694_v7 = vld [vmem:[%s2244_s1 + $0x18] sm:$0xff] (!%p293_p7)   ;;  %v1696_v9 = vld [vmem:[%s2244_s1 + $0x20] sm:$0xff] (!%p293_p7)   ;;  %v1698_v13 = vld [vmem:[%s2244_s1 + $0x28] sm:$0xff] (!%p293_p7)  }
  0x3f   : > { %s2015_s29 = scalar_lea.vmem (!%p293_p7), [#allocation2], %s1662_s21  ;;  %v1699_v14 = vld [vmem:[%s2244_s1 + $0x70] sm:$0xff] (!%p293_p7)   ;;  %v1701_v16 = vld [vmem:[%s2244_s1 + $0x78] sm:$0xff] (!%p293_p7)   ;;  %v1709_v18 = vld [vmem:[%s2244_s1 + $0x80] sm:$0xff] (!%p293_p7)  }
  0x40   : > { %v1705_v11 = vld [vmem:[%s2015_s29 + $0x4] ss:$12 sps:$4 sm:$0xff] (!%p293_p7)   ;;  %v1702_v17 = vld [vmem:[%s2244_s1 + $0x38] sm:$0xff] (!%p293_p7)   ;;  %v1703_v19 = vld [vmem:[%s2015_s29] ss:$12 sps:$4 sm:$0xff] (!%p293_p7)  }
  0x41   : > { %1481 = vmatpush3.bf16.msra.mxu0 (!%p293_p7), %v1690_v3  ;;  %1653 = vmatpush3.bf16.msra.mxu1 (!%p293_p7), %v1690_v3  ;;  %v1708_v12 = vld [vmem:[%s2015_s29 + $0x124] ss:$12 sps:$4 sm:$0xff] (!%p293_p7)   ;;  %v1706_v20 = vld [vmem:[%s2015_s29 + $0x120] ss:$12 sps:$4 sm:$0xff] (!%p293_p7)   ;;  %v1710_v21 = vld [vmem:[%s2015_s29 + $0x1c] ss:$12 sps:$4 sm:$0xff] (!%p293_p7)  }
  0x42   : > { %1482 = vmatprep.subr.bf16.mxu0 (!%p293_p7), %v1691_v4  ;;  %1646 = vmatprep.subr.bf16.mxu1 (!%p293_p7), %v1691_v4  ;;  %v1700_v15 = vld [vmem:[%s2244_s1 + $0x30] sm:$0xff] (!%p293_p7)   ;;  %v1712_v22 = vld [vmem:[%s2015_s29 + $0x13c] ss:$12 sps:$4 sm:$0xff] (!%p293_p7)   ;;  %v1714_v24 = vld [vmem:[%s2015_s29 + $0x18] ss:$12 sps:$4 sm:$0xff] (!%p293_p7)  }
  0x43   : > { %859 = vmatprep.mubr.bf16.mxu0 %v1705_v11  ;;  %955 = vmatprep.mubr.bf16.mxu1 %v1708_v12  ;;  %v1722_v23 = vld [vmem:[%s2244_s1 + $0x88] sm:$0xff]   ;;  %v1715_v25 = vld [vmem:[%s2015_s29 + $0x138] ss:$12 sps:$4 sm:$0xff]   ;;  %v1716_v26 = vld [vmem:[%s2015_s29 + $0x34] ss:$12 sps:$4 sm:$0xff]   ;;  %s2251_s23 = smov (!%p324_p8, %s1375_s23), 15 }
  0x44   : > { %v1718_v27 = vld [vmem:[%s2015_s29 + $0x154] ss:$12 sps:$4 sm:$0xff]   ;;  %v1720_v28 = vld [vmem:[%s2015_s29 + $0x30] ss:$12 sps:$4 sm:$0xff]   ;;  %v1723_v30 = vld [vmem:[%s2015_s29 + $0x4c] ss:$12 sps:$4 sm:$0xff]  }
  0x45   : > { %1483 = vmatpush3.bf16.msra.mxu0 %v1692_v5  ;;  %1654 = vmatpush3.bf16.msra.mxu1 %v1692_v5  ;;  %v1721_v29 = vld [vmem:[%s2015_s29 + $0x150] ss:$12 sps:$4 sm:$0xff]   ;;  %v1725_v31 = vld [vmem:[%s2015_s29 + $0x16c] ss:$12 sps:$4 sm:$0xff]   ;;  %v1727_v32 = vld [vmem:[%s2015_s29 + $0x48] ss:$12 sps:$4 sm:$0xff]  }
  0x46   : > { %1484 = vmatprep.subr.bf16.mxu0 %v1693_v6  ;;  %1647 = vmatprep.subr.bf16.mxu1 %v1693_v6  ;;  %v1728_v33 = vld [vmem:[%s2015_s29 + $0x168] ss:$12 sps:$4 sm:$0xff]   ;;  %v1729_v34 = vld [vmem:[%s2015_s29 + $0x64] ss:$12 sps:$4 sm:$0xff]   ;;  %v1732_v36 = vld [vmem:[%s2015_s29 + $0x60] ss:$12 sps:$4 sm:$0xff]  }
  0x47   : > { %v1731_v35 = vld [vmem:[%s2015_s29 + $0x8] ss:$12 sps:$4 sm:$0xff]   ;;  %v1733_v37 = vld [vmem:[%s2015_s29 + $0x20] ss:$12 sps:$4 sm:$0xff]   ;;  %v1736_v39 = vld [vmem:[%s2015_s29 + $0x38] ss:$12 sps:$4 sm:$0xff]  }
  0x48   : > { %v1734_v38 = vld [vmem:[%s2015_s29 + $0x7c] ss:$12 sps:$4 sm:$0xff]   ;;  %v1737_v40 = vld [vmem:[%s2015_s29 + $0x78] ss:$12 sps:$4 sm:$0xff]   ;;  %v1739_v42 = vld [vmem:[%s2015_s29 + $0x94] ss:$12 sps:$4 sm:$0xff]  }
  0x49   : > { %1485 = vmatpush3.bf16.msra.mxu0 %v1694_v7  ;;  %1655 = vmatpush3.bf16.msra.mxu1 %v1694_v7  ;;  %v1738_v41 = vld [vmem:[%s2015_s29 + $0x50] ss:$12 sps:$4 sm:$0xff]   ;;  %v1741_v43 = vld [vmem:[%s2015_s29 + $0x68] ss:$12 sps:$4 sm:$0xff]   ;;  %v1743_v45 = vld [vmem:[%s2015_s29 + $0x80] ss:$12 sps:$4 sm:$0xff]  }
  0x4a   : > { %1486 = vmatprep.subr.bf16.mxu0 %v1695_v8  ;;  %1648 = vmatprep.subr.bf16.mxu1 %v1695_v8  ;;  %v1742_v44 = vld [vmem:[%s2015_s29 + $0x90] ss:$12 sps:$4 sm:$0xff]   ;;  %v1744_v46 = vld [vmem:[%s2015_s29 + $0xac] ss:$12 sps:$4 sm:$0xff]   ;;  %v1747_v48 = vld [vmem:[%s2015_s29 + $0xa8] ss:$12 sps:$4 sm:$0xff]  }
  0x4b   : > { %v1746_v47 = vld [vmem:[%s2015_s29 + $0x98] ss:$12 sps:$4 sm:$0xff]   ;;  %v1748_v49 = vld [vmem:[%s2015_s29 + $0xb0] ss:$12 sps:$4 sm:$0xff]   ;;  %v1751_v51 = vld [vmem:[%s2015_s29 + $0xc8] ss:$12 sps:$4 sm:$0xff]  }
  0x4c   : > { %v1749_v50 = vld [vmem:[%s2015_s29 + $0xc4] ss:$12 sps:$4 sm:$0xff]   ;;  %v1752_v52 = vld [vmem:[%s2015_s29 + $0xc0] ss:$12 sps:$4 sm:$0xff]   ;;  %v1754_v54 = vld [vmem:[%s2015_s29 + $0xdc] ss:$12 sps:$4 sm:$0xff]  }
  0x4d   : > { %1487 = vmatpush3.bf16.msra.mxu0 %v1696_v9  ;;  %1656 = vmatpush3.bf16.msra.mxu1 %v1696_v9  ;;  %v1753_v53 = vld [vmem:[%s2015_s29 + $0xe0] ss:$12 sps:$4 sm:$0xff]   ;;  %v1756_v55 = vld [vmem:[%s2015_s29 + $0xf8] ss:$12 sps:$4 sm:$0xff]   ;;  %v1758_v57 = vld [vmem:[%s2015_s29 + $0x110] ss:$12 sps:$4 sm:$0xff]  }
  0x4e   : > { %1488 = vmatprep.subr.bf16.mxu0 %v1697_v10  ;;  %1649 = vmatprep.subr.bf16.mxu1 %v1697_v10  ;;  %v1757_v56 = vld [vmem:[%s2015_s29 + $0xd8] ss:$12 sps:$4 sm:$0xff]   ;;  %v1759_v58 = vld [vmem:[%s2015_s29 + $0xf4] ss:$12 sps:$4 sm:$0xff]   ;;  %v1762_v60 = vld [vmem:[%s2015_s29 + $0xf0] ss:$12 sps:$4 sm:$0xff]  }
  0x4f   : > { %v1761_v59 = vld [vmem:[%s2015_s29 + $0x128] ss:$12 sps:$4 sm:$0xff]   ;;  %v1763_v61 = vld [vmem:[%s2015_s29 + $0x140] ss:$12 sps:$4 sm:$0xff]   ;;  %v1766_v63 = vld [vmem:[%s2015_s29 + $0x158] ss:$12 sps:$4 sm:$0xff]  }
  0x50   : > { %v1764_v62 = vld [vmem:[%s2015_s29 + $0x10c] ss:$12 sps:$4 sm:$0xff]   ;;  %v1767_v0 = vld [vmem:[%s2015_s29 + $0x108] ss:$12 sps:$4 sm:$0xff]   ;;  %v1768_v1 = vld [vmem:[%s2015_s29 + $0x170] ss:$12 sps:$4 sm:$0xff]  }
  0x51   : > { %1489 = vmatpush3.bf16.msra.mxu0 %v1698_v13  ;;  %1657 = vmatpush3.bf16.msra.mxu1 %v1698_v13  ;;  %s1376_s24 = sshll.u32 %s2251_s23, 2 }
  0x52   : > { %1490 = vmatprep.subr.bf16.mxu0 %v1699_v14  ;;  %1650 = vmatprep.subr.bf16.mxu1 %v1699_v14  ;;  %s2198_s26 = scalar_lea.vmem %s2246_s3, %s1376_s24 }
  0x55   : > { %1491 = vmatpush3.bf16.msra.mxu0 %v1700_v15  ;;  %1658 = vmatpush3.bf16.msra.mxu1 %v1700_v15 }
  0x56   : > { %1492 = vmatprep.subr.bf16.mxu0 %v1701_v16  ;;  %1651 = vmatprep.subr.bf16.mxu1 %v1701_v16 }
  0x59   : > { %1493 = vmatpush3.bf16.msra.mxu0 %v1702_v17  ;;  %1659 = vmatpush3.bf16.msra.mxu1 %v1702_v17 }
  0x5a   : > { %1608 = vmatprep.subr.bf16.mxu1 %v1709_v18 }
  0x5c   : > { %860 = vmatmul.mubr.bf16.vlgmr.msra.gmra.mrb[0].mxu0 %v1703_v19  ;;  %956 = vmatmul.mubr.bf16.vlgmr.msra.gmra.mrb[0].mxu1 %v1706_v20 }
  0x5d   : > { %1609 = vmatpush3.bf16.msra.mxu1 %v1709_v18  ;;  %867 = vmatprep.mubr.bf16.mxu0 %v1710_v21 }
  0x5e   : > { %963 = vmatprep.mubr.bf16.mxu1 %v1712_v22  ;;  %1610 = vmatprep.subr.bf16.mxu1 %v1722_v23 }
  0x61   : > { %1611 = vmatpush3.bf16.msra.mxu1 %v1722_v23 }
  0x64   : > { %868 = vmatmul.mubr.bf16.gmra.mrb[4].mxu0 %v1714_v24  ;;  %964 = vmatmul.mubr.bf16.gmra.mrb[4].mxu1 %v1715_v25 }
  0x65   : > { %875 = vmatprep.mubr.bf16.mxu0 %v1716_v26  ;;  %971 = vmatprep.mubr.bf16.mxu1 %v1718_v27 }
  0x6c   : > { %876 = vmatmul.mubr.bf16.gmra.mrb[8].mxu0 %v1720_v28  ;;  %972 = vmatmul.mubr.bf16.gmra.mrb[8].mxu1 %v1721_v29 }
  0x6d   : > { %883 = vmatprep.mubr.bf16.mxu0 %v1723_v30  ;;  %979 = vmatprep.mubr.bf16.mxu1 %v1725_v31 }
  0x74   : > { %884 = vmatmul.mubr.bf16.gmra.mrb[12].mxu0 %v1727_v32  ;;  %980 = vmatmul.mubr.bf16.gmra.mrb[12].mxu1 %v1728_v33 }
  0x75   : > { %891 = vmatprep.mubr.bf16.mxu0 %v1729_v34  ;;  %1612 = vmatprep.mubr.msk.bf16.mxu1 %vm778_vm0, %v1731_v35 }
  0x7c   : > { %892 = vmatmul.mubr.bf16.gmra.mrb[16].mxu0 %v1732_v36  ;;  %1613 = vmatmul.mubr.msk.bf16.vlgmr.msra.gmra.mrb[16].mxu1 %vm778_vm0, %v1733_v37 }
  0x7d   : > { %899 = vmatprep.mubr.bf16.mxu0 %v1734_v38  ;;  %1616 = vmatprep.mubr.msk.bf16.mxu1 %vm778_vm0, %v1736_v39 }
  0x84   : > { %900 = vmatmul.mubr.bf16.gmra.mrb[20].mxu0 %v1737_v40  ;;  %1617 = vmatmul.mubr.msk.bf16.gmra.mrb[20].mxu1 %vm778_vm0, %v1738_v41 }
  0x85   : > { %907 = vmatprep.mubr.bf16.mxu0 %v1739_v42  ;;  %1620 = vmatprep.mubr.msk.bf16.mxu1 %vm778_vm0, %v1741_v43 }
  0x8c   : > { %908 = vmatmul.mubr.bf16.gmra.mrb[24].mxu0 %v1742_v44  ;;  %1621 = vmatmul.mubr.msk.bf16.gmra.mrb[24].mxu1 %vm778_vm0, %v1743_v45 }
  0x8d   : > { %915 = vmatprep.mubr.bf16.mxu0 %v1744_v46  ;;  %1624 = vmatprep.mubr.msk.bf16.mxu1 %vm778_vm0, %v1746_v47 }
  0x94   : > { %916 = vmatmul.mubr.bf16.gmra.mrb[28].mxu0 %v1747_v48  ;;  %1625 = vmatmul.mubr.msk.bf16.gmra.mrb[28].mxu1 %vm778_vm0, %v1748_v49 }
  0x95   : > { %923 = vmatprep.mubr.bf16.mxu0 %v1749_v50  ;;  %1628 = vmatprep.mubr.msk.bf16.mxu1 %vm778_vm0, %v1751_v51 }
  0x9c   : > { %924 = vmatmul.mubr.bf16.gmra.mrb[32].mxu0 %v1752_v52  ;;  %1629 = vmatmul.mubr.msk.bf16.gmra.mrb[32].mxu1 %vm778_vm0, %v1753_v53 }
  0x9d   : > { %931 = vmatprep.mubr.bf16.mxu0 %v1754_v54  ;;  %1632 = vmatprep.mubr.msk.bf16.mxu1 %vm778_vm0, %v1756_v55 }
  0xa4   : > { %932 = vmatmul.mubr.bf16.gmra.mrb[36].mxu0 %v1757_v56  ;;  %1633 = vmatmul.mubr.msk.bf16.gmra.mrb[36].mxu1 %vm778_vm0, %v1758_v57 }
  0xa5   : > { %939 = vmatprep.mubr.bf16.mxu0 %v1759_v58  ;;  %1636 = vmatprep.mubr.msk.bf16.mxu1 %vm778_vm0, %v1761_v59 }
  0xac   : > { %940 = vmatmul.mubr.bf16.gmra.mrb[40].mxu0 %v1762_v60  ;;  %1637 = vmatmul.mubr.msk.bf16.gmra.mrb[40].mxu1 %vm778_vm0, %v1763_v61 }
  0xad   : > { %947 = vmatprep.mubr.bf16.mxu0 %v1764_v62  ;;  %1640 = vmatprep.mubr.msk.bf16.mxu1 %vm778_vm0, %v1766_v63 }
  0xb4   : > { %948 = vmatmul.mubr.bf16.gmra.mrb[44].mxu0 %v1767_v0  ;;  %1641 = vmatmul.mubr.msk.bf16.gmra.mrb[44].mxu1 %vm778_vm0, %v1768_v1 }
 0x12f   : > { %v1494_v2 = vpop.f32.mrb[0].mxu0  ;;  %v1566_v3 = vpop.f32.mrb[0].mxu1 }
 0x130   : > { %v1495_v4 = vpop.f32.mrb[1].mxu0  ;;  %v1567_v5 = vpop.f32.mrb[1].mxu1 }
 0x131   : > { %v1496_v6 = vadd.f32 %v1495_v4, %v1494_v2  ;;  %v2102_v7 = vadd.f32 %v1567_v5, %v1566_v3  ;;  %v1497_v8 = vpop.f32.mrb[2].mxu0  ;;  %v1569_v9 = vpop.f32.mrb[2].mxu1 }
 0x132   : > { %v1498_v10 = vpop.f32.mrb[3].mxu0  ;;  %v1570_v11 = vpop.f32.mrb[3].mxu1 }
 0x133   : > { %v1499_v12 = vadd.f32 %v1498_v10, %v1497_v8  ;;  %v2104_v13 = vadd.f32 %v1570_v11, %v1569_v9 }
 0x137   : > { %v1500_v14 = vpop.f32.mrb[4].mxu0  ;;  %v1572_v15 = vpop.f32.mrb[4].mxu1 }
 0x138   : > { %v1501_v16 = vpop.f32.mrb[5].mxu0  ;;  %v1573_v17 = vpop.f32.mrb[5].mxu1 }
 0x139   : > { %v1502_v18 = vadd.f32 %v1501_v16, %v1500_v14  ;;  %v2106_v19 = vadd.f32 %v1573_v17, %v1572_v15  ;;  %v1503_v20 = vpop.f32.mrb[6].mxu0  ;;  %v1575_v21 = vpop.f32.mrb[6].mxu1 }
 0x13a   : > { %v1504_v22 = vpop.f32.mrb[7].mxu0  ;;  %v1576_v23 = vpop.f32.mrb[7].mxu1 }
 0x13b   : > { %v1505_v24 = vadd.f32 %v1504_v22, %v1503_v20  ;;  %v2108_v25 = vadd.f32 %v1576_v23, %v1575_v21 }
 0x13f   : > { %v1506_v26 = vpop.f32.mrb[8].mxu0  ;;  %v1578_v27 = vpop.f32.mrb[8].mxu1 }
 0x140   : > { %v1507_v28 = vpop.f32.mrb[9].mxu0  ;;  %v1579_v29 = vpop.f32.mrb[9].mxu1 }
 0x141   : > { %v1508_v30 = vadd.f32 %v1507_v28, %v1506_v26  ;;  %v2110_v31 = vadd.f32 %v1579_v29, %v1578_v27  ;;  %v1509_v32 = vpop.f32.mrb[10].mxu0  ;;  %v1581_v33 = vpop.f32.mrb[10].mxu1 }
 0x142   : > { %v1510_v34 = vpop.f32.mrb[11].mxu0  ;;  %v1582_v35 = vpop.f32.mrb[11].mxu1 }
 0x143   : > { %v1511_v36 = vadd.f32 %v1510_v34, %v1509_v32  ;;  %v2112_v37 = vadd.f32 %v1582_v35, %v1581_v33 }
 0x147   : > { %v1512_v38 = vpop.f32.mrb[12].mxu0  ;;  %v1584_v39 = vpop.f32.mrb[12].mxu1 }
 0x148   : > { %v1513_v40 = vpop.f32.mrb[13].mxu0  ;;  %v1585_v41 = vpop.f32.mrb[13].mxu1 }
 0x149   : > { %v1514_v42 = vadd.f32 %v1513_v40, %v1512_v38  ;;  %v2114_v43 = vadd.f32 %v1585_v41, %v1584_v39  ;;  %v1515_v44 = vpop.f32.mrb[14].mxu0  ;;  %v1587_v45 = vpop.f32.mrb[14].mxu1 }
 0x14a   : > { %v1516_v46 = vpop.f32.mrb[15].mxu0  ;;  %v1588_v47 = vpop.f32.mrb[15].mxu1 }
 0x14b   : > { %v1517_v48 = vadd.f32 %v1516_v46, %v1515_v44  ;;  %v2116_v49 = vadd.f32 %v1588_v47, %v1587_v45 }
 0x14f   : > { %v1518_v50 = vpop.f32.mrb[16].mxu0  ;;  %v1614_v51 = vpop.f32.mrb[16].mxu1 }
 0x150   : > { %v2118_v52 = vadd.f32 %v1614_v51, %v1502_v18  ;;  %v1519_v53 = vpop.f32.mrb[17].mxu0  ;;  %v1022_v54 = vpop.f32.mrb[17].mxu1 }
 0x151   : > { %v1520_v55 = vadd.f32 %v1519_v53, %v1518_v50  ;;  %v2120_v56 = vadd.f32 %v1496_v6, %v1022_v54  ;;  %v1521_v57 = vpop.f32.mrb[18].mxu0  ;;  %v1615_v58 = vpop.f32.mrb[18].mxu1 }
 0x152   : > { %v2122_v59 = vadd.f32 %v1615_v58, %v1505_v24  ;;  %v1522_v60 = vpop.f32.mrb[19].mxu0  ;;  %v1025_v61 = vpop.f32.mrb[19].mxu1 }
 0x153   : > { %v1523_v62 = vadd.f32 %v1522_v60, %v1521_v57  ;;  %v2124_v63 = vadd.f32 %v1499_v12, %v1025_v61 }
 0x157   : > { %v1524_v0 = vpop.f32.mrb[20].mxu0  ;;  %v1618_v1 = vpop.f32.mrb[20].mxu1 }
 0x158   : > { %v2126_v2 = vadd.f32 %v1618_v1, %v1514_v42  ;;  %v1525_v3 = vpop.f32.mrb[21].mxu0  ;;  %v1038_v4 = vpop.f32.mrb[21].mxu1 }
 0x159   : > { %v1526_v5 = vadd.f32 %v1525_v3, %v1524_v0  ;;  %v2128_v8 = vadd.f32 %v1508_v30, %v1038_v4  ;;  %v1527_v6 = vpop.f32.mrb[22].mxu0  ;;  %v1619_v9 = vpop.f32.mrb[22].mxu1 }
 0x15a   : > { %v2130_v10 = vadd.f32 %v1619_v9, %v1517_v48  ;;  %v1528_v11 = vpop.f32.mrb[23].mxu0  ;;  %v1041_v14 = vpop.f32.mrb[23].mxu1 }
 0x15b   : > { %v1529_v15 = vadd.f32 %v1528_v11, %v1527_v6  ;;  %v2132_v16 = vadd.f32 %v1511_v36, %v1041_v14 }
 0x15f   : > { %v1530_v12 = vpop.f32.mrb[24].mxu0  ;;  %v1622_v17 = vpop.f32.mrb[24].mxu1 }
 0x160   : > { %v2134_v18 = vadd.f32 %v1622_v17, %v1526_v5  ;;  %v1531_v20 = vpop.f32.mrb[25].mxu0  ;;  %v1054_v21 = vpop.f32.mrb[25].mxu1 }
 0x161   : > { %v1532_v22 = vadd.f32 %v1531_v20, %v1530_v12  ;;  %v2136_v23 = vadd.f32 %v1520_v55, %v1054_v21  ;;  %v1533_v24 = vpop.f32.mrb[26].mxu0  ;;  %v1623_v26 = vpop.f32.mrb[26].mxu1 }
 0x162   : > { %v1151_v27 = vmax.f32 %v2118_v52, %v2134_v18  ;;  %v2140_v28 = vadd.f32 %v1623_v26, %v1529_v15  ;;  %v1534_v29 = vpop.f32.mrb[27].mxu0  ;;  %v1057_v30 = vpop.f32.mrb[27].mxu1 }
 0x163   : > { %v1149_v32 = vmax.f32 %v2120_v56, %v2136_v23  ;;  %v1535_v33 = vadd.f32 %v1534_v29, %v1533_v24  ;;  %v2144_v34 = vadd.f32 %v1523_v62, %v1057_v30 }
 0x164   : > { %v1152_v35 = vmax.f32 %v2122_v59, %v2140_v28 }
 0x165   : > { %v1150_v36 = vmax.f32 %v2124_v63, %v2144_v34 }
 0x167   : > { %v1536_v38 = vpop.f32.mrb[28].mxu0  ;;  %v1626_v39 = vpop.f32.mrb[28].mxu1 }
 0x168   : > { %v1537_v40 = vpop.f32.mrb[29].mxu0  ;;  %v1070_v41 = vpop.f32.mrb[29].mxu1 }
 0x169   : > { %v1538_v42 = vadd.f32 %v1537_v40, %v1536_v38  ;;  %v2150_v44 = vadd.f32 %v1532_v22, %v1070_v41  ;;  %v1539_v45 = vpop.f32.mrb[30].mxu0  ;;  %v1627_v46 = vpop.f32.mrb[30].mxu1 }
 0x16a   : > { %v1540_v47 = vpop.f32.mrb[31].mxu0  ;;  %v1073_v48 = vpop.f32.mrb[31].mxu1 }
 0x16b   : > { %v2152_v50 = vadd.f32 %v1626_v39, %v1538_v42  ;;  %v1153_v51 = vmax.f32 %v2128_v8, %v2150_v44  ;;  %v1541_v53 = vadd.f32 %v1540_v47, %v1539_v45  ;;  %v2156_v54 = vadd.f32 %v1535_v33, %v1073_v48 }
 0x16d   : > { %v1155_v55 = vmax.f32 %v2126_v2, %v2152_v50  ;;  %v2160_v57 = vadd.f32 %v1627_v46, %v1541_v53  ;;  %v1154_v58 = vmax.f32 %v2132_v16, %v2156_v54 }
 0x16f   : > { %v1156_v60 = vmax.f32 %v2130_v10, %v2160_v57  ;;  %v1542_v61 = vpop.f32.mrb[32].mxu0  ;;  %v1630_v62 = vpop.f32.mrb[32].mxu1 }
 0x170   : > { %v1543_v0 = vpop.f32.mrb[33].mxu0  ;;  %v1086_v1 = vpop.f32.mrb[33].mxu1 }
 0x171   : > { %v1544_v3 = vadd.f32 %v1543_v0, %v1542_v61  ;;  %v1545_v4 = vpop.f32.mrb[34].mxu0  ;;  %v1631_v5 = vpop.f32.mrb[34].mxu1 }
 0x172   : > { %v1546_v6 = vpop.f32.mrb[35].mxu0  ;;  %v1089_v9 = vpop.f32.mrb[35].mxu1 }
 0x173   : > { %v1087_v11 = vadd.f32 %v1544_v3, %v1086_v1  ;;  %v1547_v14 = vadd.f32 %v1546_v6, %v1545_v4  ;;  %v1459_v4 = vld [vmem:[%s2245_s2] ss:$0 sm:$0xff] }
 0x175   : > { %v1090_v15 = vadd.f32 %v1547_v14, %v1089_v9 }
 0x177   : > { %v1548_v12 = vpop.f32.mrb[36].mxu0  ;;  %v2166_v17 = vpop.f32.mrb[36].mxu1 }
 0x178   : > { %v1549_v20 = vpop.f32.mrb[37].mxu0  ;;  %v1102_v21 = vpop.f32.mrb[37].mxu1 }
 0x179   : > { %v1550_v22 = vadd.f32 %v1549_v20, %v1548_v12  ;;  %v1551_v24 = vpop.f32.mrb[38].mxu0  ;;  %v2168_v26 = vpop.f32.mrb[38].mxu1 }
 0x17a   : > { %v1552_v29 = vpop.f32.mrb[39].mxu0  ;;  %v1105_v30 = vpop.f32.mrb[39].mxu1 }
 0x17b   : > { %v1095_v33 = vadd.f32 %v1630_v62, %v1550_v22  ;;  %v1553_v38 = vadd.f32 %v1552_v29, %v1551_v24 }
 0x17d   : > { %v1098_v39 = vadd.f32 %v1631_v5, %v1553_v38 }
 0x17f   : > { %v1554_v40 = vpop.f32.mrb[40].mxu0  ;;  %v1638_v41 = vpop.f32.mrb[40].mxu1 }
 0x180   : > { %v1127_v42 = vadd.f32 %v1638_v41, %v2106_v19  ;;  %v1555_v45 = vpop.f32.mrb[41].mxu0  ;;  %v1118_v46 = vpop.f32.mrb[41].mxu1 }
 0x181   : > { %v1556_v47 = vadd.f32 %v1555_v45, %v1554_v40  ;;  %v1119_v48 = vadd.f32 %v2102_v7, %v1118_v46  ;;  %v1557_v53 = vpop.f32.mrb[42].mxu0  ;;  %v1639_v61 = vpop.f32.mrb[42].mxu1 }
 0x182   : > { %v1159_v62 = vmax.f32 %v1095_v33, %v1127_v42  ;;  %v1130_v0 = vadd.f32 %v1639_v61, %v2108_v25  ;;  %v1558_v1 = vpop.f32.mrb[43].mxu0  ;;  %v1121_v3 = vpop.f32.mrb[43].mxu1 }
 0x183   : > { %v1103_v19 = vadd.f32 %v1556_v47, %v1102_v21  ;;  %v1157_v5 = vmax.f32 %v1087_v11, %v1119_v48  ;;  %v1559_v6 = vadd.f32 %v1558_v1, %v1557_v53  ;;  %v1122_v9 = vadd.f32 %v2104_v13, %v1121_v3 }
 0x184   : > { %v1167_v7 = vmax.f32 %v1151_v27, %v1159_v62  ;;  %v1160_v14 = vmax.f32 %v1098_v39, %v1130_v0 }
 0x185   : > { %v1165_v25 = vmax.f32 %v1149_v32, %v1157_v5  ;;  %v1106_v12 = vadd.f32 %v1559_v6, %v1105_v30  ;;  %v1158_v20 = vmax.f32 %v1090_v15, %v1122_v9 }
 0x186   : > { %v1182_v22 = vadd.f32 %v1459_v4, %v1167_v7  ;;  %v1168_v11 = vmax.f32 %v1152_v35, %v1160_v14 }
 0x187   : > { %v1180_v21 = vadd.f32 %v1459_v4, %v1165_v25  ;;  %v1166_v13 = vmax.f32 %v1150_v36, %v1158_v20  ;;  %v1560_v52 = vpop.f32.mrb[44].mxu0  ;;  %v1642_v18 = vpop.f32.mrb[44].mxu1 }
 0x188   : > { %v1190_v27 = vmax.f32 %v1182_v22, 0.0  ;;  %v1183_v24 = vadd.f32 %v1459_v4, %v1168_v11  ;;  %v1143_v56 = vadd.f32 %v1642_v18, %v2114_v43  ;;  %v1561_v23 = vpop.f32.mrb[45].mxu0  ;;  %v1134_v32 = vpop.f32.mrb[45].mxu1 }
 0x189   : > { %v1188_v59 = vmax.f32 %v1180_v21, 0.0  ;;  %v1181_v28 = vadd.f32 %v1459_v4, %v1166_v13  ;;  %v1562_v35 = vadd.f32 %v1561_v23, %v1560_v52  ;;  %v1135_v63 = vadd.f32 %v2110_v31, %v1134_v32  ;;  %v1563_v34 = vpop.f32.mrb[46].mxu0  ;;  %v1643_v36 = vpop.f32.mrb[46].mxu1 }
 0x18a   : > { %v1472_v15 = vpack.c.bf16 %v1190_v27, %v1190_v27  ;;  %v1191_v29 = vmax.f32 %v1183_v24, 0.0  ;;  %v1146_v43 = vadd.f32 %v1643_v36, %v2116_v49  ;;  %v1564_v30 = vpop.f32.mrb[47].mxu0  ;;  %v1137_v33 = vpop.f32.mrb[47].mxu1 }
 0x18b   : > { %v1470_v38 = vpack.c.bf16 %v1188_v59, %v1188_v59  ;;  %v1189_v39 = vmax.f32 %v1181_v28, 0.0  ;;  %v1111_v40 = vadd.f32 %v2166_v17, %v1562_v35  ;;  %v1161_v41 = vmax.f32 %v1103_v19, %v1135_v63 }
 0x18c   : > { %1231 = vst.msk [vmem:[%s2198_s26 + $0x8] sm:$0xf] %vm1228_vm1, %v1472_v15  ;;  %v1473_v42 = vpack.c.bf16 %v1191_v29, %v1191_v29  ;;  %v1565_v31 = vadd.f32 %v1564_v30, %v1563_v34  ;;  %v1138_v45 = vadd.f32 %v2112_v37, %v1137_v33 }
 0x18d   : > { %1229 = vst.msk [vmem:[%s2198_s26] sm:$0xf] %vm1228_vm1, %v1470_v38  ;;  %v1471_v46 = vpack.c.bf16 %v1189_v39, %v1189_v39  ;;  %v1163_v47 = vmax.f32 %v1111_v40, %v1143_v56  ;;  %v1169_v49 = vmax.f32 %v1153_v51, %v1161_v41 }
 0x18e   : > { %1232 = vst.msk [vmem:[%s2198_s26 + $0xc] sm:$0xf] %vm1228_vm1, %v1473_v42  ;;  %v1114_v48 = vadd.f32 %v2168_v26, %v1565_v31  ;;  %v1162_v17 = vmax.f32 %v1106_v12, %v1138_v45 }
 0x18f   : > { %1230 = vst.msk [vmem:[%s2198_s26 + $0x4] sm:$0xf] %vm1228_vm1, %v1471_v46  ;;  %v1171_v37 = vmax.f32 %v1155_v55, %v1163_v47  ;;  %v1184_v53 = vadd.f32 %v1459_v4, %v1169_v49 }
 0x190   : > { %v1164_v61 = vmax.f32 %v1114_v48, %v1146_v43  ;;  %v1170_v8 = vmax.f32 %v1154_v58, %v1162_v17 }
 0x191   : > { %v1186_v44 = vadd.f32 %v1459_v4, %v1171_v37  ;;  %v1192_v51 = vmax.f32 %v1184_v53, 0.0 }
 0x192   : > { %v1172_v26 = vmax.f32 %v1156_v60, %v1164_v61  ;;  %v1185_v62 = vadd.f32 %v1459_v4, %v1170_v8 }
 0x193   : > { %v1194_v0 = vmax.f32 %v1186_v44, 0.0  ;;  %v1474_v1 = vpack.c.bf16 %v1192_v51, %v1192_v51 }
 0x194   : > { %v1187_v2 = vadd.f32 %v1459_v4, %v1172_v26  ;;  %v1193_v50 = vmax.f32 %v1185_v62, 0.0 }
 0x195   : > { %v1476_v55 = vpack.c.bf16 %v1194_v0, %v1194_v0  ;;  %1233 = vst.msk [vmem:[%s2198_s26 + $0x10] sm:$0xf] %vm1228_vm1, %v1474_v1 }
 0x196   : > { %v1195_v3 = vmax.f32 %v1187_v2, 0.0  ;;  %v1475_v19 = vpack.c.bf16 %v1193_v50, %v1193_v50 }
 0x197   : > { %1235 = vst.msk [vmem:[%s2198_s26 + $0x18] sm:$0xf] %vm1228_vm1, %v1476_v55 }
 0x198   : > { %v1477_v16 = vpack.c.bf16 %v1195_v3, %v1195_v3  ;;  %1234 = vst.msk [vmem:[%s2198_s26 + $0x14] sm:$0xf] %vm1228_vm1, %v1475_v19 }
 0x19a   : > { %1236 = vst.msk [vmem:[%s2198_s26 + $0x1c] sm:$0xf] %vm1228_vm1, %v1477_v16 }
 0x19b PF: > { %p10_p9 = scmp.ge.s32.totalorder %s1830_s16, 4   ;;  %s2247_s12 = smov %s1787_s13 }
 0x19c   : > { %s2248_s13 = smov %s1839_s19  ;;  %s2249_s14 = smov %s1830_s16 }
 0x19d   :  { %12 = sbr.rel (!%p10_p9) target bundleno = 2 (0x2), region = 99 }

// kernel: iris_forward.7
= control target key start
LH: loop header
LB: loop body
LE: loop exit
PB: predicated region body
PF: predicated region fallthrough
CT: control target
= control target key end

     0   :  { %v1052_v36 = vlaneseq  ;;  %v10928_v37 = vmov 1966171168   ;;  %s14333_s0 = inlined_call_operand.vmem [shape: bf16[2,4096], index: 0, kind: input, shape index: {}]   ;;  %s14334_s1 = inlined_call_operand.vmem [shape: bf16[4096,512], index: 1, kind: input, shape index: {}]   ;;  %s14335_s2 = inlined_call_operand.vmem [shape: f32[1,512], index: 2, kind: input, shape index: {}]   ;;  %s14336_s3 = inlined_call_operand.vmem [shape: bf16[512,3], index: 3, kind: input, shape index: {}]   ;;  %s14337_s4 = inlined_call_operand.vmem [shape: f32[1,3], index: 4, kind: input, shape index: {}]   ;;  %s14338_s5 = inlined_call_operand.hbm [shape: f32[2,3], index: 5, kind: output, shape index: {}]  }
   0x1   :  { %v9330_v0 = vld [vmem:[%s14334_s1 + $0x4] ss:$16 sps:$4 sm:$0xff]   ;;  %v9332_v1 = vld [vmem:[%s14334_s1 + $0xc] ss:$16 sps:$4 sm:$0xff]   ;;  %v9334_v2 = vld [vmem:[%s14334_s1] ss:$16 sps:$4 sm:$0xff]   ;;  %v1078_v38 = vunpack.c.l.s4 %v10928_v37 }
   0x2   :  { %6424 = vmatprep.subr.bf16.mxu0 %v9330_v0  ;;  %v9335_v3 = vld [vmem:[%s14334_s1 + $0x8] ss:$16 sps:$4 sm:$0xff]   ;;  %7080 = vmatprep.subr.bf16.mxu1 %v9332_v1  ;;  %v9336_v4 = vld [vmem:[%s14334_s1 + $0x24] ss:$16 sps:$4 sm:$0xff]   ;;  %v9338_v5 = vld [vmem:[%s14334_s1 + $0x2c] ss:$16 sps:$4 sm:$0xff]  }
   0x3   :  { %6425 = vmatpush1.bf16.msra.mxu0 %v9334_v2  ;;  %7081 = vmatpush1.bf16.msra.mxu1 %v9335_v3  ;;  %v9340_v6 = vld [vmem:[%s14334_s1 + $0x20] ss:$16 sps:$4 sm:$0xff]   ;;  %v9341_v7 = vld [vmem:[%s14334_s1 + $0x28] ss:$16 sps:$4 sm:$0xff]   ;;  %v9342_v8 = vld [vmem:[%s14334_s1 + $0x44] ss:$16 sps:$4 sm:$0xff]   ;;  %v1079_v43 = vunpack.c.0.s8 %v1078_v38 }
   0x4   :  { %6426 = vmatprep.subr.bf16.mxu0 %v9336_v4  ;;  %7082 = vmatprep.subr.bf16.mxu1 %v9338_v5  ;;  %v9344_v9 = vld [vmem:[%s14334_s1 + $0x4c] ss:$16 sps:$4 sm:$0xff]   ;;  %v9346_v10 = vld [vmem:[%s14334_s1 + $0x40] ss:$16 sps:$4 sm:$0xff]   ;;  %v9347_v11 = vld [vmem:[%s14334_s1 + $0x48] ss:$16 sps:$4 sm:$0xff]  }
   0x5   :  { %v9348_v12 = vld [vmem:[%s14334_s1 + $0x64] ss:$16 sps:$4 sm:$0xff]   ;;  %v9350_v13 = vld [vmem:[%s14334_s1 + $0x6c] ss:$16 sps:$4 sm:$0xff]   ;;  %v9352_v14 = vld [vmem:[%s14334_s1 + $0x60] ss:$16 sps:$4 sm:$0xff]  }
   0x6   :  { %v9353_v15 = vld [vmem:[%s14334_s1 + $0x68] ss:$16 sps:$4 sm:$0xff]   ;;  %v9354_v16 = vld [vmem:[%s14334_s1 + $0x84] ss:$16 sps:$4 sm:$0xff]   ;;  %v9356_v17 = vld [vmem:[%s14334_s1 + $0x8c] ss:$16 sps:$4 sm:$0xff]  }
   0x7   :  { %6427 = vmatpush1.bf16.msra.mxu0 %v9340_v6  ;;  %7083 = vmatpush1.bf16.msra.mxu1 %v9341_v7  ;;  %v9358_v18 = vld [vmem:[%s14334_s1 + $0x80] ss:$16 sps:$4 sm:$0xff]   ;;  %v9359_v19 = vld [vmem:[%s14334_s1 + $0x88] ss:$16 sps:$4 sm:$0xff]   ;;  %v9360_v20 = vld [vmem:[%s14334_s1 + $0xa4] ss:$16 sps:$4 sm:$0xff]  }
   0x8   :  { %6428 = vmatprep.subr.bf16.mxu0 %v9342_v8  ;;  %7084 = vmatprep.subr.bf16.mxu1 %v9344_v9  ;;  %v9362_v21 = vld [vmem:[%s14334_s1 + $0xac] ss:$16 sps:$4 sm:$0xff]   ;;  %v9364_v22 = vld [vmem:[%s14334_s1 + $0xa0] ss:$16 sps:$4 sm:$0xff]   ;;  %v9365_v23 = vld [vmem:[%s14334_s1 + $0xa8] ss:$16 sps:$4 sm:$0xff]  }
   0x9   :  { %v9366_v24 = vld [vmem:[%s14334_s1 + $0xc4] ss:$16 sps:$4 sm:$0xff]   ;;  %v9368_v25 = vld [vmem:[%s14334_s1 + $0xcc] ss:$16 sps:$4 sm:$0xff]   ;;  %v9370_v26 = vld [vmem:[%s14334_s1 + $0xc0] ss:$16 sps:$4 sm:$0xff]  }
   0xa   :  { %v9371_v27 = vld [vmem:[%s14334_s1 + $0xc8] ss:$16 sps:$4 sm:$0xff]   ;;  %v9372_v28 = vld [vmem:[%s14334_s1 + $0xe4] ss:$16 sps:$4 sm:$0xff]   ;;  %v9374_v29 = vld [vmem:[%s14334_s1 + $0xec] ss:$16 sps:$4 sm:$0xff]  }
   0xb   :  { %6429 = vmatpush1.bf16.msra.mxu0 %v9346_v10  ;;  %7085 = vmatpush1.bf16.msra.mxu1 %v9347_v11  ;;  %v9376_v30 = vld [vmem:[%s14334_s1 + $0xe0] ss:$16 sps:$4 sm:$0xff]   ;;  %v9377_v31 = vld [vmem:[%s14334_s1 + $0xe8] ss:$16 sps:$4 sm:$0xff]   ;;  %v9378_v32 = vld [vmem:[%s14334_s1 + $0x104] ss:$16 sps:$4 sm:$0xff]  }
   0xc   :  { %6430 = vmatprep.subr.bf16.mxu0 %v9348_v12  ;;  %7086 = vmatprep.subr.bf16.mxu1 %v9350_v13  ;;  %v9380_v33 = vld [vmem:[%s14334_s1 + $0x10c] ss:$16 sps:$4 sm:$0xff]   ;;  %v9382_v34 = vld [vmem:[%s14334_s1 + $0x100] ss:$16 sps:$4 sm:$0xff]   ;;  %v9383_v35 = vld [vmem:[%s14334_s1 + $0x108] ss:$16 sps:$4 sm:$0xff]  }
   0xd   :  { %v9384_v39 = vld [vmem:[%s14334_s1 + $0x124] ss:$16 sps:$4 sm:$0xff]   ;;  %v9386_v40 = vld [vmem:[%s14334_s1 + $0x12c] ss:$16 sps:$4 sm:$0xff]   ;;  %v9388_v41 = vld [vmem:[%s14334_s1 + $0x120] ss:$16 sps:$4 sm:$0xff]  }
   0xe   :  { %v11077_v42 = vshrl.u32 %v1052_v36, 7  ;;  %v9389_v44 = vld [vmem:[%s14334_s1 + $0x128] ss:$16 sps:$4 sm:$0xff]   ;;  %v9390_v45 = vld [vmem:[%s14334_s1 + $0x144] ss:$16 sps:$4 sm:$0xff]  }
   0xf   :  { %6431 = vmatpush1.bf16.msra.mxu0 %v9352_v14  ;;  %7087 = vmatpush1.bf16.msra.mxu1 %v9353_v15  ;;  %v9392_v46 = vld [vmem:[%s14334_s1 + $0x14c] ss:$16 sps:$4 sm:$0xff]   ;;  %v9394_v47 = vld [vmem:[%s14334_s1 + $0x140] ss:$16 sps:$4 sm:$0xff]   ;;  %v9395_v48 = vld [vmem:[%s14334_s1 + $0x148] ss:$16 sps:$4 sm:$0xff]  }
  0x10   :  { %6432 = vmatprep.subr.bf16.mxu0 %v9354_v16  ;;  %7088 = vmatprep.subr.bf16.mxu1 %v9356_v17  ;;  %v11095_v49 = vsub.s32 %v1079_v43, %v11077_v42  ;;  %v9396_v50 = vld [vmem:[%s14334_s1 + $0x164] ss:$16 sps:$4 sm:$0xff]   ;;  %v9398_v51 = vld [vmem:[%s14334_s1 + $0x16c] ss:$16 sps:$4 sm:$0xff]   ;;  %v9400_v53 = vld [vmem:[%s14334_s1 + $0x160] ss:$16 sps:$4 sm:$0xff]  }
  0x11   :  { %v11106_v52 = vld [vmem:[%s14333_s0] sm:$0xff]  ;;  %v9401_v55 = vld [vmem:[%s14334_s1 + $0x168] ss:$16 sps:$4 sm:$0xff]   ;;  %v9404_v57 = vld [vmem:[%s14334_s1 + $0x18c] ss:$16 sps:$4 sm:$0xff]  }
  0x12   :  { %v1083_v54 = vrot.slane %v11106_v52, %v11095_v49  ;;  %v9402_v56 = vld [vmem:[%s14334_s1 + $0x184] ss:$16 sps:$4 sm:$0xff]   ;;  %v9406_v59 = vld [vmem:[%s14334_s1 + $0x180] ss:$16 sps:$4 sm:$0xff]   ;;  %v9407_v61 = vld [vmem:[%s14334_s1 + $0x188] ss:$16 sps:$4 sm:$0xff]  }
  0x13   :  { %6433 = vmatpush1.bf16.msra.mxu0 %v9358_v18  ;;  %7089 = vmatpush1.bf16.msra.mxu1 %v9359_v19  ;;  %v9408_v62 = vld [vmem:[%s14334_s1 + $0x1a4] ss:$16 sps:$4 sm:$0xff]   ;;  %v9410_v63 = vld [vmem:[%s14334_s1 + $0x1ac] ss:$16 sps:$4 sm:$0xff]   ;;  %v9412_v0 = vld [vmem:[%s14334_s1 + $0x1a0] ss:$16 sps:$4 sm:$0xff]  }
  0x14   :  { %6434 = vmatprep.subr.bf16.mxu0 %v9360_v20  ;;  %7090 = vmatprep.subr.bf16.mxu1 %v9362_v21  ;;  %v1091_v58 = vcombine.high %v1083_v54, %v1083_v54  ;;  %v9413_v1 = vld [vmem:[%s14334_s1 + $0x1a8] ss:$16 sps:$4 sm:$0xff]   ;;  %v9414_v2 = vld [vmem:[%s14334_s1 + $0x1c4] ss:$16 sps:$4 sm:$0xff]   ;;  %v9416_v3 = vld [vmem:[%s14334_s1 + $0x1cc] ss:$16 sps:$4 sm:$0xff]   ;;  %v11175_v13 = vrot.slane %v1083_v54, %v11095_v49 }
  0x15   :  { %v9418_v4 = vld [vmem:[%s14334_s1 + $0x1c0] ss:$16 sps:$4 sm:$0xff]   ;;  %v9419_v5 = vld [vmem:[%s14334_s1 + $0x1c8] ss:$16 sps:$4 sm:$0xff]   ;;  %v9420_v6 = vld [vmem:[%s14334_s1 + $0x1e4] ss:$16 sps:$4 sm:$0xff]  }
  0x16   :  { %v1113_v60 = vrot.slane %v1091_v58, %v11095_v49  ;;  %v9422_v7 = vld [vmem:[%s14334_s1 + $0x1ec] ss:$16 sps:$4 sm:$0xff]   ;;  %v9424_v8 = vld [vmem:[%s14334_s1 + $0x1e0] ss:$16 sps:$4 sm:$0xff]   ;;  %v9425_v9 = vld [vmem:[%s14334_s1 + $0x1e8] ss:$16 sps:$4 sm:$0xff]  }
  0x17   :  { %6435 = vmatpush1.bf16.msra.mxu0 %v9364_v22  ;;  %7091 = vmatpush1.bf16.msra.mxu1 %v9365_v23  ;;  %v9428_v10 = vld [vmem:[%s14334_s1 + $0x204] ss:$16 sps:$4 sm:$0xff]   ;;  %v9431_v11 = vld [vmem:[%s14334_s1 + $0x20c] ss:$16 sps:$4 sm:$0xff]   ;;  %v9426_v12 = vld [vmem:[%s14334_s1 + $0x200] ss:$16 sps:$4 sm:$0xff]  }
  0x18   :  { %6436 = vmatprep.subr.bf16.mxu0 %v9366_v24  ;;  %7092 = vmatprep.subr.bf16.mxu1 %v9368_v25  ;;  %v9429_v14 = vld [vmem:[%s14334_s1 + $0x208] ss:$16 sps:$4 sm:$0xff]   ;;  %v9434_v15 = vld [vmem:[%s14334_s1 + $0x224] ss:$16 sps:$4 sm:$0xff]   ;;  %v9437_v16 = vld [vmem:[%s14334_s1 + $0x22c] ss:$16 sps:$4 sm:$0xff]   ;;  %v1123_v17 = vcombine.high %v1113_v60, %v1113_v60 }
  0x19   :  { %6456 = vmatprep.mubr.bf16.mxu0 %v1113_v60  ;;  %7112 = vmatprep.mubr.bf16.mxu1 %v1113_v60  ;;  %v9432_v18 = vld [vmem:[%s14334_s1 + $0x220] ss:$16 sps:$4 sm:$0xff]   ;;  %v9435_v19 = vld [vmem:[%s14334_s1 + $0x228] ss:$16 sps:$4 sm:$0xff]   ;;  %v9440_v20 = vld [vmem:[%s14334_s1 + $0x244] ss:$16 sps:$4 sm:$0xff]  }
  0x1a   :  { %v9443_v21 = vld [vmem:[%s14334_s1 + $0x24c] ss:$16 sps:$4 sm:$0xff]   ;;  %v9438_v22 = vld [vmem:[%s14334_s1 + $0x240] ss:$16 sps:$4 sm:$0xff]   ;;  %v9441_v23 = vld [vmem:[%s14334_s1 + $0x248] ss:$16 sps:$4 sm:$0xff]  }
  0x1b   :  { %6437 = vmatpush1.bf16.msra.mxu0 %v9370_v26  ;;  %7093 = vmatpush1.bf16.msra.mxu1 %v9371_v27  ;;  %v9446_v24 = vld [vmem:[%s14334_s1 + $0x264] ss:$16 sps:$4 sm:$0xff]   ;;  %v9449_v25 = vld [vmem:[%s14334_s1 + $0x26c] ss:$16 sps:$4 sm:$0xff]   ;;  %v9444_v26 = vld [vmem:[%s14334_s1 + $0x260] ss:$16 sps:$4 sm:$0xff]  }
  0x1c   :  { %6438 = vmatprep.subr.bf16.mxu0 %v9372_v28  ;;  %7094 = vmatprep.subr.bf16.mxu1 %v9374_v29  ;;  %v9447_v27 = vld [vmem:[%s14334_s1 + $0x268] ss:$16 sps:$4 sm:$0xff]   ;;  %v9452_v28 = vld [vmem:[%s14334_s1 + $0x284] ss:$16 sps:$4 sm:$0xff]   ;;  %v9455_v29 = vld [vmem:[%s14334_s1 + $0x28c] ss:$16 sps:$4 sm:$0xff]  }
  0x1d   :  { %v9464_v36 = vld [vmem:[%s14334_s1 + $0x2c4] ss:$16 sps:$4 sm:$0xff]   ;;  %v9467_v37 = vld [vmem:[%s14334_s1 + $0x2cc] ss:$16 sps:$4 sm:$0xff]   ;;  %v9462_v38 = vld [vmem:[%s14334_s1 + $0x2c0] ss:$16 sps:$4 sm:$0xff]  }
  0x1e   :  { %v9468_v43 = vld [vmem:[%s14334_s1 + $0x2e0] ss:$16 sps:$4 sm:$0xff]   ;;  %v9483_v54 = vld [vmem:[%s14334_s1 + $0x328] ss:$16 sps:$4 sm:$0xff]   ;;  %v9497_v60 = vld [vmem:[%s14334_s1 + $0x36c] ss:$16 sps:$4 sm:$0xff]  }
  0x1f   :  { %6439 = vmatpush1.bf16.msra.mxu0 %v9376_v30  ;;  %7095 = vmatpush1.bf16.msra.mxu1 %v9377_v31  ;;  %v9450_v30 = vld [vmem:[%s14334_s1 + $0x280] ss:$16 sps:$4 sm:$0xff]   ;;  %v9453_v31 = vld [vmem:[%s14334_s1 + $0x288] ss:$16 sps:$4 sm:$0xff]  }
  0x20   :  { %6440 = vmatprep.subr.bf16.mxu0 %v9378_v32  ;;  %7096 = vmatprep.subr.bf16.mxu1 %v9380_v33  ;;  %v9458_v32 = vld [vmem:[%s14334_s1 + $0x2a4] ss:$16 sps:$4 sm:$0xff]   ;;  %v9461_v33 = vld [vmem:[%s14334_s1 + $0x2ac] ss:$16 sps:$4 sm:$0xff]   ;;  %v9489_v58 = vld [vmem:[%s14334_s1 + $0x348] ss:$16 sps:$4 sm:$0xff]  }
  0x23   :  { %6441 = vmatpush1.bf16.msra.mxu0 %v9382_v34  ;;  %7097 = vmatpush1.bf16.msra.mxu1 %v9383_v35  ;;  %v9456_v34 = vld [vmem:[%s14334_s1 + $0x2a0] ss:$16 sps:$4 sm:$0xff]   ;;  %v9459_v35 = vld [vmem:[%s14334_s1 + $0x2a8] ss:$16 sps:$4 sm:$0xff]  }
  0x24   :  { %6442 = vmatprep.subr.bf16.mxu0 %v9384_v39  ;;  %7098 = vmatprep.subr.bf16.mxu1 %v9386_v40  ;;  %v9465_v39 = vld [vmem:[%s14334_s1 + $0x2c8] ss:$16 sps:$4 sm:$0xff]   ;;  %v9470_v40 = vld [vmem:[%s14334_s1 + $0x2e4] ss:$16 sps:$4 sm:$0xff]  }
  0x27   :  { %6443 = vmatpush1.bf16.msra.mxu0 %v9388_v41  ;;  %7099 = vmatpush1.bf16.msra.mxu1 %v9389_v44  ;;  %v9473_v41 = vld [vmem:[%s14334_s1 + $0x2ec] ss:$16 sps:$4 sm:$0xff]   ;;  %v9471_v44 = vld [vmem:[%s14334_s1 + $0x2e8] ss:$16 sps:$4 sm:$0xff]  }
  0x28   :  { %6444 = vmatprep.subr.bf16.mxu0 %v9390_v45  ;;  %7100 = vmatprep.subr.bf16.mxu1 %v9392_v46  ;;  %v9476_v45 = vld [vmem:[%s14334_s1 + $0x304] ss:$16 sps:$4 sm:$0xff]   ;;  %v9479_v46 = vld [vmem:[%s14334_s1 + $0x30c] ss:$16 sps:$4 sm:$0xff]  }
  0x2b   :  { %6445 = vmatpush1.bf16.msra.mxu0 %v9394_v47  ;;  %7101 = vmatpush1.bf16.msra.mxu1 %v9395_v48  ;;  %v9474_v47 = vld [vmem:[%s14334_s1 + $0x300] ss:$16 sps:$4 sm:$0xff]   ;;  %v9477_v48 = vld [vmem:[%s14334_s1 + $0x308] ss:$16 sps:$4 sm:$0xff]  }
  0x2c   :  { %6446 = vmatprep.subr.bf16.mxu0 %v9396_v50  ;;  %7102 = vmatprep.subr.bf16.mxu1 %v9398_v51  ;;  %v9482_v50 = vld [vmem:[%s14334_s1 + $0x324] ss:$16 sps:$4 sm:$0xff]   ;;  %v9485_v51 = vld [vmem:[%s14334_s1 + $0x32c] ss:$16 sps:$4 sm:$0xff]  }
  0x2f   :  { %6447 = vmatpush1.bf16.msra.mxu0 %v9400_v53  ;;  %7103 = vmatpush1.bf16.msra.mxu1 %v9401_v55  ;;  %v9480_v53 = vld [vmem:[%s14334_s1 + $0x320] ss:$16 sps:$4 sm:$0xff]   ;;  %v9488_v55 = vld [vmem:[%s14334_s1 + $0x344] ss:$16 sps:$4 sm:$0xff]  }
  0x30   :  { %6448 = vmatprep.subr.bf16.mxu0 %v9402_v56  ;;  %7104 = vmatprep.subr.bf16.mxu1 %v9404_v57  ;;  %v9491_v56 = vld [vmem:[%s14334_s1 + $0x34c] ss:$16 sps:$4 sm:$0xff]   ;;  %v9486_v57 = vld [vmem:[%s14334_s1 + $0x340] ss:$16 sps:$4 sm:$0xff]  }
  0x33   :  { %6449 = vmatpush1.bf16.msra.mxu0 %v9406_v59  ;;  %7105 = vmatpush1.bf16.msra.mxu1 %v9407_v61  ;;  %v9494_v59 = vld [vmem:[%s14334_s1 + $0x364] ss:$16 sps:$4 sm:$0xff]   ;;  %v9492_v61 = vld [vmem:[%s14334_s1 + $0x360] ss:$16 sps:$4 sm:$0xff]  }
  0x34   :  { %6450 = vmatprep.subr.bf16.mxu0 %v9408_v62  ;;  %7106 = vmatprep.subr.bf16.mxu1 %v9410_v63  ;;  %v9495_v62 = vld [vmem:[%s14334_s1 + $0x368] ss:$16 sps:$4 sm:$0xff]   ;;  %v9500_v63 = vld [vmem:[%s14334_s1 + $0x384] ss:$16 sps:$4 sm:$0xff]  }
  0x37   :  { %6451 = vmatpush1.bf16.msra.mxu0 %v9412_v0  ;;  %7107 = vmatpush1.bf16.msra.mxu1 %v9413_v1  ;;  %v9503_v0 = vld [vmem:[%s14334_s1 + $0x38c] ss:$16 sps:$4 sm:$0xff]   ;;  %v9498_v1 = vld [vmem:[%s14334_s1 + $0x380] ss:$16 sps:$4 sm:$0xff]  }
  0x38   :  { %6452 = vmatprep.subr.bf16.mxu0 %v9414_v2  ;;  %7108 = vmatprep.subr.bf16.mxu1 %v9416_v3  ;;  %v9501_v2 = vld [vmem:[%s14334_s1 + $0x388] ss:$16 sps:$4 sm:$0xff]   ;;  %v9506_v3 = vld [vmem:[%s14334_s1 + $0x3a4] ss:$16 sps:$4 sm:$0xff]  }
  0x3b   :  { %6453 = vmatpush1.bf16.msra.mxu0 %v9418_v4  ;;  %7109 = vmatpush1.bf16.msra.mxu1 %v9419_v5  ;;  %v9509_v4 = vld [vmem:[%s14334_s1 + $0x3ac] ss:$16 sps:$4 sm:$0xff]   ;;  %v9504_v5 = vld [vmem:[%s14334_s1 + $0x3a0] ss:$16 sps:$4 sm:$0xff]  }
  0x3c   :  { %6454 = vmatprep.subr.bf16.mxu0 %v9420_v6  ;;  %7110 = vmatprep.subr.bf16.mxu1 %v9422_v7  ;;  %v9507_v6 = vld [vmem:[%s14334_s1 + $0x3a8] ss:$16 sps:$4 sm:$0xff]   ;;  %v9512_v7 = vld [vmem:[%s14334_s1 + $0x3c4] ss:$16 sps:$4 sm:$0xff]  }
  0x3f   :  { %6455 = vmatpush1.bf16.msra.mxu0 %v9424_v8  ;;  %7111 = vmatpush1.bf16.msra.mxu1 %v9425_v9  ;;  %v9515_v8 = vld [vmem:[%s14334_s1 + $0x3cc] ss:$16 sps:$4 sm:$0xff]   ;;  %v1076_v9 = vcombine.high %v11106_v52, %v11106_v52 }
  0x40   :  { %6465 = vmatprep.subr.bf16.mxu0 %v9428_v10  ;;  %7121 = vmatprep.subr.bf16.mxu1 %v9431_v11  ;;  %v9510_v10 = vld [vmem:[%s14334_s1 + $0x3c0] ss:$16 sps:$4 sm:$0xff]   ;;  %v9513_v11 = vld [vmem:[%s14334_s1 + $0x3c8] ss:$16 sps:$4 sm:$0xff]   ;;  %v9521_v52 = vld [vmem:[%s14334_s1 + $0x3ec] ss:$16 sps:$4 sm:$0xff]  }
  0x42   :  { %6457 = vmatmul.mubr.bf16.vlgmr.msra.gmra.mrb[0].mxu0 %v11175_v13  ;;  %7113 = vmatmul.mubr.bf16.vlgmr.msra.gmra.mrb[0].mxu1 %v11175_v13 }
  0x43   :  { %6466 = vmatpush1.bf16.msra.mxu0 %v9426_v12  ;;  %7122 = vmatpush1.bf16.msra.mxu1 %v9429_v14  ;;  %v9518_v12 = vld [vmem:[%s14334_s1 + $0x3e4] ss:$16 sps:$4 sm:$0xff]   ;;  %v11359_v14 = vrot.slane %v1076_v9, %v11095_v49  ;;  %v9597_v9 = vld [vmem:[%s14334_s1 + $0x588] ss:$16 sps:$4 sm:$0xff]  }
  0x44   :  { %6467 = vmatprep.subr.bf16.mxu0 %v9434_v15  ;;  %7123 = vmatprep.subr.bf16.mxu1 %v9437_v16  ;;  %v9516_v15 = vld [vmem:[%s14334_s1 + $0x3e0] ss:$16 sps:$4 sm:$0xff]   ;;  %v9519_v16 = vld [vmem:[%s14334_s1 + $0x3e8] ss:$16 sps:$4 sm:$0xff]  }
  0x45   :  { %6497 = vmatprep.mubr.bf16.mxu0 %v1123_v17  ;;  %7153 = vmatprep.mubr.bf16.mxu1 %v1123_v17  ;;  %v9524_v17 = vld [vmem:[%s14334_s1 + $0x404] ss:$16 sps:$4 sm:$0xff]  }
  0x47   :  { %6468 = vmatpush1.bf16.msra.mxu0 %v9432_v18  ;;  %7124 = vmatpush1.bf16.msra.mxu1 %v9435_v19  ;;  %v9527_v18 = vld [vmem:[%s14334_s1 + $0x40c] ss:$16 sps:$4 sm:$0xff]   ;;  %v1092_v19 = vcombine.high %v11359_v14, %v11359_v14 }
  0x48   :  { %6469 = vmatprep.subr.bf16.mxu0 %v9440_v20  ;;  %7125 = vmatprep.subr.bf16.mxu1 %v9443_v21  ;;  %v9522_v20 = vld [vmem:[%s14334_s1 + $0x400] ss:$16 sps:$4 sm:$0xff]   ;;  %v1121_v21 = vcombine.high %v11175_v13, %v11175_v13 }
  0x49   :  { %v9528_v13 = vld [vmem:[%s14334_s1 + $0x420] ss:$16 sps:$4 sm:$0xff]  }
  0x4b   :  { %6470 = vmatpush1.bf16.msra.mxu0 %v9438_v22  ;;  %7126 = vmatpush1.bf16.msra.mxu1 %v9441_v23  ;;  %v9525_v22 = vld [vmem:[%s14334_s1 + $0x408] ss:$16 sps:$4 sm:$0xff]   ;;  %v9530_v23 = vld [vmem:[%s14334_s1 + $0x424] ss:$16 sps:$4 sm:$0xff]  }
  0x4c   :  { %6471 = vmatprep.subr.bf16.mxu0 %v9446_v24  ;;  %7127 = vmatprep.subr.bf16.mxu1 %v9449_v25  ;;  %v9533_v24 = vld [vmem:[%s14334_s1 + $0x42c] ss:$16 sps:$4 sm:$0xff]   ;;  %v11390_v25 = vrot.slane %v1092_v19, %v11095_v49  ;;  %v9614_v19 = vld [vmem:[%s14334_s1 + $0x5e4] ss:$16 sps:$4 sm:$0xff]  }
  0x4f   :  { %6472 = vmatpush1.bf16.msra.mxu0 %v9444_v26  ;;  %7128 = vmatpush1.bf16.msra.mxu1 %v9447_v27  ;;  %v9531_v26 = vld [vmem:[%s14334_s1 + $0x428] ss:$16 sps:$4 sm:$0xff]   ;;  %v9536_v27 = vld [vmem:[%s14334_s1 + $0x444] ss:$16 sps:$4 sm:$0xff]  }
  0x50   :  { %6473 = vmatprep.subr.bf16.mxu0 %v9452_v28  ;;  %7129 = vmatprep.subr.bf16.mxu1 %v9455_v29  ;;  %v9539_v28 = vld [vmem:[%s14334_s1 + $0x44c] ss:$16 sps:$4 sm:$0xff]   ;;  %v9534_v29 = vld [vmem:[%s14334_s1 + $0x440] ss:$16 sps:$4 sm:$0xff]  }
  0x53   :  { %6474 = vmatpush1.bf16.msra.mxu0 %v9450_v30  ;;  %7130 = vmatpush1.bf16.msra.mxu1 %v9453_v31  ;;  %v9537_v30 = vld [vmem:[%s14334_s1 + $0x448] ss:$16 sps:$4 sm:$0xff]   ;;  %v9542_v31 = vld [vmem:[%s14334_s1 + $0x464] ss:$16 sps:$4 sm:$0xff]  }
  0x54   :  { %6475 = vmatprep.subr.bf16.mxu0 %v9458_v32  ;;  %7131 = vmatprep.subr.bf16.mxu1 %v9461_v33  ;;  %v9545_v32 = vld [vmem:[%s14334_s1 + $0x46c] ss:$16 sps:$4 sm:$0xff]   ;;  %v9540_v33 = vld [vmem:[%s14334_s1 + $0x460] ss:$16 sps:$4 sm:$0xff]  }
  0x57   :  { %6476 = vmatpush1.bf16.msra.mxu0 %v9456_v34  ;;  %7132 = vmatpush1.bf16.msra.mxu1 %v9459_v35  ;;  %v9543_v34 = vld [vmem:[%s14334_s1 + $0x468] ss:$16 sps:$4 sm:$0xff]   ;;  %v9548_v35 = vld [vmem:[%s14334_s1 + $0x484] ss:$16 sps:$4 sm:$0xff]  }
  0x58   :  { %6477 = vmatprep.subr.bf16.mxu0 %v9464_v36  ;;  %7133 = vmatprep.subr.bf16.mxu1 %v9467_v37  ;;  %v9551_v36 = vld [vmem:[%s14334_s1 + $0x48c] ss:$16 sps:$4 sm:$0xff]   ;;  %v9546_v37 = vld [vmem:[%s14334_s1 + $0x480] ss:$16 sps:$4 sm:$0xff]  }
  0x5b   :  { %6478 = vmatpush1.bf16.msra.mxu0 %v9462_v38  ;;  %7134 = vmatpush1.bf16.msra.mxu1 %v9465_v39  ;;  %v9549_v38 = vld [vmem:[%s14334_s1 + $0x488] ss:$16 sps:$4 sm:$0xff]   ;;  %v9554_v39 = vld [vmem:[%s14334_s1 + $0x4a4] ss:$16 sps:$4 sm:$0xff]  }
  0x5c   :  { %6479 = vmatprep.subr.bf16.mxu0 %v9470_v40  ;;  %7135 = vmatprep.subr.bf16.mxu1 %v9473_v41  ;;  %v9557_v40 = vld [vmem:[%s14334_s1 + $0x4ac] ss:$16 sps:$4 sm:$0xff]   ;;  %v9552_v41 = vld [vmem:[%s14334_s1 + $0x4a0] ss:$16 sps:$4 sm:$0xff]  }
  0x5f   :  { %6480 = vmatpush1.bf16.msra.mxu0 %v9468_v43  ;;  %7136 = vmatpush1.bf16.msra.mxu1 %v9471_v44  ;;  %v9555_v43 = vld [vmem:[%s14334_s1 + $0x4a8] ss:$16 sps:$4 sm:$0xff]   ;;  %v9560_v44 = vld [vmem:[%s14334_s1 + $0x4c4] ss:$16 sps:$4 sm:$0xff]  }
  0x60   :  { %6481 = vmatprep.subr.bf16.mxu0 %v9476_v45  ;;  %7137 = vmatprep.subr.bf16.mxu1 %v9479_v46  ;;  %v9563_v45 = vld [vmem:[%s14334_s1 + $0x4cc] ss:$16 sps:$4 sm:$0xff]   ;;  %v9558_v46 = vld [vmem:[%s14334_s1 + $0x4c0] ss:$16 sps:$4 sm:$0xff]  }
  0x63   :  { %6482 = vmatpush1.bf16.msra.mxu0 %v9474_v47  ;;  %7138 = vmatpush1.bf16.msra.mxu1 %v9477_v48  ;;  %v9561_v47 = vld [vmem:[%s14334_s1 + $0x4c8] ss:$16 sps:$4 sm:$0xff]   ;;  %v9566_v48 = vld [vmem:[%s14334_s1 + $0x4e4] ss:$16 sps:$4 sm:$0xff]  }
  0x64   :  { %6483 = vmatprep.subr.bf16.mxu0 %v9482_v50  ;;  %7139 = vmatprep.subr.bf16.mxu1 %v9485_v51  ;;  %v9569_v50 = vld [vmem:[%s14334_s1 + $0x4ec] ss:$16 sps:$4 sm:$0xff]   ;;  %v9564_v51 = vld [vmem:[%s14334_s1 + $0x4e0] ss:$16 sps:$4 sm:$0xff]  }
  0x67   :  { %6484 = vmatpush1.bf16.msra.mxu0 %v9480_v53  ;;  %7140 = vmatpush1.bf16.msra.mxu1 %v9483_v54  ;;  %v9567_v53 = vld [vmem:[%s14334_s1 + $0x4e8] ss:$16 sps:$4 sm:$0xff]   ;;  %v9572_v54 = vld [vmem:[%s14334_s1 + $0x504] ss:$16 sps:$4 sm:$0xff]  }
  0x68   :  { %6485 = vmatprep.subr.bf16.mxu0 %v9488_v55  ;;  %7141 = vmatprep.subr.bf16.mxu1 %v9491_v56  ;;  %v9575_v55 = vld [vmem:[%s14334_s1 + $0x50c] ss:$16 sps:$4 sm:$0xff]   ;;  %v9570_v56 = vld [vmem:[%s14334_s1 + $0x500] ss:$16 sps:$4 sm:$0xff]  }
  0x6b   :  { %6486 = vmatpush1.bf16.msra.mxu0 %v9486_v57  ;;  %7142 = vmatpush1.bf16.msra.mxu1 %v9489_v58  ;;  %v9573_v57 = vld [vmem:[%s14334_s1 + $0x508] ss:$16 sps:$4 sm:$0xff]   ;;  %v9578_v58 = vld [vmem:[%s14334_s1 + $0x524] ss:$16 sps:$4 sm:$0xff]  }
  0x6c   :  { %6487 = vmatprep.subr.bf16.mxu0 %v9494_v59  ;;  %7143 = vmatprep.subr.bf16.mxu1 %v9497_v60  ;;  %v9581_v59 = vld [vmem:[%s14334_s1 + $0x52c] ss:$16 sps:$4 sm:$0xff]   ;;  %v9576_v60 = vld [vmem:[%s14334_s1 + $0x520] ss:$16 sps:$4 sm:$0xff]  }
  0x6f   :  { %6488 = vmatpush1.bf16.msra.mxu0 %v9492_v61  ;;  %7144 = vmatpush1.bf16.msra.mxu1 %v9495_v62  ;;  %v9579_v61 = vld [vmem:[%s14334_s1 + $0x528] ss:$16 sps:$4 sm:$0xff]   ;;  %v9584_v62 = vld [vmem:[%s14334_s1 + $0x544] ss:$16 sps:$4 sm:$0xff]  }
  0x70   :  { %6489 = vmatprep.subr.bf16.mxu0 %v9500_v63  ;;  %7145 = vmatprep.subr.bf16.mxu1 %v9503_v0  ;;  %v9587_v63 = vld [vmem:[%s14334_s1 + $0x54c] ss:$16 sps:$4 sm:$0xff]   ;;  %v9582_v0 = vld [vmem:[%s14334_s1 + $0x540] ss:$16 sps:$4 sm:$0xff]  }
  0x73   :  { %6490 = vmatpush1.bf16.msra.mxu0 %v9498_v1  ;;  %7146 = vmatpush1.bf16.msra.mxu1 %v9501_v2  ;;  %v9585_v1 = vld [vmem:[%s14334_s1 + $0x548] ss:$16 sps:$4 sm:$0xff]   ;;  %v9590_v2 = vld [vmem:[%s14334_s1 + $0x564] ss:$16 sps:$4 sm:$0xff]  }
  0x74   :  { %6491 = vmatprep.subr.bf16.mxu0 %v9506_v3  ;;  %7147 = vmatprep.subr.bf16.mxu1 %v9509_v4  ;;  %v9593_v3 = vld [vmem:[%s14334_s1 + $0x56c] ss:$16 sps:$4 sm:$0xff]   ;;  %v9588_v4 = vld [vmem:[%s14334_s1 + $0x560] ss:$16 sps:$4 sm:$0xff]  }
  0x77   :  { %6492 = vmatpush1.bf16.msra.mxu0 %v9504_v5  ;;  %7148 = vmatpush1.bf16.msra.mxu1 %v9507_v6  ;;  %v9591_v5 = vld [vmem:[%s14334_s1 + $0x568] ss:$16 sps:$4 sm:$0xff]   ;;  %v9596_v6 = vld [vmem:[%s14334_s1 + $0x584] ss:$16 sps:$4 sm:$0xff]  }
  0x78   :  { %6493 = vmatprep.subr.bf16.mxu0 %v9512_v7  ;;  %7149 = vmatprep.subr.bf16.mxu1 %v9515_v8  ;;  %v9599_v7 = vld [vmem:[%s14334_s1 + $0x58c] ss:$16 sps:$4 sm:$0xff]   ;;  %v9594_v8 = vld [vmem:[%s14334_s1 + $0x580] ss:$16 sps:$4 sm:$0xff]  }
  0x7b   :  { %6494 = vmatpush1.bf16.msra.mxu0 %v9510_v10  ;;  %7150 = vmatpush1.bf16.msra.mxu1 %v9513_v11  ;;  %v9602_v10 = vld [vmem:[%s14334_s1 + $0x5a4] ss:$16 sps:$4 sm:$0xff]   ;;  %v9605_v11 = vld [vmem:[%s14334_s1 + $0x5ac] ss:$16 sps:$4 sm:$0xff]  }
  0x7c   :  { %6495 = vmatprep.subr.bf16.mxu0 %v9518_v12  ;;  %7151 = vmatprep.subr.bf16.mxu1 %v9521_v52  ;;  %v9600_v12 = vld [vmem:[%s14334_s1 + $0x5a0] ss:$16 sps:$4 sm:$0xff]   ;;  %v9603_v52 = vld [vmem:[%s14334_s1 + $0x5a8] ss:$16 sps:$4 sm:$0xff]  }
  0x7f   :  { %6496 = vmatpush1.bf16.msra.mxu0 %v9516_v15  ;;  %7152 = vmatpush1.bf16.msra.mxu1 %v9519_v16  ;;  %v9608_v15 = vld [vmem:[%s14334_s1 + $0x5c4] ss:$16 sps:$4 sm:$0xff]   ;;  %v9611_v16 = vld [vmem:[%s14334_s1 + $0x5cc] ss:$16 sps:$4 sm:$0xff]  }
  0x80   :  { %6506 = vmatprep.subr.bf16.mxu0 %v9524_v17  ;;  %7162 = vmatprep.subr.bf16.mxu1 %v9527_v18  ;;  %v9606_v17 = vld [vmem:[%s14334_s1 + $0x5c0] ss:$16 sps:$4 sm:$0xff]   ;;  %v9609_v18 = vld [vmem:[%s14334_s1 + $0x5c8] ss:$16 sps:$4 sm:$0xff]  }
  0x82   :  { %6498 = vmatmul.mubr.bf16.vlgmr.msra.gmra.mrb[0].mxu0 %v1121_v21  ;;  %7154 = vmatmul.mubr.bf16.vlgmr.msra.gmra.mrb[0].mxu1 %v1121_v21  ;;  %v9612_v21 = vld [vmem:[%s14334_s1 + $0x5e0] ss:$16 sps:$4 sm:$0xff]  }
  0x83   :  { %6507 = vmatpush1.bf16.msra.mxu0 %v9522_v20  ;;  %7163 = vmatpush1.bf16.msra.mxu1 %v9525_v22  ;;  %v9617_v20 = vld [vmem:[%s14334_s1 + $0x5ec] ss:$16 sps:$4 sm:$0xff]   ;;  %v9615_v22 = vld [vmem:[%s14334_s1 + $0x5e8] ss:$16 sps:$4 sm:$0xff]  }
  0x84   :  { %6508 = vmatprep.subr.bf16.mxu0 %v9530_v23  ;;  %7164 = vmatprep.subr.bf16.mxu1 %v9533_v24  ;;  %v9621_v23 = vld [vmem:[%s14334_s1 + $0x604] ss:$16 sps:$4 sm:$0xff]   ;;  %v9624_v24 = vld [vmem:[%s14334_s1 + $0x60c] ss:$16 sps:$4 sm:$0xff]  }
  0x85   :  { %6538 = vmatprep.mubr.bf16.mxu0 %v11390_v25  ;;  %7194 = vmatprep.mubr.bf16.mxu1 %v11390_v25 }
  0x87   :  { %6509 = vmatpush1.bf16.msra.mxu0 %v9528_v13  ;;  %7165 = vmatpush1.bf16.msra.mxu1 %v9531_v26  ;;  %v9619_v13 = vld [vmem:[%s14334_s1 + $0x600] ss:$16 sps:$4 sm:$0xff]   ;;  %v11579_v26 = vrot.slane %v11359_v14, %v11095_v49  ;;  %v1124_v14 = vcombine.high %v11390_v25, %v11390_v25  ;;  %v9633_v25 = vld [vmem:[%s14334_s1 + $0x644] ss:$16 sps:$4 sm:$0xff]  }
  0x88   :  { %6510 = vmatprep.subr.bf16.mxu0 %v9536_v27  ;;  %7166 = vmatprep.subr.bf16.mxu1 %v9539_v28  ;;  %v9622_v27 = vld [vmem:[%s14334_s1 + $0x608] ss:$16 sps:$4 sm:$0xff]   ;;  %v9627_v28 = vld [vmem:[%s14334_s1 + $0x624] ss:$16 sps:$4 sm:$0xff]  }
  0x8b   :  { %6511 = vmatpush1.bf16.msra.mxu0 %v9534_v29  ;;  %7167 = vmatpush1.bf16.msra.mxu1 %v9537_v30  ;;  %v9630_v29 = vld [vmem:[%s14334_s1 + $0x62c] ss:$16 sps:$4 sm:$0xff]   ;;  %v9625_v30 = vld [vmem:[%s14334_s1 + $0x620] ss:$16 sps:$4 sm:$0xff]  }
  0x8c   :  { %6512 = vmatprep.subr.bf16.mxu0 %v9542_v31  ;;  %7168 = vmatprep.subr.bf16.mxu1 %v9545_v32  ;;  %v9628_v31 = vld [vmem:[%s14334_s1 + $0x628] ss:$16 sps:$4 sm:$0xff]   ;;  %v9636_v32 = vld [vmem:[%s14334_s1 + $0x64c] ss:$16 sps:$4 sm:$0xff]  }
  0x8f   :  { %6513 = vmatpush1.bf16.msra.mxu0 %v9540_v33  ;;  %7169 = vmatpush1.bf16.msra.mxu1 %v9543_v34  ;;  %v9631_v33 = vld [vmem:[%s14334_s1 + $0x640] ss:$16 sps:$4 sm:$0xff]   ;;  %v9634_v34 = vld [vmem:[%s14334_s1 + $0x648] ss:$16 sps:$4 sm:$0xff]  }
  0x90   :  { %6514 = vmatprep.subr.bf16.mxu0 %v9548_v35  ;;  %7170 = vmatprep.subr.bf16.mxu1 %v9551_v36  ;;  %v9639_v35 = vld [vmem:[%s14334_s1 + $0x664] ss:$16 sps:$4 sm:$0xff]   ;;  %v9642_v36 = vld [vmem:[%s14334_s1 + $0x66c] ss:$16 sps:$4 sm:$0xff]  }
  0x93   :  { %6515 = vmatpush1.bf16.msra.mxu0 %v9546_v37  ;;  %7171 = vmatpush1.bf16.msra.mxu1 %v9549_v38  ;;  %v9637_v37 = vld [vmem:[%s14334_s1 + $0x660] ss:$16 sps:$4 sm:$0xff]   ;;  %v9640_v38 = vld [vmem:[%s14334_s1 + $0x668] ss:$16 sps:$4 sm:$0xff]  }
  0x94   :  { %6516 = vmatprep.subr.bf16.mxu0 %v9554_v39  ;;  %7172 = vmatprep.subr.bf16.mxu1 %v9557_v40  ;;  %v9645_v39 = vld [vmem:[%s14334_s1 + $0x684] ss:$16 sps:$4 sm:$0xff]   ;;  %v9648_v40 = vld [vmem:[%s14334_s1 + $0x68c] ss:$16 sps:$4 sm:$0xff]  }
  0x97   :  { %6517 = vmatpush1.bf16.msra.mxu0 %v9552_v41  ;;  %7173 = vmatpush1.bf16.msra.mxu1 %v9555_v43  ;;  %v9643_v41 = vld [vmem:[%s14334_s1 + $0x680] ss:$16 sps:$4 sm:$0xff]   ;;  %v9646_v43 = vld [vmem:[%s14334_s1 + $0x688] ss:$16 sps:$4 sm:$0xff]  }
  0x98   :  { %6518 = vmatprep.subr.bf16.mxu0 %v9560_v44  ;;  %7174 = vmatprep.subr.bf16.mxu1 %v9563_v45  ;;  %v9651_v44 = vld [vmem:[%s14334_s1 + $0x6a4] ss:$16 sps:$4 sm:$0xff]   ;;  %v9654_v45 = vld [vmem:[%s14334_s1 + $0x6ac] ss:$16 sps:$4 sm:$0xff]  }
  0x9b   :  { %6519 = vmatpush1.bf16.msra.mxu0 %v9558_v46  ;;  %7175 = vmatpush1.bf16.msra.mxu1 %v9561_v47  ;;  %v9649_v46 = vld [vmem:[%s14334_s1 + $0x6a0] ss:$16 sps:$4 sm:$0xff]   ;;  %v9652_v47 = vld [vmem:[%s14334_s1 + $0x6a8] ss:$16 sps:$4 sm:$0xff]  }
  0x9c   :  { %6520 = vmatprep.subr.bf16.mxu0 %v9566_v48  ;;  %7176 = vmatprep.subr.bf16.mxu1 %v9569_v50  ;;  %v9657_v48 = vld [vmem:[%s14334_s1 + $0x6c4] ss:$16 sps:$4 sm:$0xff]   ;;  %v9660_v50 = vld [vmem:[%s14334_s1 + $0x6cc] ss:$16 sps:$4 sm:$0xff]  }
  0x9f   :  { %6521 = vmatpush1.bf16.msra.mxu0 %v9564_v51  ;;  %7177 = vmatpush1.bf16.msra.mxu1 %v9567_v53  ;;  %v9655_v51 = vld [vmem:[%s14334_s1 + $0x6c0] ss:$16 sps:$4 sm:$0xff]   ;;  %v9658_v53 = vld [vmem:[%s14334_s1 + $0x6c8] ss:$16 sps:$4 sm:$0xff]  }
  0xa0   :  { %6522 = vmatprep.subr.bf16.mxu0 %v9572_v54  ;;  %7178 = vmatprep.subr.bf16.mxu1 %v9575_v55  ;;  %v9663_v54 = vld [vmem:[%s14334_s1 + $0x6e4] ss:$16 sps:$4 sm:$0xff]   ;;  %v9666_v55 = vld [vmem:[%s14334_s1 + $0x6ec] ss:$16 sps:$4 sm:$0xff]  }
  0xa3   :  { %6523 = vmatpush1.bf16.msra.mxu0 %v9570_v56  ;;  %7179 = vmatpush1.bf16.msra.mxu1 %v9573_v57  ;;  %v9661_v56 = vld [vmem:[%s14334_s1 + $0x6e0] ss:$16 sps:$4 sm:$0xff]   ;;  %v9664_v57 = vld [vmem:[%s14334_s1 + $0x6e8] ss:$16 sps:$4 sm:$0xff]  }
  0xa4   :  { %6524 = vmatprep.subr.bf16.mxu0 %v9578_v58  ;;  %7180 = vmatprep.subr.bf16.mxu1 %v9581_v59  ;;  %v9669_v58 = vld [vmem:[%s14334_s1 + $0x704] ss:$16 sps:$4 sm:$0xff]   ;;  %v9672_v59 = vld [vmem:[%s14334_s1 + $0x70c] ss:$16 sps:$4 sm:$0xff]  }
  0xa7   :  { %6525 = vmatpush1.bf16.msra.mxu0 %v9576_v60  ;;  %7181 = vmatpush1.bf16.msra.mxu1 %v9579_v61  ;;  %v9667_v60 = vld [vmem:[%s14334_s1 + $0x700] ss:$16 sps:$4 sm:$0xff]   ;;  %v9670_v61 = vld [vmem:[%s14334_s1 + $0x708] ss:$16 sps:$4 sm:$0xff]  }
  0xa8   :  { %6526 = vmatprep.subr.bf16.mxu0 %v9584_v62  ;;  %7182 = vmatprep.subr.bf16.mxu1 %v9587_v63  ;;  %v9675_v62 = vld [vmem:[%s14334_s1 + $0x724] ss:$16 sps:$4 sm:$0xff]   ;;  %v9678_v63 = vld [vmem:[%s14334_s1 + $0x72c] ss:$16 sps:$4 sm:$0xff]  }
  0xab   :  { %6527 = vmatpush1.bf16.msra.mxu0 %v9582_v0  ;;  %7183 = vmatpush1.bf16.msra.mxu1 %v9585_v1  ;;  %v9673_v0 = vld [vmem:[%s14334_s1 + $0x720] ss:$16 sps:$4 sm:$0xff]   ;;  %v9676_v1 = vld [vmem:[%s14334_s1 + $0x728] ss:$16 sps:$4 sm:$0xff]  }
  0xac   :  { %6528 = vmatprep.subr.bf16.mxu0 %v9590_v2  ;;  %7184 = vmatprep.subr.bf16.mxu1 %v9593_v3  ;;  %v9681_v2 = vld [vmem:[%s14334_s1 + $0x744] ss:$16 sps:$4 sm:$0xff]   ;;  %v9684_v3 = vld [vmem:[%s14334_s1 + $0x74c] ss:$16 sps:$4 sm:$0xff]  }
  0xaf   :  { %6529 = vmatpush1.bf16.msra.mxu0 %v9588_v4  ;;  %7185 = vmatpush1.bf16.msra.mxu1 %v9591_v5  ;;  %v9679_v4 = vld [vmem:[%s14334_s1 + $0x740] ss:$16 sps:$4 sm:$0xff]   ;;  %v9682_v5 = vld [vmem:[%s14334_s1 + $0x748] ss:$16 sps:$4 sm:$0xff]  }
  0xb0   :  { %6530 = vmatprep.subr.bf16.mxu0 %v9596_v6  ;;  %7186 = vmatprep.subr.bf16.mxu1 %v9599_v7  ;;  %v9687_v6 = vld [vmem:[%s14334_s1 + $0x764] ss:$16 sps:$4 sm:$0xff]   ;;  %v9690_v7 = vld [vmem:[%s14334_s1 + $0x76c] ss:$16 sps:$4 sm:$0xff]  }
  0xb3   :  { %6531 = vmatpush1.bf16.msra.mxu0 %v9594_v8  ;;  %7187 = vmatpush1.bf16.msra.mxu1 %v9597_v9  ;;  %v9685_v8 = vld [vmem:[%s14334_s1 + $0x760] ss:$16 sps:$4 sm:$0xff]   ;;  %v9688_v9 = vld [vmem:[%s14334_s1 + $0x768] ss:$16 sps:$4 sm:$0xff]  }
  0xb4   :  { %6532 = vmatprep.subr.bf16.mxu0 %v9602_v10  ;;  %7188 = vmatprep.subr.bf16.mxu1 %v9605_v11  ;;  %v9693_v10 = vld [vmem:[%s14334_s1 + $0x784] ss:$16 sps:$4 sm:$0xff]   ;;  %v9696_v11 = vld [vmem:[%s14334_s1 + $0x78c] ss:$16 sps:$4 sm:$0xff]  }
  0xb7   :  { %6533 = vmatpush1.bf16.msra.mxu0 %v9600_v12  ;;  %7189 = vmatpush1.bf16.msra.mxu1 %v9603_v52  ;;  %v9691_v12 = vld [vmem:[%s14334_s1 + $0x780] ss:$16 sps:$4 sm:$0xff]   ;;  %v9694_v52 = vld [vmem:[%s14334_s1 + $0x788] ss:$16 sps:$4 sm:$0xff]  }
  0xb8   :  { %6534 = vmatprep.subr.bf16.mxu0 %v9608_v15  ;;  %7190 = vmatprep.subr.bf16.mxu1 %v9611_v16  ;;  %v9699_v15 = vld [vmem:[%s14334_s1 + $0x7a4] ss:$16 sps:$4 sm:$0xff]   ;;  %v9702_v16 = vld [vmem:[%s14334_s1 + $0x7ac] ss:$16 sps:$4 sm:$0xff]  }
  0xbb   :  { %6535 = vmatpush1.bf16.msra.mxu0 %v9606_v17  ;;  %7191 = vmatpush1.bf16.msra.mxu1 %v9609_v18  ;;  %v9697_v17 = vld [vmem:[%s14334_s1 + $0x7a0] ss:$16 sps:$4 sm:$0xff]   ;;  %v9700_v18 = vld [vmem:[%s14334_s1 + $0x7a8] ss:$16 sps:$4 sm:$0xff]  }
  0xbc   :  { %6536 = vmatprep.subr.bf16.mxu0 %v9614_v19  ;;  %7192 = vmatprep.subr.bf16.mxu1 %v9617_v20  ;;  %v9705_v19 = vld [vmem:[%s14334_s1 + $0x7c4] ss:$16 sps:$4 sm:$0xff]   ;;  %v9708_v20 = vld [vmem:[%s14334_s1 + $0x7cc] ss:$16 sps:$4 sm:$0xff]  }
  0xbf   :  { %6537 = vmatpush1.bf16.msra.mxu0 %v9612_v21  ;;  %7193 = vmatpush1.bf16.msra.mxu1 %v9615_v22  ;;  %v11753_v21 = vld.sshfl [vmem:[%s14333_s0 + $0x8] sm:$0xff pattern:$0x75316420]  ;;  %v9703_v22 = vld [vmem:[%s14334_s1 + $0x7c0] ss:$16 sps:$4 sm:$0xff]  }
  0xc0   :  { %6547 = vmatprep.subr.bf16.mxu0 %v9621_v23  ;;  %7203 = vmatprep.subr.bf16.mxu1 %v9624_v24  ;;  %v9706_v23 = vld [vmem:[%s14334_s1 + $0x7c8] ss:$16 sps:$4 sm:$0xff]   ;;  %v9711_v24 = vld [vmem:[%s14334_s1 + $0x7e4] ss:$16 sps:$4 sm:$0xff]  }
  0xc2   :  { %6539 = vmatmul.mubr.bf16.vlgmr.msra.gmra.mrb[0].mxu0 %v11579_v26  ;;  %7195 = vmatmul.mubr.bf16.vlgmr.msra.gmra.mrb[0].mxu1 %v11579_v26 }
  0xc3   :  { %6548 = vmatpush1.bf16.msra.mxu0 %v9619_v13  ;;  %7204 = vmatpush1.bf16.msra.mxu1 %v9622_v27  ;;  %v9714_v13 = vld [vmem:[%s14334_s1 + $0x7ec] ss:$16 sps:$4 sm:$0xff]   ;;  %v9709_v27 = vld [vmem:[%s14334_s1 + $0x7e0] ss:$16 sps:$4 sm:$0xff]  }
  0xc4   :  { %6549 = vmatprep.subr.bf16.mxu0 %v9627_v28  ;;  %7205 = vmatprep.subr.bf16.mxu1 %v9630_v29  ;;  %v9712_v28 = vld [vmem:[%s14334_s1 + $0x7e8] ss:$16 sps:$4 sm:$0xff]   ;;  %v9717_v29 = vld [vmem:[%s14334_s1 + $0x804] ss:$16 sps:$4 sm:$0xff]  }
  0xc5   :  { %6579 = vmatprep.mubr.bf16.mxu0 %v1124_v14  ;;  %7235 = vmatprep.mubr.bf16.mxu1 %v1124_v14  ;;  %v9720_v14 = vld [vmem:[%s14334_s1 + $0x80c] ss:$16 sps:$4 sm:$0xff]  }
  0xc7   :  { %6550 = vmatpush1.bf16.msra.mxu0 %v9625_v30  ;;  %7206 = vmatpush1.bf16.msra.mxu1 %v9628_v31  ;;  %v1140_v30 = vcombine.high %v11753_v21, %v11753_v21  ;;  %v1122_v31 = vcombine.high %v11579_v26, %v11579_v26  ;;  %v9726_v26 = vld [vmem:[%s14334_s1 + $0x82c] ss:$16 sps:$4 sm:$0xff]  }
  0xc8   :  { %6551 = vmatprep.subr.bf16.mxu0 %v9633_v25  ;;  %7207 = vmatprep.subr.bf16.mxu1 %v9636_v32  ;;  %v9715_v25 = vld [vmem:[%s14334_s1 + $0x800] ss:$16 sps:$4 sm:$0xff]   ;;  %v9718_v32 = vld [vmem:[%s14334_s1 + $0x808] ss:$16 sps:$4 sm:$0xff]  }
  0xcb   :  { %6552 = vmatpush1.bf16.msra.mxu0 %v9631_v33  ;;  %7208 = vmatpush1.bf16.msra.mxu1 %v9634_v34  ;;  %v9723_v33 = vld [vmem:[%s14334_s1 + $0x824] ss:$16 sps:$4 sm:$0xff]   ;;  %v11796_v34 = vrot.slane %v1140_v30, %v11095_v49 }
  0xcc   :  { %6553 = vmatprep.subr.bf16.mxu0 %v9639_v35  ;;  %7209 = vmatprep.subr.bf16.mxu1 %v9642_v36  ;;  %v9721_v35 = vld [vmem:[%s14334_s1 + $0x820] ss:$16 sps:$4 sm:$0xff]   ;;  %v9724_v36 = vld [vmem:[%s14334_s1 + $0x828] ss:$16 sps:$4 sm:$0xff]   ;;  %v9807_v30 = vld [vmem:[%s14334_s1 + $0x9e4] ss:$16 sps:$4 sm:$0xff]  }
  0xcf   :  { %6554 = vmatpush1.bf16.msra.mxu0 %v9637_v37  ;;  %7210 = vmatpush1.bf16.msra.mxu1 %v9640_v38  ;;  %v9729_v37 = vld [vmem:[%s14334_s1 + $0x844] ss:$16 sps:$4 sm:$0xff]   ;;  %v9732_v38 = vld [vmem:[%s14334_s1 + $0x84c] ss:$16 sps:$4 sm:$0xff]  }
  0xd0   :  { %6555 = vmatprep.subr.bf16.mxu0 %v9645_v39  ;;  %7211 = vmatprep.subr.bf16.mxu1 %v9648_v40  ;;  %v9727_v39 = vld [vmem:[%s14334_s1 + $0x840] ss:$16 sps:$4 sm:$0xff]   ;;  %v9730_v40 = vld [vmem:[%s14334_s1 + $0x848] ss:$16 sps:$4 sm:$0xff]  }
  0xd3   :  { %6556 = vmatpush1.bf16.msra.mxu0 %v9643_v41  ;;  %7212 = vmatpush1.bf16.msra.mxu1 %v9646_v43  ;;  %v9735_v41 = vld [vmem:[%s14334_s1 + $0x864] ss:$16 sps:$4 sm:$0xff]   ;;  %v9738_v43 = vld [vmem:[%s14334_s1 + $0x86c] ss:$16 sps:$4 sm:$0xff]  }
  0xd4   :  { %6557 = vmatprep.subr.bf16.mxu0 %v9651_v44  ;;  %7213 = vmatprep.subr.bf16.mxu1 %v9654_v45  ;;  %v9733_v44 = vld [vmem:[%s14334_s1 + $0x860] ss:$16 sps:$4 sm:$0xff]   ;;  %v9736_v45 = vld [vmem:[%s14334_s1 + $0x868] ss:$16 sps:$4 sm:$0xff]  }
  0xd7   :  { %6558 = vmatpush1.bf16.msra.mxu0 %v9649_v46  ;;  %7214 = vmatpush1.bf16.msra.mxu1 %v9652_v47  ;;  %v9741_v46 = vld [vmem:[%s14334_s1 + $0x884] ss:$16 sps:$4 sm:$0xff]   ;;  %v9744_v47 = vld [vmem:[%s14334_s1 + $0x88c] ss:$16 sps:$4 sm:$0xff]  }
  0xd8   :  { %6559 = vmatprep.subr.bf16.mxu0 %v9657_v48  ;;  %7215 = vmatprep.subr.bf16.mxu1 %v9660_v50  ;;  %v9739_v48 = vld [vmem:[%s14334_s1 + $0x880] ss:$16 sps:$4 sm:$0xff]   ;;  %v9742_v50 = vld [vmem:[%s14334_s1 + $0x888] ss:$16 sps:$4 sm:$0xff]  }
  0xdb   :  { %6560 = vmatpush1.bf16.msra.mxu0 %v9655_v51  ;;  %7216 = vmatpush1.bf16.msra.mxu1 %v9658_v53  ;;  %v9747_v51 = vld [vmem:[%s14334_s1 + $0x8a4] ss:$16 sps:$4 sm:$0xff]   ;;  %v9750_v53 = vld [vmem:[%s14334_s1 + $0x8ac] ss:$16 sps:$4 sm:$0xff]  }
  0xdc   :  { %6561 = vmatprep.subr.bf16.mxu0 %v9663_v54  ;;  %7217 = vmatprep.subr.bf16.mxu1 %v9666_v55  ;;  %v9745_v54 = vld [vmem:[%s14334_s1 + $0x8a0] ss:$16 sps:$4 sm:$0xff]   ;;  %v9748_v55 = vld [vmem:[%s14334_s1 + $0x8a8] ss:$16 sps:$4 sm:$0xff]  }
  0xdf   :  { %6562 = vmatpush1.bf16.msra.mxu0 %v9661_v56  ;;  %7218 = vmatpush1.bf16.msra.mxu1 %v9664_v57  ;;  %v9753_v56 = vld [vmem:[%s14334_s1 + $0x8c4] ss:$16 sps:$4 sm:$0xff]   ;;  %v9756_v57 = vld [vmem:[%s14334_s1 + $0x8cc] ss:$16 sps:$4 sm:$0xff]  }
  0xe0   :  { %6563 = vmatprep.subr.bf16.mxu0 %v9669_v58  ;;  %7219 = vmatprep.subr.bf16.mxu1 %v9672_v59  ;;  %v9751_v58 = vld [vmem:[%s14334_s1 + $0x8c0] ss:$16 sps:$4 sm:$0xff]   ;;  %v9754_v59 = vld [vmem:[%s14334_s1 + $0x8c8] ss:$16 sps:$4 sm:$0xff]  }
  0xe3   :  { %6564 = vmatpush1.bf16.msra.mxu0 %v9667_v60  ;;  %7220 = vmatpush1.bf16.msra.mxu1 %v9670_v61  ;;  %v9759_v60 = vld [vmem:[%s14334_s1 + $0x8e4] ss:$16 sps:$4 sm:$0xff]   ;;  %v9762_v61 = vld [vmem:[%s14334_s1 + $0x8ec] ss:$16 sps:$4 sm:$0xff]  }
  0xe4   :  { %6565 = vmatprep.subr.bf16.mxu0 %v9675_v62  ;;  %7221 = vmatprep.subr.bf16.mxu1 %v9678_v63  ;;  %v9757_v62 = vld [vmem:[%s14334_s1 + $0x8e0] ss:$16 sps:$4 sm:$0xff]   ;;  %v9760_v63 = vld [vmem:[%s14334_s1 + $0x8e8] ss:$16 sps:$4 sm:$0xff]  }
  0xe7   :  { %6566 = vmatpush1.bf16.msra.mxu0 %v9673_v0  ;;  %7222 = vmatpush1.bf16.msra.mxu1 %v9676_v1  ;;  %v9765_v0 = vld [vmem:[%s14334_s1 + $0x904] ss:$16 sps:$4 sm:$0xff]   ;;  %v9768_v1 = vld [vmem:[%s14334_s1 + $0x90c] ss:$16 sps:$4 sm:$0xff]  }
  0xe8   :  { %6567 = vmatprep.subr.bf16.mxu0 %v9681_v2  ;;  %7223 = vmatprep.subr.bf16.mxu1 %v9684_v3  ;;  %v9763_v2 = vld [vmem:[%s14334_s1 + $0x900] ss:$16 sps:$4 sm:$0xff]   ;;  %v9766_v3 = vld [vmem:[%s14334_s1 + $0x908] ss:$16 sps:$4 sm:$0xff]  }
  0xeb   :  { %6568 = vmatpush1.bf16.msra.mxu0 %v9679_v4  ;;  %7224 = vmatpush1.bf16.msra.mxu1 %v9682_v5  ;;  %v9771_v4 = vld [vmem:[%s14334_s1 + $0x924] ss:$16 sps:$4 sm:$0xff]   ;;  %v9774_v5 = vld [vmem:[%s14334_s1 + $0x92c] ss:$16 sps:$4 sm:$0xff]  }
  0xec   :  { %6569 = vmatprep.subr.bf16.mxu0 %v9687_v6  ;;  %7225 = vmatprep.subr.bf16.mxu1 %v9690_v7  ;;  %v9769_v6 = vld [vmem:[%s14334_s1 + $0x920] ss:$16 sps:$4 sm:$0xff]   ;;  %v9772_v7 = vld [vmem:[%s14334_s1 + $0x928] ss:$16 sps:$4 sm:$0xff]  }
  0xef   :  { %6570 = vmatpush1.bf16.msra.mxu0 %v9685_v8  ;;  %7226 = vmatpush1.bf16.msra.mxu1 %v9688_v9  ;;  %v9777_v8 = vld [vmem:[%s14334_s1 + $0x944] ss:$16 sps:$4 sm:$0xff]   ;;  %v9780_v9 = vld [vmem:[%s14334_s1 + $0x94c] ss:$16 sps:$4 sm:$0xff]  }
  0xf0   :  { %6571 = vmatprep.subr.bf16.mxu0 %v9693_v10  ;;  %7227 = vmatprep.subr.bf16.mxu1 %v9696_v11  ;;  %v9775_v10 = vld [vmem:[%s14334_s1 + $0x940] ss:$16 sps:$4 sm:$0xff]   ;;  %v9778_v11 = vld [vmem:[%s14334_s1 + $0x948] ss:$16 sps:$4 sm:$0xff]  }
  0xf3   :  { %6572 = vmatpush1.bf16.msra.mxu0 %v9691_v12  ;;  %7228 = vmatpush1.bf16.msra.mxu1 %v9694_v52  ;;  %v9783_v12 = vld [vmem:[%s14334_s1 + $0x964] ss:$16 sps:$4 sm:$0xff]   ;;  %v9786_v52 = vld [vmem:[%s14334_s1 + $0x96c] ss:$16 sps:$4 sm:$0xff]  }
  0xf4   :  { %6573 = vmatprep.subr.bf16.mxu0 %v9699_v15  ;;  %7229 = vmatprep.subr.bf16.mxu1 %v9702_v16  ;;  %v9781_v15 = vld [vmem:[%s14334_s1 + $0x960] ss:$16 sps:$4 sm:$0xff]   ;;  %v9784_v16 = vld [vmem:[%s14334_s1 + $0x968] ss:$16 sps:$4 sm:$0xff]  }
  0xf7   :  { %6574 = vmatpush1.bf16.msra.mxu0 %v9697_v17  ;;  %7230 = vmatpush1.bf16.msra.mxu1 %v9700_v18  ;;  %v9789_v17 = vld [vmem:[%s14334_s1 + $0x984] ss:$16 sps:$4 sm:$0xff]   ;;  %v9792_v18 = vld [vmem:[%s14334_s1 + $0x98c] ss:$16 sps:$4 sm:$0xff]  }
  0xf8   :  { %6575 = vmatprep.subr.bf16.mxu0 %v9705_v19  ;;  %7231 = vmatprep.subr.bf16.mxu1 %v9708_v20  ;;  %v9787_v19 = vld [vmem:[%s14334_s1 + $0x980] ss:$16 sps:$4 sm:$0xff]   ;;  %v9790_v20 = vld [vmem:[%s14334_s1 + $0x988] ss:$16 sps:$4 sm:$0xff]  }
  0xfb   :  { %6576 = vmatpush1.bf16.msra.mxu0 %v9703_v22  ;;  %7232 = vmatpush1.bf16.msra.mxu1 %v9706_v23  ;;  %v9795_v22 = vld [vmem:[%s14334_s1 + $0x9a4] ss:$16 sps:$4 sm:$0xff]   ;;  %v9798_v23 = vld [vmem:[%s14334_s1 + $0x9ac] ss:$16 sps:$4 sm:$0xff]  }
  0xfc   :  { %6577 = vmatprep.subr.bf16.mxu0 %v9711_v24  ;;  %7233 = vmatprep.subr.bf16.mxu1 %v9714_v13  ;;  %v9793_v24 = vld [vmem:[%s14334_s1 + $0x9a0] ss:$16 sps:$4 sm:$0xff]   ;;  %v9796_v13 = vld [vmem:[%s14334_s1 + $0x9a8] ss:$16 sps:$4 sm:$0xff]  }
  0xff   :  { %6578 = vmatpush1.bf16.msra.mxu0 %v9709_v27  ;;  %7234 = vmatpush1.bf16.msra.mxu1 %v9712_v28  ;;  %v9801_v27 = vld [vmem:[%s14334_s1 + $0x9c4] ss:$16 sps:$4 sm:$0xff]   ;;  %v9804_v28 = vld [vmem:[%s14334_s1 + $0x9cc] ss:$16 sps:$4 sm:$0xff]  }
 0x100   :  { %6588 = vmatprep.subr.bf16.mxu0 %v9717_v29  ;;  %7244 = vmatprep.subr.bf16.mxu1 %v9720_v14  ;;  %v9799_v29 = vld [vmem:[%s14334_s1 + $0x9c0] ss:$16 sps:$4 sm:$0xff]   ;;  %v9802_v14 = vld [vmem:[%s14334_s1 + $0x9c8] ss:$16 sps:$4 sm:$0xff]  }
 0x102   :  { %6580 = vmatmul.mubr.bf16.vlgmr.msra.gmra.mrb[0].mxu0 %v1122_v31  ;;  %7236 = vmatmul.mubr.bf16.vlgmr.msra.gmra.mrb[0].mxu1 %v1122_v31  ;;  %v9810_v31 = vld [vmem:[%s14334_s1 + $0x9ec] ss:$16 sps:$4 sm:$0xff]  }
 0x103   :  { %6589 = vmatpush1.bf16.msra.mxu0 %v9715_v25  ;;  %7245 = vmatpush1.bf16.msra.mxu1 %v9718_v32  ;;  %v9805_v25 = vld [vmem:[%s14334_s1 + $0x9e0] ss:$16 sps:$4 sm:$0xff]   ;;  %v9808_v32 = vld [vmem:[%s14334_s1 + $0x9e8] ss:$16 sps:$4 sm:$0xff]  }
 0x104   :  { %6590 = vmatprep.subr.bf16.mxu0 %v9723_v33  ;;  %7246 = vmatprep.subr.bf16.mxu1 %v9726_v26  ;;  %v9813_v33 = vld [vmem:[%s14334_s1 + $0xa04] ss:$16 sps:$4 sm:$0xff]   ;;  %v9816_v26 = vld [vmem:[%s14334_s1 + $0xa0c] ss:$16 sps:$4 sm:$0xff]  }
 0x105   :  { %6620 = vmatprep.mubr.bf16.mxu0 %v11796_v34  ;;  %7276 = vmatprep.mubr.bf16.mxu1 %v11796_v34 }
 0x107   :  { %6591 = vmatpush1.bf16.msra.mxu0 %v9721_v35  ;;  %7247 = vmatpush1.bf16.msra.mxu1 %v9724_v36  ;;  %v11982_v35 = vrot.slane %v11753_v21, %v11095_v49  ;;  %v9811_v36 = vld [vmem:[%s14334_s1 + $0xa00] ss:$16 sps:$4 sm:$0xff]   ;;  %v9822_v21 = vld [vmem:[%s14334_s1 + $0xa2c] ss:$16 sps:$4 sm:$0xff]  }
 0x108   :  { %6592 = vmatprep.subr.bf16.mxu0 %v9729_v37  ;;  %7248 = vmatprep.subr.bf16.mxu1 %v9732_v38  ;;  %v9814_v37 = vld [vmem:[%s14334_s1 + $0xa08] ss:$16 sps:$4 sm:$0xff]   ;;  %v9819_v38 = vld [vmem:[%s14334_s1 + $0xa24] ss:$16 sps:$4 sm:$0xff]  }
 0x10b   :  { %6593 = vmatpush1.bf16.msra.mxu0 %v9727_v39  ;;  %7249 = vmatpush1.bf16.msra.mxu1 %v9730_v40  ;;  %v1172_v39 = vcombine.high %v11796_v34, %v11796_v34  ;;  %v9817_v40 = vld [vmem:[%s14334_s1 + $0xa20] ss:$16 sps:$4 sm:$0xff]   ;;  %v9825_v34 = vld [vmem:[%s14334_s1 + $0xa44] ss:$16 sps:$4 sm:$0xff]  }
 0x10c   :  { %6594 = vmatprep.subr.bf16.mxu0 %v9735_v41  ;;  %7250 = vmatprep.subr.bf16.mxu1 %v9738_v43  ;;  %v9820_v41 = vld [vmem:[%s14334_s1 + $0xa28] ss:$16 sps:$4 sm:$0xff]   ;;  %v9828_v43 = vld [vmem:[%s14334_s1 + $0xa4c] ss:$16 sps:$4 sm:$0xff]  }
 0x10f   :  { %6595 = vmatpush1.bf16.msra.mxu0 %v9733_v44  ;;  %7251 = vmatpush1.bf16.msra.mxu1 %v9736_v45  ;;  %v9823_v44 = vld [vmem:[%s14334_s1 + $0xa40] ss:$16 sps:$4 sm:$0xff]   ;;  %v9826_v45 = vld [vmem:[%s14334_s1 + $0xa48] ss:$16 sps:$4 sm:$0xff]  }
 0x110   :  { %6596 = vmatprep.subr.bf16.mxu0 %v9741_v46  ;;  %7252 = vmatprep.subr.bf16.mxu1 %v9744_v47  ;;  %v9831_v46 = vld [vmem:[%s14334_s1 + $0xa64] ss:$16 sps:$4 sm:$0xff]   ;;  %v9834_v47 = vld [vmem:[%s14334_s1 + $0xa6c] ss:$16 sps:$4 sm:$0xff]  }
 0x113   :  { %6597 = vmatpush1.bf16.msra.mxu0 %v9739_v48  ;;  %7253 = vmatpush1.bf16.msra.mxu1 %v9742_v50  ;;  %v9829_v48 = vld [vmem:[%s14334_s1 + $0xa60] ss:$16 sps:$4 sm:$0xff]   ;;  %v9832_v50 = vld [vmem:[%s14334_s1 + $0xa68] ss:$16 sps:$4 sm:$0xff]  }
 0x114   :  { %6598 = vmatprep.subr.bf16.mxu0 %v9747_v51  ;;  %7254 = vmatprep.subr.bf16.mxu1 %v9750_v53  ;;  %v9837_v51 = vld [vmem:[%s14334_s1 + $0xa84] ss:$16 sps:$4 sm:$0xff]   ;;  %v9840_v53 = vld [vmem:[%s14334_s1 + $0xa8c] ss:$16 sps:$4 sm:$0xff]  }
 0x117   :  { %6599 = vmatpush1.bf16.msra.mxu0 %v9745_v54  ;;  %7255 = vmatpush1.bf16.msra.mxu1 %v9748_v55  ;;  %v9835_v54 = vld [vmem:[%s14334_s1 + $0xa80] ss:$16 sps:$4 sm:$0xff]   ;;  %v9838_v55 = vld [vmem:[%s14334_s1 + $0xa88] ss:$16 sps:$4 sm:$0xff]  }
 0x118   :  { %6600 = vmatprep.subr.bf16.mxu0 %v9753_v56  ;;  %7256 = vmatprep.subr.bf16.mxu1 %v9756_v57  ;;  %v9843_v56 = vld [vmem:[%s14334_s1 + $0xaa4] ss:$16 sps:$4 sm:$0xff]   ;;  %v9846_v57 = vld [vmem:[%s14334_s1 + $0xaac] ss:$16 sps:$4 sm:$0xff]  }
 0x11b   :  { %6601 = vmatpush1.bf16.msra.mxu0 %v9751_v58  ;;  %7257 = vmatpush1.bf16.msra.mxu1 %v9754_v59  ;;  %v9841_v58 = vld [vmem:[%s14334_s1 + $0xaa0] ss:$16 sps:$4 sm:$0xff]   ;;  %v9844_v59 = vld [vmem:[%s14334_s1 + $0xaa8] ss:$16 sps:$4 sm:$0xff]  }
 0x11c   :  { %6602 = vmatprep.subr.bf16.mxu0 %v9759_v60  ;;  %7258 = vmatprep.subr.bf16.mxu1 %v9762_v61  ;;  %v9849_v60 = vld [vmem:[%s14334_s1 + $0xac4] ss:$16 sps:$4 sm:$0xff]   ;;  %v9852_v61 = vld [vmem:[%s14334_s1 + $0xacc] ss:$16 sps:$4 sm:$0xff]  }
 0x11f   :  { %6603 = vmatpush1.bf16.msra.mxu0 %v9757_v62  ;;  %7259 = vmatpush1.bf16.msra.mxu1 %v9760_v63  ;;  %v9847_v62 = vld [vmem:[%s14334_s1 + $0xac0] ss:$16 sps:$4 sm:$0xff]   ;;  %v9850_v63 = vld [vmem:[%s14334_s1 + $0xac8] ss:$16 sps:$4 sm:$0xff]  }
 0x120   :  { %6604 = vmatprep.subr.bf16.mxu0 %v9765_v0  ;;  %7260 = vmatprep.subr.bf16.mxu1 %v9768_v1  ;;  %v9855_v0 = vld [vmem:[%s14334_s1 + $0xae4] ss:$16 sps:$4 sm:$0xff]   ;;  %v9858_v1 = vld [vmem:[%s14334_s1 + $0xaec] ss:$16 sps:$4 sm:$0xff]  }
 0x123   :  { %6605 = vmatpush1.bf16.msra.mxu0 %v9763_v2  ;;  %7261 = vmatpush1.bf16.msra.mxu1 %v9766_v3  ;;  %v9853_v2 = vld [vmem:[%s14334_s1 + $0xae0] ss:$16 sps:$4 sm:$0xff]   ;;  %v9856_v3 = vld [vmem:[%s14334_s1 + $0xae8] ss:$16 sps:$4 sm:$0xff]  }
 0x124   :  { %6606 = vmatprep.subr.bf16.mxu0 %v9771_v4  ;;  %7262 = vmatprep.subr.bf16.mxu1 %v9774_v5  ;;  %v9861_v4 = vld [vmem:[%s14334_s1 + $0xb04] ss:$16 sps:$4 sm:$0xff]   ;;  %v9864_v5 = vld [vmem:[%s14334_s1 + $0xb0c] ss:$16 sps:$4 sm:$0xff]  }
 0x127   :  { %6607 = vmatpush1.bf16.msra.mxu0 %v9769_v6  ;;  %7263 = vmatpush1.bf16.msra.mxu1 %v9772_v7  ;;  %v9859_v6 = vld [vmem:[%s14334_s1 + $0xb00] ss:$16 sps:$4 sm:$0xff]   ;;  %v9862_v7 = vld [vmem:[%s14334_s1 + $0xb08] ss:$16 sps:$4 sm:$0xff]  }
 0x128   :  { %6608 = vmatprep.subr.bf16.mxu0 %v9777_v8  ;;  %7264 = vmatprep.subr.bf16.mxu1 %v9780_v9  ;;  %v9867_v8 = vld [vmem:[%s14334_s1 + $0xb24] ss:$16 sps:$4 sm:$0xff]   ;;  %v9870_v9 = vld [vmem:[%s14334_s1 + $0xb2c] ss:$16 sps:$4 sm:$0xff]  }
 0x12b   :  { %6609 = vmatpush1.bf16.msra.mxu0 %v9775_v10  ;;  %7265 = vmatpush1.bf16.msra.mxu1 %v9778_v11  ;;  %v9865_v10 = vld [vmem:[%s14334_s1 + $0xb20] ss:$16 sps:$4 sm:$0xff]   ;;  %v9868_v11 = vld [vmem:[%s14334_s1 + $0xb28] ss:$16 sps:$4 sm:$0xff]  }
 0x12c   :  { %6610 = vmatprep.subr.bf16.mxu0 %v9783_v12  ;;  %7266 = vmatprep.subr.bf16.mxu1 %v9786_v52  ;;  %v9873_v12 = vld [vmem:[%s14334_s1 + $0xb44] ss:$16 sps:$4 sm:$0xff]   ;;  %v9876_v52 = vld [vmem:[%s14334_s1 + $0xb4c] ss:$16 sps:$4 sm:$0xff]  }
 0x12f   :  { %6611 = vmatpush1.bf16.msra.mxu0 %v9781_v15  ;;  %7267 = vmatpush1.bf16.msra.mxu1 %v9784_v16  ;;  %v9871_v15 = vld [vmem:[%s14334_s1 + $0xb40] ss:$16 sps:$4 sm:$0xff]   ;;  %v9874_v16 = vld [vmem:[%s14334_s1 + $0xb48] ss:$16 sps:$4 sm:$0xff]  }
 0x130   :  { %6612 = vmatprep.subr.bf16.mxu0 %v9789_v17  ;;  %7268 = vmatprep.subr.bf16.mxu1 %v9792_v18  ;;  %v9879_v17 = vld [vmem:[%s14334_s1 + $0xb64] ss:$16 sps:$4 sm:$0xff]   ;;  %v9882_v18 = vld [vmem:[%s14334_s1 + $0xb6c] ss:$16 sps:$4 sm:$0xff]  }
 0x133   :  { %6613 = vmatpush1.bf16.msra.mxu0 %v9787_v19  ;;  %7269 = vmatpush1.bf16.msra.mxu1 %v9790_v20  ;;  %v9877_v19 = vld [vmem:[%s14334_s1 + $0xb60] ss:$16 sps:$4 sm:$0xff]   ;;  %v9880_v20 = vld [vmem:[%s14334_s1 + $0xb68] ss:$16 sps:$4 sm:$0xff]  }
 0x134   :  { %6614 = vmatprep.subr.bf16.mxu0 %v9795_v22  ;;  %7270 = vmatprep.subr.bf16.mxu1 %v9798_v23  ;;  %v9885_v22 = vld [vmem:[%s14334_s1 + $0xb84] ss:$16 sps:$4 sm:$0xff]   ;;  %v9888_v23 = vld [vmem:[%s14334_s1 + $0xb8c] ss:$16 sps:$4 sm:$0xff]  }
 0x137   :  { %6615 = vmatpush1.bf16.msra.mxu0 %v9793_v24  ;;  %7271 = vmatpush1.bf16.msra.mxu1 %v9796_v13  ;;  %v9883_v24 = vld [vmem:[%s14334_s1 + $0xb80] ss:$16 sps:$4 sm:$0xff]   ;;  %v9886_v13 = vld [vmem:[%s14334_s1 + $0xb88] ss:$16 sps:$4 sm:$0xff]  }
 0x138   :  { %6616 = vmatprep.subr.bf16.mxu0 %v9801_v27  ;;  %7272 = vmatprep.subr.bf16.mxu1 %v9804_v28  ;;  %v9891_v27 = vld [vmem:[%s14334_s1 + $0xba4] ss:$16 sps:$4 sm:$0xff]   ;;  %v9894_v28 = vld [vmem:[%s14334_s1 + $0xbac] ss:$16 sps:$4 sm:$0xff]  }
 0x13b   :  { %6617 = vmatpush1.bf16.msra.mxu0 %v9799_v29  ;;  %7273 = vmatpush1.bf16.msra.mxu1 %v9802_v14  ;;  %v9889_v29 = vld [vmem:[%s14334_s1 + $0xba0] ss:$16 sps:$4 sm:$0xff]   ;;  %v9892_v14 = vld [vmem:[%s14334_s1 + $0xba8] ss:$16 sps:$4 sm:$0xff]  }
 0x13c   :  { %6618 = vmatprep.subr.bf16.mxu0 %v9807_v30  ;;  %7274 = vmatprep.subr.bf16.mxu1 %v9810_v31  ;;  %v9897_v30 = vld [vmem:[%s14334_s1 + $0xbc4] ss:$16 sps:$4 sm:$0xff]   ;;  %v9900_v31 = vld [vmem:[%s14334_s1 + $0xbcc] ss:$16 sps:$4 sm:$0xff]  }
 0x13f   :  { %6619 = vmatpush1.bf16.msra.mxu0 %v9805_v25  ;;  %7275 = vmatpush1.bf16.msra.mxu1 %v9808_v32  ;;  %v10902_v25 = vld [vmem:[%s14333_s0 + $0x8] sm:$0xff] }
 0x140   :  { %6629 = vmatprep.subr.bf16.mxu0 %v9813_v33  ;;  %7285 = vmatprep.subr.bf16.mxu1 %v9816_v26  ;;  %v1125_v32 = vcombine.high %v10902_v25, %v10902_v25  ;;  %v9895_v33 = vld [vmem:[%s14334_s1 + $0xbc0] ss:$16 sps:$4 sm:$0xff]   ;;  %v9898_v26 = vld [vmem:[%s14334_s1 + $0xbc8] ss:$16 sps:$4 sm:$0xff]  }
 0x141   :  { %v9979_v25 = vld [vmem:[%s14334_s1 + $0xd80] ss:$16 sps:$4 sm:$0xff]  }
 0x142   :  { %6621 = vmatmul.mubr.bf16.vlgmr.msra.gmra.mrb[0].mxu0 %v11982_v35  ;;  %7277 = vmatmul.mubr.bf16.vlgmr.msra.gmra.mrb[0].mxu1 %v11982_v35 }
 0x143   :  { %6630 = vmatpush1.bf16.msra.mxu0 %v9811_v36  ;;  %7286 = vmatpush1.bf16.msra.mxu1 %v9814_v37  ;;  %v9903_v36 = vld [vmem:[%s14334_s1 + $0xbe4] ss:$16 sps:$4 sm:$0xff]   ;;  %v9906_v37 = vld [vmem:[%s14334_s1 + $0xbec] ss:$16 sps:$4 sm:$0xff]  }
 0x144   :  { %6631 = vmatprep.subr.bf16.mxu0 %v9819_v38  ;;  %7287 = vmatprep.subr.bf16.mxu1 %v9822_v21  ;;  %v12172_v38 = vrot.slane %v1125_v32, %v11095_v49  ;;  %v9901_v21 = vld [vmem:[%s14334_s1 + $0xbe0] ss:$16 sps:$4 sm:$0xff]   ;;  %v9982_v32 = vld [vmem:[%s14334_s1 + $0xd88] ss:$16 sps:$4 sm:$0xff]  }
 0x145   :  { %6661 = vmatprep.mubr.bf16.mxu0 %v1172_v39  ;;  %7317 = vmatprep.mubr.bf16.mxu1 %v1172_v39  ;;  %v9904_v39 = vld [vmem:[%s14334_s1 + $0xbe8] ss:$16 sps:$4 sm:$0xff]  }
 0x147   :  { %6632 = vmatpush1.bf16.msra.mxu0 %v9817_v40  ;;  %7288 = vmatpush1.bf16.msra.mxu1 %v9820_v41  ;;  %v9909_v40 = vld [vmem:[%s14334_s1 + $0xc04] ss:$16 sps:$4 sm:$0xff]   ;;  %v9912_v41 = vld [vmem:[%s14334_s1 + $0xc0c] ss:$16 sps:$4 sm:$0xff]  }
 0x148   :  { %6633 = vmatprep.subr.bf16.mxu0 %v9825_v34  ;;  %7289 = vmatprep.subr.bf16.mxu1 %v9828_v43  ;;  %v1141_v34 = vcombine.high %v12172_v38, %v12172_v38  ;;  %v1170_v43 = vcombine.high %v11982_v35, %v11982_v35  ;;  %v9918_v35 = vld [vmem:[%s14334_s1 + $0xc2c] ss:$16 sps:$4 sm:$0xff]  }
 0x14b   :  { %6634 = vmatpush1.bf16.msra.mxu0 %v9823_v44  ;;  %7290 = vmatpush1.bf16.msra.mxu1 %v9826_v45  ;;  %v9907_v44 = vld [vmem:[%s14334_s1 + $0xc00] ss:$16 sps:$4 sm:$0xff]   ;;  %v9910_v45 = vld [vmem:[%s14334_s1 + $0xc08] ss:$16 sps:$4 sm:$0xff]  }
 0x14c   :  { %6635 = vmatprep.subr.bf16.mxu0 %v9831_v46  ;;  %7291 = vmatprep.subr.bf16.mxu1 %v9834_v47  ;;  %v9915_v46 = vld [vmem:[%s14334_s1 + $0xc24] ss:$16 sps:$4 sm:$0xff]   ;;  %v12203_v47 = vrot.slane %v1141_v34, %v11095_v49 }
 0x14d   :  { %v9999_v34 = vld [vmem:[%s14334_s1 + $0xde4] ss:$16 sps:$4 sm:$0xff]  }
 0x14f   :  { %6636 = vmatpush1.bf16.msra.mxu0 %v9829_v48  ;;  %7292 = vmatpush1.bf16.msra.mxu1 %v9832_v50  ;;  %v9913_v48 = vld [vmem:[%s14334_s1 + $0xc20] ss:$16 sps:$4 sm:$0xff]   ;;  %v9916_v50 = vld [vmem:[%s14334_s1 + $0xc28] ss:$16 sps:$4 sm:$0xff]  }
 0x150   :  { %6637 = vmatprep.subr.bf16.mxu0 %v9837_v51  ;;  %7293 = vmatprep.subr.bf16.mxu1 %v9840_v53  ;;  %v9921_v51 = vld [vmem:[%s14334_s1 + $0xc44] ss:$16 sps:$4 sm:$0xff]   ;;  %v9924_v53 = vld [vmem:[%s14334_s1 + $0xc4c] ss:$16 sps:$4 sm:$0xff]  }
 0x153   :  { %6638 = vmatpush1.bf16.msra.mxu0 %v9835_v54  ;;  %7294 = vmatpush1.bf16.msra.mxu1 %v9838_v55  ;;  %v9919_v54 = vld [vmem:[%s14334_s1 + $0xc40] ss:$16 sps:$4 sm:$0xff]   ;;  %v9922_v55 = vld [vmem:[%s14334_s1 + $0xc48] ss:$16 sps:$4 sm:$0xff]  }
 0x154   :  { %6639 = vmatprep.subr.bf16.mxu0 %v9843_v56  ;;  %7295 = vmatprep.subr.bf16.mxu1 %v9846_v57  ;;  %v9927_v56 = vld [vmem:[%s14334_s1 + $0xc64] ss:$16 sps:$4 sm:$0xff]   ;;  %v9930_v57 = vld [vmem:[%s14334_s1 + $0xc6c] ss:$16 sps:$4 sm:$0xff]  }
 0x157   :  { %6640 = vmatpush1.bf16.msra.mxu0 %v9841_v58  ;;  %7296 = vmatpush1.bf16.msra.mxu1 %v9844_v59  ;;  %v9925_v58 = vld [vmem:[%s14334_s1 + $0xc60] ss:$16 sps:$4 sm:$0xff]   ;;  %v9928_v59 = vld [vmem:[%s14334_s1 + $0xc68] ss:$16 sps:$4 sm:$0xff]  }
 0x158   :  { %6641 = vmatprep.subr.bf16.mxu0 %v9849_v60  ;;  %7297 = vmatprep.subr.bf16.mxu1 %v9852_v61  ;;  %v9933_v60 = vld [vmem:[%s14334_s1 + $0xc84] ss:$16 sps:$4 sm:$0xff]   ;;  %v9936_v61 = vld [vmem:[%s14334_s1 + $0xc8c] ss:$16 sps:$4 sm:$0xff]  }
 0x15b   :  { %6642 = vmatpush1.bf16.msra.mxu0 %v9847_v62  ;;  %7298 = vmatpush1.bf16.msra.mxu1 %v9850_v63  ;;  %v9931_v62 = vld [vmem:[%s14334_s1 + $0xc80] ss:$16 sps:$4 sm:$0xff]   ;;  %v9934_v63 = vld [vmem:[%s14334_s1 + $0xc88] ss:$16 sps:$4 sm:$0xff]  }
 0x15c   :  { %6643 = vmatprep.subr.bf16.mxu0 %v9855_v0  ;;  %7299 = vmatprep.subr.bf16.mxu1 %v9858_v1  ;;  %v9939_v0 = vld [vmem:[%s14334_s1 + $0xca4] ss:$16 sps:$4 sm:$0xff]   ;;  %v9942_v1 = vld [vmem:[%s14334_s1 + $0xcac] ss:$16 sps:$4 sm:$0xff]  }
 0x15f   :  { %6644 = vmatpush1.bf16.msra.mxu0 %v9853_v2  ;;  %7300 = vmatpush1.bf16.msra.mxu1 %v9856_v3  ;;  %v9937_v2 = vld [vmem:[%s14334_s1 + $0xca0] ss:$16 sps:$4 sm:$0xff]   ;;  %v9940_v3 = vld [vmem:[%s14334_s1 + $0xca8] ss:$16 sps:$4 sm:$0xff]  }
 0x160   :  { %6645 = vmatprep.subr.bf16.mxu0 %v9861_v4  ;;  %7301 = vmatprep.subr.bf16.mxu1 %v9864_v5  ;;  %v9945_v4 = vld [vmem:[%s14334_s1 + $0xcc4] ss:$16 sps:$4 sm:$0xff]   ;;  %v9948_v5 = vld [vmem:[%s14334_s1 + $0xccc] ss:$16 sps:$4 sm:$0xff]  }
 0x163   :  { %6646 = vmatpush1.bf16.msra.mxu0 %v9859_v6  ;;  %7302 = vmatpush1.bf16.msra.mxu1 %v9862_v7  ;;  %v9943_v6 = vld [vmem:[%s14334_s1 + $0xcc0] ss:$16 sps:$4 sm:$0xff]   ;;  %v9946_v7 = vld [vmem:[%s14334_s1 + $0xcc8] ss:$16 sps:$4 sm:$0xff]  }
 0x164   :  { %6647 = vmatprep.subr.bf16.mxu0 %v9867_v8  ;;  %7303 = vmatprep.subr.bf16.mxu1 %v9870_v9  ;;  %v9951_v8 = vld [vmem:[%s14334_s1 + $0xce4] ss:$16 sps:$4 sm:$0xff]   ;;  %v9954_v9 = vld [vmem:[%s14334_s1 + $0xcec] ss:$16 sps:$4 sm:$0xff]  }
 0x167   :  { %6648 = vmatpush1.bf16.msra.mxu0 %v9865_v10  ;;  %7304 = vmatpush1.bf16.msra.mxu1 %v9868_v11  ;;  %v9949_v10 = vld [vmem:[%s14334_s1 + $0xce0] ss:$16 sps:$4 sm:$0xff]   ;;  %v9952_v11 = vld [vmem:[%s14334_s1 + $0xce8] ss:$16 sps:$4 sm:$0xff]  }
 0x168   :  { %6649 = vmatprep.subr.bf16.mxu0 %v9873_v12  ;;  %7305 = vmatprep.subr.bf16.mxu1 %v9876_v52  ;;  %v9957_v12 = vld [vmem:[%s14334_s1 + $0xd04] ss:$16 sps:$4 sm:$0xff]   ;;  %v9960_v52 = vld [vmem:[%s14334_s1 + $0xd0c] ss:$16 sps:$4 sm:$0xff]  }
 0x16b   :  { %6650 = vmatpush1.bf16.msra.mxu0 %v9871_v15  ;;  %7306 = vmatpush1.bf16.msra.mxu1 %v9874_v16  ;;  %v9955_v15 = vld [vmem:[%s14334_s1 + $0xd00] ss:$16 sps:$4 sm:$0xff]   ;;  %v9958_v16 = vld [vmem:[%s14334_s1 + $0xd08] ss:$16 sps:$4 sm:$0xff]  }
 0x16c   :  { %6651 = vmatprep.subr.bf16.mxu0 %v9879_v17  ;;  %7307 = vmatprep.subr.bf16.mxu1 %v9882_v18  ;;  %v9963_v17 = vld [vmem:[%s14334_s1 + $0xd24] ss:$16 sps:$4 sm:$0xff]   ;;  %v9966_v18 = vld [vmem:[%s14334_s1 + $0xd2c] ss:$16 sps:$4 sm:$0xff]  }
 0x16f   :  { %6652 = vmatpush1.bf16.msra.mxu0 %v9877_v19  ;;  %7308 = vmatpush1.bf16.msra.mxu1 %v9880_v20  ;;  %v9961_v19 = vld [vmem:[%s14334_s1 + $0xd20] ss:$16 sps:$4 sm:$0xff]   ;;  %v9964_v20 = vld [vmem:[%s14334_s1 + $0xd28] ss:$16 sps:$4 sm:$0xff]  }
 0x170   :  { %6653 = vmatprep.subr.bf16.mxu0 %v9885_v22  ;;  %7309 = vmatprep.subr.bf16.mxu1 %v9888_v23  ;;  %v9969_v22 = vld [vmem:[%s14334_s1 + $0xd44] ss:$16 sps:$4 sm:$0xff]   ;;  %v9972_v23 = vld [vmem:[%s14334_s1 + $0xd4c] ss:$16 sps:$4 sm:$0xff]  }
 0x173   :  { %6654 = vmatpush1.bf16.msra.mxu0 %v9883_v24  ;;  %7310 = vmatpush1.bf16.msra.mxu1 %v9886_v13  ;;  %v9967_v24 = vld [vmem:[%s14334_s1 + $0xd40] ss:$16 sps:$4 sm:$0xff]   ;;  %v9970_v13 = vld [vmem:[%s14334_s1 + $0xd48] ss:$16 sps:$4 sm:$0xff]  }
 0x174   :  { %6655 = vmatprep.subr.bf16.mxu0 %v9891_v27  ;;  %7311 = vmatprep.subr.bf16.mxu1 %v9894_v28  ;;  %v9975_v27 = vld [vmem:[%s14334_s1 + $0xd64] ss:$16 sps:$4 sm:$0xff]   ;;  %v9978_v28 = vld [vmem:[%s14334_s1 + $0xd6c] ss:$16 sps:$4 sm:$0xff]  }
 0x177   :  { %6656 = vmatpush1.bf16.msra.mxu0 %v9889_v29  ;;  %7312 = vmatpush1.bf16.msra.mxu1 %v9892_v14  ;;  %v9973_v29 = vld [vmem:[%s14334_s1 + $0xd60] ss:$16 sps:$4 sm:$0xff]   ;;  %v9976_v14 = vld [vmem:[%s14334_s1 + $0xd68] ss:$16 sps:$4 sm:$0xff]  }
 0x178   :  { %6657 = vmatprep.subr.bf16.mxu0 %v9897_v30  ;;  %7313 = vmatprep.subr.bf16.mxu1 %v9900_v31  ;;  %v9981_v30 = vld [vmem:[%s14334_s1 + $0xd84] ss:$16 sps:$4 sm:$0xff]   ;;  %v9984_v31 = vld [vmem:[%s14334_s1 + $0xd8c] ss:$16 sps:$4 sm:$0xff]  }
 0x17b   :  { %6658 = vmatpush1.bf16.msra.mxu0 %v9895_v33  ;;  %7314 = vmatpush1.bf16.msra.mxu1 %v9898_v26  ;;  %v9987_v33 = vld [vmem:[%s14334_s1 + $0xda4] ss:$16 sps:$4 sm:$0xff]   ;;  %v9990_v26 = vld [vmem:[%s14334_s1 + $0xdac] ss:$16 sps:$4 sm:$0xff]  }
 0x17c   :  { %6659 = vmatprep.subr.bf16.mxu0 %v9903_v36  ;;  %7315 = vmatprep.subr.bf16.mxu1 %v9906_v37  ;;  %v9985_v36 = vld [vmem:[%s14334_s1 + $0xda0] ss:$16 sps:$4 sm:$0xff]   ;;  %v9988_v37 = vld [vmem:[%s14334_s1 + $0xda8] ss:$16 sps:$4 sm:$0xff]  }
 0x17f   :  { %6660 = vmatpush1.bf16.msra.mxu0 %v9901_v21  ;;  %7316 = vmatpush1.bf16.msra.mxu1 %v9904_v39  ;;  %v9993_v21 = vld [vmem:[%s14334_s1 + $0xdc4] ss:$16 sps:$4 sm:$0xff]   ;;  %v9996_v39 = vld [vmem:[%s14334_s1 + $0xdcc] ss:$16 sps:$4 sm:$0xff]  }
 0x180   :  { %6670 = vmatprep.subr.bf16.mxu0 %v9909_v40  ;;  %7326 = vmatprep.subr.bf16.mxu1 %v9912_v41  ;;  %v9991_v40 = vld [vmem:[%s14334_s1 + $0xdc0] ss:$16 sps:$4 sm:$0xff]   ;;  %v9994_v41 = vld [vmem:[%s14334_s1 + $0xdc8] ss:$16 sps:$4 sm:$0xff]  }
 0x182   :  { %6662 = vmatmul.mubr.bf16.vlgmr.msra.gmra.mrb[0].mxu0 %v1170_v43  ;;  %7318 = vmatmul.mubr.bf16.vlgmr.msra.gmra.mrb[0].mxu1 %v1170_v43  ;;  %v10002_v43 = vld [vmem:[%s14334_s1 + $0xdec] ss:$16 sps:$4 sm:$0xff]  }
 0x183   :  { %6671 = vmatpush1.bf16.msra.mxu0 %v9907_v44  ;;  %7327 = vmatpush1.bf16.msra.mxu1 %v9910_v45  ;;  %v9997_v44 = vld [vmem:[%s14334_s1 + $0xde0] ss:$16 sps:$4 sm:$0xff]   ;;  %v10000_v45 = vld [vmem:[%s14334_s1 + $0xde8] ss:$16 sps:$4 sm:$0xff]  }
 0x184   :  { %6672 = vmatprep.subr.bf16.mxu0 %v9915_v46  ;;  %7328 = vmatprep.subr.bf16.mxu1 %v9918_v35  ;;  %v10006_v46 = vld [vmem:[%s14334_s1 + $0xe04] ss:$16 sps:$4 sm:$0xff]   ;;  %v10009_v35 = vld [vmem:[%s14334_s1 + $0xe0c] ss:$16 sps:$4 sm:$0xff]  }
 0x185   :  { %6702 = vmatprep.mubr.bf16.mxu0 %v12203_v47  ;;  %7358 = vmatprep.mubr.bf16.mxu1 %v12203_v47 }
 0x187   :  { %6673 = vmatpush1.bf16.msra.mxu0 %v9913_v48  ;;  %7329 = vmatpush1.bf16.msra.mxu1 %v9916_v50  ;;  %v12389_v48 = vrot.slane %v12172_v38, %v11095_v49  ;;  %v10004_v50 = vld [vmem:[%s14334_s1 + $0xe00] ss:$16 sps:$4 sm:$0xff]   ;;  %v10015_v38 = vld [vmem:[%s14334_s1 + $0xe2c] ss:$16 sps:$4 sm:$0xff]  }
 0x188   :  { %6674 = vmatprep.subr.bf16.mxu0 %v9921_v51  ;;  %7330 = vmatprep.subr.bf16.mxu1 %v9924_v53  ;;  %v10007_v51 = vld [vmem:[%s14334_s1 + $0xe08] ss:$16 sps:$4 sm:$0xff]   ;;  %v10012_v53 = vld [vmem:[%s14334_s1 + $0xe24] ss:$16 sps:$4 sm:$0xff]  }
 0x18b   :  { %6675 = vmatpush1.bf16.msra.mxu0 %v9919_v54  ;;  %7331 = vmatpush1.bf16.msra.mxu1 %v9922_v55  ;;  %v1173_v54 = vcombine.high %v12203_v47, %v12203_v47  ;;  %v10010_v55 = vld [vmem:[%s14334_s1 + $0xe20] ss:$16 sps:$4 sm:$0xff]   ;;  %v10018_v47 = vld [vmem:[%s14334_s1 + $0xe44] ss:$16 sps:$4 sm:$0xff]  }
 0x18c   :  { %6676 = vmatprep.subr.bf16.mxu0 %v9927_v56  ;;  %7332 = vmatprep.subr.bf16.mxu1 %v9930_v57  ;;  %v10013_v56 = vld [vmem:[%s14334_s1 + $0xe28] ss:$16 sps:$4 sm:$0xff]   ;;  %v10021_v57 = vld [vmem:[%s14334_s1 + $0xe4c] ss:$16 sps:$4 sm:$0xff]  }
 0x18f   :  { %6677 = vmatpush1.bf16.msra.mxu0 %v9925_v58  ;;  %7333 = vmatpush1.bf16.msra.mxu1 %v9928_v59  ;;  %v10016_v58 = vld [vmem:[%s14334_s1 + $0xe40] ss:$16 sps:$4 sm:$0xff]   ;;  %v10019_v59 = vld [vmem:[%s14334_s1 + $0xe48] ss:$16 sps:$4 sm:$0xff]  }
 0x190   :  { %6678 = vmatprep.subr.bf16.mxu0 %v9933_v60  ;;  %7334 = vmatprep.subr.bf16.mxu1 %v9936_v61  ;;  %v10024_v60 = vld [vmem:[%s14334_s1 + $0xe64] ss:$16 sps:$4 sm:$0xff]   ;;  %v10027_v61 = vld [vmem:[%s14334_s1 + $0xe6c] ss:$16 sps:$4 sm:$0xff]  }
 0x193   :  { %6679 = vmatpush1.bf16.msra.mxu0 %v9931_v62  ;;  %7335 = vmatpush1.bf16.msra.mxu1 %v9934_v63  ;;  %v10022_v62 = vld [vmem:[%s14334_s1 + $0xe60] ss:$16 sps:$4 sm:$0xff]   ;;  %v10025_v63 = vld [vmem:[%s14334_s1 + $0xe68] ss:$16 sps:$4 sm:$0xff]  }
 0x194   :  { %6680 = vmatprep.subr.bf16.mxu0 %v9939_v0  ;;  %7336 = vmatprep.subr.bf16.mxu1 %v9942_v1  ;;  %v10030_v0 = vld [vmem:[%s14334_s1 + $0xe84] ss:$16 sps:$4 sm:$0xff]   ;;  %v10033_v1 = vld [vmem:[%s14334_s1 + $0xe8c] ss:$16 sps:$4 sm:$0xff]  }
 0x197   :  { %6681 = vmatpush1.bf16.msra.mxu0 %v9937_v2  ;;  %7337 = vmatpush1.bf16.msra.mxu1 %v9940_v3  ;;  %v10028_v2 = vld [vmem:[%s14334_s1 + $0xe80] ss:$16 sps:$4 sm:$0xff]   ;;  %v10031_v3 = vld [vmem:[%s14334_s1 + $0xe88] ss:$16 sps:$4 sm:$0xff]  }
 0x198   :  { %6682 = vmatprep.subr.bf16.mxu0 %v9945_v4  ;;  %7338 = vmatprep.subr.bf16.mxu1 %v9948_v5  ;;  %v10036_v4 = vld [vmem:[%s14334_s1 + $0xea4] ss:$16 sps:$4 sm:$0xff]   ;;  %v10039_v5 = vld [vmem:[%s14334_s1 + $0xeac] ss:$16 sps:$4 sm:$0xff]  }
 0x19b   :  { %6683 = vmatpush1.bf16.msra.mxu0 %v9943_v6  ;;  %7339 = vmatpush1.bf16.msra.mxu1 %v9946_v7  ;;  %v10034_v6 = vld [vmem:[%s14334_s1 + $0xea0] ss:$16 sps:$4 sm:$0xff]   ;;  %v10037_v7 = vld [vmem:[%s14334_s1 + $0xea8] ss:$16 sps:$4 sm:$0xff]  }
 0x19c   :  { %6684 = vmatprep.subr.bf16.mxu0 %v9951_v8  ;;  %7340 = vmatprep.subr.bf16.mxu1 %v9954_v9  ;;  %v10042_v8 = vld [vmem:[%s14334_s1 + $0xec4] ss:$16 sps:$4 sm:$0xff]   ;;  %v10045_v9 = vld [vmem:[%s14334_s1 + $0xecc] ss:$16 sps:$4 sm:$0xff]  }
 0x19f   :  { %6685 = vmatpush1.bf16.msra.mxu0 %v9949_v10  ;;  %7341 = vmatpush1.bf16.msra.mxu1 %v9952_v11  ;;  %v10040_v10 = vld [vmem:[%s14334_s1 + $0xec0] ss:$16 sps:$4 sm:$0xff]   ;;  %v10043_v11 = vld [vmem:[%s14334_s1 + $0xec8] ss:$16 sps:$4 sm:$0xff]  }
 0x1a0   :  { %6686 = vmatprep.subr.bf16.mxu0 %v9957_v12  ;;  %7342 = vmatprep.subr.bf16.mxu1 %v9960_v52  ;;  %v10048_v12 = vld [vmem:[%s14334_s1 + $0xee4] ss:$16 sps:$4 sm:$0xff]   ;;  %v10051_v52 = vld [vmem:[%s14334_s1 + $0xeec] ss:$16 sps:$4 sm:$0xff]  }
 0x1a3   :  { %6687 = vmatpush1.bf16.msra.mxu0 %v9955_v15  ;;  %7343 = vmatpush1.bf16.msra.mxu1 %v9958_v16  ;;  %v10046_v15 = vld [vmem:[%s14334_s1 + $0xee0] ss:$16 sps:$4 sm:$0xff]   ;;  %v10049_v16 = vld [vmem:[%s14334_s1 + $0xee8] ss:$16 sps:$4 sm:$0xff]  }
 0x1a4   :  { %6688 = vmatprep.subr.bf16.mxu0 %v9963_v17  ;;  %7344 = vmatprep.subr.bf16.mxu1 %v9966_v18  ;;  %v10054_v17 = vld [vmem:[%s14334_s1 + $0xf04] ss:$16 sps:$4 sm:$0xff]   ;;  %v10057_v18 = vld [vmem:[%s14334_s1 + $0xf0c] ss:$16 sps:$4 sm:$0xff]  }
 0x1a7   :  { %6689 = vmatpush1.bf16.msra.mxu0 %v9961_v19  ;;  %7345 = vmatpush1.bf16.msra.mxu1 %v9964_v20  ;;  %v10052_v19 = vld [vmem:[%s14334_s1 + $0xf00] ss:$16 sps:$4 sm:$0xff]   ;;  %v10055_v20 = vld [vmem:[%s14334_s1 + $0xf08] ss:$16 sps:$4 sm:$0xff]  }
 0x1a8   :  { %6690 = vmatprep.subr.bf16.mxu0 %v9969_v22  ;;  %7346 = vmatprep.subr.bf16.mxu1 %v9972_v23  ;;  %v10060_v22 = vld [vmem:[%s14334_s1 + $0xf24] ss:$16 sps:$4 sm:$0xff]   ;;  %v10063_v23 = vld [vmem:[%s14334_s1 + $0xf2c] ss:$16 sps:$4 sm:$0xff]  }
 0x1ab   :  { %6691 = vmatpush1.bf16.msra.mxu0 %v9967_v24  ;;  %7347 = vmatpush1.bf16.msra.mxu1 %v9970_v13  ;;  %v10058_v24 = vld [vmem:[%s14334_s1 + $0xf20] ss:$16 sps:$4 sm:$0xff]   ;;  %v10061_v13 = vld [vmem:[%s14334_s1 + $0xf28] ss:$16 sps:$4 sm:$0xff]  }
 0x1ac   :  { %6692 = vmatprep.subr.bf16.mxu0 %v9975_v27  ;;  %7348 = vmatprep.subr.bf16.mxu1 %v9978_v28  ;;  %v10066_v27 = vld [vmem:[%s14334_s1 + $0xf44] ss:$16 sps:$4 sm:$0xff]   ;;  %v10069_v28 = vld [vmem:[%s14334_s1 + $0xf4c] ss:$16 sps:$4 sm:$0xff]  }
 0x1af   :  { %6693 = vmatpush1.bf16.msra.mxu0 %v9973_v29  ;;  %7349 = vmatpush1.bf16.msra.mxu1 %v9976_v14  ;;  %v10064_v29 = vld [vmem:[%s14334_s1 + $0xf40] ss:$16 sps:$4 sm:$0xff]   ;;  %v10067_v14 = vld [vmem:[%s14334_s1 + $0xf48] ss:$16 sps:$4 sm:$0xff]  }
 0x1b0   :  { %6694 = vmatprep.subr.bf16.mxu0 %v9981_v30  ;;  %7350 = vmatprep.subr.bf16.mxu1 %v9984_v31  ;;  %v10072_v30 = vld [vmem:[%s14334_s1 + $0xf64] ss:$16 sps:$4 sm:$0xff]   ;;  %v10075_v31 = vld [vmem:[%s14334_s1 + $0xf6c] ss:$16 sps:$4 sm:$0xff]  }
 0x1b3   :  { %6695 = vmatpush1.bf16.msra.mxu0 %v9979_v25  ;;  %7351 = vmatpush1.bf16.msra.mxu1 %v9982_v32  ;;  %v10070_v25 = vld [vmem:[%s14334_s1 + $0xf60] ss:$16 sps:$4 sm:$0xff]   ;;  %v10073_v32 = vld [vmem:[%s14334_s1 + $0xf68] ss:$16 sps:$4 sm:$0xff]  }
 0x1b4   :  { %6696 = vmatprep.subr.bf16.mxu0 %v9987_v33  ;;  %7352 = vmatprep.subr.bf16.mxu1 %v9990_v26  ;;  %v10078_v33 = vld [vmem:[%s14334_s1 + $0xf84] ss:$16 sps:$4 sm:$0xff]   ;;  %v10081_v26 = vld [vmem:[%s14334_s1 + $0xf8c] ss:$16 sps:$4 sm:$0xff]  }
 0x1b7   :  { %6697 = vmatpush1.bf16.msra.mxu0 %v9985_v36  ;;  %7353 = vmatpush1.bf16.msra.mxu1 %v9988_v37  ;;  %v10076_v36 = vld [vmem:[%s14334_s1 + $0xf80] ss:$16 sps:$4 sm:$0xff]   ;;  %v10079_v37 = vld [vmem:[%s14334_s1 + $0xf88] ss:$16 sps:$4 sm:$0xff]  }
 0x1b8   :  { %6698 = vmatprep.subr.bf16.mxu0 %v9993_v21  ;;  %7354 = vmatprep.subr.bf16.mxu1 %v9996_v39  ;;  %v10084_v21 = vld [vmem:[%s14334_s1 + $0xfa4] ss:$16 sps:$4 sm:$0xff]   ;;  %v10087_v39 = vld [vmem:[%s14334_s1 + $0xfac] ss:$16 sps:$4 sm:$0xff]  }
 0x1bb   :  { %6699 = vmatpush1.bf16.msra.mxu0 %v9991_v40  ;;  %7355 = vmatpush1.bf16.msra.mxu1 %v9994_v41  ;;  %v10082_v40 = vld [vmem:[%s14334_s1 + $0xfa0] ss:$16 sps:$4 sm:$0xff]   ;;  %v10085_v41 = vld [vmem:[%s14334_s1 + $0xfa8] ss:$16 sps:$4 sm:$0xff]  }
 0x1bc   :  { %6700 = vmatprep.subr.bf16.mxu0 %v9999_v34  ;;  %7356 = vmatprep.subr.bf16.mxu1 %v10002_v43  ;;  %v10090_v34 = vld [vmem:[%s14334_s1 + $0xfc4] ss:$16 sps:$4 sm:$0xff]   ;;  %v10093_v43 = vld [vmem:[%s14334_s1 + $0xfcc] ss:$16 sps:$4 sm:$0xff]  }
 0x1bf   :  { %6701 = vmatpush1.bf16.msra.mxu0 %v9997_v44  ;;  %7357 = vmatpush1.bf16.msra.mxu1 %v10000_v45  ;;  %v12566_v44 = vld [vmem:[%s14333_s0 + $0x10] sm:$0xff] }
 0x1c0   :  { %6711 = vmatprep.subr.bf16.mxu0 %v10006_v46  ;;  %7367 = vmatprep.subr.bf16.mxu1 %v10009_v35  ;;  %v10088_v45 = vld [vmem:[%s14334_s1 + $0xfc0] ss:$16 sps:$4 sm:$0xff]   ;;  %v10091_v46 = vld [vmem:[%s14334_s1 + $0xfc8] ss:$16 sps:$4 sm:$0xff]   ;;  %v10096_v35 = vld [vmem:[%s14334_s1 + $0xfe4] ss:$16 sps:$4 sm:$0xff]  }
 0x1c2   :  { %6703 = vmatmul.mubr.bf16.vlgmr.msra.gmra.mrb[0].mxu0 %v12389_v48  ;;  %7359 = vmatmul.mubr.bf16.vlgmr.msra.gmra.mrb[0].mxu1 %v12389_v48 }
 0x1c3   :  { %6712 = vmatpush1.bf16.msra.mxu0 %v10004_v50  ;;  %7368 = vmatpush1.bf16.msra.mxu1 %v10007_v51  ;;  %v10099_v50 = vld [vmem:[%s14334_s1 + $0xfec] ss:$16 sps:$4 sm:$0xff]   ;;  %v12582_v51 = vrot.slane %v12566_v44, %v11095_v49 }
 0x1c4   :  { %6713 = vmatprep.subr.bf16.mxu0 %v10012_v53  ;;  %7369 = vmatprep.subr.bf16.mxu1 %v10015_v38  ;;  %v10094_v53 = vld [vmem:[%s14334_s1 + $0xfe0] ss:$16 sps:$4 sm:$0xff]   ;;  %v10097_v38 = vld [vmem:[%s14334_s1 + $0xfe8] ss:$16 sps:$4 sm:$0xff]  }
 0x1c5   :  { %6743 = vmatprep.mubr.bf16.mxu0 %v1173_v54  ;;  %7399 = vmatprep.mubr.bf16.mxu1 %v1173_v54  ;;  %v10102_v54 = vld [vmem:[%s14334_s1 + $0x1004] ss:$16 sps:$4 sm:$0xff]  }
 0x1c7   :  { %6714 = vmatpush1.bf16.msra.mxu0 %v10010_v55  ;;  %7370 = vmatpush1.bf16.msra.mxu1 %v10013_v56  ;;  %v10105_v55 = vld [vmem:[%s14334_s1 + $0x100c] ss:$16 sps:$4 sm:$0xff]   ;;  %v1189_v56 = vcombine.high %v12582_v51, %v12582_v51 }
 0x1c8   :  { %6715 = vmatprep.subr.bf16.mxu0 %v10018_v47  ;;  %7371 = vmatprep.subr.bf16.mxu1 %v10021_v57  ;;  %v1171_v47 = vcombine.high %v12389_v48, %v12389_v48  ;;  %v10100_v57 = vld [vmem:[%s14334_s1 + $0x1000] ss:$16 sps:$4 sm:$0xff]   ;;  %v10111_v48 = vld [vmem:[%s14334_s1 + $0x102c] ss:$16 sps:$4 sm:$0xff]  }
 0x1cb   :  { %6716 = vmatpush1.bf16.msra.mxu0 %v10016_v58  ;;  %7372 = vmatpush1.bf16.msra.mxu1 %v10019_v59  ;;  %v10103_v58 = vld [vmem:[%s14334_s1 + $0x1008] ss:$16 sps:$4 sm:$0xff]   ;;  %v10108_v59 = vld [vmem:[%s14334_s1 + $0x1024] ss:$16 sps:$4 sm:$0xff]  }
 0x1cc   :  { %6717 = vmatprep.subr.bf16.mxu0 %v10024_v60  ;;  %7373 = vmatprep.subr.bf16.mxu1 %v10027_v61  ;;  %v12613_v60 = vrot.slane %v1189_v56, %v11095_v49  ;;  %v10106_v61 = vld [vmem:[%s14334_s1 + $0x1020] ss:$16 sps:$4 sm:$0xff]   ;;  %v10187_v56 = vld [vmem:[%s14334_s1 + $0x11c8] ss:$16 sps:$4 sm:$0xff]  }
 0x1cf   :  { %6718 = vmatpush1.bf16.msra.mxu0 %v10022_v62  ;;  %7374 = vmatpush1.bf16.msra.mxu1 %v10025_v63  ;;  %v10109_v62 = vld [vmem:[%s14334_s1 + $0x1028] ss:$16 sps:$4 sm:$0xff]   ;;  %v10114_v63 = vld [vmem:[%s14334_s1 + $0x1044] ss:$16 sps:$4 sm:$0xff]  }
 0x1d0   :  { %6719 = vmatprep.subr.bf16.mxu0 %v10030_v0  ;;  %7375 = vmatprep.subr.bf16.mxu1 %v10033_v1  ;;  %v10117_v0 = vld [vmem:[%s14334_s1 + $0x104c] ss:$16 sps:$4 sm:$0xff]   ;;  %v10112_v1 = vld [vmem:[%s14334_s1 + $0x1040] ss:$16 sps:$4 sm:$0xff]  }
 0x1d3   :  { %6720 = vmatpush1.bf16.msra.mxu0 %v10028_v2  ;;  %7376 = vmatpush1.bf16.msra.mxu1 %v10031_v3  ;;  %v10115_v2 = vld [vmem:[%s14334_s1 + $0x1048] ss:$16 sps:$4 sm:$0xff]   ;;  %v10120_v3 = vld [vmem:[%s14334_s1 + $0x1064] ss:$16 sps:$4 sm:$0xff]  }
 0x1d4   :  { %6721 = vmatprep.subr.bf16.mxu0 %v10036_v4  ;;  %7377 = vmatprep.subr.bf16.mxu1 %v10039_v5  ;;  %v10123_v4 = vld [vmem:[%s14334_s1 + $0x106c] ss:$16 sps:$4 sm:$0xff]   ;;  %v10118_v5 = vld [vmem:[%s14334_s1 + $0x1060] ss:$16 sps:$4 sm:$0xff]  }
 0x1d7   :  { %6722 = vmatpush1.bf16.msra.mxu0 %v10034_v6  ;;  %7378 = vmatpush1.bf16.msra.mxu1 %v10037_v7  ;;  %v10121_v6 = vld [vmem:[%s14334_s1 + $0x1068] ss:$16 sps:$4 sm:$0xff]   ;;  %v10126_v7 = vld [vmem:[%s14334_s1 + $0x1084] ss:$16 sps:$4 sm:$0xff]  }
 0x1d8   :  { %6723 = vmatprep.subr.bf16.mxu0 %v10042_v8  ;;  %7379 = vmatprep.subr.bf16.mxu1 %v10045_v9  ;;  %v10129_v8 = vld [vmem:[%s14334_s1 + $0x108c] ss:$16 sps:$4 sm:$0xff]   ;;  %v10124_v9 = vld [vmem:[%s14334_s1 + $0x1080] ss:$16 sps:$4 sm:$0xff]  }
 0x1db   :  { %6724 = vmatpush1.bf16.msra.mxu0 %v10040_v10  ;;  %7380 = vmatpush1.bf16.msra.mxu1 %v10043_v11  ;;  %v10127_v10 = vld [vmem:[%s14334_s1 + $0x1088] ss:$16 sps:$4 sm:$0xff]   ;;  %v10132_v11 = vld [vmem:[%s14334_s1 + $0x10a4] ss:$16 sps:$4 sm:$0xff]  }
 0x1dc   :  { %6725 = vmatprep.subr.bf16.mxu0 %v10048_v12  ;;  %7381 = vmatprep.subr.bf16.mxu1 %v10051_v52  ;;  %v10135_v12 = vld [vmem:[%s14334_s1 + $0x10ac] ss:$16 sps:$4 sm:$0xff]   ;;  %v10130_v52 = vld [vmem:[%s14334_s1 + $0x10a0] ss:$16 sps:$4 sm:$0xff]  }
 0x1df   :  { %6726 = vmatpush1.bf16.msra.mxu0 %v10046_v15  ;;  %7382 = vmatpush1.bf16.msra.mxu1 %v10049_v16  ;;  %v10133_v15 = vld [vmem:[%s14334_s1 + $0x10a8] ss:$16 sps:$4 sm:$0xff]   ;;  %v10138_v16 = vld [vmem:[%s14334_s1 + $0x10c4] ss:$16 sps:$4 sm:$0xff]  }
 0x1e0   :  { %6727 = vmatprep.subr.bf16.mxu0 %v10054_v17  ;;  %7383 = vmatprep.subr.bf16.mxu1 %v10057_v18  ;;  %v10141_v17 = vld [vmem:[%s14334_s1 + $0x10cc] ss:$16 sps:$4 sm:$0xff]   ;;  %v10136_v18 = vld [vmem:[%s14334_s1 + $0x10c0] ss:$16 sps:$4 sm:$0xff]  }
 0x1e3   :  { %6728 = vmatpush1.bf16.msra.mxu0 %v10052_v19  ;;  %7384 = vmatpush1.bf16.msra.mxu1 %v10055_v20  ;;  %v10139_v19 = vld [vmem:[%s14334_s1 + $0x10c8] ss:$16 sps:$4 sm:$0xff]   ;;  %v10144_v20 = vld [vmem:[%s14334_s1 + $0x10e4] ss:$16 sps:$4 sm:$0xff]  }
 0x1e4   :  { %6729 = vmatprep.subr.bf16.mxu0 %v10060_v22  ;;  %7385 = vmatprep.subr.bf16.mxu1 %v10063_v23  ;;  %v10147_v22 = vld [vmem:[%s14334_s1 + $0x10ec] ss:$16 sps:$4 sm:$0xff]   ;;  %v10142_v23 = vld [vmem:[%s14334_s1 + $0x10e0] ss:$16 sps:$4 sm:$0xff]  }
 0x1e7   :  { %6730 = vmatpush1.bf16.msra.mxu0 %v10058_v24  ;;  %7386 = vmatpush1.bf16.msra.mxu1 %v10061_v13  ;;  %v10145_v24 = vld [vmem:[%s14334_s1 + $0x10e8] ss:$16 sps:$4 sm:$0xff]   ;;  %v10150_v13 = vld [vmem:[%s14334_s1 + $0x1104] ss:$16 sps:$4 sm:$0xff]  }
 0x1e8   :  { %6731 = vmatprep.subr.bf16.mxu0 %v10066_v27  ;;  %7387 = vmatprep.subr.bf16.mxu1 %v10069_v28  ;;  %v10153_v27 = vld [vmem:[%s14334_s1 + $0x110c] ss:$16 sps:$4 sm:$0xff]   ;;  %v10148_v28 = vld [vmem:[%s14334_s1 + $0x1100] ss:$16 sps:$4 sm:$0xff]  }
 0x1eb   :  { %6732 = vmatpush1.bf16.msra.mxu0 %v10064_v29  ;;  %7388 = vmatpush1.bf16.msra.mxu1 %v10067_v14  ;;  %v10151_v29 = vld [vmem:[%s14334_s1 + $0x1108] ss:$16 sps:$4 sm:$0xff]   ;;  %v10156_v14 = vld [vmem:[%s14334_s1 + $0x1124] ss:$16 sps:$4 sm:$0xff]  }
 0x1ec   :  { %6733 = vmatprep.subr.bf16.mxu0 %v10072_v30  ;;  %7389 = vmatprep.subr.bf16.mxu1 %v10075_v31  ;;  %v10159_v30 = vld [vmem:[%s14334_s1 + $0x112c] ss:$16 sps:$4 sm:$0xff]   ;;  %v10154_v31 = vld [vmem:[%s14334_s1 + $0x1120] ss:$16 sps:$4 sm:$0xff]  }
 0x1ef   :  { %6734 = vmatpush1.bf16.msra.mxu0 %v10070_v25  ;;  %7390 = vmatpush1.bf16.msra.mxu1 %v10073_v32  ;;  %v10157_v25 = vld [vmem:[%s14334_s1 + $0x1128] ss:$16 sps:$4 sm:$0xff]   ;;  %v10162_v32 = vld [vmem:[%s14334_s1 + $0x1144] ss:$16 sps:$4 sm:$0xff]  }
 0x1f0   :  { %6735 = vmatprep.subr.bf16.mxu0 %v10078_v33  ;;  %7391 = vmatprep.subr.bf16.mxu1 %v10081_v26  ;;  %v10165_v33 = vld [vmem:[%s14334_s1 + $0x114c] ss:$16 sps:$4 sm:$0xff]   ;;  %v10160_v26 = vld [vmem:[%s14334_s1 + $0x1140] ss:$16 sps:$4 sm:$0xff]  }
 0x1f3   :  { %6736 = vmatpush1.bf16.msra.mxu0 %v10076_v36  ;;  %7392 = vmatpush1.bf16.msra.mxu1 %v10079_v37  ;;  %v10163_v36 = vld [vmem:[%s14334_s1 + $0x1148] ss:$16 sps:$4 sm:$0xff]   ;;  %v10168_v37 = vld [vmem:[%s14334_s1 + $0x1164] ss:$16 sps:$4 sm:$0xff]  }
 0x1f4   :  { %6737 = vmatprep.subr.bf16.mxu0 %v10084_v21  ;;  %7393 = vmatprep.subr.bf16.mxu1 %v10087_v39  ;;  %v10171_v21 = vld [vmem:[%s14334_s1 + $0x116c] ss:$16 sps:$4 sm:$0xff]   ;;  %v10166_v39 = vld [vmem:[%s14334_s1 + $0x1160] ss:$16 sps:$4 sm:$0xff]  }
 0x1f7   :  { %6738 = vmatpush1.bf16.msra.mxu0 %v10082_v40  ;;  %7394 = vmatpush1.bf16.msra.mxu1 %v10085_v41  ;;  %v10169_v40 = vld [vmem:[%s14334_s1 + $0x1168] ss:$16 sps:$4 sm:$0xff]   ;;  %v10174_v41 = vld [vmem:[%s14334_s1 + $0x1184] ss:$16 sps:$4 sm:$0xff]  }
 0x1f8   :  { %6739 = vmatprep.subr.bf16.mxu0 %v10090_v34  ;;  %7395 = vmatprep.subr.bf16.mxu1 %v10093_v43  ;;  %v10177_v34 = vld [vmem:[%s14334_s1 + $0x118c] ss:$16 sps:$4 sm:$0xff]   ;;  %v10172_v43 = vld [vmem:[%s14334_s1 + $0x1180] ss:$16 sps:$4 sm:$0xff]  }
 0x1fb   :  { %6740 = vmatpush1.bf16.msra.mxu0 %v10088_v45  ;;  %7396 = vmatpush1.bf16.msra.mxu1 %v10091_v46  ;;  %v10175_v45 = vld [vmem:[%s14334_s1 + $0x1188] ss:$16 sps:$4 sm:$0xff]   ;;  %v10180_v46 = vld [vmem:[%s14334_s1 + $0x11a4] ss:$16 sps:$4 sm:$0xff]  }
 0x1fc   :  { %6741 = vmatprep.subr.bf16.mxu0 %v10096_v35  ;;  %7397 = vmatprep.subr.bf16.mxu1 %v10099_v50  ;;  %v10183_v35 = vld [vmem:[%s14334_s1 + $0x11ac] ss:$16 sps:$4 sm:$0xff]   ;;  %v10178_v50 = vld [vmem:[%s14334_s1 + $0x11a0] ss:$16 sps:$4 sm:$0xff]  }
 0x1ff   :  { %6742 = vmatpush1.bf16.msra.mxu0 %v10094_v53  ;;  %7398 = vmatpush1.bf16.msra.mxu1 %v10097_v38  ;;  %v10181_v53 = vld [vmem:[%s14334_s1 + $0x11a8] ss:$16 sps:$4 sm:$0xff]   ;;  %v10186_v38 = vld [vmem:[%s14334_s1 + $0x11c4] ss:$16 sps:$4 sm:$0xff]  }
 0x200   :  { %6752 = vmatprep.subr.bf16.mxu0 %v10102_v54  ;;  %7408 = vmatprep.subr.bf16.mxu1 %v10105_v55  ;;  %v10189_v54 = vld [vmem:[%s14334_s1 + $0x11cc] ss:$16 sps:$4 sm:$0xff]   ;;  %v10184_v55 = vld [vmem:[%s14334_s1 + $0x11c0] ss:$16 sps:$4 sm:$0xff]  }
 0x202   :  { %6744 = vmatmul.mubr.bf16.vlgmr.msra.gmra.mrb[0].mxu0 %v1171_v47  ;;  %7400 = vmatmul.mubr.bf16.vlgmr.msra.gmra.mrb[0].mxu1 %v1171_v47  ;;  %v10192_v47 = vld [vmem:[%s14334_s1 + $0x11e4] ss:$16 sps:$4 sm:$0xff]  }
 0x203   :  { %6753 = vmatpush1.bf16.msra.mxu0 %v10100_v57  ;;  %7409 = vmatpush1.bf16.msra.mxu1 %v10103_v58  ;;  %v10195_v57 = vld [vmem:[%s14334_s1 + $0x11ec] ss:$16 sps:$4 sm:$0xff]   ;;  %v10190_v58 = vld [vmem:[%s14334_s1 + $0x11e0] ss:$16 sps:$4 sm:$0xff]  }
 0x204   :  { %6754 = vmatprep.subr.bf16.mxu0 %v10108_v59  ;;  %7410 = vmatprep.subr.bf16.mxu1 %v10111_v48  ;;  %v10193_v59 = vld [vmem:[%s14334_s1 + $0x11e8] ss:$16 sps:$4 sm:$0xff]   ;;  %v10198_v48 = vld [vmem:[%s14334_s1 + $0x1204] ss:$16 sps:$4 sm:$0xff]  }
 0x205   :  { %6784 = vmatprep.mubr.bf16.mxu0 %v12613_v60  ;;  %7440 = vmatprep.mubr.bf16.mxu1 %v12613_v60 }
 0x207   :  { %6755 = vmatpush1.bf16.msra.mxu0 %v10106_v61  ;;  %7411 = vmatpush1.bf16.msra.mxu1 %v10109_v62  ;;  %v10201_v61 = vld [vmem:[%s14334_s1 + $0x120c] ss:$16 sps:$4 sm:$0xff]   ;;  %v12799_v62 = vrot.slane %v12582_v51, %v11095_v49 }
 0x208   :  { %6756 = vmatprep.subr.bf16.mxu0 %v10114_v63  ;;  %7412 = vmatprep.subr.bf16.mxu1 %v10117_v0  ;;  %v10196_v63 = vld [vmem:[%s14334_s1 + $0x1200] ss:$16 sps:$4 sm:$0xff]   ;;  %v10199_v0 = vld [vmem:[%s14334_s1 + $0x1208] ss:$16 sps:$4 sm:$0xff]   ;;  %v10207_v51 = vld [vmem:[%s14334_s1 + $0x122c] ss:$16 sps:$4 sm:$0xff]  }
 0x20b   :  { %6757 = vmatpush1.bf16.msra.mxu0 %v10112_v1  ;;  %7413 = vmatpush1.bf16.msra.mxu1 %v10115_v2  ;;  %v10204_v1 = vld [vmem:[%s14334_s1 + $0x1224] ss:$16 sps:$4 sm:$0xff]   ;;  %v1221_v2 = vcombine.high %v12613_v60, %v12613_v60 }
 0x20c   :  { %6758 = vmatprep.subr.bf16.mxu0 %v10120_v3  ;;  %7414 = vmatprep.subr.bf16.mxu1 %v10123_v4  ;;  %v10202_v3 = vld [vmem:[%s14334_s1 + $0x1220] ss:$16 sps:$4 sm:$0xff]   ;;  %v10205_v4 = vld [vmem:[%s14334_s1 + $0x1228] ss:$16 sps:$4 sm:$0xff]   ;;  %v10210_v60 = vld [vmem:[%s14334_s1 + $0x1244] ss:$16 sps:$4 sm:$0xff]  }
 0x20f   :  { %6759 = vmatpush1.bf16.msra.mxu0 %v10118_v5  ;;  %7415 = vmatpush1.bf16.msra.mxu1 %v10121_v6  ;;  %v10213_v5 = vld [vmem:[%s14334_s1 + $0x124c] ss:$16 sps:$4 sm:$0xff]   ;;  %v10208_v6 = vld [vmem:[%s14334_s1 + $0x1240] ss:$16 sps:$4 sm:$0xff]  }
 0x210   :  { %6760 = vmatprep.subr.bf16.mxu0 %v10126_v7  ;;  %7416 = vmatprep.subr.bf16.mxu1 %v10129_v8  ;;  %v10211_v7 = vld [vmem:[%s14334_s1 + $0x1248] ss:$16 sps:$4 sm:$0xff]   ;;  %v10216_v8 = vld [vmem:[%s14334_s1 + $0x1264] ss:$16 sps:$4 sm:$0xff]  }
 0x213   :  { %6761 = vmatpush1.bf16.msra.mxu0 %v10124_v9  ;;  %7417 = vmatpush1.bf16.msra.mxu1 %v10127_v10  ;;  %v10219_v9 = vld [vmem:[%s14334_s1 + $0x126c] ss:$16 sps:$4 sm:$0xff]   ;;  %v10214_v10 = vld [vmem:[%s14334_s1 + $0x1260] ss:$16 sps:$4 sm:$0xff]  }
 0x214   :  { %6762 = vmatprep.subr.bf16.mxu0 %v10132_v11  ;;  %7418 = vmatprep.subr.bf16.mxu1 %v10135_v12  ;;  %v10217_v11 = vld [vmem:[%s14334_s1 + $0x1268] ss:$16 sps:$4 sm:$0xff]   ;;  %v10222_v12 = vld [vmem:[%s14334_s1 + $0x1284] ss:$16 sps:$4 sm:$0xff]  }
 0x217   :  { %6763 = vmatpush1.bf16.msra.mxu0 %v10130_v52  ;;  %7419 = vmatpush1.bf16.msra.mxu1 %v10133_v15  ;;  %v10225_v52 = vld [vmem:[%s14334_s1 + $0x128c] ss:$16 sps:$4 sm:$0xff]   ;;  %v10220_v15 = vld [vmem:[%s14334_s1 + $0x1280] ss:$16 sps:$4 sm:$0xff]  }
 0x218   :  { %6764 = vmatprep.subr.bf16.mxu0 %v10138_v16  ;;  %7420 = vmatprep.subr.bf16.mxu1 %v10141_v17  ;;  %v10223_v16 = vld [vmem:[%s14334_s1 + $0x1288] ss:$16 sps:$4 sm:$0xff]   ;;  %v10228_v17 = vld [vmem:[%s14334_s1 + $0x12a4] ss:$16 sps:$4 sm:$0xff]  }
 0x21b   :  { %6765 = vmatpush1.bf16.msra.mxu0 %v10136_v18  ;;  %7421 = vmatpush1.bf16.msra.mxu1 %v10139_v19  ;;  %v10231_v18 = vld [vmem:[%s14334_s1 + $0x12ac] ss:$16 sps:$4 sm:$0xff]   ;;  %v10226_v19 = vld [vmem:[%s14334_s1 + $0x12a0] ss:$16 sps:$4 sm:$0xff]  }
 0x21c   :  { %6766 = vmatprep.subr.bf16.mxu0 %v10144_v20  ;;  %7422 = vmatprep.subr.bf16.mxu1 %v10147_v22  ;;  %v10229_v20 = vld [vmem:[%s14334_s1 + $0x12a8] ss:$16 sps:$4 sm:$0xff]   ;;  %v10234_v22 = vld [vmem:[%s14334_s1 + $0x12c4] ss:$16 sps:$4 sm:$0xff]  }
 0x21f   :  { %6767 = vmatpush1.bf16.msra.mxu0 %v10142_v23  ;;  %7423 = vmatpush1.bf16.msra.mxu1 %v10145_v24  ;;  %v10237_v23 = vld [vmem:[%s14334_s1 + $0x12cc] ss:$16 sps:$4 sm:$0xff]   ;;  %v10232_v24 = vld [vmem:[%s14334_s1 + $0x12c0] ss:$16 sps:$4 sm:$0xff]  }
 0x220   :  { %6768 = vmatprep.subr.bf16.mxu0 %v10150_v13  ;;  %7424 = vmatprep.subr.bf16.mxu1 %v10153_v27  ;;  %v10235_v13 = vld [vmem:[%s14334_s1 + $0x12c8] ss:$16 sps:$4 sm:$0xff]   ;;  %v10240_v27 = vld [vmem:[%s14334_s1 + $0x12e4] ss:$16 sps:$4 sm:$0xff]  }
 0x223   :  { %6769 = vmatpush1.bf16.msra.mxu0 %v10148_v28  ;;  %7425 = vmatpush1.bf16.msra.mxu1 %v10151_v29  ;;  %v10243_v28 = vld [vmem:[%s14334_s1 + $0x12ec] ss:$16 sps:$4 sm:$0xff]   ;;  %v10238_v29 = vld [vmem:[%s14334_s1 + $0x12e0] ss:$16 sps:$4 sm:$0xff]  }
 0x224   :  { %6770 = vmatprep.subr.bf16.mxu0 %v10156_v14  ;;  %7426 = vmatprep.subr.bf16.mxu1 %v10159_v30  ;;  %v10241_v14 = vld [vmem:[%s14334_s1 + $0x12e8] ss:$16 sps:$4 sm:$0xff]   ;;  %v10246_v30 = vld [vmem:[%s14334_s1 + $0x1304] ss:$16 sps:$4 sm:$0xff]  }
 0x227   :  { %6771 = vmatpush1.bf16.msra.mxu0 %v10154_v31  ;;  %7427 = vmatpush1.bf16.msra.mxu1 %v10157_v25  ;;  %v10249_v31 = vld [vmem:[%s14334_s1 + $0x130c] ss:$16 sps:$4 sm:$0xff]   ;;  %v10244_v25 = vld [vmem:[%s14334_s1 + $0x1300] ss:$16 sps:$4 sm:$0xff]  }
 0x228   :  { %6772 = vmatprep.subr.bf16.mxu0 %v10162_v32  ;;  %7428 = vmatprep.subr.bf16.mxu1 %v10165_v33  ;;  %v10247_v32 = vld [vmem:[%s14334_s1 + $0x1308] ss:$16 sps:$4 sm:$0xff]   ;;  %v10252_v33 = vld [vmem:[%s14334_s1 + $0x1324] ss:$16 sps:$4 sm:$0xff]  }
 0x22b   :  { %6773 = vmatpush1.bf16.msra.mxu0 %v10160_v26  ;;  %7429 = vmatpush1.bf16.msra.mxu1 %v10163_v36  ;;  %v10255_v26 = vld [vmem:[%s14334_s1 + $0x132c] ss:$16 sps:$4 sm:$0xff]  }
 0x22c   :  { %6774 = vmatprep.subr.bf16.mxu0 %v10168_v37  ;;  %7430 = vmatprep.subr.bf16.mxu1 %v10171_v21 }
 0x22f   :  { %6775 = vmatpush1.bf16.msra.mxu0 %v10166_v39  ;;  %7431 = vmatpush1.bf16.msra.mxu1 %v10169_v40 }
 0x230   :  { %6776 = vmatprep.subr.bf16.mxu0 %v10174_v41  ;;  %7432 = vmatprep.subr.bf16.mxu1 %v10177_v34 }
 0x233   :  { %6777 = vmatpush1.bf16.msra.mxu0 %v10172_v43  ;;  %7433 = vmatpush1.bf16.msra.mxu1 %v10175_v45 }
 0x234   :  { %6778 = vmatprep.subr.bf16.mxu0 %v10180_v46  ;;  %7434 = vmatprep.subr.bf16.mxu1 %v10183_v35 }
 0x237   :  { %6779 = vmatpush1.bf16.msra.mxu0 %v10178_v50  ;;  %7435 = vmatpush1.bf16.msra.mxu1 %v10181_v53 }
 0x238   :  { %6780 = vmatprep.subr.bf16.mxu0 %v10186_v38  ;;  %7436 = vmatprep.subr.bf16.mxu1 %v10189_v54 }
 0x23b   :  { %6781 = vmatpush1.bf16.msra.mxu0 %v10184_v55  ;;  %7437 = vmatpush1.bf16.msra.mxu1 %v10187_v56 }
 0x23c   :  { %6782 = vmatprep.subr.bf16.mxu0 %v10192_v47  ;;  %7438 = vmatprep.subr.bf16.mxu1 %v10195_v57 }
 0x23f   :  { %6783 = vmatpush1.bf16.msra.mxu0 %v10190_v58  ;;  %7439 = vmatpush1.bf16.msra.mxu1 %v10193_v59 }
 0x240   :  { %6793 = vmatprep.subr.bf16.mxu0 %v10198_v48  ;;  %7449 = vmatprep.subr.bf16.mxu1 %v10201_v61 }
 0x242   :  { %6785 = vmatmul.mubr.bf16.vlgmr.msra.gmra.mrb[0].mxu0 %v12799_v62  ;;  %7441 = vmatmul.mubr.bf16.vlgmr.msra.gmra.mrb[0].mxu1 %v12799_v62 }
 0x243   :  { %6794 = vmatpush1.bf16.msra.mxu0 %v10196_v63  ;;  %7450 = vmatpush1.bf16.msra.mxu1 %v10199_v0 }
 0x244   :  { %6795 = vmatprep.subr.bf16.mxu0 %v10204_v1  ;;  %7451 = vmatprep.subr.bf16.mxu1 %v10207_v51 }
 0x245   :  { %6825 = vmatprep.mubr.bf16.mxu0 %v1221_v2  ;;  %7481 = vmatprep.mubr.bf16.mxu1 %v1221_v2 }
 0x247   :  { %6796 = vmatpush1.bf16.msra.mxu0 %v10202_v3  ;;  %7452 = vmatpush1.bf16.msra.mxu1 %v10205_v4 }
 0x248   :  { %6797 = vmatprep.subr.bf16.mxu0 %v10210_v60  ;;  %7453 = vmatprep.subr.bf16.mxu1 %v10213_v5 }
 0x24b   :  { %6798 = vmatpush1.bf16.msra.mxu0 %v10208_v6  ;;  %7454 = vmatpush1.bf16.msra.mxu1 %v10211_v7 }
 0x24c   :  { %6799 = vmatprep.subr.bf16.mxu0 %v10216_v8  ;;  %7455 = vmatprep.subr.bf16.mxu1 %v10219_v9 }
 0x24f   :  { %6800 = vmatpush1.bf16.msra.mxu0 %v10214_v10  ;;  %7456 = vmatpush1.bf16.msra.mxu1 %v10217_v11 }
 0x250   :  { %6801 = vmatprep.subr.bf16.mxu0 %v10222_v12  ;;  %7457 = vmatprep.subr.bf16.mxu1 %v10225_v52 }
 0x253   :  { %6802 = vmatpush1.bf16.msra.mxu0 %v10220_v15  ;;  %7458 = vmatpush1.bf16.msra.mxu1 %v10223_v16 }
 0x254   :  { %6803 = vmatprep.subr.bf16.mxu0 %v10228_v17  ;;  %7459 = vmatprep.subr.bf16.mxu1 %v10231_v18 }
 0x257   :  { %6804 = vmatpush1.bf16.msra.mxu0 %v10226_v19  ;;  %7460 = vmatpush1.bf16.msra.mxu1 %v10229_v20 }
 0x258   :  { %6805 = vmatprep.subr.bf16.mxu0 %v10234_v22  ;;  %7461 = vmatprep.subr.bf16.mxu1 %v10237_v23 }
 0x25b   :  { %6806 = vmatpush1.bf16.msra.mxu0 %v10232_v24  ;;  %7462 = vmatpush1.bf16.msra.mxu1 %v10235_v13 }
 0x25c   :  { %6807 = vmatprep.subr.bf16.mxu0 %v10240_v27  ;;  %7463 = vmatprep.subr.bf16.mxu1 %v10243_v28 }
 0x25f   :  { %6808 = vmatpush1.bf16.msra.mxu0 %v10238_v29  ;;  %7464 = vmatpush1.bf16.msra.mxu1 %v10241_v14 }
 0x260   :  { %6809 = vmatprep.subr.bf16.mxu0 %v10246_v30  ;;  %7465 = vmatprep.subr.bf16.mxu1 %v10249_v31 }
 0x261   :  { %10 = vsyncpa [#allocation3], 0  ;;  %v10250_v36 = vld [vmem:[%s14334_s1 + $0x1320] ss:$16 sps:$4 sm:$0xff]   ;;  %v10253_v37 = vld [vmem:[%s14334_s1 + $0x1328] ss:$16 sps:$4 sm:$0xff]   ;;  %v1174_v59 = vcombine.high %v12566_v44, %v12566_v44  ;;  %v1219_v60 = vcombine.high %v12799_v62, %v12799_v62 }
 0x262   :  { %v10258_v21 = vld [vmem:[%s14334_s1 + $0x1344] ss:$16 sps:$4 sm:$0xff]   ;;  %v10261_v39 = vld [vmem:[%s14334_s1 + $0x134c] ss:$16 sps:$4 sm:$0xff]   ;;  %v10256_v40 = vld [vmem:[%s14334_s1 + $0x1340] ss:$16 sps:$4 sm:$0xff]  }
 0x263   :  { %6810 = vmatpush1.bf16.msra.mxu0 %v10244_v25  ;;  %7466 = vmatpush1.bf16.msra.mxu1 %v10247_v32  ;;  %v10259_v41 = vld [vmem:[%s14334_s1 + $0x1348] ss:$16 sps:$4 sm:$0xff]   ;;  %v10264_v34 = vld [vmem:[%s14334_s1 + $0x1364] ss:$16 sps:$4 sm:$0xff]   ;;  %v10267_v43 = vld [vmem:[%s14334_s1 + $0x136c] ss:$16 sps:$4 sm:$0xff]   ;;  %v12988_v0 = vrot.slane %v1174_v59, %v11095_v49 }
 0x264   :  { %6811 = vmatprep.subr.bf16.mxu0 %v10252_v33  ;;  %7467 = vmatprep.subr.bf16.mxu1 %v10255_v26  ;;  %v10262_v45 = vld [vmem:[%s14334_s1 + $0x1360] ss:$16 sps:$4 sm:$0xff]   ;;  %v10265_v46 = vld [vmem:[%s14334_s1 + $0x1368] ss:$16 sps:$4 sm:$0xff]   ;;  %v10270_v35 = vld [vmem:[%s14334_s1 + $0x1384] ss:$16 sps:$4 sm:$0xff]  }
 0x265   :  { %v10273_v50 = vld [vmem:[%s14334_s1 + $0x138c] ss:$16 sps:$4 sm:$0xff]   ;;  %v10268_v53 = vld [vmem:[%s14334_s1 + $0x1380] ss:$16 sps:$4 sm:$0xff]   ;;  %v10271_v38 = vld [vmem:[%s14334_s1 + $0x1388] ss:$16 sps:$4 sm:$0xff]   ;;  %v1190_v4 = vcombine.high %v12988_v0, %v12988_v0 }
 0x266   :  { %v10276_v54 = vld [vmem:[%s14334_s1 + $0x13a4] ss:$16 sps:$4 sm:$0xff]   ;;  %v10279_v55 = vld [vmem:[%s14334_s1 + $0x13ac] ss:$16 sps:$4 sm:$0xff]   ;;  %v10274_v56 = vld [vmem:[%s14334_s1 + $0x13a0] ss:$16 sps:$4 sm:$0xff]  }
 0x267   :  { %6812 = vmatpush1.bf16.msra.mxu0 %v10250_v36  ;;  %7468 = vmatpush1.bf16.msra.mxu1 %v10253_v37  ;;  %v10277_v47 = vld [vmem:[%s14334_s1 + $0x13a8] ss:$16 sps:$4 sm:$0xff]   ;;  %v10282_v57 = vld [vmem:[%s14334_s1 + $0x13c4] ss:$16 sps:$4 sm:$0xff]   ;;  %v10285_v58 = vld [vmem:[%s14334_s1 + $0x13cc] ss:$16 sps:$4 sm:$0xff]   ;;  %v13019_v8 = vrot.slane %v1190_v4, %v11095_v49 }
 0x268   :  { %6813 = vmatprep.subr.bf16.mxu0 %v10258_v21  ;;  %7469 = vmatprep.subr.bf16.mxu1 %v10261_v39  ;;  %v10280_v48 = vld [vmem:[%s14334_s1 + $0x13c0] ss:$16 sps:$4 sm:$0xff]   ;;  %v10283_v61 = vld [vmem:[%s14334_s1 + $0x13c8] ss:$16 sps:$4 sm:$0xff]   ;;  %v10288_v63 = vld [vmem:[%s14334_s1 + $0x13e4] ss:$16 sps:$4 sm:$0xff]  }
 0x269   :  { %v10291_v44 = vld [vmem:[%s14334_s1 + $0x13ec] ss:$16 sps:$4 sm:$0xff]   ;;  %v10286_v1 = vld [vmem:[%s14334_s1 + $0x13e0] ss:$16 sps:$4 sm:$0xff]   ;;  %v10289_v51 = vld [vmem:[%s14334_s1 + $0x13e8] ss:$16 sps:$4 sm:$0xff]  }
 0x26a   :  { %v10294_v2 = vld [vmem:[%s14334_s1 + $0x1404] ss:$16 sps:$4 sm:$0xff]   ;;  %v10297_v3 = vld [vmem:[%s14334_s1 + $0x140c] ss:$16 sps:$4 sm:$0xff]   ;;  %v10292_v5 = vld [vmem:[%s14334_s1 + $0x1400] ss:$16 sps:$4 sm:$0xff]  }
 0x26b   :  { %6814 = vmatpush1.bf16.msra.mxu0 %v10256_v40  ;;  %7470 = vmatpush1.bf16.msra.mxu1 %v10259_v41  ;;  %v10295_v6 = vld [vmem:[%s14334_s1 + $0x1408] ss:$16 sps:$4 sm:$0xff]   ;;  %v10300_v7 = vld [vmem:[%s14334_s1 + $0x1424] ss:$16 sps:$4 sm:$0xff]   ;;  %v10303_v62 = vld [vmem:[%s14334_s1 + $0x142c] ss:$16 sps:$4 sm:$0xff]  }
 0x26c   :  { %6815 = vmatprep.subr.bf16.mxu0 %v10264_v34  ;;  %7471 = vmatprep.subr.bf16.mxu1 %v10267_v43  ;;  %v10298_v9 = vld [vmem:[%s14334_s1 + $0x1420] ss:$16 sps:$4 sm:$0xff]   ;;  %v10301_v10 = vld [vmem:[%s14334_s1 + $0x1428] ss:$16 sps:$4 sm:$0xff]   ;;  %v10306_v11 = vld [vmem:[%s14334_s1 + $0x1444] ss:$16 sps:$4 sm:$0xff]  }
 0x26d   :  { %v10309_v12 = vld [vmem:[%s14334_s1 + $0x144c] ss:$16 sps:$4 sm:$0xff]   ;;  %v10304_v52 = vld [vmem:[%s14334_s1 + $0x1440] ss:$16 sps:$4 sm:$0xff]   ;;  %v10307_v15 = vld [vmem:[%s14334_s1 + $0x1448] ss:$16 sps:$4 sm:$0xff]  }
 0x26e   :  { %v10312_v16 = vld [vmem:[%s14334_s1 + $0x1464] ss:$16 sps:$4 sm:$0xff]   ;;  %v10315_v17 = vld [vmem:[%s14334_s1 + $0x146c] ss:$16 sps:$4 sm:$0xff]   ;;  %v10310_v18 = vld [vmem:[%s14334_s1 + $0x1460] ss:$16 sps:$4 sm:$0xff]  }
 0x26f   :  { %6816 = vmatpush1.bf16.msra.mxu0 %v10262_v45  ;;  %7472 = vmatpush1.bf16.msra.mxu1 %v10265_v46  ;;  %v10313_v19 = vld [vmem:[%s14334_s1 + $0x1468] ss:$16 sps:$4 sm:$0xff]   ;;  %v10318_v20 = vld [vmem:[%s14334_s1 + $0x1484] ss:$16 sps:$4 sm:$0xff]   ;;  %v10321_v22 = vld [vmem:[%s14334_s1 + $0x148c] ss:$16 sps:$4 sm:$0xff]  }
 0x270   :  { %6817 = vmatprep.subr.bf16.mxu0 %v10270_v35  ;;  %7473 = vmatprep.subr.bf16.mxu1 %v10273_v50  ;;  %v10316_v23 = vld [vmem:[%s14334_s1 + $0x1480] ss:$16 sps:$4 sm:$0xff]   ;;  %v10319_v24 = vld [vmem:[%s14334_s1 + $0x1488] ss:$16 sps:$4 sm:$0xff]   ;;  %v10324_v13 = vld [vmem:[%s14334_s1 + $0x14a4] ss:$16 sps:$4 sm:$0xff]  }
 0x271   :  { %v10327_v27 = vld [vmem:[%s14334_s1 + $0x14ac] ss:$16 sps:$4 sm:$0xff]   ;;  %v10322_v28 = vld [vmem:[%s14334_s1 + $0x14a0] ss:$16 sps:$4 sm:$0xff]   ;;  %v10325_v29 = vld [vmem:[%s14334_s1 + $0x14a8] ss:$16 sps:$4 sm:$0xff]  }
 0x272   :  { %v10330_v14 = vld [vmem:[%s14334_s1 + $0x14c4] ss:$16 sps:$4 sm:$0xff]   ;;  %v10333_v30 = vld [vmem:[%s14334_s1 + $0x14cc] ss:$16 sps:$4 sm:$0xff]   ;;  %v10328_v31 = vld [vmem:[%s14334_s1 + $0x14c0] ss:$16 sps:$4 sm:$0xff]  }
 0x273   :  { %6818 = vmatpush1.bf16.msra.mxu0 %v10268_v53  ;;  %7474 = vmatpush1.bf16.msra.mxu1 %v10271_v38  ;;  %v10331_v25 = vld [vmem:[%s14334_s1 + $0x14c8] ss:$16 sps:$4 sm:$0xff]   ;;  %v10336_v32 = vld [vmem:[%s14334_s1 + $0x14e4] ss:$16 sps:$4 sm:$0xff]   ;;  %v10339_v33 = vld [vmem:[%s14334_s1 + $0x14ec] ss:$16 sps:$4 sm:$0xff]  }
 0x274   :  { %6819 = vmatprep.subr.bf16.mxu0 %v10276_v54  ;;  %7475 = vmatprep.subr.bf16.mxu1 %v10279_v55  ;;  %v10334_v26 = vld [vmem:[%s14334_s1 + $0x14e0] ss:$16 sps:$4 sm:$0xff]   ;;  %v10337_v36 = vld [vmem:[%s14334_s1 + $0x14e8] ss:$16 sps:$4 sm:$0xff]   ;;  %v10342_v37 = vld [vmem:[%s14334_s1 + $0x1504] ss:$16 sps:$4 sm:$0xff]  }
 0x275   :  { %v10345_v21 = vld [vmem:[%s14334_s1 + $0x150c] ss:$16 sps:$4 sm:$0xff]   ;;  %v10340_v39 = vld [vmem:[%s14334_s1 + $0x1500] ss:$16 sps:$4 sm:$0xff]   ;;  %v10343_v40 = vld [vmem:[%s14334_s1 + $0x1508] ss:$16 sps:$4 sm:$0xff]  }
 0x276   :  { %v10348_v41 = vld [vmem:[%s14334_s1 + $0x1524] ss:$16 sps:$4 sm:$0xff]   ;;  %v10351_v34 = vld [vmem:[%s14334_s1 + $0x152c] ss:$16 sps:$4 sm:$0xff]   ;;  %v10346_v43 = vld [vmem:[%s14334_s1 + $0x1520] ss:$16 sps:$4 sm:$0xff]  }
 0x277   :  { %6820 = vmatpush1.bf16.msra.mxu0 %v10274_v56  ;;  %7476 = vmatpush1.bf16.msra.mxu1 %v10277_v47  ;;  %v10349_v45 = vld [vmem:[%s14334_s1 + $0x1528] ss:$16 sps:$4 sm:$0xff]   ;;  %v10354_v46 = vld [vmem:[%s14334_s1 + $0x1544] ss:$16 sps:$4 sm:$0xff]   ;;  %v10357_v35 = vld [vmem:[%s14334_s1 + $0x154c] ss:$16 sps:$4 sm:$0xff]  }
 0x278   :  { %6821 = vmatprep.subr.bf16.mxu0 %v10282_v57  ;;  %7477 = vmatprep.subr.bf16.mxu1 %v10285_v58  ;;  %v10352_v50 = vld [vmem:[%s14334_s1 + $0x1540] ss:$16 sps:$4 sm:$0xff]   ;;  %v10355_v53 = vld [vmem:[%s14334_s1 + $0x1548] ss:$16 sps:$4 sm:$0xff]   ;;  %v10360_v38 = vld [vmem:[%s14334_s1 + $0x1564] ss:$16 sps:$4 sm:$0xff]  }
 0x279   :  { %v10363_v54 = vld [vmem:[%s14334_s1 + $0x156c] ss:$16 sps:$4 sm:$0xff]   ;;  %v10358_v55 = vld [vmem:[%s14334_s1 + $0x1560] ss:$16 sps:$4 sm:$0xff]   ;;  %v10361_v56 = vld [vmem:[%s14334_s1 + $0x1568] ss:$16 sps:$4 sm:$0xff]  }
 0x27a   :  { %v10366_v47 = vld [vmem:[%s14334_s1 + $0x1584] ss:$16 sps:$4 sm:$0xff]   ;;  %v10369_v57 = vld [vmem:[%s14334_s1 + $0x158c] ss:$16 sps:$4 sm:$0xff]   ;;  %v10364_v58 = vld [vmem:[%s14334_s1 + $0x1580] ss:$16 sps:$4 sm:$0xff]  }
 0x27b   :  { %6822 = vmatpush1.bf16.msra.mxu0 %v10280_v48  ;;  %7478 = vmatpush1.bf16.msra.mxu1 %v10283_v61  ;;  %v10367_v59 = vld [vmem:[%s14334_s1 + $0x1588] ss:$16 sps:$4 sm:$0xff]   ;;  %v10372_v48 = vld [vmem:[%s14334_s1 + $0x15a4] ss:$16 sps:$4 sm:$0xff]   ;;  %v10375_v61 = vld [vmem:[%s14334_s1 + $0x15ac] ss:$16 sps:$4 sm:$0xff]  }
 0x27c   :  { %6823 = vmatprep.subr.bf16.mxu0 %v10288_v63  ;;  %7479 = vmatprep.subr.bf16.mxu1 %v10291_v44  ;;  %v10370_v63 = vld [vmem:[%s14334_s1 + $0x15a0] ss:$16 sps:$4 sm:$0xff]   ;;  %v10373_v44 = vld [vmem:[%s14334_s1 + $0x15a8] ss:$16 sps:$4 sm:$0xff]   ;;  %v10384_v4 = vld [vmem:[%s14334_s1 + $0x15e4] ss:$16 sps:$4 sm:$0xff]  }
 0x27d   :  { %s10929_s16 = smov [#allocation2]   ;;  %vm8087_vm0 = vcmask 17408  }
 0x27e   :  { %s8095_s17 = sshll.u32 %s10929_s16, 4  ;;  %s8096_s17 = int_to_ptr.vmem [resolvable:$true] %s8095_s17 }
 0x27f   :  { %6824 = vmatpush1.bf16.msra.mxu0 %v10286_v1  ;;  %7480 = vmatpush1.bf16.msra.mxu1 %v10289_v51  ;;  %v10378_v1 = vld [vmem:[%s14334_s1 + $0x15c4] ss:$16 sps:$4 sm:$0xff]   ;;  %v10381_v51 = vld [vmem:[%s14334_s1 + $0x15cc] ss:$16 sps:$4 sm:$0xff]   ;;  %s10904_s18 = scalar_lea.vmem %s8096_s17, 32  ;;  %p10909_p1 = scmp.lt.s32.totalorder %s8096_s17, %s8096_s17 }
 0x280   :  { %6834 = vmatprep.subr.bf16.mxu0 %v10294_v2  ;;  %7490 = vmatprep.subr.bf16.mxu1 %v10297_v3  ;;  %v10376_v2 = vld [vmem:[%s14334_s1 + $0x15c0] ss:$16 sps:$4 sm:$0xff]   ;;  %v10379_v3 = vld [vmem:[%s14334_s1 + $0x15c8] ss:$16 sps:$4 sm:$0xff]   ;;  %p10905_p0 = scmp.ne.s32.totalorder %s8096_s17, %s10904_s18  ;;  %p10910_p2 = scmp.lt.s32.totalorder %s10904_s18, %s10904_s18 }
 0x282   :  { %6826 = vmatmul.mubr.bf16.vlgmr.msra.gmra.mrb[0].mxu0 %v1219_v60  ;;  %7482 = vmatmul.mubr.bf16.vlgmr.msra.gmra.mrb[0].mxu1 %v1219_v60  ;;  %v10387_v60 = vld [vmem:[%s14334_s1 + $0x15ec] ss:$16 sps:$4 sm:$0xff]   ;;  %p10911_p3 = por %p10910_p2, %p10909_p1 }
 0x283   :  { %6835 = vmatpush1.bf16.msra.mxu0 %v10292_v5  ;;  %7491 = vmatpush1.bf16.msra.mxu1 %v10295_v6  ;;  %v10382_v5 = vld [vmem:[%s14334_s1 + $0x15e0] ss:$16 sps:$4 sm:$0xff]   ;;  %v10385_v6 = vld [vmem:[%s14334_s1 + $0x15e8] ss:$16 sps:$4 sm:$0xff]  }
 0x284   :  { %6836 = vmatprep.subr.bf16.mxu0 %v10300_v7  ;;  %7492 = vmatprep.subr.bf16.mxu1 %v10303_v62  ;;  %v10391_v7 = vld [vmem:[%s14334_s1 + $0x1604] ss:$16 sps:$4 sm:$0xff]   ;;  %v10394_v62 = vld [vmem:[%s14334_s1 + $0x160c] ss:$16 sps:$4 sm:$0xff]   ;;  %p10912_p4 = pnand %p10911_p3, %p10905_p0 }
 0x285   :  { %6866 = vmatprep.mubr.bf16.mxu0 %v13019_v8  ;;  %7522 = vmatprep.mubr.bf16.mxu1 %v13019_v8 }
 0x287   :  { %6837 = vmatpush1.bf16.msra.mxu0 %v10298_v9  ;;  %7493 = vmatpush1.bf16.msra.mxu1 %v10301_v10  ;;  %v13205_v9 = vrot.slane %v12988_v0, %v11095_v49  ;;  %v10389_v10 = vld [vmem:[%s14334_s1 + $0x1600] ss:$16 sps:$4 sm:$0xff]   ;;  %v10400_v0 = vld [vmem:[%s14334_s1 + $0x162c] ss:$16 sps:$4 sm:$0xff]  }
 0x288   :  { %6838 = vmatprep.subr.bf16.mxu0 %v10306_v11  ;;  %7494 = vmatprep.subr.bf16.mxu1 %v10309_v12  ;;  %v10392_v11 = vld [vmem:[%s14334_s1 + $0x1608] ss:$16 sps:$4 sm:$0xff]   ;;  %v10397_v12 = vld [vmem:[%s14334_s1 + $0x1624] ss:$16 sps:$4 sm:$0xff]  }
 0x28b   :  { %6839 = vmatpush1.bf16.msra.mxu0 %v10304_v52  ;;  %7495 = vmatpush1.bf16.msra.mxu1 %v10307_v15  ;;  %v1222_v52 = vcombine.high %v13019_v8, %v13019_v8  ;;  %v10395_v15 = vld [vmem:[%s14334_s1 + $0x1620] ss:$16 sps:$4 sm:$0xff]   ;;  %v10403_v8 = vld [vmem:[%s14334_s1 + $0x1644] ss:$16 sps:$4 sm:$0xff]  }
 0x28c   :  { %6840 = vmatprep.subr.bf16.mxu0 %v10312_v16  ;;  %7496 = vmatprep.subr.bf16.mxu1 %v10315_v17  ;;  %v10398_v16 = vld [vmem:[%s14334_s1 + $0x1628] ss:$16 sps:$4 sm:$0xff]   ;;  %v10406_v17 = vld [vmem:[%s14334_s1 + $0x164c] ss:$16 sps:$4 sm:$0xff]  }
 0x28f   :  { %6841 = vmatpush1.bf16.msra.mxu0 %v10310_v18  ;;  %7497 = vmatpush1.bf16.msra.mxu1 %v10313_v19  ;;  %v10401_v18 = vld [vmem:[%s14334_s1 + $0x1640] ss:$16 sps:$4 sm:$0xff]   ;;  %v10404_v19 = vld [vmem:[%s14334_s1 + $0x1648] ss:$16 sps:$4 sm:$0xff]  }
 0x290   :  { %6842 = vmatprep.subr.bf16.mxu0 %v10318_v20  ;;  %7498 = vmatprep.subr.bf16.mxu1 %v10321_v22  ;;  %v10409_v20 = vld [vmem:[%s14334_s1 + $0x1664] ss:$16 sps:$4 sm:$0xff]   ;;  %v10412_v22 = vld [vmem:[%s14334_s1 + $0x166c] ss:$16 sps:$4 sm:$0xff]  }
 0x293   :  { %6843 = vmatpush1.bf16.msra.mxu0 %v10316_v23  ;;  %7499 = vmatpush1.bf16.msra.mxu1 %v10319_v24  ;;  %v10407_v23 = vld [vmem:[%s14334_s1 + $0x1660] ss:$16 sps:$4 sm:$0xff]   ;;  %v10410_v24 = vld [vmem:[%s14334_s1 + $0x1668] ss:$16 sps:$4 sm:$0xff]  }
 0x294   :  { %6844 = vmatprep.subr.bf16.mxu0 %v10324_v13  ;;  %7500 = vmatprep.subr.bf16.mxu1 %v10327_v27  ;;  %v10415_v13 = vld [vmem:[%s14334_s1 + $0x1684] ss:$16 sps:$4 sm:$0xff]   ;;  %v10418_v27 = vld [vmem:[%s14334_s1 + $0x168c] ss:$16 sps:$4 sm:$0xff]  }
 0x297   :  { %6845 = vmatpush1.bf16.msra.mxu0 %v10322_v28  ;;  %7501 = vmatpush1.bf16.msra.mxu1 %v10325_v29  ;;  %v10413_v28 = vld [vmem:[%s14334_s1 + $0x1680] ss:$16 sps:$4 sm:$0xff]   ;;  %v10416_v29 = vld [vmem:[%s14334_s1 + $0x1688] ss:$16 sps:$4 sm:$0xff]  }
 0x298   :  { %6846 = vmatprep.subr.bf16.mxu0 %v10330_v14  ;;  %7502 = vmatprep.subr.bf16.mxu1 %v10333_v30  ;;  %v10421_v14 = vld [vmem:[%s14334_s1 + $0x16a4] ss:$16 sps:$4 sm:$0xff]   ;;  %v10424_v30 = vld [vmem:[%s14334_s1 + $0x16ac] ss:$16 sps:$4 sm:$0xff]  }
 0x29b   :  { %6847 = vmatpush1.bf16.msra.mxu0 %v10328_v31  ;;  %7503 = vmatpush1.bf16.msra.mxu1 %v10331_v25  ;;  %v10419_v31 = vld [vmem:[%s14334_s1 + $0x16a0] ss:$16 sps:$4 sm:$0xff]   ;;  %v10422_v25 = vld [vmem:[%s14334_s1 + $0x16a8] ss:$16 sps:$4 sm:$0xff]  }
 0x29c   :  { %6848 = vmatprep.subr.bf16.mxu0 %v10336_v32  ;;  %7504 = vmatprep.subr.bf16.mxu1 %v10339_v33  ;;  %v10427_v32 = vld [vmem:[%s14334_s1 + $0x16c4] ss:$16 sps:$4 sm:$0xff]   ;;  %v10430_v33 = vld [vmem:[%s14334_s1 + $0x16cc] ss:$16 sps:$4 sm:$0xff]  }
 0x29f   :  { %6849 = vmatpush1.bf16.msra.mxu0 %v10334_v26  ;;  %7505 = vmatpush1.bf16.msra.mxu1 %v10337_v36  ;;  %v10425_v26 = vld [vmem:[%s14334_s1 + $0x16c0] ss:$16 sps:$4 sm:$0xff]   ;;  %v10428_v36 = vld [vmem:[%s14334_s1 + $0x16c8] ss:$16 sps:$4 sm:$0xff]  }
 0x2a0   :  { %6850 = vmatprep.subr.bf16.mxu0 %v10342_v37  ;;  %7506 = vmatprep.subr.bf16.mxu1 %v10345_v21  ;;  %v10433_v37 = vld [vmem:[%s14334_s1 + $0x16e4] ss:$16 sps:$4 sm:$0xff]   ;;  %v10436_v21 = vld [vmem:[%s14334_s1 + $0x16ec] ss:$16 sps:$4 sm:$0xff]  }
 0x2a3   :  { %6851 = vmatpush1.bf16.msra.mxu0 %v10340_v39  ;;  %7507 = vmatpush1.bf16.msra.mxu1 %v10343_v40  ;;  %v10431_v39 = vld [vmem:[%s14334_s1 + $0x16e0] ss:$16 sps:$4 sm:$0xff]   ;;  %v10434_v40 = vld [vmem:[%s14334_s1 + $0x16e8] ss:$16 sps:$4 sm:$0xff]  }
 0x2a4   :  { %6852 = vmatprep.subr.bf16.mxu0 %v10348_v41  ;;  %7508 = vmatprep.subr.bf16.mxu1 %v10351_v34  ;;  %v10439_v41 = vld [vmem:[%s14334_s1 + $0x1704] ss:$16 sps:$4 sm:$0xff]   ;;  %v10442_v34 = vld [vmem:[%s14334_s1 + $0x170c] ss:$16 sps:$4 sm:$0xff]  }
 0x2a7   :  { %6853 = vmatpush1.bf16.msra.mxu0 %v10346_v43  ;;  %7509 = vmatpush1.bf16.msra.mxu1 %v10349_v45  ;;  %v10437_v43 = vld [vmem:[%s14334_s1 + $0x1700] ss:$16 sps:$4 sm:$0xff]   ;;  %v10440_v45 = vld [vmem:[%s14334_s1 + $0x1708] ss:$16 sps:$4 sm:$0xff]  }
 0x2a8   :  { %6854 = vmatprep.subr.bf16.mxu0 %v10354_v46  ;;  %7510 = vmatprep.subr.bf16.mxu1 %v10357_v35  ;;  %v10445_v46 = vld [vmem:[%s14334_s1 + $0x1724] ss:$16 sps:$4 sm:$0xff]   ;;  %v10448_v35 = vld [vmem:[%s14334_s1 + $0x172c] ss:$16 sps:$4 sm:$0xff]  }
 0x2ab   :  { %6855 = vmatpush1.bf16.msra.mxu0 %v10352_v50  ;;  %7511 = vmatpush1.bf16.msra.mxu1 %v10355_v53  ;;  %v10443_v50 = vld [vmem:[%s14334_s1 + $0x1720] ss:$16 sps:$4 sm:$0xff]   ;;  %v10446_v53 = vld [vmem:[%s14334_s1 + $0x1728] ss:$16 sps:$4 sm:$0xff]  }
 0x2ac   :  { %6856 = vmatprep.subr.bf16.mxu0 %v10360_v38  ;;  %7512 = vmatprep.subr.bf16.mxu1 %v10363_v54  ;;  %v10451_v38 = vld [vmem:[%s14334_s1 + $0x1744] ss:$16 sps:$4 sm:$0xff]   ;;  %v10454_v54 = vld [vmem:[%s14334_s1 + $0x174c] ss:$16 sps:$4 sm:$0xff]  }
 0x2af   :  { %6857 = vmatpush1.bf16.msra.mxu0 %v10358_v55  ;;  %7513 = vmatpush1.bf16.msra.mxu1 %v10361_v56  ;;  %v10449_v55 = vld [vmem:[%s14334_s1 + $0x1740] ss:$16 sps:$4 sm:$0xff]   ;;  %v10452_v56 = vld [vmem:[%s14334_s1 + $0x1748] ss:$16 sps:$4 sm:$0xff]  }
 0x2b0   :  { %6858 = vmatprep.subr.bf16.mxu0 %v10366_v47  ;;  %7514 = vmatprep.subr.bf16.mxu1 %v10369_v57  ;;  %v10457_v47 = vld [vmem:[%s14334_s1 + $0x1764] ss:$16 sps:$4 sm:$0xff]   ;;  %v10460_v57 = vld [vmem:[%s14334_s1 + $0x176c] ss:$16 sps:$4 sm:$0xff]  }
 0x2b3   :  { %6859 = vmatpush1.bf16.msra.mxu0 %v10364_v58  ;;  %7515 = vmatpush1.bf16.msra.mxu1 %v10367_v59  ;;  %v10455_v58 = vld [vmem:[%s14334_s1 + $0x1760] ss:$16 sps:$4 sm:$0xff]   ;;  %v10458_v59 = vld [vmem:[%s14334_s1 + $0x1768] ss:$16 sps:$4 sm:$0xff]  }
 0x2b4   :  { %6860 = vmatprep.subr.bf16.mxu0 %v10372_v48  ;;  %7516 = vmatprep.subr.bf16.mxu1 %v10375_v61  ;;  %v10463_v48 = vld [vmem:[%s14334_s1 + $0x1784] ss:$16 sps:$4 sm:$0xff]   ;;  %v10466_v61 = vld [vmem:[%s14334_s1 + $0x178c] ss:$16 sps:$4 sm:$0xff]  }
 0x2b7   :  { %6861 = vmatpush1.bf16.msra.mxu0 %v10370_v63  ;;  %7517 = vmatpush1.bf16.msra.mxu1 %v10373_v44  ;;  %v10461_v63 = vld [vmem:[%s14334_s1 + $0x1780] ss:$16 sps:$4 sm:$0xff]   ;;  %v10464_v44 = vld [vmem:[%s14334_s1 + $0x1788] ss:$16 sps:$4 sm:$0xff]  }
 0x2b8   :  { %6862 = vmatprep.subr.bf16.mxu0 %v10378_v1  ;;  %7518 = vmatprep.subr.bf16.mxu1 %v10381_v51  ;;  %v10469_v1 = vld [vmem:[%s14334_s1 + $0x17a4] ss:$16 sps:$4 sm:$0xff]   ;;  %v10472_v51 = vld [vmem:[%s14334_s1 + $0x17ac] ss:$16 sps:$4 sm:$0xff]  }
 0x2bb   :  { %6863 = vmatpush1.bf16.msra.mxu0 %v10376_v2  ;;  %7519 = vmatpush1.bf16.msra.mxu1 %v10379_v3  ;;  %v10467_v2 = vld [vmem:[%s14334_s1 + $0x17a0] ss:$16 sps:$4 sm:$0xff]   ;;  %v10470_v3 = vld [vmem:[%s14334_s1 + $0x17a8] ss:$16 sps:$4 sm:$0xff]  }
 0x2bc   :  { %6864 = vmatprep.subr.bf16.mxu0 %v10384_v4  ;;  %7520 = vmatprep.subr.bf16.mxu1 %v10387_v60  ;;  %v10475_v4 = vld [vmem:[%s14334_s1 + $0x17c4] ss:$16 sps:$4 sm:$0xff]   ;;  %v10478_v60 = vld [vmem:[%s14334_s1 + $0x17cc] ss:$16 sps:$4 sm:$0xff]  }
 0x2bf   :  { %6865 = vmatpush1.bf16.msra.mxu0 %v10382_v5  ;;  %7521 = vmatpush1.bf16.msra.mxu1 %v10385_v6  ;;  %v13382_v5 = vld [vmem:[%s14333_s0 + $0x18] sm:$0xff]  ;;  %v10473_v6 = vld [vmem:[%s14334_s1 + $0x17c0] ss:$16 sps:$4 sm:$0xff]  }
 0x2c0   :  { %6875 = vmatprep.subr.bf16.mxu0 %v10391_v7  ;;  %7531 = vmatprep.subr.bf16.mxu1 %v10394_v62  ;;  %v10476_v7 = vld [vmem:[%s14334_s1 + $0x17c8] ss:$16 sps:$4 sm:$0xff]   ;;  %v10481_v62 = vld [vmem:[%s14334_s1 + $0x17e4] ss:$16 sps:$4 sm:$0xff]  }
 0x2c2   :  { %6867 = vmatmul.mubr.bf16.vlgmr.msra.gmra.mrb[0].mxu0 %v13205_v9  ;;  %7523 = vmatmul.mubr.bf16.vlgmr.msra.gmra.mrb[0].mxu1 %v13205_v9 }
 0x2c3   :  { %6876 = vmatpush1.bf16.msra.mxu0 %v10389_v10  ;;  %7532 = vmatpush1.bf16.msra.mxu1 %v10392_v11  ;;  %v10484_v10 = vld [vmem:[%s14334_s1 + $0x17ec] ss:$16 sps:$4 sm:$0xff]   ;;  %v13398_v11 = vrot.slane %v13382_v5, %v11095_v49 }
 0x2c4   :  { %6877 = vmatprep.subr.bf16.mxu0 %v10397_v12  ;;  %7533 = vmatprep.subr.bf16.mxu1 %v10400_v0  ;;  %v10479_v12 = vld [vmem:[%s14334_s1 + $0x17e0] ss:$16 sps:$4 sm:$0xff]   ;;  %v10482_v0 = vld [vmem:[%s14334_s1 + $0x17e8] ss:$16 sps:$4 sm:$0xff]  }
 0x2c5   :  { %6907 = vmatprep.mubr.bf16.mxu0 %v1222_v52  ;;  %7563 = vmatprep.mubr.bf16.mxu1 %v1222_v52  ;;  %v10487_v52 = vld [vmem:[%s14334_s1 + $0x1804] ss:$16 sps:$4 sm:$0xff]  }
 0x2c7   :  { %6878 = vmatpush1.bf16.msra.mxu0 %v10395_v15  ;;  %7534 = vmatpush1.bf16.msra.mxu1 %v10398_v16  ;;  %v10490_v15 = vld [vmem:[%s14334_s1 + $0x180c] ss:$16 sps:$4 sm:$0xff]   ;;  %v1238_v16 = vcombine.high %v13398_v11, %v13398_v11 }
 0x2c8   :  { %6879 = vmatprep.subr.bf16.mxu0 %v10403_v8  ;;  %7535 = vmatprep.subr.bf16.mxu1 %v10406_v17  ;;  %v1220_v8 = vcombine.high %v13205_v9, %v13205_v9  ;;  %v10485_v17 = vld [vmem:[%s14334_s1 + $0x1800] ss:$16 sps:$4 sm:$0xff]   ;;  %v10496_v9 = vld [vmem:[%s14334_s1 + $0x182c] ss:$16 sps:$4 sm:$0xff]  }
 0x2cb   :  { %6880 = vmatpush1.bf16.msra.mxu0 %v10401_v18  ;;  %7536 = vmatpush1.bf16.msra.mxu1 %v10404_v19  ;;  %v10488_v18 = vld [vmem:[%s14334_s1 + $0x1808] ss:$16 sps:$4 sm:$0xff]   ;;  %v10493_v19 = vld [vmem:[%s14334_s1 + $0x1824] ss:$16 sps:$4 sm:$0xff]  }
 0x2cc   :  { %6881 = vmatprep.subr.bf16.mxu0 %v10409_v20  ;;  %7537 = vmatprep.subr.bf16.mxu1 %v10412_v22  ;;  %v13429_v20 = vrot.slane %v1238_v16, %v11095_v49  ;;  %v10491_v22 = vld [vmem:[%s14334_s1 + $0x1820] ss:$16 sps:$4 sm:$0xff]   ;;  %v10572_v16 = vld [vmem:[%s14334_s1 + $0x19c8] ss:$16 sps:$4 sm:$0xff]  }
 0x2cf   :  { %6882 = vmatpush1.bf16.msra.mxu0 %v10407_v23  ;;  %7538 = vmatpush1.bf16.msra.mxu1 %v10410_v24  ;;  %v10494_v23 = vld [vmem:[%s14334_s1 + $0x1828] ss:$16 sps:$4 sm:$0xff]   ;;  %v10499_v24 = vld [vmem:[%s14334_s1 + $0x1844] ss:$16 sps:$4 sm:$0xff]  }
 0x2d0   :  { %6883 = vmatprep.subr.bf16.mxu0 %v10415_v13  ;;  %7539 = vmatprep.subr.bf16.mxu1 %v10418_v27  ;;  %v10502_v13 = vld [vmem:[%s14334_s1 + $0x184c] ss:$16 sps:$4 sm:$0xff]   ;;  %v10497_v27 = vld [vmem:[%s14334_s1 + $0x1840] ss:$16 sps:$4 sm:$0xff]  }
 0x2d3   :  { %6884 = vmatpush1.bf16.msra.mxu0 %v10413_v28  ;;  %7540 = vmatpush1.bf16.msra.mxu1 %v10416_v29  ;;  %v10500_v28 = vld [vmem:[%s14334_s1 + $0x1848] ss:$16 sps:$4 sm:$0xff]   ;;  %v10505_v29 = vld [vmem:[%s14334_s1 + $0x1864] ss:$16 sps:$4 sm:$0xff]  }
 0x2d4   :  { %6885 = vmatprep.subr.bf16.mxu0 %v10421_v14  ;;  %7541 = vmatprep.subr.bf16.mxu1 %v10424_v30  ;;  %v10508_v14 = vld [vmem:[%s14334_s1 + $0x186c] ss:$16 sps:$4 sm:$0xff]   ;;  %v10503_v30 = vld [vmem:[%s14334_s1 + $0x1860] ss:$16 sps:$4 sm:$0xff]  }
 0x2d7   :  { %6886 = vmatpush1.bf16.msra.mxu0 %v10419_v31  ;;  %7542 = vmatpush1.bf16.msra.mxu1 %v10422_v25  ;;  %v10506_v31 = vld [vmem:[%s14334_s1 + $0x1868] ss:$16 sps:$4 sm:$0xff]   ;;  %v10511_v25 = vld [vmem:[%s14334_s1 + $0x1884] ss:$16 sps:$4 sm:$0xff]  }
 0x2d8   :  { %6887 = vmatprep.subr.bf16.mxu0 %v10427_v32  ;;  %7543 = vmatprep.subr.bf16.mxu1 %v10430_v33  ;;  %v10514_v32 = vld [vmem:[%s14334_s1 + $0x188c] ss:$16 sps:$4 sm:$0xff]   ;;  %v10509_v33 = vld [vmem:[%s14334_s1 + $0x1880] ss:$16 sps:$4 sm:$0xff]  }
 0x2db   :  { %6888 = vmatpush1.bf16.msra.mxu0 %v10425_v26  ;;  %7544 = vmatpush1.bf16.msra.mxu1 %v10428_v36  ;;  %v10512_v26 = vld [vmem:[%s14334_s1 + $0x1888] ss:$16 sps:$4 sm:$0xff]   ;;  %v10517_v36 = vld [vmem:[%s14334_s1 + $0x18a4] ss:$16 sps:$4 sm:$0xff]  }
 0x2dc   :  { %6889 = vmatprep.subr.bf16.mxu0 %v10433_v37  ;;  %7545 = vmatprep.subr.bf16.mxu1 %v10436_v21  ;;  %v10520_v37 = vld [vmem:[%s14334_s1 + $0x18ac] ss:$16 sps:$4 sm:$0xff]   ;;  %v10515_v21 = vld [vmem:[%s14334_s1 + $0x18a0] ss:$16 sps:$4 sm:$0xff]  }
 0x2df   :  { %6890 = vmatpush1.bf16.msra.mxu0 %v10431_v39  ;;  %7546 = vmatpush1.bf16.msra.mxu1 %v10434_v40  ;;  %v10518_v39 = vld [vmem:[%s14334_s1 + $0x18a8] ss:$16 sps:$4 sm:$0xff]   ;;  %v10523_v40 = vld [vmem:[%s14334_s1 + $0x18c4] ss:$16 sps:$4 sm:$0xff]  }
 0x2e0   :  { %6891 = vmatprep.subr.bf16.mxu0 %v10439_v41  ;;  %7547 = vmatprep.subr.bf16.mxu1 %v10442_v34  ;;  %v10526_v41 = vld [vmem:[%s14334_s1 + $0x18cc] ss:$16 sps:$4 sm:$0xff]   ;;  %v10521_v34 = vld [vmem:[%s14334_s1 + $0x18c0] ss:$16 sps:$4 sm:$0xff]  }
 0x2e3   :  { %6892 = vmatpush1.bf16.msra.mxu0 %v10437_v43  ;;  %7548 = vmatpush1.bf16.msra.mxu1 %v10440_v45  ;;  %v10524_v43 = vld [vmem:[%s14334_s1 + $0x18c8] ss:$16 sps:$4 sm:$0xff]   ;;  %v10529_v45 = vld [vmem:[%s14334_s1 + $0x18e4] ss:$16 sps:$4 sm:$0xff]  }
 0x2e4   :  { %6893 = vmatprep.subr.bf16.mxu0 %v10445_v46  ;;  %7549 = vmatprep.subr.bf16.mxu1 %v10448_v35  ;;  %v10532_v46 = vld [vmem:[%s14334_s1 + $0x18ec] ss:$16 sps:$4 sm:$0xff]   ;;  %v10527_v35 = vld [vmem:[%s14334_s1 + $0x18e0] ss:$16 sps:$4 sm:$0xff]  }
 0x2e7   :  { %6894 = vmatpush1.bf16.msra.mxu0 %v10443_v50  ;;  %7550 = vmatpush1.bf16.msra.mxu1 %v10446_v53  ;;  %v10530_v50 = vld [vmem:[%s14334_s1 + $0x18e8] ss:$16 sps:$4 sm:$0xff]   ;;  %v10535_v53 = vld [vmem:[%s14334_s1 + $0x1904] ss:$16 sps:$4 sm:$0xff]  }
 0x2e8   :  { %6895 = vmatprep.subr.bf16.mxu0 %v10451_v38  ;;  %7551 = vmatprep.subr.bf16.mxu1 %v10454_v54  ;;  %v10538_v38 = vld [vmem:[%s14334_s1 + $0x190c] ss:$16 sps:$4 sm:$0xff]   ;;  %v10533_v54 = vld [vmem:[%s14334_s1 + $0x1900] ss:$16 sps:$4 sm:$0xff]  }
 0x2eb   :  { %6896 = vmatpush1.bf16.msra.mxu0 %v10449_v55  ;;  %7552 = vmatpush1.bf16.msra.mxu1 %v10452_v56  ;;  %v10536_v55 = vld [vmem:[%s14334_s1 + $0x1908] ss:$16 sps:$4 sm:$0xff]   ;;  %v10541_v56 = vld [vmem:[%s14334_s1 + $0x1924] ss:$16 sps:$4 sm:$0xff]  }
 0x2ec   :  { %6897 = vmatprep.subr.bf16.mxu0 %v10457_v47  ;;  %7553 = vmatprep.subr.bf16.mxu1 %v10460_v57  ;;  %v10544_v47 = vld [vmem:[%s14334_s1 + $0x192c] ss:$16 sps:$4 sm:$0xff]   ;;  %v10539_v57 = vld [vmem:[%s14334_s1 + $0x1920] ss:$16 sps:$4 sm:$0xff]  }
 0x2ef   :  { %6898 = vmatpush1.bf16.msra.mxu0 %v10455_v58  ;;  %7554 = vmatpush1.bf16.msra.mxu1 %v10458_v59  ;;  %v10542_v58 = vld [vmem:[%s14334_s1 + $0x1928] ss:$16 sps:$4 sm:$0xff]   ;;  %v10547_v59 = vld [vmem:[%s14334_s1 + $0x1944] ss:$16 sps:$4 sm:$0xff]  }
 0x2f0   :  { %6899 = vmatprep.subr.bf16.mxu0 %v10463_v48  ;;  %7555 = vmatprep.subr.bf16.mxu1 %v10466_v61  ;;  %v10550_v48 = vld [vmem:[%s14334_s1 + $0x194c] ss:$16 sps:$4 sm:$0xff]   ;;  %v10545_v61 = vld [vmem:[%s14334_s1 + $0x1940] ss:$16 sps:$4 sm:$0xff]  }
 0x2f3   :  { %6900 = vmatpush1.bf16.msra.mxu0 %v10461_v63  ;;  %7556 = vmatpush1.bf16.msra.mxu1 %v10464_v44  ;;  %v10548_v63 = vld [vmem:[%s14334_s1 + $0x1948] ss:$16 sps:$4 sm:$0xff]   ;;  %v10553_v44 = vld [vmem:[%s14334_s1 + $0x1964] ss:$16 sps:$4 sm:$0xff]  }
 0x2f4   :  { %6901 = vmatprep.subr.bf16.mxu0 %v10469_v1  ;;  %7557 = vmatprep.subr.bf16.mxu1 %v10472_v51  ;;  %v10556_v1 = vld [vmem:[%s14334_s1 + $0x196c] ss:$16 sps:$4 sm:$0xff]   ;;  %v10551_v51 = vld [vmem:[%s14334_s1 + $0x1960] ss:$16 sps:$4 sm:$0xff]  }
 0x2f7   :  { %6902 = vmatpush1.bf16.msra.mxu0 %v10467_v2  ;;  %7558 = vmatpush1.bf16.msra.mxu1 %v10470_v3  ;;  %v10554_v2 = vld [vmem:[%s14334_s1 + $0x1968] ss:$16 sps:$4 sm:$0xff]   ;;  %v10559_v3 = vld [vmem:[%s14334_s1 + $0x1984] ss:$16 sps:$4 sm:$0xff]  }
 0x2f8   :  { %6903 = vmatprep.subr.bf16.mxu0 %v10475_v4  ;;  %7559 = vmatprep.subr.bf16.mxu1 %v10478_v60  ;;  %v10562_v4 = vld [vmem:[%s14334_s1 + $0x198c] ss:$16 sps:$4 sm:$0xff]   ;;  %v10557_v60 = vld [vmem:[%s14334_s1 + $0x1980] ss:$16 sps:$4 sm:$0xff]  }
 0x2fb   :  { %6904 = vmatpush1.bf16.msra.mxu0 %v10473_v6  ;;  %7560 = vmatpush1.bf16.msra.mxu1 %v10476_v7  ;;  %v10560_v6 = vld [vmem:[%s14334_s1 + $0x1988] ss:$16 sps:$4 sm:$0xff]   ;;  %v10565_v7 = vld [vmem:[%s14334_s1 + $0x19a4] ss:$16 sps:$4 sm:$0xff]  }
 0x2fc   :  { %6905 = vmatprep.subr.bf16.mxu0 %v10481_v62  ;;  %7561 = vmatprep.subr.bf16.mxu1 %v10484_v10  ;;  %v10568_v62 = vld [vmem:[%s14334_s1 + $0x19ac] ss:$16 sps:$4 sm:$0xff]   ;;  %v10563_v10 = vld [vmem:[%s14334_s1 + $0x19a0] ss:$16 sps:$4 sm:$0xff]  }
 0x2ff   :  { %6906 = vmatpush1.bf16.msra.mxu0 %v10479_v12  ;;  %7562 = vmatpush1.bf16.msra.mxu1 %v10482_v0  ;;  %v10566_v12 = vld [vmem:[%s14334_s1 + $0x19a8] ss:$16 sps:$4 sm:$0xff]   ;;  %v10571_v0 = vld [vmem:[%s14334_s1 + $0x19c4] ss:$16 sps:$4 sm:$0xff]  }
 0x300   :  { %6916 = vmatprep.subr.bf16.mxu0 %v10487_v52  ;;  %7572 = vmatprep.subr.bf16.mxu1 %v10490_v15  ;;  %v10574_v52 = vld [vmem:[%s14334_s1 + $0x19cc] ss:$16 sps:$4 sm:$0xff]   ;;  %v10569_v15 = vld [vmem:[%s14334_s1 + $0x19c0] ss:$16 sps:$4 sm:$0xff]  }
 0x302   :  { %6908 = vmatmul.mubr.bf16.vlgmr.msra.gmra.mrb[0].mxu0 %v1220_v8  ;;  %7564 = vmatmul.mubr.bf16.vlgmr.msra.gmra.mrb[0].mxu1 %v1220_v8  ;;  %v10577_v8 = vld [vmem:[%s14334_s1 + $0x19e4] ss:$16 sps:$4 sm:$0xff]  }
 0x303   :  { %6917 = vmatpush1.bf16.msra.mxu0 %v10485_v17  ;;  %7573 = vmatpush1.bf16.msra.mxu1 %v10488_v18  ;;  %v10580_v17 = vld [vmem:[%s14334_s1 + $0x19ec] ss:$16 sps:$4 sm:$0xff]   ;;  %v10575_v18 = vld [vmem:[%s14334_s1 + $0x19e0] ss:$16 sps:$4 sm:$0xff]  }
 0x304   :  { %6918 = vmatprep.subr.bf16.mxu0 %v10493_v19  ;;  %7574 = vmatprep.subr.bf16.mxu1 %v10496_v9  ;;  %v10578_v19 = vld [vmem:[%s14334_s1 + $0x19e8] ss:$16 sps:$4 sm:$0xff]   ;;  %v10583_v9 = vld [vmem:[%s14334_s1 + $0x1a04] ss:$16 sps:$4 sm:$0xff]  }
 0x305   :  { %6948 = vmatprep.mubr.bf16.mxu0 %v13429_v20  ;;  %7604 = vmatprep.mubr.bf16.mxu1 %v13429_v20 }
 0x307   :  { %6919 = vmatpush1.bf16.msra.mxu0 %v10491_v22  ;;  %7575 = vmatpush1.bf16.msra.mxu1 %v10494_v23  ;;  %v10586_v22 = vld [vmem:[%s14334_s1 + $0x1a0c] ss:$16 sps:$4 sm:$0xff]   ;;  %v13615_v23 = vrot.slane %v13398_v11, %v11095_v49 }
 0x308   :  { %6920 = vmatprep.subr.bf16.mxu0 %v10499_v24  ;;  %7576 = vmatprep.subr.bf16.mxu1 %v10502_v13  ;;  %v10581_v24 = vld [vmem:[%s14334_s1 + $0x1a00] ss:$16 sps:$4 sm:$0xff]   ;;  %v10584_v13 = vld [vmem:[%s14334_s1 + $0x1a08] ss:$16 sps:$4 sm:$0xff]   ;;  %v10592_v11 = vld [vmem:[%s14334_s1 + $0x1a2c] ss:$16 sps:$4 sm:$0xff]  }
 0x30b   :  { %6921 = vmatpush1.bf16.msra.mxu0 %v10497_v27  ;;  %7577 = vmatpush1.bf16.msra.mxu1 %v10500_v28  ;;  %v10589_v27 = vld [vmem:[%s14334_s1 + $0x1a24] ss:$16 sps:$4 sm:$0xff]   ;;  %v1270_v28 = vcombine.high %v13429_v20, %v13429_v20 }
 0x30c   :  { %6922 = vmatprep.subr.bf16.mxu0 %v10505_v29  ;;  %7578 = vmatprep.subr.bf16.mxu1 %v10508_v14  ;;  %v10587_v29 = vld [vmem:[%s14334_s1 + $0x1a20] ss:$16 sps:$4 sm:$0xff]   ;;  %v10590_v14 = vld [vmem:[%s14334_s1 + $0x1a28] ss:$16 sps:$4 sm:$0xff]   ;;  %v10595_v20 = vld [vmem:[%s14334_s1 + $0x1a44] ss:$16 sps:$4 sm:$0xff]  }
 0x30f   :  { %6923 = vmatpush1.bf16.msra.mxu0 %v10503_v30  ;;  %7579 = vmatpush1.bf16.msra.mxu1 %v10506_v31  ;;  %v10598_v30 = vld [vmem:[%s14334_s1 + $0x1a4c] ss:$16 sps:$4 sm:$0xff]   ;;  %v10593_v31 = vld [vmem:[%s14334_s1 + $0x1a40] ss:$16 sps:$4 sm:$0xff]  }
 0x310   :  { %6924 = vmatprep.subr.bf16.mxu0 %v10511_v25  ;;  %7580 = vmatprep.subr.bf16.mxu1 %v10514_v32  ;;  %v10596_v25 = vld [vmem:[%s14334_s1 + $0x1a48] ss:$16 sps:$4 sm:$0xff]   ;;  %v10601_v32 = vld [vmem:[%s14334_s1 + $0x1a64] ss:$16 sps:$4 sm:$0xff]  }
 0x313   :  { %6925 = vmatpush1.bf16.msra.mxu0 %v10509_v33  ;;  %7581 = vmatpush1.bf16.msra.mxu1 %v10512_v26  ;;  %v10604_v33 = vld [vmem:[%s14334_s1 + $0x1a6c] ss:$16 sps:$4 sm:$0xff]   ;;  %v10599_v26 = vld [vmem:[%s14334_s1 + $0x1a60] ss:$16 sps:$4 sm:$0xff]  }
 0x314   :  { %6926 = vmatprep.subr.bf16.mxu0 %v10517_v36  ;;  %7582 = vmatprep.subr.bf16.mxu1 %v10520_v37  ;;  %v10602_v36 = vld [vmem:[%s14334_s1 + $0x1a68] ss:$16 sps:$4 sm:$0xff]   ;;  %v10607_v37 = vld [vmem:[%s14334_s1 + $0x1a84] ss:$16 sps:$4 sm:$0xff]  }
 0x317   :  { %6927 = vmatpush1.bf16.msra.mxu0 %v10515_v21  ;;  %7583 = vmatpush1.bf16.msra.mxu1 %v10518_v39  ;;  %v10610_v21 = vld [vmem:[%s14334_s1 + $0x1a8c] ss:$16 sps:$4 sm:$0xff]   ;;  %v10605_v39 = vld [vmem:[%s14334_s1 + $0x1a80] ss:$16 sps:$4 sm:$0xff]  }
 0x318   :  { %6928 = vmatprep.subr.bf16.mxu0 %v10523_v40  ;;  %7584 = vmatprep.subr.bf16.mxu1 %v10526_v41  ;;  %v10608_v40 = vld [vmem:[%s14334_s1 + $0x1a88] ss:$16 sps:$4 sm:$0xff]   ;;  %v10613_v41 = vld [vmem:[%s14334_s1 + $0x1aa4] ss:$16 sps:$4 sm:$0xff]  }
 0x31b   :  { %6929 = vmatpush1.bf16.msra.mxu0 %v10521_v34  ;;  %7585 = vmatpush1.bf16.msra.mxu1 %v10524_v43  ;;  %v10616_v34 = vld [vmem:[%s14334_s1 + $0x1aac] ss:$16 sps:$4 sm:$0xff]   ;;  %v10611_v43 = vld [vmem:[%s14334_s1 + $0x1aa0] ss:$16 sps:$4 sm:$0xff]  }
 0x31c   :  { %6930 = vmatprep.subr.bf16.mxu0 %v10529_v45  ;;  %7586 = vmatprep.subr.bf16.mxu1 %v10532_v46  ;;  %v10614_v45 = vld [vmem:[%s14334_s1 + $0x1aa8] ss:$16 sps:$4 sm:$0xff]   ;;  %v10619_v46 = vld [vmem:[%s14334_s1 + $0x1ac4] ss:$16 sps:$4 sm:$0xff]  }
 0x31f   :  { %6931 = vmatpush1.bf16.msra.mxu0 %v10527_v35  ;;  %7587 = vmatpush1.bf16.msra.mxu1 %v10530_v50  ;;  %v10622_v35 = vld [vmem:[%s14334_s1 + $0x1acc] ss:$16 sps:$4 sm:$0xff]   ;;  %v10617_v50 = vld [vmem:[%s14334_s1 + $0x1ac0] ss:$16 sps:$4 sm:$0xff]  }
 0x320   :  { %6932 = vmatprep.subr.bf16.mxu0 %v10535_v53  ;;  %7588 = vmatprep.subr.bf16.mxu1 %v10538_v38  ;;  %v10620_v53 = vld [vmem:[%s14334_s1 + $0x1ac8] ss:$16 sps:$4 sm:$0xff]   ;;  %v10625_v38 = vld [vmem:[%s14334_s1 + $0x1ae4] ss:$16 sps:$4 sm:$0xff]  }
 0x323   :  { %6933 = vmatpush1.bf16.msra.mxu0 %v10533_v54  ;;  %7589 = vmatpush1.bf16.msra.mxu1 %v10536_v55  ;;  %v10628_v54 = vld [vmem:[%s14334_s1 + $0x1aec] ss:$16 sps:$4 sm:$0xff]   ;;  %v10623_v55 = vld [vmem:[%s14334_s1 + $0x1ae0] ss:$16 sps:$4 sm:$0xff]  }
 0x324   :  { %6934 = vmatprep.subr.bf16.mxu0 %v10541_v56  ;;  %7590 = vmatprep.subr.bf16.mxu1 %v10544_v47  ;;  %v10626_v56 = vld [vmem:[%s14334_s1 + $0x1ae8] ss:$16 sps:$4 sm:$0xff]   ;;  %v10631_v47 = vld [vmem:[%s14334_s1 + $0x1b04] ss:$16 sps:$4 sm:$0xff]  }
 0x327   :  { %6935 = vmatpush1.bf16.msra.mxu0 %v10539_v57  ;;  %7591 = vmatpush1.bf16.msra.mxu1 %v10542_v58  ;;  %v10634_v57 = vld [vmem:[%s14334_s1 + $0x1b0c] ss:$16 sps:$4 sm:$0xff]   ;;  %v10629_v58 = vld [vmem:[%s14334_s1 + $0x1b00] ss:$16 sps:$4 sm:$0xff]  }
 0x328   :  { %6936 = vmatprep.subr.bf16.mxu0 %v10547_v59  ;;  %7592 = vmatprep.subr.bf16.mxu1 %v10550_v48  ;;  %v10632_v59 = vld [vmem:[%s14334_s1 + $0x1b08] ss:$16 sps:$4 sm:$0xff]   ;;  %v10637_v48 = vld [vmem:[%s14334_s1 + $0x1b24] ss:$16 sps:$4 sm:$0xff]  }
 0x32b   :  { %6937 = vmatpush1.bf16.msra.mxu0 %v10545_v61  ;;  %7593 = vmatpush1.bf16.msra.mxu1 %v10548_v63  ;;  %v10640_v61 = vld [vmem:[%s14334_s1 + $0x1b2c] ss:$16 sps:$4 sm:$0xff]   ;;  %v10635_v63 = vld [vmem:[%s14334_s1 + $0x1b20] ss:$16 sps:$4 sm:$0xff]  }
 0x32c   :  { %6938 = vmatprep.subr.bf16.mxu0 %v10553_v44  ;;  %7594 = vmatprep.subr.bf16.mxu1 %v10556_v1  ;;  %v10638_v44 = vld [vmem:[%s14334_s1 + $0x1b28] ss:$16 sps:$4 sm:$0xff]   ;;  %v10643_v1 = vld [vmem:[%s14334_s1 + $0x1b44] ss:$16 sps:$4 sm:$0xff]  }
 0x32f   :  { %6939 = vmatpush1.bf16.msra.mxu0 %v10551_v51  ;;  %7595 = vmatpush1.bf16.msra.mxu1 %v10554_v2  ;;  %v10646_v51 = vld [vmem:[%s14334_s1 + $0x1b4c] ss:$16 sps:$4 sm:$0xff]   ;;  %v10641_v2 = vld [vmem:[%s14334_s1 + $0x1b40] ss:$16 sps:$4 sm:$0xff]  }
 0x330   :  { %6940 = vmatprep.subr.bf16.mxu0 %v10559_v3  ;;  %7596 = vmatprep.subr.bf16.mxu1 %v10562_v4  ;;  %v10644_v3 = vld [vmem:[%s14334_s1 + $0x1b48] ss:$16 sps:$4 sm:$0xff]   ;;  %v10649_v4 = vld [vmem:[%s14334_s1 + $0x1b64] ss:$16 sps:$4 sm:$0xff]  }
 0x333   :  { %6941 = vmatpush1.bf16.msra.mxu0 %v10557_v60  ;;  %7597 = vmatpush1.bf16.msra.mxu1 %v10560_v6  ;;  %v10652_v60 = vld [vmem:[%s14334_s1 + $0x1b6c] ss:$16 sps:$4 sm:$0xff]   ;;  %v10647_v6 = vld [vmem:[%s14334_s1 + $0x1b60] ss:$16 sps:$4 sm:$0xff]  }
 0x334   :  { %6942 = vmatprep.subr.bf16.mxu0 %v10565_v7  ;;  %7598 = vmatprep.subr.bf16.mxu1 %v10568_v62  ;;  %v10650_v7 = vld [vmem:[%s14334_s1 + $0x1b68] ss:$16 sps:$4 sm:$0xff]   ;;  %v10655_v62 = vld [vmem:[%s14334_s1 + $0x1b84] ss:$16 sps:$4 sm:$0xff]  }
 0x337   :  { %6943 = vmatpush1.bf16.msra.mxu0 %v10563_v10  ;;  %7599 = vmatpush1.bf16.msra.mxu1 %v10566_v12  ;;  %v10658_v10 = vld [vmem:[%s14334_s1 + $0x1b8c] ss:$16 sps:$4 sm:$0xff]   ;;  %v10653_v12 = vld [vmem:[%s14334_s1 + $0x1b80] ss:$16 sps:$4 sm:$0xff]  }
 0x338   :  { %6944 = vmatprep.subr.bf16.mxu0 %v10571_v0  ;;  %7600 = vmatprep.subr.bf16.mxu1 %v10574_v52  ;;  %v10656_v0 = vld [vmem:[%s14334_s1 + $0x1b88] ss:$16 sps:$4 sm:$0xff]   ;;  %v10661_v52 = vld [vmem:[%s14334_s1 + $0x1ba4] ss:$16 sps:$4 sm:$0xff]  }
 0x33b   :  { %6945 = vmatpush1.bf16.msra.mxu0 %v10569_v15  ;;  %7601 = vmatpush1.bf16.msra.mxu1 %v10572_v16  ;;  %v10664_v15 = vld [vmem:[%s14334_s1 + $0x1bac] ss:$16 sps:$4 sm:$0xff]   ;;  %v10659_v16 = vld [vmem:[%s14334_s1 + $0x1ba0] ss:$16 sps:$4 sm:$0xff]  }
 0x33c   :  { %6946 = vmatprep.subr.bf16.mxu0 %v10577_v8  ;;  %7602 = vmatprep.subr.bf16.mxu1 %v10580_v17  ;;  %v10662_v8 = vld [vmem:[%s14334_s1 + $0x1ba8] ss:$16 sps:$4 sm:$0xff]   ;;  %v10667_v17 = vld [vmem:[%s14334_s1 + $0x1bc4] ss:$16 sps:$4 sm:$0xff]  }
 0x33f   :  { %6947 = vmatpush1.bf16.msra.mxu0 %v10575_v18  ;;  %7603 = vmatpush1.bf16.msra.mxu1 %v10578_v19  ;;  %v10670_v18 = vld [vmem:[%s14334_s1 + $0x1bcc] ss:$16 sps:$4 sm:$0xff]   ;;  %v1223_v19 = vcombine.high %v13382_v5, %v13382_v5 }
 0x340   :  { %6957 = vmatprep.subr.bf16.mxu0 %v10583_v9  ;;  %7613 = vmatprep.subr.bf16.mxu1 %v10586_v22  ;;  %v10665_v9 = vld [vmem:[%s14334_s1 + $0x1bc0] ss:$16 sps:$4 sm:$0xff]   ;;  %v10668_v22 = vld [vmem:[%s14334_s1 + $0x1bc8] ss:$16 sps:$4 sm:$0xff]   ;;  %v10676_v5 = vld [vmem:[%s14334_s1 + $0x1bec] ss:$16 sps:$4 sm:$0xff]  }
 0x342   :  { %6949 = vmatmul.mubr.bf16.vlgmr.msra.gmra.mrb[0].mxu0 %v13615_v23  ;;  %7605 = vmatmul.mubr.bf16.vlgmr.msra.gmra.mrb[0].mxu1 %v13615_v23 }
 0x343   :  { %6958 = vmatpush1.bf16.msra.mxu0 %v10581_v24  ;;  %7614 = vmatpush1.bf16.msra.mxu1 %v10584_v13  ;;  %v10673_v24 = vld [vmem:[%s14334_s1 + $0x1be4] ss:$16 sps:$4 sm:$0xff]   ;;  %v13804_v13 = vrot.slane %v1223_v19, %v11095_v49  ;;  %v10752_v19 = vld [vmem:[%s14334_s1 + $0x1d88] ss:$16 sps:$4 sm:$0xff]  }
 0x344   :  { %6959 = vmatprep.subr.bf16.mxu0 %v10589_v27  ;;  %7615 = vmatprep.subr.bf16.mxu1 %v10592_v11  ;;  %v10671_v27 = vld [vmem:[%s14334_s1 + $0x1be0] ss:$16 sps:$4 sm:$0xff]   ;;  %v10674_v11 = vld [vmem:[%s14334_s1 + $0x1be8] ss:$16 sps:$4 sm:$0xff]  }
 0x345   :  { %6989 = vmatprep.mubr.bf16.mxu0 %v1270_v28  ;;  %7645 = vmatprep.mubr.bf16.mxu1 %v1270_v28  ;;  %v10679_v28 = vld [vmem:[%s14334_s1 + $0x1c04] ss:$16 sps:$4 sm:$0xff]  }
 0x347   :  { %6960 = vmatpush1.bf16.msra.mxu0 %v10587_v29  ;;  %7616 = vmatpush1.bf16.msra.mxu1 %v10590_v14  ;;  %v10682_v29 = vld [vmem:[%s14334_s1 + $0x1c0c] ss:$16 sps:$4 sm:$0xff]   ;;  %v1239_v14 = vcombine.high %v13804_v13, %v13804_v13 }
 0x348   :  { %6961 = vmatprep.subr.bf16.mxu0 %v10595_v20  ;;  %7617 = vmatprep.subr.bf16.mxu1 %v10598_v30  ;;  %v1268_v20 = vcombine.high %v13615_v23, %v13615_v23  ;;  %v10677_v30 = vld [vmem:[%s14334_s1 + $0x1c00] ss:$16 sps:$4 sm:$0xff]   ;;  %v10688_v23 = vld [vmem:[%s14334_s1 + $0x1c2c] ss:$16 sps:$4 sm:$0xff]  }
 0x34b   :  { %6962 = vmatpush1.bf16.msra.mxu0 %v10593_v31  ;;  %7618 = vmatpush1.bf16.msra.mxu1 %v10596_v25  ;;  %v10680_v31 = vld [vmem:[%s14334_s1 + $0x1c08] ss:$16 sps:$4 sm:$0xff]   ;;  %v10685_v25 = vld [vmem:[%s14334_s1 + $0x1c24] ss:$16 sps:$4 sm:$0xff]  }
 0x34c   :  { %6963 = vmatprep.subr.bf16.mxu0 %v10601_v32  ;;  %7619 = vmatprep.subr.bf16.mxu1 %v10604_v33  ;;  %v13835_v32 = vrot.slane %v1239_v14, %v11095_v49  ;;  %v10683_v33 = vld [vmem:[%s14334_s1 + $0x1c20] ss:$16 sps:$4 sm:$0xff]   ;;  %v10769_v14 = vld [vmem:[%s14334_s1 + $0x1de4] ss:$16 sps:$4 sm:$0xff]  }
 0x34f   :  { %6964 = vmatpush1.bf16.msra.mxu0 %v10599_v26  ;;  %7620 = vmatpush1.bf16.msra.mxu1 %v10602_v36  ;;  %v10686_v26 = vld [vmem:[%s14334_s1 + $0x1c28] ss:$16 sps:$4 sm:$0xff]   ;;  %v10691_v36 = vld [vmem:[%s14334_s1 + $0x1c44] ss:$16 sps:$4 sm:$0xff]  }
 0x350   :  { %6965 = vmatprep.subr.bf16.mxu0 %v10607_v37  ;;  %7621 = vmatprep.subr.bf16.mxu1 %v10610_v21  ;;  %v10694_v37 = vld [vmem:[%s14334_s1 + $0x1c4c] ss:$16 sps:$4 sm:$0xff]   ;;  %v10689_v21 = vld [vmem:[%s14334_s1 + $0x1c40] ss:$16 sps:$4 sm:$0xff]  }
 0x353   :  { %6966 = vmatpush1.bf16.msra.mxu0 %v10605_v39  ;;  %7622 = vmatpush1.bf16.msra.mxu1 %v10608_v40  ;;  %v10692_v39 = vld [vmem:[%s14334_s1 + $0x1c48] ss:$16 sps:$4 sm:$0xff]   ;;  %v10697_v40 = vld [vmem:[%s14334_s1 + $0x1c64] ss:$16 sps:$4 sm:$0xff]  }
 0x354   :  { %6967 = vmatprep.subr.bf16.mxu0 %v10613_v41  ;;  %7623 = vmatprep.subr.bf16.mxu1 %v10616_v34  ;;  %v10700_v41 = vld [vmem:[%s14334_s1 + $0x1c6c] ss:$16 sps:$4 sm:$0xff]   ;;  %v10695_v34 = vld [vmem:[%s14334_s1 + $0x1c60] ss:$16 sps:$4 sm:$0xff]  }
 0x357   :  { %6968 = vmatpush1.bf16.msra.mxu0 %v10611_v43  ;;  %7624 = vmatpush1.bf16.msra.mxu1 %v10614_v45  ;;  %v10698_v43 = vld [vmem:[%s14334_s1 + $0x1c68] ss:$16 sps:$4 sm:$0xff]   ;;  %v10703_v45 = vld [vmem:[%s14334_s1 + $0x1c84] ss:$16 sps:$4 sm:$0xff]  }
 0x358   :  { %6969 = vmatprep.subr.bf16.mxu0 %v10619_v46  ;;  %7625 = vmatprep.subr.bf16.mxu1 %v10622_v35  ;;  %v10706_v46 = vld [vmem:[%s14334_s1 + $0x1c8c] ss:$16 sps:$4 sm:$0xff]   ;;  %v10701_v35 = vld [vmem:[%s14334_s1 + $0x1c80] ss:$16 sps:$4 sm:$0xff]  }
 0x35b   :  { %6970 = vmatpush1.bf16.msra.mxu0 %v10617_v50  ;;  %7626 = vmatpush1.bf16.msra.mxu1 %v10620_v53  ;;  %v10704_v50 = vld [vmem:[%s14334_s1 + $0x1c88] ss:$16 sps:$4 sm:$0xff]   ;;  %v10709_v53 = vld [vmem:[%s14334_s1 + $0x1ca4] ss:$16 sps:$4 sm:$0xff]  }
 0x35c   :  { %6971 = vmatprep.subr.bf16.mxu0 %v10625_v38  ;;  %7627 = vmatprep.subr.bf16.mxu1 %v10628_v54  ;;  %v10712_v38 = vld [vmem:[%s14334_s1 + $0x1cac] ss:$16 sps:$4 sm:$0xff]   ;;  %v10707_v54 = vld [vmem:[%s14334_s1 + $0x1ca0] ss:$16 sps:$4 sm:$0xff]  }
 0x35f   :  { %6972 = vmatpush1.bf16.msra.mxu0 %v10623_v55  ;;  %7628 = vmatpush1.bf16.msra.mxu1 %v10626_v56  ;;  %v10710_v55 = vld [vmem:[%s14334_s1 + $0x1ca8] ss:$16 sps:$4 sm:$0xff]   ;;  %v10715_v56 = vld [vmem:[%s14334_s1 + $0x1cc4] ss:$16 sps:$4 sm:$0xff]  }
 0x360   :  { %6973 = vmatprep.subr.bf16.mxu0 %v10631_v47  ;;  %7629 = vmatprep.subr.bf16.mxu1 %v10634_v57  ;;  %v10718_v47 = vld [vmem:[%s14334_s1 + $0x1ccc] ss:$16 sps:$4 sm:$0xff]   ;;  %v10713_v57 = vld [vmem:[%s14334_s1 + $0x1cc0] ss:$16 sps:$4 sm:$0xff]  }
 0x363   :  { %6974 = vmatpush1.bf16.msra.mxu0 %v10629_v58  ;;  %7630 = vmatpush1.bf16.msra.mxu1 %v10632_v59  ;;  %v10716_v58 = vld [vmem:[%s14334_s1 + $0x1cc8] ss:$16 sps:$4 sm:$0xff]   ;;  %v10721_v59 = vld [vmem:[%s14334_s1 + $0x1ce4] ss:$16 sps:$4 sm:$0xff]  }
 0x364   :  { %6975 = vmatprep.subr.bf16.mxu0 %v10637_v48  ;;  %7631 = vmatprep.subr.bf16.mxu1 %v10640_v61  ;;  %v10724_v48 = vld [vmem:[%s14334_s1 + $0x1cec] ss:$16 sps:$4 sm:$0xff]   ;;  %v10719_v61 = vld [vmem:[%s14334_s1 + $0x1ce0] ss:$16 sps:$4 sm:$0xff]  }
 0x367   :  { %6976 = vmatpush1.bf16.msra.mxu0 %v10635_v63  ;;  %7632 = vmatpush1.bf16.msra.mxu1 %v10638_v44  ;;  %v10722_v63 = vld [vmem:[%s14334_s1 + $0x1ce8] ss:$16 sps:$4 sm:$0xff]   ;;  %v10727_v44 = vld [vmem:[%s14334_s1 + $0x1d04] ss:$16 sps:$4 sm:$0xff]  }
 0x368   :  { %6977 = vmatprep.subr.bf16.mxu0 %v10643_v1  ;;  %7633 = vmatprep.subr.bf16.mxu1 %v10646_v51  ;;  %v10730_v1 = vld [vmem:[%s14334_s1 + $0x1d0c] ss:$16 sps:$4 sm:$0xff]   ;;  %v10725_v51 = vld [vmem:[%s14334_s1 + $0x1d00] ss:$16 sps:$4 sm:$0xff]  }
 0x36b   :  { %6978 = vmatpush1.bf16.msra.mxu0 %v10641_v2  ;;  %7634 = vmatpush1.bf16.msra.mxu1 %v10644_v3  ;;  %v10728_v2 = vld [vmem:[%s14334_s1 + $0x1d08] ss:$16 sps:$4 sm:$0xff]   ;;  %v10733_v3 = vld [vmem:[%s14334_s1 + $0x1d24] ss:$16 sps:$4 sm:$0xff]  }
 0x36c   :  { %6979 = vmatprep.subr.bf16.mxu0 %v10649_v4  ;;  %7635 = vmatprep.subr.bf16.mxu1 %v10652_v60  ;;  %v10736_v4 = vld [vmem:[%s14334_s1 + $0x1d2c] ss:$16 sps:$4 sm:$0xff]   ;;  %v10731_v60 = vld [vmem:[%s14334_s1 + $0x1d20] ss:$16 sps:$4 sm:$0xff]  }
 0x36f   :  { %6980 = vmatpush1.bf16.msra.mxu0 %v10647_v6  ;;  %7636 = vmatpush1.bf16.msra.mxu1 %v10650_v7  ;;  %v10734_v6 = vld [vmem:[%s14334_s1 + $0x1d28] ss:$16 sps:$4 sm:$0xff]   ;;  %v10739_v7 = vld [vmem:[%s14334_s1 + $0x1d44] ss:$16 sps:$4 sm:$0xff]  }
 0x370   :  { %6981 = vmatprep.subr.bf16.mxu0 %v10655_v62  ;;  %7637 = vmatprep.subr.bf16.mxu1 %v10658_v10  ;;  %v10742_v62 = vld [vmem:[%s14334_s1 + $0x1d4c] ss:$16 sps:$4 sm:$0xff]   ;;  %v10737_v10 = vld [vmem:[%s14334_s1 + $0x1d40] ss:$16 sps:$4 sm:$0xff]  }
 0x373   :  { %6982 = vmatpush1.bf16.msra.mxu0 %v10653_v12  ;;  %7638 = vmatpush1.bf16.msra.mxu1 %v10656_v0  ;;  %v10740_v12 = vld [vmem:[%s14334_s1 + $0x1d48] ss:$16 sps:$4 sm:$0xff]   ;;  %v10745_v0 = vld [vmem:[%s14334_s1 + $0x1d64] ss:$16 sps:$4 sm:$0xff]  }
 0x374   :  { %6983 = vmatprep.subr.bf16.mxu0 %v10661_v52  ;;  %7639 = vmatprep.subr.bf16.mxu1 %v10664_v15  ;;  %v10748_v52 = vld [vmem:[%s14334_s1 + $0x1d6c] ss:$16 sps:$4 sm:$0xff]   ;;  %v10743_v15 = vld [vmem:[%s14334_s1 + $0x1d60] ss:$16 sps:$4 sm:$0xff]  }
 0x377   :  { %6984 = vmatpush1.bf16.msra.mxu0 %v10659_v16  ;;  %7640 = vmatpush1.bf16.msra.mxu1 %v10662_v8  ;;  %v10746_v16 = vld [vmem:[%s14334_s1 + $0x1d68] ss:$16 sps:$4 sm:$0xff]   ;;  %v10751_v8 = vld [vmem:[%s14334_s1 + $0x1d84] ss:$16 sps:$4 sm:$0xff]  }
 0x378   :  { %6985 = vmatprep.subr.bf16.mxu0 %v10667_v17  ;;  %7641 = vmatprep.subr.bf16.mxu1 %v10670_v18  ;;  %v10754_v17 = vld [vmem:[%s14334_s1 + $0x1d8c] ss:$16 sps:$4 sm:$0xff]   ;;  %v10749_v18 = vld [vmem:[%s14334_s1 + $0x1d80] ss:$16 sps:$4 sm:$0xff]  }
 0x37b   :  { %6986 = vmatpush1.bf16.msra.mxu0 %v10665_v9  ;;  %7642 = vmatpush1.bf16.msra.mxu1 %v10668_v22  ;;  %v10757_v9 = vld [vmem:[%s14334_s1 + $0x1da4] ss:$16 sps:$4 sm:$0xff]   ;;  %v10760_v22 = vld [vmem:[%s14334_s1 + $0x1dac] ss:$16 sps:$4 sm:$0xff]  }
 0x37c   :  { %6987 = vmatprep.subr.bf16.mxu0 %v10673_v24  ;;  %7643 = vmatprep.subr.bf16.mxu1 %v10676_v5  ;;  %v10755_v24 = vld [vmem:[%s14334_s1 + $0x1da0] ss:$16 sps:$4 sm:$0xff]   ;;  %v10758_v5 = vld [vmem:[%s14334_s1 + $0x1da8] ss:$16 sps:$4 sm:$0xff]  }
 0x37f   :  { %6988 = vmatpush1.bf16.msra.mxu0 %v10671_v27  ;;  %7644 = vmatpush1.bf16.msra.mxu1 %v10674_v11  ;;  %v10763_v27 = vld [vmem:[%s14334_s1 + $0x1dc4] ss:$16 sps:$4 sm:$0xff]   ;;  %v10766_v11 = vld [vmem:[%s14334_s1 + $0x1dcc] ss:$16 sps:$4 sm:$0xff]  }
 0x380   :  { %6998 = vmatprep.subr.bf16.mxu0 %v10679_v28  ;;  %7654 = vmatprep.subr.bf16.mxu1 %v10682_v29  ;;  %v10761_v28 = vld [vmem:[%s14334_s1 + $0x1dc0] ss:$16 sps:$4 sm:$0xff]   ;;  %v10764_v29 = vld [vmem:[%s14334_s1 + $0x1dc8] ss:$16 sps:$4 sm:$0xff]  }
 0x382   :  { %6990 = vmatmul.mubr.bf16.vlgmr.msra.gmra.mrb[0].mxu0 %v1268_v20  ;;  %7646 = vmatmul.mubr.bf16.vlgmr.msra.gmra.mrb[0].mxu1 %v1268_v20  ;;  %v10772_v20 = vld [vmem:[%s14334_s1 + $0x1dec] ss:$16 sps:$4 sm:$0xff]  }
 0x383   :  { %6999 = vmatpush1.bf16.msra.mxu0 %v10677_v30  ;;  %7655 = vmatpush1.bf16.msra.mxu1 %v10680_v31  ;;  %v10767_v30 = vld [vmem:[%s14334_s1 + $0x1de0] ss:$16 sps:$4 sm:$0xff]   ;;  %v10770_v31 = vld [vmem:[%s14334_s1 + $0x1de8] ss:$16 sps:$4 sm:$0xff]  }
 0x384   :  { %7000 = vmatprep.subr.bf16.mxu0 %v10685_v25  ;;  %7656 = vmatprep.subr.bf16.mxu1 %v10688_v23  ;;  %v10776_v25 = vld [vmem:[%s14334_s1 + $0x1e04] ss:$16 sps:$4 sm:$0xff]   ;;  %v10779_v23 = vld [vmem:[%s14334_s1 + $0x1e0c] ss:$16 sps:$4 sm:$0xff]  }
 0x385   :  { %7030 = vmatprep.mubr.bf16.mxu0 %v13835_v32  ;;  %7686 = vmatprep.mubr.bf16.mxu1 %v13835_v32 }
 0x387   :  { %7001 = vmatpush1.bf16.msra.mxu0 %v10683_v33  ;;  %7657 = vmatpush1.bf16.msra.mxu1 %v10686_v26  ;;  %v14021_v33 = vrot.slane %v13804_v13, %v11095_v49  ;;  %v10774_v26 = vld [vmem:[%s14334_s1 + $0x1e00] ss:$16 sps:$4 sm:$0xff]   ;;  %v10785_v49 = vld [vmem:[%s14334_s1 + $0x1e2c] ss:$16 sps:$4 sm:$0xff]   ;;  %v1271_v13 = vcombine.high %v13835_v32, %v13835_v32  ;;  %v10788_v32 = vld [vmem:[%s14334_s1 + $0x1e44] ss:$16 sps:$4 sm:$0xff]  }
 0x388   :  { %7002 = vmatprep.subr.bf16.mxu0 %v10691_v36  ;;  %7658 = vmatprep.subr.bf16.mxu1 %v10694_v37  ;;  %v10777_v36 = vld [vmem:[%s14334_s1 + $0x1e08] ss:$16 sps:$4 sm:$0xff]   ;;  %v10782_v37 = vld [vmem:[%s14334_s1 + $0x1e24] ss:$16 sps:$4 sm:$0xff]  }
 0x38b   :  { %7003 = vmatpush1.bf16.msra.mxu0 %v10689_v21  ;;  %7659 = vmatpush1.bf16.msra.mxu1 %v10692_v39  ;;  %v10780_v21 = vld [vmem:[%s14334_s1 + $0x1e20] ss:$16 sps:$4 sm:$0xff]   ;;  %v10783_v39 = vld [vmem:[%s14334_s1 + $0x1e28] ss:$16 sps:$4 sm:$0xff]  }
 0x38c   :  { %7004 = vmatprep.subr.bf16.mxu0 %v10697_v40  ;;  %7660 = vmatprep.subr.bf16.mxu1 %v10700_v41  ;;  %v10791_v40 = vld [vmem:[%s14334_s1 + $0x1e4c] ss:$16 sps:$4 sm:$0xff]   ;;  %v10786_v41 = vld [vmem:[%s14334_s1 + $0x1e40] ss:$16 sps:$4 sm:$0xff]  }
 0x38f   :  { %7005 = vmatpush1.bf16.msra.mxu0 %v10695_v34  ;;  %7661 = vmatpush1.bf16.msra.mxu1 %v10698_v43  ;;  %v10789_v34 = vld [vmem:[%s14334_s1 + $0x1e48] ss:$16 sps:$4 sm:$0xff]   ;;  %v10794_v43 = vld [vmem:[%s14334_s1 + $0x1e64] ss:$16 sps:$4 sm:$0xff]  }
 0x390   :  { %7006 = vmatprep.subr.bf16.mxu0 %v10703_v45  ;;  %7662 = vmatprep.subr.bf16.mxu1 %v10706_v46  ;;  %v10797_v45 = vld [vmem:[%s14334_s1 + $0x1e6c] ss:$16 sps:$4 sm:$0xff]   ;;  %v10792_v46 = vld [vmem:[%s14334_s1 + $0x1e60] ss:$16 sps:$4 sm:$0xff]  }
 0x393   :  { %7007 = vmatpush1.bf16.msra.mxu0 %v10701_v35  ;;  %7663 = vmatpush1.bf16.msra.mxu1 %v10704_v50  ;;  %v10795_v35 = vld [vmem:[%s14334_s1 + $0x1e68] ss:$16 sps:$4 sm:$0xff]   ;;  %v10800_v50 = vld [vmem:[%s14334_s1 + $0x1e84] ss:$16 sps:$4 sm:$0xff]  }
 0x394   :  { %7008 = vmatprep.subr.bf16.mxu0 %v10709_v53  ;;  %7664 = vmatprep.subr.bf16.mxu1 %v10712_v38  ;;  %v10803_v53 = vld [vmem:[%s14334_s1 + $0x1e8c] ss:$16 sps:$4 sm:$0xff]   ;;  %v10798_v38 = vld [vmem:[%s14334_s1 + $0x1e80] ss:$16 sps:$4 sm:$0xff]  }
 0x397   :  { %7009 = vmatpush1.bf16.msra.mxu0 %v10707_v54  ;;  %7665 = vmatpush1.bf16.msra.mxu1 %v10710_v55  ;;  %v10801_v54 = vld [vmem:[%s14334_s1 + $0x1e88] ss:$16 sps:$4 sm:$0xff]   ;;  %v10806_v55 = vld [vmem:[%s14334_s1 + $0x1ea4] ss:$16 sps:$4 sm:$0xff]  }
 0x398   :  { %7010 = vmatprep.subr.bf16.mxu0 %v10715_v56  ;;  %7666 = vmatprep.subr.bf16.mxu1 %v10718_v47  ;;  %v10809_v56 = vld [vmem:[%s14334_s1 + $0x1eac] ss:$16 sps:$4 sm:$0xff]   ;;  %v10804_v47 = vld [vmem:[%s14334_s1 + $0x1ea0] ss:$16 sps:$4 sm:$0xff]  }
 0x39b   :  { %7011 = vmatpush1.bf16.msra.mxu0 %v10713_v57  ;;  %7667 = vmatpush1.bf16.msra.mxu1 %v10716_v58  ;;  %v10807_v57 = vld [vmem:[%s14334_s1 + $0x1ea8] ss:$16 sps:$4 sm:$0xff]   ;;  %v10812_v58 = vld [vmem:[%s14334_s1 + $0x1ec4] ss:$16 sps:$4 sm:$0xff]  }
 0x39c   :  { %7012 = vmatprep.subr.bf16.mxu0 %v10721_v59  ;;  %7668 = vmatprep.subr.bf16.mxu1 %v10724_v48  ;;  %v10815_v59 = vld [vmem:[%s14334_s1 + $0x1ecc] ss:$16 sps:$4 sm:$0xff]   ;;  %v10810_v48 = vld [vmem:[%s14334_s1 + $0x1ec0] ss:$16 sps:$4 sm:$0xff]  }
 0x39f   :  { %7013 = vmatpush1.bf16.msra.mxu0 %v10719_v61  ;;  %7669 = vmatpush1.bf16.msra.mxu1 %v10722_v63  ;;  %v10813_v61 = vld [vmem:[%s14334_s1 + $0x1ec8] ss:$16 sps:$4 sm:$0xff]   ;;  %v10818_v63 = vld [vmem:[%s14334_s1 + $0x1ee4] ss:$16 sps:$4 sm:$0xff]  }
 0x3a0   :  { %7014 = vmatprep.subr.bf16.mxu0 %v10727_v44  ;;  %7670 = vmatprep.subr.bf16.mxu1 %v10730_v1  ;;  %v10821_v44 = vld [vmem:[%s14334_s1 + $0x1eec] ss:$16 sps:$4 sm:$0xff]   ;;  %v10816_v1 = vld [vmem:[%s14334_s1 + $0x1ee0] ss:$16 sps:$4 sm:$0xff]  }
 0x3a3   :  { %7015 = vmatpush1.bf16.msra.mxu0 %v10725_v51  ;;  %7671 = vmatpush1.bf16.msra.mxu1 %v10728_v2  ;;  %v10819_v51 = vld [vmem:[%s14334_s1 + $0x1ee8] ss:$16 sps:$4 sm:$0xff]   ;;  %v10824_v2 = vld [vmem:[%s14334_s1 + $0x1f04] ss:$16 sps:$4 sm:$0xff]  }
 0x3a4   :  { %7016 = vmatprep.subr.bf16.mxu0 %v10733_v3  ;;  %7672 = vmatprep.subr.bf16.mxu1 %v10736_v4  ;;  %v10827_v3 = vld [vmem:[%s14334_s1 + $0x1f0c] ss:$16 sps:$4 sm:$0xff]   ;;  %v10822_v4 = vld [vmem:[%s14334_s1 + $0x1f00] ss:$16 sps:$4 sm:$0xff]  }
 0x3a7   :  { %7017 = vmatpush1.bf16.msra.mxu0 %v10731_v60  ;;  %7673 = vmatpush1.bf16.msra.mxu1 %v10734_v6  ;;  %v10825_v60 = vld [vmem:[%s14334_s1 + $0x1f08] ss:$16 sps:$4 sm:$0xff]   ;;  %v10830_v6 = vld [vmem:[%s14334_s1 + $0x1f24] ss:$16 sps:$4 sm:$0xff]  }
 0x3a8   :  { %7018 = vmatprep.subr.bf16.mxu0 %v10739_v7  ;;  %7674 = vmatprep.subr.bf16.mxu1 %v10742_v62  ;;  %v10833_v7 = vld [vmem:[%s14334_s1 + $0x1f2c] ss:$16 sps:$4 sm:$0xff]   ;;  %v10828_v62 = vld [vmem:[%s14334_s1 + $0x1f20] ss:$16 sps:$4 sm:$0xff]  }
 0x3ab   :  { %7019 = vmatpush1.bf16.msra.mxu0 %v10737_v10  ;;  %7675 = vmatpush1.bf16.msra.mxu1 %v10740_v12  ;;  %v10831_v10 = vld [vmem:[%s14334_s1 + $0x1f28] ss:$16 sps:$4 sm:$0xff]   ;;  %v10836_v12 = vld [vmem:[%s14334_s1 + $0x1f44] ss:$16 sps:$4 sm:$0xff]  }
 0x3ac   :  { %7020 = vmatprep.subr.bf16.mxu0 %v10745_v0  ;;  %7676 = vmatprep.subr.bf16.mxu1 %v10748_v52  ;;  %v10839_v0 = vld [vmem:[%s14334_s1 + $0x1f4c] ss:$16 sps:$4 sm:$0xff]   ;;  %v10834_v52 = vld [vmem:[%s14334_s1 + $0x1f40] ss:$16 sps:$4 sm:$0xff]  }
 0x3af   :  { %7021 = vmatpush1.bf16.msra.mxu0 %v10743_v15  ;;  %7677 = vmatpush1.bf16.msra.mxu1 %v10746_v16  ;;  %v10837_v15 = vld [vmem:[%s14334_s1 + $0x1f48] ss:$16 sps:$4 sm:$0xff]   ;;  %v10842_v16 = vld [vmem:[%s14334_s1 + $0x1f64] ss:$16 sps:$4 sm:$0xff]  }
 0x3b0   :  { %7022 = vmatprep.subr.bf16.mxu0 %v10751_v8  ;;  %7678 = vmatprep.subr.bf16.mxu1 %v10754_v17  ;;  %v10845_v8 = vld [vmem:[%s14334_s1 + $0x1f6c] ss:$16 sps:$4 sm:$0xff]   ;;  %v10840_v17 = vld [vmem:[%s14334_s1 + $0x1f60] ss:$16 sps:$4 sm:$0xff]  }
 0x3b3   :  { %7023 = vmatpush1.bf16.msra.mxu0 %v10749_v18  ;;  %7679 = vmatpush1.bf16.msra.mxu1 %v10752_v19  ;;  %v10843_v18 = vld [vmem:[%s14334_s1 + $0x1f68] ss:$16 sps:$4 sm:$0xff]   ;;  %v10848_v19 = vld [vmem:[%s14334_s1 + $0x1f84] ss:$16 sps:$4 sm:$0xff]  }
 0x3b4   :  { %7024 = vmatprep.subr.bf16.mxu0 %v10757_v9  ;;  %7680 = vmatprep.subr.bf16.mxu1 %v10760_v22  ;;  %v10851_v9 = vld [vmem:[%s14334_s1 + $0x1f8c] ss:$16 sps:$4 sm:$0xff]   ;;  %v10846_v22 = vld [vmem:[%s14334_s1 + $0x1f80] ss:$16 sps:$4 sm:$0xff]  }
 0x3b7   :  { %7025 = vmatpush1.bf16.msra.mxu0 %v10755_v24  ;;  %7681 = vmatpush1.bf16.msra.mxu1 %v10758_v5  ;;  %v10849_v24 = vld [vmem:[%s14334_s1 + $0x1f88] ss:$16 sps:$4 sm:$0xff]   ;;  %v10854_v5 = vld [vmem:[%s14334_s1 + $0x1fa4] ss:$16 sps:$4 sm:$0xff]  }
 0x3b8   :  { %7026 = vmatprep.subr.bf16.mxu0 %v10763_v27  ;;  %7682 = vmatprep.subr.bf16.mxu1 %v10766_v11  ;;  %v10857_v27 = vld [vmem:[%s14334_s1 + $0x1fac] ss:$16 sps:$4 sm:$0xff]   ;;  %v10852_v11 = vld [vmem:[%s14334_s1 + $0x1fa0] ss:$16 sps:$4 sm:$0xff]  }
 0x3bb   :  { %7027 = vmatpush1.bf16.msra.mxu0 %v10761_v28  ;;  %7683 = vmatpush1.bf16.msra.mxu1 %v10764_v29  ;;  %v10855_v28 = vld [vmem:[%s14334_s1 + $0x1fa8] ss:$16 sps:$4 sm:$0xff]   ;;  %v10860_v29 = vld [vmem:[%s14334_s1 + $0x1fc4] ss:$16 sps:$4 sm:$0xff]  }
 0x3bc   :  { %7028 = vmatprep.subr.bf16.mxu0 %v10769_v14  ;;  %7684 = vmatprep.subr.bf16.mxu1 %v10772_v20  ;;  %v10863_v14 = vld [vmem:[%s14334_s1 + $0x1fcc] ss:$16 sps:$4 sm:$0xff]   ;;  %v10858_v20 = vld [vmem:[%s14334_s1 + $0x1fc0] ss:$16 sps:$4 sm:$0xff]  }
 0x3bf   :  { %7029 = vmatpush1.bf16.msra.mxu0 %v10767_v30  ;;  %7685 = vmatpush1.bf16.msra.mxu1 %v10770_v31  ;;  %v10861_v30 = vld [vmem:[%s14334_s1 + $0x1fc8] ss:$16 sps:$4 sm:$0xff]   ;;  %v10866_v31 = vld [vmem:[%s14334_s1 + $0x1fe4] ss:$16 sps:$4 sm:$0xff]  }
 0x3c0   :  { %7039 = vmatprep.subr.bf16.mxu0 %v10776_v25  ;;  %7695 = vmatprep.subr.bf16.mxu1 %v10779_v23  ;;  %v10869_v25 = vld [vmem:[%s14334_s1 + $0x1fec] ss:$16 sps:$4 sm:$0xff]   ;;  %v10864_v23 = vld [vmem:[%s14334_s1 + $0x1fe0] ss:$16 sps:$4 sm:$0xff]  }
 0x3c2   :  { %7031 = vmatmul.mubr.bf16.vlgmr.msra.gmra.mrb[0].mxu0 %v14021_v33  ;;  %7687 = vmatmul.mubr.bf16.vlgmr.msra.gmra.mrb[0].mxu1 %v14021_v33 }
 0x3c3   :  { %7040 = vmatpush1.bf16.msra.mxu0 %v10774_v26  ;;  %7696 = vmatpush1.bf16.msra.mxu1 %v10777_v36  ;;  %v10867_v26 = vld [vmem:[%s14334_s1 + $0x1fe8] ss:$16 sps:$4 sm:$0xff]   ;;  %v10870_v36 = vld [vmem:[%s14336_s3 + $0x40] sm:$0xff]  }
 0x3c4   :  { %7041 = vmatprep.subr.bf16.mxu0 %v10782_v37  ;;  %7697 = vmatprep.subr.bf16.mxu1 %v10785_v49  ;;  %v10871_v37 = vld [vmem:[%s14336_s3 + $0xc0] sm:$0xff]   ;;  %v1269_v49 = vcombine.high %v14021_v33, %v14021_v33  ;;  %v10875_v33 = vld [vmem:[%s14336_s3 + $0xc8] sm:$0xff]  }
 0x3c5   :  { %7071 = vmatprep.mubr.bf16.mxu0 %v1271_v13  ;;  %7727 = vmatprep.mubr.bf16.mxu1 %v1271_v13  ;;  %v10872_v13 = vld [vmem:[%s14336_s3] sm:$0xff]  }
 0x3c7   :  { %7042 = vmatpush1.bf16.msra.mxu0 %v10780_v21  ;;  %7698 = vmatpush1.bf16.msra.mxu1 %v10783_v39  ;;  %v10873_v21 = vld [vmem:[%s14336_s3 + $0x80] sm:$0xff]   ;;  %v10874_v39 = vld [vmem:[%s14336_s3 + $0x48] sm:$0xff]  }
 0x3c8   :  { %7043 = vmatprep.subr.bf16.mxu0 %v10788_v32  ;;  %7699 = vmatprep.subr.bf16.mxu1 %v10791_v40  ;;  %v10876_v32 = vld [vmem:[%s14336_s3 + $0x8] sm:$0xff]  }
 0x3c9   :  { %v10877_v40 = vld [vmem:[%s14336_s3 + $0x88] sm:$0xff]  }
 0x3cb   :  { %7044 = vmatpush1.bf16.msra.mxu0 %v10786_v41  ;;  %7700 = vmatpush1.bf16.msra.mxu1 %v10789_v34  ;;  %v10878_v41 = vld [vmem:[%s14336_s3 + $0x50] sm:$0xff]  }
 0x3cc   :  { %7045 = vmatprep.subr.bf16.mxu0 %v10794_v43  ;;  %7701 = vmatprep.subr.bf16.mxu1 %v10797_v45  ;;  %v10879_v34 = vld [vmem:[%s14336_s3 + $0xd0] sm:$0xff]  }
 0x3cd   :  { %v10880_v43 = vld [vmem:[%s14336_s3 + $0x10] sm:$0xff]  }
 0x3ce   :  { %v10881_v45 = vld [vmem:[%s14336_s3 + $0x90] sm:$0xff]  }
 0x3cf   :  { %7046 = vmatpush1.bf16.msra.mxu0 %v10792_v46  ;;  %7702 = vmatpush1.bf16.msra.mxu1 %v10795_v35  ;;  %v10882_v46 = vld [vmem:[%s14336_s3 + $0x58] sm:$0xff]  }
 0x3d0   :  { %7047 = vmatprep.subr.bf16.mxu0 %v10800_v50  ;;  %7703 = vmatprep.subr.bf16.mxu1 %v10803_v53  ;;  %v10883_v35 = vld [vmem:[%s14336_s3 + $0xd8] sm:$0xff]  }
 0x3d1   :  { %v10884_v50 = vld [vmem:[%s14336_s3 + $0x18] sm:$0xff]  }
 0x3d2   :  { %v10885_v53 = vld [vmem:[%s14336_s3 + $0x98] sm:$0xff]  }
 0x3d3   :  { %7048 = vmatpush1.bf16.msra.mxu0 %v10798_v38  ;;  %7704 = vmatpush1.bf16.msra.mxu1 %v10801_v54  ;;  %v10886_v38 = vld [vmem:[%s14336_s3 + $0x60] sm:$0xff]  }
 0x3d4   :  { %7049 = vmatprep.subr.bf16.mxu0 %v10806_v55  ;;  %7705 = vmatprep.subr.bf16.mxu1 %v10809_v56  ;;  %v10887_v54 = vld [vmem:[%s14336_s3 + $0xe0] sm:$0xff]  }
 0x3d5   :  { %v10888_v55 = vld [vmem:[%s14336_s3 + $0x20] sm:$0xff]  }
 0x3d6   :  { %v10889_v56 = vld [vmem:[%s14336_s3 + $0xa0] sm:$0xff]  }
 0x3d7   :  { %7050 = vmatpush1.bf16.msra.mxu0 %v10804_v47  ;;  %7706 = vmatpush1.bf16.msra.mxu1 %v10807_v57  ;;  %v10890_v47 = vld [vmem:[%s14336_s3 + $0x68] sm:$0xff]  }
 0x3d8   :  { %7051 = vmatprep.subr.bf16.mxu0 %v10812_v58  ;;  %7707 = vmatprep.subr.bf16.mxu1 %v10815_v59  ;;  %v10891_v57 = vld [vmem:[%s14336_s3 + $0xe8] sm:$0xff]  }
 0x3d9   :  { %v10892_v58 = vld [vmem:[%s14336_s3 + $0x28] sm:$0xff]  }
 0x3da   :  { %v10893_v59 = vld [vmem:[%s14336_s3 + $0xa8] sm:$0xff]  }
 0x3db   :  { %7052 = vmatpush1.bf16.msra.mxu0 %v10810_v48  ;;  %7708 = vmatpush1.bf16.msra.mxu1 %v10813_v61  ;;  %v10894_v48 = vld [vmem:[%s14336_s3 + $0x70] sm:$0xff]  }
 0x3dc   :  { %7053 = vmatprep.subr.bf16.mxu0 %v10818_v63  ;;  %7709 = vmatprep.subr.bf16.mxu1 %v10821_v44  ;;  %v10895_v61 = vld [vmem:[%s14336_s3 + $0xf0] sm:$0xff]  }
 0x3dd   :  { %v10896_v63 = vld [vmem:[%s14336_s3 + $0x30] sm:$0xff]  }
 0x3de   :  { %v10897_v44 = vld [vmem:[%s14336_s3 + $0xb0] sm:$0xff]  }
 0x3df   :  { %7054 = vmatpush1.bf16.msra.mxu0 %v10816_v1  ;;  %7710 = vmatpush1.bf16.msra.mxu1 %v10819_v51  ;;  %v10898_v1 = vld [vmem:[%s14336_s3 + $0x78] sm:$0xff]  }
 0x3e0   :  { %7055 = vmatprep.subr.bf16.mxu0 %v10824_v2  ;;  %7711 = vmatprep.subr.bf16.mxu1 %v10827_v3  ;;  %v10899_v51 = vld [vmem:[%s14336_s3 + $0xf8] sm:$0xff]  }
 0x3e1   :  { %v10900_v2 = vld [vmem:[%s14336_s3 + $0x38] sm:$0xff]  }
 0x3e2   :  { %v10901_v3 = vld [vmem:[%s14336_s3 + $0xb8] sm:$0xff]  }
 0x3e3   :  { %7056 = vmatpush1.bf16.msra.mxu0 %v10822_v4  ;;  %7712 = vmatpush1.bf16.msra.mxu1 %v10825_v60  ;;  %v1054_v4 = vsub.s32 0, %v11077_v42  ;;  %v1062_v60 = vsub.s32 2, %v11077_v42 }
 0x3e4   :  { %7057 = vmatprep.subr.bf16.mxu0 %v10830_v6  ;;  %7713 = vmatprep.subr.bf16.mxu1 %v10833_v7  ;;  %v1050_v6 = vld [vmem:[%s14335_s2] sm:$0xf]  ;;  %v1058_v7 = vsub.s32 1, %v11077_v42 }
 0x3e7   :  { %7058 = vmatpush1.bf16.msra.mxu0 %v10828_v62  ;;  %7714 = vmatpush1.bf16.msra.mxu1 %v10831_v10  ;;  %v1066_v62 = vsub.s32 3, %v11077_v42  ;;  %v1055_v10 = vrot.slane %v1050_v6, %v1054_v4 }
 0x3e8   :  { %7059 = vmatprep.subr.bf16.mxu0 %v10836_v12  ;;  %7715 = vmatprep.subr.bf16.mxu1 %v10839_v0  ;;  %v1063_v12 = vrot.slane %v1050_v6, %v1062_v60  ;;  %v1059_v0 = vrot.slane %v1050_v6, %v1058_v7 }
 0x3eb   :  { %7060 = vmatpush1.bf16.msra.mxu0 %v10834_v52  ;;  %7716 = vmatpush1.bf16.msra.mxu1 %v10837_v15  ;;  %v1067_v52 = vrot.slane %v1050_v6, %v1066_v62 }
 0x3ec   :  { %7061 = vmatprep.subr.bf16.mxu0 %v10842_v16  ;;  %7717 = vmatprep.subr.bf16.mxu1 %v10845_v8 }
 0x3ef   :  { %7062 = vmatpush1.bf16.msra.mxu0 %v10840_v17  ;;  %7718 = vmatpush1.bf16.msra.mxu1 %v10843_v18 }
 0x3f0   :  { %7063 = vmatprep.subr.bf16.mxu0 %v10848_v19  ;;  %7719 = vmatprep.subr.bf16.mxu1 %v10851_v9 }
 0x3f3   :  { %7064 = vmatpush1.bf16.msra.mxu0 %v10846_v22  ;;  %7720 = vmatpush1.bf16.msra.mxu1 %v10849_v24 }
 0x3f4   :  { %7065 = vmatprep.subr.bf16.mxu0 %v10854_v5  ;;  %7721 = vmatprep.subr.bf16.mxu1 %v10857_v27 }
 0x3f7   :  { %7066 = vmatpush1.bf16.msra.mxu0 %v10852_v11  ;;  %7722 = vmatpush1.bf16.msra.mxu1 %v10855_v28 }
 0x3f8   :  { %7067 = vmatprep.subr.bf16.mxu0 %v10860_v29  ;;  %7723 = vmatprep.subr.bf16.mxu1 %v10863_v14 }
 0x3fb   :  { %7068 = vmatpush1.bf16.msra.mxu0 %v10858_v20  ;;  %7724 = vmatpush1.bf16.msra.mxu1 %v10861_v30 }
 0x3fc   :  { %7069 = vmatprep.subr.bf16.mxu0 %v10866_v31  ;;  %7725 = vmatprep.subr.bf16.mxu1 %v10869_v25 }
 0x3ff   :  { %7070 = vmatpush1.bf16.msra.mxu0 %v10864_v23  ;;  %7726 = vmatpush1.bf16.msra.mxu1 %v10867_v26 }
 0x400   :  { %9160 = vmatprep.subr.bf16.mxu0 %v10870_v36  ;;  %9182 = vmatprep.subr.bf16.mxu1 %v10871_v37  ;;  %v9127_v36 = vld [vmem:[%s14337_s4] ss:$0 sm:$0xff] }
 0x402   :  { %7072 = vmatmul.mubr.bf16.vlgmr.msra.gmra.mrb[0].mxu0 %v1269_v49  ;;  %7728 = vmatmul.mubr.bf16.vlgmr.msra.gmra.mrb[0].mxu1 %v1269_v49 }
 0x403   :  { %9161 = vmatpush3.bf16.msra.mxu0 %v10872_v13  ;;  %9183 = vmatpush3.bf16.msra.mxu1 %v10873_v21 }
 0x404   :  { %9162 = vmatprep.subr.bf16.mxu0 %v10874_v39  ;;  %9184 = vmatprep.subr.bf16.mxu1 %v10875_v33 }
 0x407   :  { %9163 = vmatpush3.bf16.msra.mxu0 %v10876_v32  ;;  %9185 = vmatpush3.bf16.msra.mxu1 %v10877_v40 }
 0x408   :  { %9164 = vmatprep.subr.bf16.mxu0 %v10878_v41  ;;  %9186 = vmatprep.subr.bf16.mxu1 %v10879_v34 }
 0x40b   :  { %9165 = vmatpush3.bf16.msra.mxu0 %v10880_v43  ;;  %9187 = vmatpush3.bf16.msra.mxu1 %v10881_v45 }
 0x40c   :  { %9166 = vmatprep.subr.bf16.mxu0 %v10882_v46  ;;  %9188 = vmatprep.subr.bf16.mxu1 %v10883_v35 }
 0x40f   :  { %9167 = vmatpush3.bf16.msra.mxu0 %v10884_v50  ;;  %9189 = vmatpush3.bf16.msra.mxu1 %v10885_v53 }
 0x410   :  { %9168 = vmatprep.subr.bf16.mxu0 %v10886_v38  ;;  %9190 = vmatprep.subr.bf16.mxu1 %v10887_v54 }
 0x413   :  { %9169 = vmatpush3.bf16.msra.mxu0 %v10888_v55  ;;  %9191 = vmatpush3.bf16.msra.mxu1 %v10889_v56 }
 0x414   :  { %9170 = vmatprep.subr.bf16.mxu0 %v10890_v47  ;;  %9192 = vmatprep.subr.bf16.mxu1 %v10891_v57 }
 0x417   :  { %9171 = vmatpush3.bf16.msra.mxu0 %v10892_v58  ;;  %9193 = vmatpush3.bf16.msra.mxu1 %v10893_v59 }
 0x418   :  { %9172 = vmatprep.subr.bf16.mxu0 %v10894_v48  ;;  %9194 = vmatprep.subr.bf16.mxu1 %v10895_v61 }
 0x41b   :  { %9173 = vmatpush3.bf16.msra.mxu0 %v10896_v63  ;;  %9195 = vmatpush3.bf16.msra.mxu1 %v10897_v44 }
 0x41c   :  { %9174 = vmatprep.subr.bf16.mxu0 %v10898_v1  ;;  %9196 = vmatprep.subr.bf16.mxu1 %v10899_v51 }
 0x41f   :  { %9175 = vmatpush3.bf16.msra.mxu0 %v10900_v2  ;;  %9197 = vmatpush3.bf16.msra.mxu1 %v10901_v3 }
 0x4d5   :  { %v7073_v15 = vpop.f32.mrb[0].mxu0  ;;  %v7729_v16 = vpop.f32.mrb[0].mxu1 }
 0x4d6   :  { %v9204_v8 = vadd.f32 %v7073_v15, %v1055_v10  ;;  %v9206_v17 = vadd.f32 %v7729_v16, %v1063_v12  ;;  %v7075_v18 = vpop.f32.mrb[1].mxu0  ;;  %v7731_v19 = vpop.f32.mrb[1].mxu1 }
 0x4d7   :  { %v9205_v9 = vadd.f32 %v7075_v18, %v1059_v0  ;;  %v9207_v22 = vadd.f32 %v7731_v19, %v1067_v52  ;;  %v7077_v24 = vpop.f32.mrb[2].mxu0  ;;  %v7733_v5 = vpop.f32.mrb[2].mxu1 }
 0x4d8   :  { %v7736_v27 = vmax.f32 %v9204_v8, 0.0  ;;  %v7738_v11 = vmax.f32 %v9206_v17, 0.0  ;;  %v7078_v28 = vpop.f32.mrb[3].mxu0  ;;  %v7734_v29 = vpop.f32.mrb[3].mxu1 }
 0x4d9   :  { %v7737_v14 = vmax.f32 %v9205_v9, 0.0  ;;  %v7739_v42 = vmax.f32 %v9207_v22, 0.0 }
 0x4da   :  { %v7740_v31 = vpack.c.bf16 %v7736_v27, %v7736_v27  ;;  %v7742_v25 = vpack.c.bf16 %v7738_v11, %v7738_v11 }
 0x4db   :  { %v7741_v20 = vpack.c.bf16 %v7737_v14, %v7737_v14  ;;  %v7743_v30 = vpack.c.bf16 %v7739_v42, %v7739_v42 }
 0x4dd   :  { %8039 = vmatprep.mubr.bf16.mxu0 %v7741_v20  ;;  %8079 = vmatprep.mubr.bf16.mxu1 %v7743_v30 }
 0x4de   :  { %8040 = vmatmul.mubr.bf16.vlgmr.msra.gmra.mrb[4].mxu0 %v7740_v31  ;;  %8080 = vmatmul.mubr.bf16.vlgmr.msra.gmra.mrb[4].mxu1 %v7742_v25 }
 0x5b1   :  { %v9176_v23 = vpop.f32.mrb[4].mxu0  ;;  %v9198_v26 = vpop.f32.mrb[4].mxu1 }
 0x5b2   :  { %v9177_v37 = vpop.f32.mrb[5].mxu0  ;;  %v9199_v49 = vpop.f32.mrb[5].mxu1 }
 0x5b3   :  { %v9178_v13 = vadd.f32 %v9177_v37, %v9176_v23  ;;  %v9200_v21 = vadd.f32 %v9199_v49, %v9198_v26  ;;  %v9179_v39 = vpop.f32.mrb[6].mxu0  ;;  %v9201_v33 = vpop.f32.mrb[6].mxu1 }
 0x5b4   :  { %v9180_v32 = vpop.f32.mrb[7].mxu0  ;;  %v9202_v40 = vpop.f32.mrb[7].mxu1 }
 0x5b5   :  { %v8042_v41 = vadd.f32 %v9178_v13, %v9127_v36 }
 0x5b7   :  { %v8082_v34 = vadd.f32 %v9200_v21, %v8042_v41 }
 0x5b9   :  { %8088 = vst.msk [vmem:[#allocation2] sm:$0x3] %vm8087_vm0, %v8082_v34 }
 0x5ba   :  { %10915 = shalt.err (!%p10912_p4)
}
 0x5bb   :  { %s10916_s20 = scalar_lea.hbm %s14338_s5, 32 }
 0x5bc   :  { %p10917_p5 = scmp.ne.s32.totalorder %s14338_s5, %s10916_s20  ;;  %p10920_p6 = scmp.lt.u32.totalorder %s10916_s20, %s14338_s5 }
 0x5be   :  { %p10922_p7 = pnand %p10920_p6, %p10917_p5 }
 0x5c0   :  { %10925 = shalt.err (!%p10922_p7)
}
 0x5c1   :  { %8098 = dma.vmem_to_hbm [thread:$0]  %s8096_s17, 32, %s14338_s5, [#allocation3]  }
 0x5c2   :  { %10926 = dma.done.wait [#allocation3], 32  }
 0x5c3   :  { %10927 = vsyncadd [#allocation3], 4294967264 }
 0x5c4   :  { %8102 = vsyncpa [#allocation3], 1 }

</bundles_post_ra>
